<compile_context>
chip_gen: v7x
topology: tpu7x:2x2x1
jax: 0.10.0
libtpu: 0.0.40
codegen_flags: <defaults>
</compile_context>

<pallas_src>
import functools

import jax
import jax.numpy as jnp
from jax.experimental import pallas as pl
from jax.experimental.pallas import tpu as pltpu

EPS = 1e-5
MATMUL_DTYPE = jnp.float32   # jnp.bfloat16 trades ~1e-2 abs error for MXU speed


# ---------------------------------------------------------------------------
# The Pallas kernel: whole forward pass of `Res` on 2-D lane-dense slabs
# ---------------------------------------------------------------------------
def _res_kernel(xp_ref, w1_ref, w2_ref, s1t_ref, bn1_ref, bn2_ref,
                out_ref, yz_ref, *, N, Np, H, W, P, K, C, Cp, Cf1p, Cf2p):
  f32 = jnp.float32
  Hp = H + 2 * P
  R = H * Np                      # interior rows (row = h*Np + n)
  L0 = W * Cp                     # input / output lanes
  L1 = W * Cf1p                   # fused conv1-output lanes
  L2 = W * Cf2p                   # fused conv2-output lanes
  inv_count = 1.0 / float(N * H * W)   # real elements per channel (pads are 0)

  # ---- index masks / 0-1 matrices built on-core (iota + bit ops only) ------
  # Rows belonging to batch-padding entries (n >= N) must not leak into BN2.
  r_ids = jax.lax.broadcasted_iota(jnp.int32, (R, 1), 0)
  rowmask = (jnp.bitwise_and(r_ids, Np - 1) < N).astype(f32)

  # BN2 channel-gather matrix: s2t[l, c] = 1 iff lane l carries channel c.
  l2 = jax.lax.broadcasted_iota(jnp.int32, (L2, Cf2p), 0)
  c2 = jax.lax.broadcasted_iota(jnp.int32, (L2, Cf2p), 1)
  s2t = (jnp.bitwise_and(l2, Cf2p - 1) == c2).astype(f32)

  # Branch-fold matrix (L2 -> L0): sums the main (c) and Res2 (c+C) channels of
  # the fused conv2 output into output channel c of the same w, zero elsewhere.
  li = jax.lax.broadcasted_iota(jnp.int32, (L2, L0), 0)
  lo = jax.lax.broadcasted_iota(jnp.int32, (L2, L0), 1)
  ci = jnp.bitwise_and(li, Cf2p - 1)
  co = jnp.bitwise_and(lo, Cp - 1)
  same_w = (li - ci) == (lo - co)          # valid because Cf2p == Cp
  fold = (same_w & ((ci == co) | (ci == co + C)) & (co < C)).astype(f32)

  def conv(src_ref, w_ref):
    # K row-shifted (8-aligned) views stacked along the contraction dim ->
    # one deep MXU matmul per conv (no per-tap MRF pops / VPU accumulation).
    taps = [src_ref[kh * Np:kh * Np + R, :] for kh in range(K)]
    lhs = jnp.concatenate(taps, axis=1).astype(MATMUL_DTYPE)
    return jnp.dot(lhs, w_ref[...], preferred_element_type=f32)

  def bn(a, gather, gamma, beta):
    # One-pass training-mode BatchNorm on the flat slab.  Per-channel stats via
    # a 0/1 gather matmul; the spread back to lanes reuses the same matrix with
    # a transposed contraction (so only one matrix is needed per BN).
    colsum = jnp.sum(a, axis=0, keepdims=True)
    colsumsq = jnp.sum(a * a, axis=0, keepdims=True)
    chsum = jnp.dot(colsum, gather, preferred_element_type=f32)
    chsumsq = jnp.dot(colsumsq, gather, preferred_element_type=f32)
    mean = chsum * inv_count
    var = jnp.maximum(chsumsq * inv_count - mean * mean, 0.0)   # clamp: no NaN
    scale_c = gamma * jax.lax.rsqrt(var + EPS)
    shift_c = beta - mean * scale_c
    scale_l = jnp.einsum("xc,lc->xl", scale_c, gather,
                         preferred_element_type=f32)
    shift_l = jnp.einsum("xc,lc->xl", shift_c, gather,
                         preferred_element_type=f32)
    return a * scale_l + shift_l

  # conv1 of both branches (fused along Cout) -> bn1 -> relu.  Zero the rows of
  # batch-padding entries so they cannot pollute BN2's statistics.
  a1 = conv(xp_ref, w1_ref)                                       # (R, L1)
  y1z1 = jnp.maximum(
      bn(a1, s1t_ref[...], bn1_ref[0:1, :], bn1_ref[1:2, :]), 0.0) * rowmask

  # Row-halo-padded fused intermediate slab: zero only the 2*P*Np halo rows.
  yz_ref[0:P * Np, :] = jnp.zeros((P * Np, L1), f32)
  yz_ref[(P + H) * Np:Hp * Np, :] = jnp.zeros((P * Np, L1), f32)
  yz_ref[P * Np:(P + H) * Np, :] = y1z1

  # conv2 of both branches (block-diagonal over Cin, fused along Cout) -> bn2.
  a2 = conv(yz_ref, w2_ref)                                       # (R, L2)
  t2 = bn(a2, s2t, bn2_ref[0:1, :], bn2_ref[1:2, :])

  # Residual combine: fold (y2 + z2) onto the C real lanes per pixel, add X,
  # relu.  Lane-dense (multiple-of-128) output store.
  yz_sum = jnp.dot(t2, fold, preferred_element_type=f32)          # (R, L0)
  out_ref[...] = jnp.maximum(xp_ref[P * Np:(P + H) * Np, :] + yz_sum, 0.0)


# ---------------------------------------------------------------------------
# Wrapper: layout plumbing + static weight-matrix construction
# ---------------------------------------------------------------------------
def _round_up(x, m):
  return (x + m - 1) // m * m


def _pow2_at_least(x, lo):
  return 1 << (max(x, lo) - 1).bit_length()


def _banded_stack(w_hwio, W, P):
  """(K,K,Cin,Cout) HWIO conv weight -> stacked band matrix (K*W*Cin, W*Cout).

  The W-direction convolution (including its zero padding) becomes a matmul
  with a block-banded matrix; the K kh taps are stacked along the contraction
  dim so each conv is a single deep MXU matmul in the kernel.
  """
  Kh, Kw, Ci, Co = w_hwio.shape
  wi = jnp.arange(W)
  wo = jnp.arange(W)
  kw = jnp.arange(Kw)
  sel = (wi[None, :, None] - wo[None, None, :] + P
         == kw[:, None, None]).astype(jnp.float32)                # (Kw, W, W)
  band = jnp.einsum("aio,hacd->hicod", sel, w_hwio.astype(jnp.float32))
  return band.reshape(Kh * W * Ci, W * Co)


def res_forward(x_nchw, params, *, kernel_size, padding, inter_channels=32):
  """Runs Res.forward.  x_nchw: (N, C, H, W) float32."""
  K, P, I = kernel_size, padding, inter_channels
  assert 2 * P == K - 1, "residual add requires 'same' spatial shape"
  f32 = jnp.float32

  N, C, H, W = x_nchw.shape
  Np = _pow2_at_least(N, 8)        # sublane-aligned per-tap row offsets
  Cp = _pow2_at_least(C, 8)        # lane-dense input/output slab
  Cf1 = C + I
  Cf1p = _round_up(Cf1, 8)
  Cf2 = 2 * C
  Cf2p = _pow2_at_least(Cf2, 8)
  Hp = H + 2 * P

  # Layout preconditions of this kernel (hold for the Res(4, 3, 1) config).
  assert (W * Cp) % 128 == 0 and (W * Cf1p) % 128 == 0 and (W * Cf2p) % 128 == 0
  # In-kernel branch fold assumes the fused conv2 group equals the output group.
  # TODO(synk): pass a general fold matrix when 2*C != padded output group.
  assert Cf2p == Cp and Cf2 == Cf2p

  # Lane-dense 2-D slab: row = h*Np + n, lane = w*Cp + c.  Halo rows and all
  # channel/batch padding are zero; zero inputs x zero-padded weights keep the
  # BN statistics exact with inv_count = 1/(N*H*W).
  x = jnp.transpose(x_nchw, (0, 2, 3, 1)).astype(f32)              # NCHW->NHWC
  xpad = jnp.pad(x, ((0, Np - N), (P, P), (0, 0), (0, Cp - C)))    # (Np,Hp,W,Cp)
  xp2 = jnp.transpose(xpad, (1, 0, 2, 3)).reshape(Hp * Np, W * Cp)

  # Fuse the two branches' conv weights (conv1 along Cout; conv2 block-diagonal
  # over Cin with both branch outputs concatenated along Cout), pad channels.
  w1f = jnp.concatenate([params["w1"], params["rw1"]], axis=3)      # (K,K,C,Cf1)
  w1f = jnp.pad(w1f, ((0, 0), (0, 0), (0, Cp - C), (0, Cf1p - Cf1)))
  w2m = jnp.pad(params["w2"], ((0, 0), (0, 0), (0, Cf1p - C), (0, 0)))
  w2r = jnp.pad(params["rw2"], ((0, 0), (0, 0), (C, Cf1p - C - I), (0, 0)))
  w2f = jnp.concatenate([w2m, w2r], axis=3)                         # (K,K,Cf1p,2C)
  w2f = jnp.pad(w2f, ((0, 0), (0, 0), (0, 0), (0, Cf2p - Cf2)))
  # Conv biases are dropped: training-mode BatchNorm cancels them exactly.

  wstack1 = _banded_stack(w1f, W, P).astype(MATMUL_DTYPE)   # (K*W*Cp,   W*Cf1p)
  wstack2 = _banded_stack(w2f, W, P).astype(MATMUL_DTYPE)   # (K*W*Cf1p, W*Cf2p)
  # TODO(synk): for large W, switch to per-W-tile bands (or im2col) to drop the
  # (W-K)/W structural-zero FLOPs and the O(W^2) band-weight footprint.

  # BN1 channel-gather matrix (lane -> channel); BN2/fold are built in-kernel.
  lane_ch = jnp.arange(W * Cf1p) % Cf1p
  s1t = (lane_ch[:, None] == jnp.arange(Cf1p)[None, :]).astype(f32)

  def packed_bn(g_list, b_list, n):
    def pad1(v):
      v = jnp.concatenate([p.astype(f32) for p in v])
      return jnp.concatenate([v, jnp.zeros((n - v.shape[0],), f32)])
    return jnp.stack([pad1(g_list), pad1(b_list)])          # (2, n): gamma,beta

  bn1p = packed_bn([params["g1"], params["rg1"]],
                   [params["be1"], params["rbe1"]], Cf1p)
  bn2p = packed_bn([params["g2"], params["rg2"]],
                   [params["be2"], params["rbe2"]], Cf2p)

  vmem = pl.BlockSpec(memory_space=pltpu.MemorySpace.VMEM)
  kernel = functools.partial(_res_kernel, N=N, Np=Np, H=H, W=W, P=P, K=K,
                             C=C, Cp=Cp, Cf1p=Cf1p, Cf2p=Cf2p)
  # TODO(synk): for non-toy (N,H,W) add a halo-overlapped grid over the h*Np
  # row axis (marked "parallel" so v7x's two TensorCores split it) plus a
  # separate BN-stats pass, and size tiles per arch (<= ~56 MiB on v7x's
  # 64 MiB VMEM; larger tiles + raised vmem_limit_bytes on v5e/v6e's 128 MiB).
  out2 = pl.pallas_call(
      kernel,
      out_shape=jax.ShapeDtypeStruct((H * Np, W * Cp), f32),
      in_specs=[vmem] * 6,
      out_specs=vmem,
      scratch_shapes=[
          pltpu.VMEM((Hp * Np, W * Cf1p), f32),   # row-halo-padded fused y1/z1
      ],
      compiler_params=pltpu.CompilerParams(vmem_limit_bytes=32 * 1024 * 1024),
  )(xp2, wstack1, wstack2, s1t, bn1p, bn2p)

  out = out2.reshape(H, Np, W, Cp)
  out = jnp.transpose(out, (1, 3, 0, 2))[:N, :C]                   # -> NCHW
  return out


# ---------------------------------------------------------------------------
# Pure-JAX reference (for correctness check; includes conv biases)
# ---------------------------------------------------------------------------
def _conv_ref(x, w, b, p):
  y = jax.lax.conv_general_dilated(
      x, w, window_strides=(1, 1), padding=[(p, p), (p, p)],
      dimension_numbers=("NHWC", "HWIO", "NHWC"))
  return y + b


def _bn_ref(x, gamma, beta):
  mean = jnp.mean(x, axis=(0, 1, 2), keepdims=True)
  var = jnp.mean(jnp.square(x - mean), axis=(0, 1, 2), keepdims=True)
  return (x - mean) * (gamma * jax.lax.rsqrt(var + EPS)) + beta


def res_forward_ref(x_nchw, params, *, padding):
  x = jnp.transpose(x_nchw, (0, 2, 3, 1)).astype(jnp.float32)
  y = jax.nn.relu(_bn_ref(_conv_ref(x, params["w1"], params["b1"], padding),
                          params["g1"], params["be1"]))
  y = _bn_ref(_conv_ref(y, params["w2"], params["b2"], padding),
              params["g2"], params["be2"])
  z = jax.nn.relu(_bn_ref(_conv_ref(x, params["rw1"], params["rb1"], padding),
                          params["rg1"], params["rbe1"]))
  z = _bn_ref(_conv_ref(z, params["rw2"], params["rb2"], padding),
              params["rg2"], params["rbe2"])
  out = jax.nn.relu(x + y + z)
  return jnp.transpose(out, (0, 3, 1, 2))


# ---------------------------------------------------------------------------
# Deterministic synthetic parameters (HWIO conv weights, flat bn params)
# ---------------------------------------------------------------------------
def make_params(key, in_channels, kernel_size, inter_channels=32):
  C, K, I = in_channels, kernel_size, inter_channels
  ks = jax.random.split(key, 16)
  f32 = jnp.float32

  def nrm(k, shape, s):
    return (jax.random.normal(k, shape) * s).astype(f32)

  def gam(k, n):
    return (1.0 + 0.1 * jax.random.normal(k, (n,))).astype(f32)

  return {
      # main branch conv1/bn1, conv2/bn2  (C -> C -> C)
      "w1": nrm(ks[0], (K, K, C, C), 0.2), "b1": nrm(ks[1], (C,), 0.05),
      "g1": gam(ks[2], C), "be1": nrm(ks[3], (C,), 0.1),
      "w2": nrm(ks[4], (K, K, C, C), 0.2), "b2": nrm(ks[5], (C,), 0.05),
      "g2": gam(ks[6], C), "be2": nrm(ks[7], (C,), 0.1),
      # Res2: conv1/bn1 (C -> 32), conv2/bn2 (32 -> C)
      "rw1": nrm(ks[8], (K, K, C, I), 0.2), "rb1": nrm(ks[9], (I,), 0.05),
      "rg1": gam(ks[10], I), "rbe1": nrm(ks[11], (I,), 0.1),
      "rw2": nrm(ks[12], (K, K, I, C), 0.1), "rb2": nrm(ks[13], (C,), 0.05),
      "rg2": gam(ks[14], C), "rbe2": nrm(ks[15], (C,), 0.1),
  }


if __name__ == "__main__":
  # Res(in_channels=4, kernel_size=3, padding=1) at small shapes.
  N, C, H, W = 2, 4, 16, 16
  K, P = 3, 1

  key = jax.random.PRNGKey(0)
  kx, kp = jax.random.split(key)
  x = jax.random.normal(kx, (N, C, H, W), dtype=jnp.float32)
  params = make_params(kp, in_channels=C, kernel_size=K)

  out = res_forward(x, params, kernel_size=K, padding=P)
  out = jax.block_until_ready(out)

  ref = jax.block_until_ready(res_forward_ref(x, params, padding=P))
  assert out.shape == (N, C, H, W), out.shape
  assert jnp.allclose(out, ref, atol=1e-3, rtol=1e-3), float(
      jnp.max(jnp.abs(out - ref)))

  print("KERNEL_OK")
</pallas_src>

<mosaic_0001>
module attributes {stable_mosaic.version = 11 : i64} {
  func.func @_res_kernel(%arg0: memref<144x128xf32, #tpu.memory_space<vmem>>, %arg1: memref<384x640xf32, #tpu.memory_space<vmem>>, %arg2: memref<1920x128xf32, #tpu.memory_space<vmem>>, %arg3: memref<640x40xf32, #tpu.memory_space<vmem>>, %arg4: memref<2x40xf32, #tpu.memory_space<vmem>>, %arg5: memref<2x8xf32, #tpu.memory_space<vmem>>, %arg6: memref<128x128xf32, #tpu.memory_space<vmem>>, %arg7: memref<144x640xf32, #tpu.memory_space<vmem>>) attributes {dimension_semantics = [], scalar_prefetch = 0 : i64, scratch_operands = 1 : i64, tpu.core_type = #tpu.core_type<tc>} {
    %0 = tpu.iota {dimensions = array<i32: 0>} : vector<128x1xi32>
    %c7_i32 = arith.constant 7 : i32
    %1 = vector.broadcast %c7_i32 : i32 to vector<128x1xi32>
    %2 = arith.andi %0, %1 : vector<128x1xi32>
    %c2_i32 = arith.constant 2 : i32
    %3 = vector.broadcast %c2_i32 : i32 to vector<128x1xi32>
    %4 = arith.cmpi slt, %2, %3 : vector<128x1xi32>
    %5 = arith.extui %4 : vector<128x1xi1> to vector<128x1xi32>
    %6 = arith.sitofp %5 : vector<128x1xi32> to vector<128x1xf32>
    %7 = tpu.iota {dimensions = array<i32: 0>} : vector<128x8xi32>
    %8 = tpu.iota {dimensions = array<i32: 1>} : vector<128x8xi32>
    %c7_i32_0 = arith.constant 7 : i32
    %9 = vector.broadcast %c7_i32_0 : i32 to vector<128x8xi32>
    %10 = arith.andi %7, %9 : vector<128x8xi32>
    %11 = arith.cmpi eq, %10, %8 : vector<128x8xi32>
    %12 = arith.extui %11 : vector<128x8xi1> to vector<128x8xi32>
    %13 = arith.sitofp %12 : vector<128x8xi32> to vector<128x8xf32>
    %14 = tpu.iota {dimensions = array<i32: 0>} : vector<128x128xi32>
    %15 = tpu.iota {dimensions = array<i32: 1>} : vector<128x128xi32>
    %c7_i32_1 = arith.constant 7 : i32
    %16 = vector.broadcast %c7_i32_1 : i32 to vector<128x128xi32>
    %17 = arith.andi %14, %16 : vector<128x128xi32>
    %c7_i32_2 = arith.constant 7 : i32
    %18 = vector.broadcast %c7_i32_2 : i32 to vector<128x128xi32>
    %19 = arith.andi %15, %18 : vector<128x128xi32>
    %20 = arith.subi %14, %17 : vector<128x128xi32>
    %21 = arith.subi %15, %19 : vector<128x128xi32>
    %22 = arith.cmpi eq, %20, %21 : vector<128x128xi32>
    %23 = arith.cmpi eq, %17, %19 : vector<128x128xi32>
    %c4_i32 = arith.constant 4 : i32
    %24 = vector.broadcast %c4_i32 : i32 to vector<128x128xi32>
    %25 = arith.addi %19, %24 : vector<128x128xi32>
    %26 = arith.cmpi eq, %17, %25 : vector<128x128xi32>
    %27 = arith.ori %23, %26 : vector<128x128xi1>
    %28 = arith.andi %22, %27 : vector<128x128xi1>
    %c4_i32_3 = arith.constant 4 : i32
    %29 = vector.broadcast %c4_i32_3 : i32 to vector<128x128xi32>
    %30 = arith.cmpi slt, %19, %29 : vector<128x128xi32>
    %31 = arith.andi %28, %30 : vector<128x128xi1>
    %32 = arith.extui %31 : vector<128x128xi1> to vector<128x128xi32>
    %33 = arith.sitofp %32 : vector<128x128xi32> to vector<128x128xf32>
    %c0 = arith.constant 0 : index
    %c0_4 = arith.constant 0 : index
    %34 = vector.load %arg0[%c0, %c0_4] : memref<144x128xf32, #tpu.memory_space<vmem>>, vector<128x128xf32>
    %c8 = arith.constant 8 : index
    %c0_5 = arith.constant 0 : index
    %35 = vector.load %arg0[%c8, %c0_5] : memref<144x128xf32, #tpu.memory_space<vmem>>, vector<128x128xf32>
    %c16 = arith.constant 16 : index
    %c0_6 = arith.constant 0 : index
    %36 = vector.load %arg0[%c16, %c0_6] : memref<144x128xf32, #tpu.memory_space<vmem>>, vector<128x128xf32>
    %37 = tpu.concatenate %34, %35, %36 in 1 : vector<128x128xf32>, vector<128x128xf32>, vector<128x128xf32> -> vector<128x384xf32>
    %c0_7 = arith.constant 0 : index
    %c0_8 = arith.constant 0 : index
    %38 = vector.load %arg1[%c0_7, %c0_8] : memref<384x640xf32, #tpu.memory_space<vmem>>, vector<384x640xf32>
    %cst = arith.constant dense<0.000000e+00> : vector<128x640xf32>
    %39 = tpu.matmul %37, %38, %cst {dimension_numbers = #tpu.dot_dimension_numbers<[1], [0], [0], [1], [0, 0, 1, 1], [], []>} : vector<128x384xf32>, vector<384x640xf32>, vector<128x640xf32> -> vector<128x640xf32>
    %c0_9 = arith.constant 0 : index
    %c0_10 = arith.constant 0 : index
    %40 = vector.load %arg3[%c0_9, %c0_10] : memref<640x40xf32, #tpu.memory_space<vmem>>, vector<640x40xf32>
    %c0_11 = arith.constant 0 : index
    %c0_12 = arith.constant 0 : index
    %41 = vector.load %arg4[%c0_11, %c0_12] : memref<2x40xf32, #tpu.memory_space<vmem>>, vector<1x40xf32>
    %c1 = arith.constant 1 : index
    %c0_13 = arith.constant 0 : index
    %42 = vector.load %arg4[%c1, %c0_13] : memref<2x40xf32, #tpu.memory_space<vmem>>, vector<1x40xf32>
    %cst_14 = arith.constant dense<0.000000e+00> : vector<640xf32>
    %43 = vector.multi_reduction <add>, %39, %cst_14 [0] : vector<128x640xf32> to vector<640xf32>
    %44 = vector.shape_cast %43 : vector<640xf32> to vector<1x640xf32>
    %45 = arith.mulf %39, %39 : vector<128x640xf32>
    %cst_15 = arith.constant dense<0.000000e+00> : vector<640xf32>
    %46 = vector.multi_reduction <add>, %45, %cst_15 [0] : vector<128x640xf32> to vector<640xf32>
    %47 = vector.shape_cast %46 : vector<640xf32> to vector<1x640xf32>
    %cst_16 = arith.constant dense<0.000000e+00> : vector<1x40xf32>
    %48 = tpu.matmul %44, %40, %cst_16 {dimension_numbers = #tpu.dot_dimension_numbers<[1], [0], [0], [1], [0, 0, 1, 1], [], []>} : vector<1x640xf32>, vector<640x40xf32>, vector<1x40xf32> -> vector<1x40xf32>
    %cst_17 = arith.constant dense<0.000000e+00> : vector<1x40xf32>
    %49 = tpu.matmul %47, %40, %cst_17 {dimension_numbers = #tpu.dot_dimension_numbers<[1], [0], [0], [1], [0, 0, 1, 1], [], []>} : vector<1x640xf32>, vector<640x40xf32>, vector<1x40xf32> -> vector<1x40xf32>
    %cst_18 = arith.constant 0.001953125 : f32
    %50 = vector.broadcast %cst_18 : f32 to vector<1x40xf32>
    %51 = arith.mulf %48, %50 : vector<1x40xf32>
    %cst_19 = arith.constant 0.001953125 : f32
    %52 = vector.broadcast %cst_19 : f32 to vector<1x40xf32>
    %53 = arith.mulf %49, %52 : vector<1x40xf32>
    %54 = arith.mulf %51, %51 : vector<1x40xf32>
    %55 = arith.subf %53, %54 : vector<1x40xf32>
    %cst_20 = arith.constant 0.000000e+00 : f32
    %56 = vector.broadcast %cst_20 : f32 to vector<1x40xf32>
    %57 = arith.maximumf %55, %56 : vector<1x40xf32>
    %cst_21 = arith.constant 9.99999974E-6 : f32
    %58 = vector.broadcast %cst_21 : f32 to vector<1x40xf32>
    %59 = arith.addf %57, %58 : vector<1x40xf32>
    %60 = math.rsqrt %59 : vector<1x40xf32>
    %61 = arith.mulf %41, %60 : vector<1x40xf32>
    %62 = arith.mulf %51, %61 : vector<1x40xf32>
    %63 = arith.subf %42, %62 : vector<1x40xf32>
    "tpu.trace_start"() <{level = 10 : i32, message = "xc,lc->xl"}> : () -> ()
    %cst_22 = arith.constant dense<0.000000e+00> : vector<1x640xf32>
    %64 = tpu.matmul %61, %40, %cst_22 {dimension_numbers = #tpu.dot_dimension_numbers<[1], [1], [0], [0], [0, 0, 1, 0], [], []>} : vector<1x40xf32>, vector<640x40xf32>, vector<1x640xf32> -> vector<1x640xf32>
    %cst_23 = arith.constant dense<0.000000e+00> : vector<1x640xf32>
    %65 = tpu.matmul %63, %40, %cst_23 {dimension_numbers = #tpu.dot_dimension_numbers<[1], [1], [0], [0], [0, 0, 1, 0], [], []>} : vector<1x40xf32>, vector<640x40xf32>, vector<1x640xf32> -> vector<1x640xf32>
    "tpu.trace_stop"() : () -> ()
    %66 = vector.broadcast %64 : vector<1x640xf32> to vector<128x640xf32>
    %67 = arith.mulf %39, %66 : vector<128x640xf32>
    %68 = vector.broadcast %65 : vector<1x640xf32> to vector<128x640xf32>
    %69 = arith.addf %67, %68 : vector<128x640xf32>
    %cst_24 = arith.constant 0.000000e+00 : f32
    %70 = vector.broadcast %cst_24 : f32 to vector<128x640xf32>
    %71 = arith.maximumf %69, %70 : vector<128x640xf32>
    %72 = vector.broadcast %6 : vector<128x1xf32> to vector<128x640xf32>
    %73 = arith.mulf %71, %72 : vector<128x640xf32>
    %cst_25 = arith.constant 0.000000e+00 : f32
    %74 = vector.broadcast %cst_25 : f32 to vector<8x640xf32>
    %c0_26 = arith.constant 0 : index
    %c0_27 = arith.constant 0 : index
    %75 = vector.load %arg7[%c0_26, %c0_27] : memref<144x640xf32, #tpu.memory_space<vmem>>, vector<8x640xf32>
    tpu.vector_store %arg7[%c0_26, %c0_27], %74 {strides = array<i32>} : memref<144x640xf32, #tpu.memory_space<vmem>>, vector<8x640xf32>,
    %cst_28 = arith.constant 0.000000e+00 : f32
    %76 = vector.broadcast %cst_28 : f32 to vector<8x640xf32>
    %c136 = arith.constant 136 : index
    %c0_29 = arith.constant 0 : index
    %77 = vector.load %arg7[%c136, %c0_29] : memref<144x640xf32, #tpu.memory_space<vmem>>, vector<8x640xf32>
    tpu.vector_store %arg7[%c136, %c0_29], %76 {strides = array<i32>} : memref<144x640xf32, #tpu.memory_space<vmem>>, vector<8x640xf32>,
    %c8_30 = arith.constant 8 : index
    %c0_31 = arith.constant 0 : index
    %78 = vector.load %arg7[%c8_30, %c0_31] : memref<144x640xf32, #tpu.memory_space<vmem>>, vector<128x640xf32>
    tpu.vector_store %arg7[%c8_30, %c0_31], %73 {strides = array<i32>} : memref<144x640xf32, #tpu.memory_space<vmem>>, vector<128x640xf32>,
    %c0_32 = arith.constant 0 : index
    %c0_33 = arith.constant 0 : index
    %79 = vector.load %arg7[%c0_32, %c0_33] : memref<144x640xf32, #tpu.memory_space<vmem>>, vector<128x640xf32>
    %c8_34 = arith.constant 8 : index
    %c0_35 = arith.constant 0 : index
    %80 = vector.load %arg7[%c8_34, %c0_35] : memref<144x640xf32, #tpu.memory_space<vmem>>, vector<128x640xf32>
    %c16_36 = arith.constant 16 : index
    %c0_37 = arith.constant 0 : index
    %81 = vector.load %arg7[%c16_36, %c0_37] : memref<144x640xf32, #tpu.memory_space<vmem>>, vector<128x640xf32>
    %82 = tpu.concatenate %79, %80, %81 in 1 : vector<128x640xf32>, vector<128x640xf32>, vector<128x640xf32> -> vector<128x1920xf32>
    %c0_38 = arith.constant 0 : index
    %c0_39 = arith.constant 0 : index
    %83 = vector.load %arg2[%c0_38, %c0_39] : memref<1920x128xf32, #tpu.memory_space<vmem>>, vector<1920x128xf32>
    %cst_40 = arith.constant dense<0.000000e+00> : vector<128x128xf32>
    %84 = tpu.matmul %82, %83, %cst_40 {dimension_numbers = #tpu.dot_dimension_numbers<[1], [0], [0], [1], [0, 0, 1, 1], [], []>} : vector<128x1920xf32>, vector<1920x128xf32>, vector<128x128xf32> -> vector<128x128xf32>
    %c0_41 = arith.constant 0 : index
    %c0_42 = arith.constant 0 : index
    %85 = vector.load %arg5[%c0_41, %c0_42] : memref<2x8xf32, #tpu.memory_space<vmem>>, vector<1x8xf32>
    %c1_43 = arith.constant 1 : index
    %c0_44 = arith.constant 0 : index
    %86 = vector.load %arg5[%c1_43, %c0_44] : memref<2x8xf32, #tpu.memory_space<vmem>>, vector<1x8xf32>
    %cst_45 = arith.constant dense<0.000000e+00> : vector<128xf32>
    %87 = vector.multi_reduction <add>, %84, %cst_45 [0] : vector<128x128xf32> to vector<128xf32>
    %88 = vector.shape_cast %87 : vector<128xf32> to vector<1x128xf32>
    %89 = arith.mulf %84, %84 : vector<128x128xf32>
    %cst_46 = arith.constant dense<0.000000e+00> : vector<128xf32>
    %90 = vector.multi_reduction <add>, %89, %cst_46 [0] : vector<128x128xf32> to vector<128xf32>
    %91 = vector.shape_cast %90 : vector<128xf32> to vector<1x128xf32>
    %cst_47 = arith.constant dense<0.000000e+00> : vector<1x8xf32>
    %92 = tpu.matmul %88, %13, %cst_47 {dimension_numbers = #tpu.dot_dimension_numbers<[1], [0], [0], [1], [0, 0, 1, 1], [], []>} : vector<1x128xf32>, vector<128x8xf32>, vector<1x8xf32> -> vector<1x8xf32>
    %cst_48 = arith.constant dense<0.000000e+00> : vector<1x8xf32>
    %93 = tpu.matmul %91, %13, %cst_48 {dimension_numbers = #tpu.dot_dimension_numbers<[1], [0], [0], [1], [0, 0, 1, 1], [], []>} : vector<1x128xf32>, vector<128x8xf32>, vector<1x8xf32> -> vector<1x8xf32>
    %cst_49 = arith.constant 0.001953125 : f32
    %94 = vector.broadcast %cst_49 : f32 to vector<1x8xf32>
    %95 = arith.mulf %92, %94 : vector<1x8xf32>
    %cst_50 = arith.constant 0.001953125 : f32
    %96 = vector.broadcast %cst_50 : f32 to vector<1x8xf32>
    %97 = arith.mulf %93, %96 : vector<1x8xf32>
    %98 = arith.mulf %95, %95 : vector<1x8xf32>
    %99 = arith.subf %97, %98 : vector<1x8xf32>
    %cst_51 = arith.constant 0.000000e+00 : f32
    %100 = vector.broadcast %cst_51 : f32 to vector<1x8xf32>
    %101 = arith.maximumf %99, %100 : vector<1x8xf32>
    %cst_52 = arith.constant 9.99999974E-6 : f32
    %102 = vector.broadcast %cst_52 : f32 to vector<1x8xf32>
    %103 = arith.addf %101, %102 : vector<1x8xf32>
    %104 = math.rsqrt %103 : vector<1x8xf32>
    %105 = arith.mulf %85, %104 : vector<1x8xf32>
    %106 = arith.mulf %95, %105 : vector<1x8xf32>
    %107 = arith.subf %86, %106 : vector<1x8xf32>
    "tpu.trace_start"() <{level = 10 : i32, message = "xc,lc->xl"}> : () -> ()
    %cst_53 = arith.constant dense<0.000000e+00> : vector<1x128xf32>
    %108 = tpu.matmul %105, %13, %cst_53 {dimension_numbers = #tpu.dot_dimension_numbers<[1], [1], [0], [0], [0, 0, 1, 0], [], []>} : vector<1x8xf32>, vector<128x8xf32>, vector<1x128xf32> -> vector<1x128xf32>
    %cst_54 = arith.constant dense<0.000000e+00> : vector<1x128xf32>
    %109 = tpu.matmul %107, %13, %cst_54 {dimension_numbers = #tpu.dot_dimension_numbers<[1], [1], [0], [0], [0, 0, 1, 0], [], []>} : vector<1x8xf32>, vector<128x8xf32>, vector<1x128xf32> -> vector<1x128xf32>
    "tpu.trace_stop"() : () -> ()
    %110 = vector.broadcast %108 : vector<1x128xf32> to vector<128x128xf32>
    %111 = arith.mulf %84, %110 : vector<128x128xf32>
    %112 = vector.broadcast %109 : vector<1x128xf32> to vector<128x128xf32>
    %113 = arith.addf %111, %112 : vector<128x128xf32>
    %cst_55 = arith.constant dense<0.000000e+00> : vector<128x128xf32>
    %114 = tpu.matmul %113, %33, %cst_55 {dimension_numbers = #tpu.dot_dimension_numbers<[1], [0], [0], [1], [0, 0, 1, 1], [], []>} : vector<128x128xf32>, vector<128x128xf32>, vector<128x128xf32> -> vector<128x128xf32>
    %c8_56 = arith.constant 8 : index
    %c0_57 = arith.constant 0 : index
    %115 = vector.load %arg0[%c8_56, %c0_57] : memref<144x128xf32, #tpu.memory_space<vmem>>, vector<128x128xf32>
    %116 = arith.addf %115, %114 : vector<128x128xf32>
    %cst_58 = arith.constant 0.000000e+00 : f32
    %117 = vector.broadcast %cst_58 : f32 to vector<128x128xf32>
    %118 = arith.maximumf %116, %117 : vector<128x128xf32>
    %c0_59 = arith.constant 0 : index
    %c0_60 = arith.constant 0 : index
    %119 = vector.load %arg6[%c0_59, %c0_60] : memref<128x128xf32, #tpu.memory_space<vmem>>, vector<128x128xf32>
    tpu.vector_store %arg6[%c0_59, %c0_60], %118 {strides = array<i32>} : memref<128x128xf32, #tpu.memory_space<vmem>>, vector<128x128xf32>,
    return
  }
}

</mosaic_0001>

<bundles_post_ra>
// kernel: tpu_custom_call.1
= control target key start
LH: loop header
LB: loop body
LE: loop exit
PB: predicated region body
PF: predicated region fallthrough
CT: control target
= control target key end

     0   :  { %11 = vsyncpa [#allocation4], 0  ;;  %s12670_s0 = inlined_call_operand.vmem [shape: f32[144,128], index: 0, kind: input, shape index: {}]   ;;  %s12671_s1 = inlined_call_operand.hbm [shape: f32[384,640], index: 1, kind: input, shape index: {}]   ;;  %s12672_s2 = inlined_call_operand.hbm [shape: f32[1920,128], index: 2, kind: input, shape index: {}]   ;;  %s12673_s3 = inlined_call_operand.vmem [shape: f32[640,40], index: 3, kind: input, shape index: {}]   ;;  %s12674_s4 = inlined_call_operand.vmem [shape: f32[2,40], index: 4, kind: input, shape index: {}]   ;;  %s12675_s5 = inlined_call_operand.vmem [shape: f32[2,8], index: 5, kind: input, shape index: {}]   ;;  %s12676_s6 = inlined_call_operand.hbm [shape: f32[128,128], index: 6, kind: output, shape index: {}]  }
   0x1   :  { %12 = vsyncpa [#allocation7], 0 }
   0x2   :  { %13 = vsyncpa [#allocation5], 0  ;;  %s8863_s21 = smov [#allocation3]   ;;  %s8791_s25 = scalar_lea.hbm %s12671_s1, 30720 }
   0x3   :  { %s21_s22 = sshll.u32 %s8863_s21, 4  ;;  %p8792_p0 = scmp.ne.s32.totalorder %s12671_s1, %s8791_s25  ;;  %s22_s22 = int_to_ptr.vmem [resolvable:$true] %s21_s22 }
   0x4   :  { %p8795_p1 = scmp.lt.u32.totalorder %s8791_s25, %s12671_s1 }
   0x6   :  { %p8797_p2 = pnand %p8795_p1, %p8792_p0 }
   0x8   :  { %8800 = shalt.err (!%p8797_p2)
}
   0x9   :  { %s8801_s30 = scalar_lea.vmem %s22_s22, 30720  ;;  %p8806_p4 = scmp.lt.s32.totalorder %s22_s22, %s22_s22 }
   0xa   :  { %p8802_p3 = scmp.ne.s32.totalorder %s22_s22, %s8801_s30  ;;  %p8807_p5 = scmp.lt.s32.totalorder %s8801_s30, %s8801_s30 }
   0xc   :  { %p8808_p6 = por %p8807_p5, %p8806_p4 }
   0xe   :  { %p8809_p7 = pnand %p8808_p6, %p8802_p3 }
  0x10   :  { %8812 = shalt.err (!%p8809_p7)
}
  0x11   :  { %s8864_s7 = smov 640   ;;  %s8865_s8 = smov 40  }
  0x12   :  { %27 = dma.hbm_to_vmem [thread:$0]  %s12671_s1, 30720, %s22_s22, [#allocation4], %s8864_s7, %s8864_s7, %s8865_s8  }
  0x13   :  { %s8866_s11 = smov [#allocation6]   ;;  %s8813_s15 = scalar_lea.hbm %s12672_s2, 30720 }
  0x14   :  { %s33_s12 = sshll.u32 %s8866_s11, 4  ;;  %p8814_p8 = scmp.ne.s32.totalorder %s12672_s2, %s8813_s15  ;;  %s34_s12 = int_to_ptr.vmem [resolvable:$true] %s33_s12 }
  0x15   :  { %p8817_p9 = scmp.lt.u32.totalorder %s8813_s15, %s12672_s2 }
  0x17   :  { %p8819_p10 = pnand %p8817_p9, %p8814_p8 }
  0x19   :  { %8822 = shalt.err (!%p8819_p10)
}
  0x1a   :  { %s8823_s20 = scalar_lea.vmem %s34_s12, 30720  ;;  %p8828_p12 = scmp.lt.s32.totalorder %s34_s12, %s34_s12 }
  0x1b   :  { %p8824_p11 = scmp.ne.s32.totalorder %s34_s12, %s8823_s20  ;;  %p8829_p13 = scmp.lt.s32.totalorder %s8823_s20, %s8823_s20 }
  0x1d   :  { %p8830_p0 = por %p8829_p13, %p8828_p12 }
  0x1f   :  { %p8831_p1 = pnand %p8830_p0, %p8824_p11 }
  0x21   :  { %8834 = shalt.err (!%p8831_p1)
}
  0x22   :  { %s8867_s1 = smov 128   ;;  %s8868_s21 = smov 8  }
  0x23   :  { %39 = dma.hbm_to_vmem [thread:$0]  %s12672_s2, 30720, %s34_s12, [#allocation7], %s8867_s1, %s8867_s1, %s8868_s21  }
  0x24   :  { %8857 = dma.done.wait [#allocation4], 30720  }
  0x25   :  { %8858 = vsyncadd [#allocation4], 4294936576 }
  0x26   :  { %8859 = dma.done.wait [#allocation7], 30720  }
  0x27   :  { %8860 = vsyncadd [#allocation7], 4294936576  ;;  %v12677_v0 = vmov 0.0   ;;  %v365_v1 = vld [vmem:[#allocation3 + $0x8] sm:$0xff]  ;;  %v370_v2 = vld [vmem:[#allocation3 + $0x30] sm:$0xff]  ;;  %vm8871_vm0 = vmmov 0  }
  0x28   :  { %829 = vmatprep.mubr.f32.mxu1 %v12677_v0  ;;  %v525_v3 = vld [vmem:[#allocation3 + $0x508] sm:$0xff]  ;;  %v7590_v4 = vpack.c.bf16 %v370_v2, %v365_v1  ;;  %v530_v5 = vld [vmem:[#allocation3 + $0x530] sm:$0xff]  ;;  %v364_v6 = vld [vmem:[#allocation3] sm:$0xff]  ;;  %vm2340_vm1 = vcmask 326656   ;;  %s8873_s17 = smov [#allocation8]  }
  0x29   :  { %v369_v7 = vld [vmem:[#allocation3 + $0x28] sm:$0xff]  ;;  %v7654_v8 = vpack.c.bf16 %v530_v5, %v525_v3  ;;  %v524_v10 = vld [vmem:[#allocation3 + $0x500] sm:$0xff]  ;;  %v375_v12 = vld [vmem:[#allocation3 + $0x58] sm:$0xff]  ;;  %s5685_s18 = sshll.u32 %s8873_s17, 4  ;;  %s5686_s18 = int_to_ptr.vmem [resolvable:$true] %s5685_s18 }
  0x2a   :  { %v7592_v9 = vpack.c.bf16 %v369_v7, %v364_v6  ;;  %v529_v11 = vld [vmem:[#allocation3 + $0x528] sm:$0xff]  ;;  %7591 = vmatprep.subr.bf16.mxu0 %v7590_v4  ;;  %v380_v14 = vld [vmem:[#allocation3 + $0x80] sm:$0xff]  ;;  %v535_v15 = vld [vmem:[#allocation3 + $0x558] sm:$0xff]  ;;  %s8835_s19 = scalar_lea.vmem %s5686_s18, 2048  ;;  %p8840_p3 = scmp.lt.s32.totalorder %s5686_s18, %s5686_s18 }
  0x2b   :  { %v7656_v13 = vpack.c.bf16 %v529_v11, %v524_v10  ;;  %v540_v16 = vld [vmem:[#allocation3 + $0x580] sm:$0xff]  ;;  %7655 = vmatprep.subr.bf16.mxu1 %v7654_v8  ;;  %v7594_v17 = vpack.c.bf16 %v380_v14, %v375_v12  ;;  %v374_v19 = vld [vmem:[#allocation3 + $0x50] sm:$0xff]  ;;  %v379_v20 = vld [vmem:[#allocation3 + $0x78] sm:$0xff]  ;;  %p8836_p2 = scmp.ne.s32.totalorder %s5686_s18, %s8835_s19  ;;  %p8841_p4 = scmp.lt.s32.totalorder %s8835_s19, %s8835_s19 }
  0x2c   :  { %7593 = vmatpush1.bf16.msra.mxu0 %v7592_v9  ;;  %v7658_v18 = vpack.c.bf16 %v540_v16, %v535_v15  ;;  %v534_v21 = vld [vmem:[#allocation3 + $0x550] sm:$0xff]  ;;  %v7596_v22 = vpack.c.bf16 %v379_v20, %v374_v19  ;;  %v539_v23 = vld [vmem:[#allocation3 + $0x578] sm:$0xff]  ;;  %v385_v24 = vld [vmem:[#allocation3 + $0xa8] sm:$0xff] }
  0x2d   :  { %7657 = vmatpush1.bf16.msra.mxu1 %v7656_v13  ;;  %v390_v25 = vld [vmem:[#allocation3 + $0xd0] sm:$0xff]  ;;  %7595 = vmatprep.subr.bf16.mxu0 %v7594_v17  ;;  %v7660_v26 = vpack.c.bf16 %v539_v23, %v534_v21  ;;  %v545_v28 = vld [vmem:[#allocation3 + $0x5a8] sm:$0xff]  ;;  %v384_v30 = vld [vmem:[#allocation3 + $0xa0] sm:$0xff]  ;;  %p8842_p5 = por %p8841_p4, %p8840_p3 }
  0x2e   :  { %7659 = vmatprep.subr.bf16.mxu1 %v7658_v18  ;;  %v7598_v27 = vpack.c.bf16 %v390_v25, %v385_v24  ;;  %v550_v29 = vld [vmem:[#allocation3 + $0x5d0] sm:$0xff]  ;;  %v389_v32 = vld [vmem:[#allocation3 + $0xc8] sm:$0xff]  ;;  %v544_v33 = vld [vmem:[#allocation3 + $0x5a0] sm:$0xff] }
  0x2f   :  { %v7662_v31 = vpack.c.bf16 %v550_v29, %v545_v28  ;;  %v549_v34 = vld [vmem:[#allocation3 + $0x5c8] sm:$0xff]  ;;  %v7600_v35 = vpack.c.bf16 %v389_v32, %v384_v30  ;;  %v395_v36 = vld [vmem:[#allocation3 + $0xf8] sm:$0xff]  ;;  %v400_v37 = vld [vmem:[#allocation3 + $0x120] sm:$0xff]  ;;  %p8843_p6 = pnand %p8842_p5, %p8836_p2 }
  0x30   :  { %7597 = vmatpush1.bf16.msra.mxu0 %v7596_v22  ;;  %v555_v38 = vld [vmem:[#allocation3 + $0x5f8] sm:$0xff]  ;;  %v7664_v39 = vpack.c.bf16 %v549_v34, %v544_v33  ;;  %v7602_v40 = vpack.c.bf16 %v400_v37, %v395_v36  ;;  %v560_v41 = vld [vmem:[#allocation3 + $0x620] sm:$0xff]  ;;  %v394_v42 = vld [vmem:[#allocation3 + $0xf0] sm:$0xff] }
  0x31   :  { %7661 = vmatpush1.bf16.msra.mxu1 %v7660_v26  ;;  %7599 = vmatprep.subr.bf16.mxu0 %v7598_v27  ;;  %v399_v43 = vld [vmem:[#allocation3 + $0x118] sm:$0xff]  ;;  %v7666_v44 = vpack.c.bf16 %v560_v41, %v555_v38  ;;  %v554_v45 = vld [vmem:[#allocation3 + $0x5f0] sm:$0xff]  ;;  %v405_v47 = vld [vmem:[#allocation3 + $0x148] sm:$0xff] }
  0x32   :  { %7663 = vmatprep.subr.bf16.mxu1 %v7662_v31  ;;  %v559_v46 = vld [vmem:[#allocation3 + $0x618] sm:$0xff]  ;;  %v410_v48 = vld [vmem:[#allocation3 + $0x170] sm:$0xff]  ;;  %v565_v49 = vld [vmem:[#allocation3 + $0x648] sm:$0xff]  ;;  %v7604_v51 = vpack.c.bf16 %v399_v43, %v394_v42 }
  0x33   :  { %v570_v50 = vld [vmem:[#allocation3 + $0x670] sm:$0xff]  ;;  %v7668_v52 = vpack.c.bf16 %v559_v46, %v554_v45  ;;  %v7606_v53 = vpack.c.bf16 %v410_v48, %v405_v47  ;;  %v404_v54 = vld [vmem:[#allocation3 + $0x140] sm:$0xff]  ;;  %v409_v55 = vld [vmem:[#allocation3 + $0x168] sm:$0xff] }
  0x34   :  { %7601 = vmatpush1.bf16.msra.mxu0 %v7600_v35  ;;  %v564_v56 = vld [vmem:[#allocation3 + $0x640] sm:$0xff]  ;;  %v7670_v57 = vpack.c.bf16 %v570_v50, %v565_v49  ;;  %v569_v58 = vld [vmem:[#allocation3 + $0x668] sm:$0xff]  ;;  %v415_v59 = vld [vmem:[#allocation3 + $0x198] sm:$0xff]  ;;  %v7608_v63 = vpack.c.bf16 %v409_v55, %v404_v54 }
  0x35   :  { %7665 = vmatpush1.bf16.msra.mxu1 %v7664_v39  ;;  %7603 = vmatprep.subr.bf16.mxu0 %v7602_v40  ;;  %v420_v60 = vld [vmem:[#allocation3 + $0x1c0] sm:$0xff]  ;;  %v575_v61 = vld [vmem:[#allocation3 + $0x698] sm:$0xff]  ;;  %v7672_v1 = vpack.c.bf16 %v569_v58, %v564_v56  ;;  %v414_v3 = vld [vmem:[#allocation3 + $0x190] sm:$0xff] }
  0x36   :  { %7667 = vmatprep.subr.bf16.mxu1 %v7666_v44  ;;  %v580_v62 = vld [vmem:[#allocation3 + $0x6c0] sm:$0xff]  ;;  %v7610_v2 = vpack.c.bf16 %v420_v60, %v415_v59  ;;  %v419_v4 = vld [vmem:[#allocation3 + $0x1b8] sm:$0xff]  ;;  %v574_v5 = vld [vmem:[#allocation3 + $0x690] sm:$0xff] }
  0x37   :  { %v7674_v6 = vpack.c.bf16 %v580_v62, %v575_v61  ;;  %v579_v7 = vld [vmem:[#allocation3 + $0x6b8] sm:$0xff]  ;;  %v425_v8 = vld [vmem:[#allocation3 + $0x1e8] sm:$0xff]  ;;  %v430_v9 = vld [vmem:[#allocation3 + $0x210] sm:$0xff]  ;;  %v7612_v12 = vpack.c.bf16 %v419_v4, %v414_v3 }
  0x38   :  { %7605 = vmatpush1.bf16.msra.mxu0 %v7604_v51  ;;  %v585_v10 = vld [vmem:[#allocation3 + $0x6e8] sm:$0xff]  ;;  %v590_v11 = vld [vmem:[#allocation3 + $0x710] sm:$0xff]  ;;  %v7676_v13 = vpack.c.bf16 %v579_v7, %v574_v5  ;;  %v7614_v14 = vpack.c.bf16 %v430_v9, %v425_v8  ;;  %v424_v15 = vld [vmem:[#allocation3 + $0x1e0] sm:$0xff] }
  0x39   :  { %7669 = vmatpush1.bf16.msra.mxu1 %v7668_v52  ;;  %7607 = vmatprep.subr.bf16.mxu0 %v7606_v53  ;;  %v429_v16 = vld [vmem:[#allocation3 + $0x208] sm:$0xff]  ;;  %v584_v17 = vld [vmem:[#allocation3 + $0x6e0] sm:$0xff]  ;;  %v7678_v18 = vpack.c.bf16 %v590_v11, %v585_v10  ;;  %v435_v20 = vld [vmem:[#allocation3 + $0x238] sm:$0xff] }
  0x3a   :  { %7671 = vmatprep.subr.bf16.mxu1 %v7670_v57  ;;  %v589_v19 = vld [vmem:[#allocation3 + $0x708] sm:$0xff]  ;;  %v440_v21 = vld [vmem:[#allocation3 + $0x260] sm:$0xff]  ;;  %v595_v22 = vld [vmem:[#allocation3 + $0x738] sm:$0xff]  ;;  %v7616_v24 = vpack.c.bf16 %v429_v16, %v424_v15 }
  0x3b   :  { %v600_v23 = vld [vmem:[#allocation3 + $0x760] sm:$0xff]  ;;  %v7680_v25 = vpack.c.bf16 %v589_v19, %v584_v17  ;;  %v7618_v26 = vpack.c.bf16 %v440_v21, %v435_v20  ;;  %v434_v27 = vld [vmem:[#allocation3 + $0x230] sm:$0xff]  ;;  %v439_v28 = vld [vmem:[#allocation3 + $0x258] sm:$0xff] }
  0x3c   :  { %7609 = vmatpush1.bf16.msra.mxu0 %v7608_v63  ;;  %v594_v29 = vld [vmem:[#allocation3 + $0x730] sm:$0xff]  ;;  %v7682_v30 = vpack.c.bf16 %v600_v23, %v595_v22  ;;  %v599_v31 = vld [vmem:[#allocation3 + $0x758] sm:$0xff]  ;;  %v445_v32 = vld [vmem:[#allocation3 + $0x288] sm:$0xff]  ;;  %v7620_v36 = vpack.c.bf16 %v439_v28, %v434_v27 }
  0x3d   :  { %7673 = vmatpush1.bf16.msra.mxu1 %v7672_v1  ;;  %7611 = vmatprep.subr.bf16.mxu0 %v7610_v2  ;;  %v450_v33 = vld [vmem:[#allocation3 + $0x2b0] sm:$0xff]  ;;  %v367_v34 = vld [vmem:[#allocation3 + $0x18] sm:$0xff]  ;;  %v372_v35 = vld [vmem:[#allocation3 + $0x40] sm:$0xff]  ;;  %v7684_v37 = vpack.c.bf16 %v599_v31, %v594_v29 }
  0x3e   :  { %7675 = vmatprep.subr.bf16.mxu1 %v7674_v6  ;;  %v7622_v38 = vpack.c.bf16 %v450_v33, %v445_v32  ;;  %v444_v39 = vld [vmem:[#allocation3 + $0x280] sm:$0xff]  ;;  %v449_v40 = vld [vmem:[#allocation3 + $0x2a8] sm:$0xff]  ;;  %v8937_v41 = vpack.c.bf16 %v372_v35, %v367_v34  ;;  %v366_v42 = vld [vmem:[#allocation3 + $0x10] sm:$0xff] }
  0x3f   :  { %v371_v43 = vld [vmem:[#allocation3 + $0x38] sm:$0xff]  ;;  %v460_v45 = vld [vmem:[#allocation3 + $0x300] sm:$0xff]  ;;  %v377_v46 = vld [vmem:[#allocation3 + $0x68] sm:$0xff]  ;;  %v7624_v48 = vpack.c.bf16 %v449_v40, %v444_v39 }
  0x40   :  { %7613 = vmatpush1.bf16.msra.mxu0 %v7612_v12  ;;  %v455_v44 = vld [vmem:[#allocation3 + $0x2d8] sm:$0xff]  ;;  %v382_v47 = vld [vmem:[#allocation3 + $0x90] sm:$0xff]  ;;  %v8944_v50 = vpack.c.bf16 %v371_v43, %v366_v42  ;;  %v376_v55 = vld [vmem:[#allocation3 + $0x60] sm:$0xff] }
  0x41   :  { %7677 = vmatpush1.bf16.msra.mxu1 %v7676_v13  ;;  %7615 = vmatprep.subr.bf16.mxu0 %v7614_v14  ;;  %v8942_v49 = vld [vmem:[%s12670_s0 + $0x10] sm:$0xff]  ;;  %v459_v52 = vld [vmem:[#allocation3 + $0x2f8] sm:$0xff]  ;;  %v7626_v53 = vpack.c.bf16 %v460_v45, %v455_v44  ;;  %v8947_v54 = vpack.c.bf16 %v382_v47, %v377_v46  ;;  %v381_v56 = vld [vmem:[#allocation3 + $0x88] sm:$0xff] }
  0x42   :  { %7679 = vmatprep.subr.bf16.mxu1 %v7678_v18  ;;  %v454_v51 = vld [vmem:[#allocation3 + $0x2d0] sm:$0xff]  ;;  %v465_v57 = vld [vmem:[#allocation3 + $0x328] sm:$0xff]  ;;  %v387_v59 = vld [vmem:[#allocation3 + $0xb8] sm:$0xff]  ;;  %v8957_v63 = vpack.c.bf16 %v381_v56, %v376_v55 }
  0x43   :  { %v470_v58 = vld [vmem:[#allocation3 + $0x350] sm:$0xff]  ;;  %v392_v60 = vld [vmem:[#allocation3 + $0xe0] sm:$0xff]  ;;  %v7628_v61 = vpack.c.bf16 %v459_v52, %v454_v51  ;;  %v8955_v62 = vld [vmem:[%s12670_s0 + $0x18] sm:$0xff] }
  0x44   :  { %7617 = vmatpush1.bf16.msra.mxu0 %v7616_v24  ;;  %v464_v1 = vld [vmem:[#allocation3 + $0x320] sm:$0xff]  ;;  %v469_v2 = vld [vmem:[#allocation3 + $0x348] sm:$0xff]  ;;  %v7630_v3 = vpack.c.bf16 %v470_v58, %v465_v57  ;;  %v8960_v4 = vpack.c.bf16 %v392_v60, %v387_v59  ;;  %v386_v5 = vld [vmem:[#allocation3 + $0xb0] sm:$0xff] }
  0x45   :  { %7681 = vmatpush1.bf16.msra.mxu1 %v7680_v25  ;;  %7619 = vmatprep.subr.bf16.mxu0 %v7618_v26  ;;  %v391_v6 = vld [vmem:[#allocation3 + $0xd8] sm:$0xff]  ;;  %v480_v8 = vld [vmem:[#allocation3 + $0x3a0] sm:$0xff]  ;;  %v397_v9 = vld [vmem:[#allocation3 + $0x108] sm:$0xff]  ;;  %v7632_v11 = vpack.c.bf16 %v469_v2, %v464_v1 }
  0x46   :  { %7683 = vmatprep.subr.bf16.mxu1 %v7682_v30  ;;  %v475_v7 = vld [vmem:[#allocation3 + $0x378] sm:$0xff]  ;;  %v402_v10 = vld [vmem:[#allocation3 + $0x130] sm:$0xff]  ;;  %v8968_v12 = vld [vmem:[%s12670_s0 + $0x20] sm:$0xff]  ;;  %v8970_v13 = vpack.c.bf16 %v391_v6, %v386_v5 }
  0x47   :  { %v474_v14 = vld [vmem:[#allocation3 + $0x370] sm:$0xff]  ;;  %v479_v15 = vld [vmem:[#allocation3 + $0x398] sm:$0xff]  ;;  %v7634_v16 = vpack.c.bf16 %v480_v8, %v475_v7  ;;  %v8973_v17 = vpack.c.bf16 %v402_v10, %v397_v9  ;;  %v396_v18 = vld [vmem:[#allocation3 + $0x100] sm:$0xff] }
  0x48   :  { %7621 = vmatpush1.bf16.msra.mxu0 %v7620_v36  ;;  %v401_v19 = vld [vmem:[#allocation3 + $0x128] sm:$0xff]  ;;  %v490_v21 = vld [vmem:[#allocation3 + $0x3f0] sm:$0xff]  ;;  %v407_v22 = vld [vmem:[#allocation3 + $0x158] sm:$0xff]  ;;  %v7636_v25 = vpack.c.bf16 %v479_v15, %v474_v14 }
  0x49   :  { %7685 = vmatpush1.bf16.msra.mxu1 %v7684_v37  ;;  %7623 = vmatprep.subr.bf16.mxu0 %v7622_v38  ;;  %v485_v20 = vld [vmem:[#allocation3 + $0x3c8] sm:$0xff]  ;;  %v412_v23 = vld [vmem:[#allocation3 + $0x180] sm:$0xff]  ;;  %v8983_v26 = vpack.c.bf16 %v401_v19, %v396_v18  ;;  %v406_v32 = vld [vmem:[#allocation3 + $0x150] sm:$0xff] }
  0x4a   :  { %8678 = vmatprep.subr.bf16.mxu1 %v8937_v41  ;;  %v8979_v24 = vld [vmem:[%s12670_s0 + $0x28] sm:$0xff]  ;;  %v484_v27 = vld [vmem:[#allocation3 + $0x3c0] sm:$0xff]  ;;  %v7638_v30 = vpack.c.bf16 %v490_v21, %v485_v20  ;;  %v8991_v31 = vpack.c.bf16 %v412_v23, %v407_v22  ;;  %v411_v33 = vld [vmem:[#allocation3 + $0x178] sm:$0xff] }
  0x4b   :  { %v489_v28 = vld [vmem:[#allocation3 + $0x3e8] sm:$0xff]  ;;  %v495_v34 = vld [vmem:[#allocation3 + $0x418] sm:$0xff]  ;;  %v500_v35 = vld [vmem:[#allocation3 + $0x440] sm:$0xff]  ;;  %v9002_v40 = vpack.c.bf16 %v411_v33, %v406_v32 }
  0x4c   :  { %830 = vmatmul.mubr.f32.vlgmr.msra.gmra.mrb[0].mxu1 %v8942_v49  ;;  %7625 = vmatpush1.bf16.msra.mxu0 %v7624_v48  ;;  %v8988_v29 = vld [vmem:[%s12670_s0 + $0x8] sm:$0xff]  ;;  %v422_v37 = vld [vmem:[#allocation3 + $0x1d0] sm:$0xff]  ;;  %v7640_v38 = vpack.c.bf16 %v489_v28, %v484_v27  ;;  %v499_v43 = vld [vmem:[#allocation3 + $0x438] sm:$0xff]  ;;  %v7642_v44 = vpack.c.bf16 %v500_v35, %v495_v34 }
  0x4d   :  { %8694 = vmatpush1.bf16.msra.mxu1 %v8944_v50  ;;  %835 = vmatprep.mubr.f32.mxu1 %v12677_v0  ;;  %v417_v36 = vld [vmem:[#allocation3 + $0x1a8] sm:$0xff]  ;;  %v9000_v39 = vld [vmem:[%s12670_s0 + $0x30] sm:$0xff]  ;;  %v416_v46 = vld [vmem:[#allocation3 + $0x1a0] sm:$0xff] }
  0x4e   :  { %7627 = vmatprep.subr.bf16.mxu0 %v7626_v53  ;;  %8679 = vmatprep.subr.bf16.mxu1 %v8947_v54  ;;  %v494_v42 = vld [vmem:[#allocation3 + $0x410] sm:$0xff]  ;;  %v9005_v45 = vpack.c.bf16 %v422_v37, %v417_v36  ;;  %v421_v47 = vld [vmem:[#allocation3 + $0x1c8] sm:$0xff]  ;;  %v427_v52 = vld [vmem:[#allocation3 + $0x1f8] sm:$0xff] }
  0x4f   :  { %668 = vmatprep.mubr.f32.mxu0 %v8988_v29  ;;  %v505_v48 = vld [vmem:[#allocation3 + $0x468] sm:$0xff]  ;;  %v510_v51 = vld [vmem:[#allocation3 + $0x490] sm:$0xff]  ;;  %v432_v53 = vld [vmem:[#allocation3 + $0x220] sm:$0xff]  ;;  %v7644_v55 = vpack.c.bf16 %v499_v43, %v494_v42  ;;  %v9015_v57 = vpack.c.bf16 %v421_v47, %v416_v46 }
  0x50   :  { %836 = vmatmul.mubr.f32.gmra.mrb[2].mxu1 %v8955_v62  ;;  %7629 = vmatpush1.bf16.msra.mxu0 %v7628_v61  ;;  %v9013_v56 = vld [vmem:[%s12670_s0 + $0x38] sm:$0xff]  ;;  %v504_v58 = vld [vmem:[#allocation3 + $0x460] sm:$0xff]  ;;  %v509_v59 = vld [vmem:[#allocation3 + $0x488] sm:$0xff]  ;;  %v7646_v60 = vpack.c.bf16 %v510_v51, %v505_v48  ;;  %v9018_v61 = vpack.c.bf16 %v432_v53, %v427_v52 }
  0x51   :  { %8695 = vmatpush1.bf16.msra.mxu1 %v8957_v63  ;;  %841 = vmatprep.mubr.f32.mxu1 %v12677_v0  ;;  %v426_v1 = vld [vmem:[#allocation3 + $0x1f0] sm:$0xff]  ;;  %v431_v2 = vld [vmem:[#allocation3 + $0x218] sm:$0xff]  ;;  %v520_v5 = vld [vmem:[#allocation3 + $0x4e0] sm:$0xff]  ;;  %v7648_v8 = vpack.c.bf16 %v509_v59, %v504_v58 }
  0x52   :  { %7631 = vmatprep.subr.bf16.mxu0 %v7630_v3  ;;  %8680 = vmatprep.subr.bf16.mxu1 %v8960_v4  ;;  %v515_v3 = vld [vmem:[#allocation3 + $0x4b8] sm:$0xff]  ;;  %v437_v6 = vld [vmem:[#allocation3 + $0x248] sm:$0xff]  ;;  %v442_v7 = vld [vmem:[#allocation3 + $0x270] sm:$0xff]  ;;  %v9028_v10 = vpack.c.bf16 %v431_v2, %v426_v1 }
  0x53   :  { %v9026_v9 = vld [vmem:[%s12670_s0 + $0x40] sm:$0xff]  ;;  %v519_v14 = vld [vmem:[#allocation3 + $0x4d8] sm:$0xff]  ;;  %v7650_v15 = vpack.c.bf16 %v520_v5, %v515_v3  ;;  %v441_v19 = vld [vmem:[#allocation3 + $0x268] sm:$0xff] }
  0x54   :  { %842 = vmatmul.mubr.f32.gmra.mrb[4].mxu1 %v8968_v12  ;;  %7633 = vmatpush1.bf16.msra.mxu0 %v7632_v11  ;;  %v514_v11 = vld [vmem:[#allocation3 + $0x4b0] sm:$0xff]  ;;  %v436_v18 = vld [vmem:[#allocation3 + $0x240] sm:$0xff]  ;;  %v447_v20 = vld [vmem:[#allocation3 + $0x298] sm:$0xff] }
  0x55   :  { %8696 = vmatpush1.bf16.msra.mxu1 %v8970_v13  ;;  %847 = vmatprep.mubr.f32.mxu1 %v12677_v0  ;;  %v452_v21 = vld [vmem:[#allocation3 + $0x2c0] sm:$0xff]  ;;  %v7652_v22 = vpack.c.bf16 %v519_v14, %v514_v11  ;;  %v9039_v23 = vld [vmem:[%s12670_s0 + $0x48] sm:$0xff]  ;;  %v446_v28 = vld [vmem:[#allocation3 + $0x290] sm:$0xff] }
  0x56   :  { %7635 = vmatprep.subr.bf16.mxu0 %v7634_v16  ;;  %8681 = vmatprep.subr.bf16.mxu1 %v8973_v17  ;;  %v9031_v16 = vpack.c.bf16 %v442_v7, %v437_v6  ;;  %v9044_v27 = vpack.c.bf16 %v452_v21, %v447_v20  ;;  %v9050_v32 = vld [vmem:[%s12670_s0] sm:$0xff]  ;;  %v457_v33 = vld [vmem:[#allocation3 + $0x2e8] sm:$0xff]  ;;  %v462_v34 = vld [vmem:[#allocation3 + $0x310] sm:$0xff] }
  0x57   :  { %v9057_v35 = vld [vmem:[%s12670_s0 + $0x50] sm:$0xff]  ;;  %v456_v37 = vld [vmem:[#allocation3 + $0x2e0] sm:$0xff]  ;;  %v9064_v42 = vpack.c.bf16 %v462_v34, %v457_v33  ;;  %v467_v43 = vld [vmem:[#allocation3 + $0x338] sm:$0xff] }
  0x58   :  { %848 = vmatmul.mubr.f32.gmra.mrb[6].mxu1 %v8979_v24  ;;  %7637 = vmatpush1.bf16.msra.mxu0 %v7636_v25  ;;  %v9041_v25 = vpack.c.bf16 %v441_v19, %v436_v18  ;;  %v466_v47 = vld [vmem:[#allocation3 + $0x330] sm:$0xff]  ;;  %v471_v48 = vld [vmem:[#allocation3 + $0x358] sm:$0xff]  ;;  %v477_v51 = vld [vmem:[#allocation3 + $0x388] sm:$0xff] }
  0x59   :  { %8697 = vmatpush1.bf16.msra.mxu1 %v8983_v26  ;;  %853 = vmatprep.mubr.f32.mxu1 %v12677_v0  ;;  %v482_v52 = vld [vmem:[#allocation3 + $0x3b0] sm:$0xff]  ;;  %v9092_v53 = vpack.c.bf16 %v471_v48, %v466_v47  ;;  %v481_v58 = vld [vmem:[#allocation3 + $0x3a8] sm:$0xff]  ;;  %v487_v59 = vld [vmem:[#allocation3 + $0x3d8] sm:$0xff] }
  0x5a   :  { %7639 = vmatprep.subr.bf16.mxu0 %v7638_v30  ;;  %8682 = vmatprep.subr.bf16.mxu1 %v8991_v31  ;;  %v451_v30 = vld [vmem:[#allocation3 + $0x2b8] sm:$0xff]  ;;  %v486_v2 = vld [vmem:[#allocation3 + $0x3d0] sm:$0xff]  ;;  %v497_v5 = vld [vmem:[#allocation3 + $0x428] sm:$0xff] }
  0x5b   :  { %v9059_v36 = vpack.c.bf16 %v451_v30, %v446_v28  ;;  %v491_v3 = vld [vmem:[#allocation3 + $0x3f8] sm:$0xff]  ;;  %v502_v6 = vld [vmem:[#allocation3 + $0x450] sm:$0xff]  ;;  %v501_v11 = vld [vmem:[#allocation3 + $0x448] sm:$0xff] }
  0x5c   :  { %854 = vmatmul.mubr.f32.gmra.mrb[8].mxu1 %v9000_v39  ;;  %7641 = vmatpush1.bf16.msra.mxu0 %v7640_v38  ;;  %v461_v38 = vld [vmem:[#allocation3 + $0x308] sm:$0xff]  ;;  %v9126_v7 = vpack.c.bf16 %v491_v3, %v486_v2  ;;  %v507_v14 = vld [vmem:[#allocation3 + $0x478] sm:$0xff]  ;;  %v506_v19 = vld [vmem:[#allocation3 + $0x470] sm:$0xff] }
  0x5d   :  { %8698 = vmatpush1.bf16.msra.mxu1 %v9002_v40  ;;  %859 = vmatprep.mubr.f32.mxu1 %v12677_v0  ;;  %v9075_v46 = vpack.c.bf16 %v461_v38, %v456_v37  ;;  %v511_v20 = vld [vmem:[#allocation3 + $0x498] sm:$0xff]  ;;  %v517_v21 = vld [vmem:[#allocation3 + $0x4c8] sm:$0xff]  ;;  %v516_v30 = vld [vmem:[#allocation3 + $0x4c0] sm:$0xff] }
  0x5e   :  { %7643 = vmatprep.subr.bf16.mxu0 %v7642_v44  ;;  %8683 = vmatprep.subr.bf16.mxu1 %v9005_v45  ;;  %v472_v44 = vld [vmem:[#allocation3 + $0x360] sm:$0xff]  ;;  %v9160_v28 = vpack.c.bf16 %v511_v20, %v506_v19  ;;  %v521_v33 = vld [vmem:[#allocation3 + $0x4e8] sm:$0xff]  ;;  %v527_v34 = vld [vmem:[#allocation3 + $0x518] sm:$0xff] }
  0x5f   :  { %v532_v37 = vld [vmem:[#allocation3 + $0x540] sm:$0xff]  ;;  %v9177_v38 = vpack.c.bf16 %v521_v33, %v516_v30  ;;  %v537_v47 = vld [vmem:[#allocation3 + $0x568] sm:$0xff]  ;;  %v542_v48 = vld [vmem:[#allocation3 + $0x590] sm:$0xff] }
  0x60   :  { %860 = vmatmul.mubr.f32.gmra.mrb[10].mxu1 %v9013_v56  ;;  %7645 = vmatpush1.bf16.msra.mxu0 %v7644_v55  ;;  %v476_v55 = vld [vmem:[#allocation3 + $0x380] sm:$0xff]  ;;  %v562_v3 = vld [vmem:[#allocation3 + $0x630] sm:$0xff]  ;;  %vm10235_vm2 = vmpackc.low %vm2340_vm1, %vm2340_vm1 }
  0x61   :  { %8699 = vmatpush1.bf16.msra.mxu1 %v9015_v57  ;;  %865 = vmatprep.mubr.f32.mxu1 %v12677_v0  ;;  %v9109_v1 = vpack.c.bf16 %v481_v58, %v476_v55  ;;  %v7754_v55 = vpack.c.bf16 %v542_v48, %v537_v47  ;;  %v552_v58 = vld [vmem:[#allocation3 + $0x5e0] sm:$0xff]  ;;  %v582_v20 = vld [vmem:[#allocation3 + $0x6d0] sm:$0xff]  ;;  %v601_v47 = vld [vmem:[#allocation3 + $0x768] sm:$0xff] }
  0x62   :  { %7647 = vmatprep.subr.bf16.mxu0 %v7646_v60  ;;  %8684 = vmatprep.subr.bf16.mxu1 %v9018_v61  ;;  %v492_v60 = vld [vmem:[#allocation3 + $0x400] sm:$0xff] }
  0x63   :  { %v592_v33 = vld [vmem:[#allocation3 + $0x720] sm:$0xff] }
  0x64   :  { %866 = vmatmul.mubr.f32.gmra.mrb[12].mxu1 %v9026_v9  ;;  %7649 = vmatpush1.bf16.msra.mxu0 %v7648_v8  ;;  %v496_v8 = vld [vmem:[#allocation3 + $0x420] sm:$0xff] }
  0x65   :  { %8700 = vmatpush1.bf16.msra.mxu1 %v9028_v10  ;;  %871 = vmatprep.mubr.f32.mxu1 %v12677_v0  ;;  %v9143_v18 = vpack.c.bf16 %v501_v11, %v496_v8  ;;  %v572_v11 = vld [vmem:[#allocation3 + $0x680] sm:$0xff] }
  0x66   :  { %7651 = vmatprep.subr.bf16.mxu0 %v7650_v15  ;;  %8685 = vmatprep.subr.bf16.mxu1 %v9031_v16  ;;  %v512_v15 = vld [vmem:[#allocation3 + $0x4a0] sm:$0xff] }
  0x68   :  { %872 = vmatmul.mubr.f32.gmra.mrb[14].mxu1 %v9039_v23  ;;  %7653 = vmatpush1.bf16.msra.mxu0 %v7652_v22  ;;  %v522_v22 = vld [vmem:[#allocation3 + $0x4f0] sm:$0xff] }
  0x69   :  { %8701 = vmatpush1.bf16.msra.mxu1 %v9041_v25  ;;  %877 = vmatprep.mubr.f32.mxu1 %v12677_v0 }
  0x6a   :  { %7687 = vmatprep.subr.bf16.mxu0 %v8937_v41  ;;  %8686 = vmatprep.subr.bf16.mxu1 %v9044_v27  ;;  %v9073_v41 = vld [vmem:[%s12670_s0 + $0x58] sm:$0xff] }
  0x6b   :  { %669 = vmatmul.mubr.f32.vlgmr.msra.gmra.mrb[0].mxu0 %v9050_v32 }
  0x6c   :  { %878 = vmatmul.mubr.f32.gmra.mrb[16].mxu1 %v9057_v35  ;;  %7689 = vmatpush1.bf16.msra.mxu0 %v8944_v50  ;;  %v9081_v50 = vpack.c.bf16 %v472_v44, %v467_v43  ;;  %v526_v43 = vld [vmem:[#allocation3 + $0x510] sm:$0xff]  ;;  %v531_v44 = vld [vmem:[#allocation3 + $0x538] sm:$0xff] }
  0x6d   :  { %8702 = vmatpush1.bf16.msra.mxu1 %v9059_v36  ;;  %674 = vmatprep.mubr.f32.mxu0 %v8942_v49 }
  0x6e   :  { %883 = vmatprep.mubr.f32.mxu1 %v12677_v0  ;;  %7691 = vmatprep.subr.bf16.mxu0 %v8947_v54  ;;  %v9090_v54 = vld [vmem:[%s12670_s0 + $0x60] sm:$0xff] }
  0x6f   :  { %675 = vmatmul.mubr.f32.gmra.mrb[2].mxu0 %v8988_v29  ;;  %8687 = vmatprep.subr.bf16.mxu1 %v9064_v42 }
  0x70   :  { %884 = vmatmul.mubr.f32.gmra.mrb[18].mxu1 %v9073_v41  ;;  %7693 = vmatpush1.bf16.msra.mxu0 %v8957_v63  ;;  %v9098_v63 = vpack.c.bf16 %v482_v52, %v477_v51  ;;  %v7752_v51 = vpack.c.bf16 %v531_v44, %v526_v43  ;;  %v541_v52 = vld [vmem:[#allocation3 + $0x588] sm:$0xff]  ;;  %v602_v44 = vld [vmem:[#allocation3 + $0x770] sm:$0xff] }
  0x71   :  { %8703 = vmatpush1.bf16.msra.mxu1 %v9075_v46  ;;  %680 = vmatprep.mubr.f32.mxu0 %v8955_v62 }
  0x72   :  { %889 = vmatprep.mubr.f32.mxu1 %v12677_v0  ;;  %7695 = vmatprep.subr.bf16.mxu0 %v8960_v4  ;;  %v9107_v4 = vld [vmem:[%s12670_s0 + $0x68] sm:$0xff] }
  0x73   :  { %681 = vmatmul.mubr.f32.gmra.mrb[4].mxu0 %v8942_v49  ;;  %8688 = vmatprep.subr.bf16.mxu1 %v9081_v50 }
  0x74   :  { %890 = vmatmul.mubr.f32.gmra.mrb[20].mxu1 %v9090_v54  ;;  %7697 = vmatpush1.bf16.msra.mxu0 %v8970_v13  ;;  %v9115_v13 = vpack.c.bf16 %v492_v60, %v487_v59  ;;  %v551_v60 = vld [vmem:[#allocation3 + $0x5d8] sm:$0xff] }
  0x75   :  { %8704 = vmatpush1.bf16.msra.mxu1 %v9092_v53  ;;  %686 = vmatprep.mubr.f32.mxu0 %v8968_v12 }
  0x76   :  { %895 = vmatprep.mubr.f32.mxu1 %v12677_v0  ;;  %7699 = vmatprep.subr.bf16.mxu0 %v8973_v17  ;;  %v9124_v17 = vld [vmem:[%s12670_s0 + $0x70] sm:$0xff] }
  0x77   :  { %687 = vmatmul.mubr.f32.gmra.mrb[6].mxu0 %v8955_v62  ;;  %8689 = vmatprep.subr.bf16.mxu1 %v9098_v63 }
  0x78   :  { %896 = vmatmul.mubr.f32.gmra.mrb[22].mxu1 %v9107_v4  ;;  %7701 = vmatpush1.bf16.msra.mxu0 %v8983_v26  ;;  %v9132_v26 = vpack.c.bf16 %v502_v6, %v497_v5  ;;  %v561_v6 = vld [vmem:[#allocation3 + $0x628] sm:$0xff] }
  0x79   :  { %8705 = vmatpush1.bf16.msra.mxu1 %v9109_v1  ;;  %692 = vmatprep.mubr.f32.mxu0 %v8979_v24 }
  0x7a   :  { %901 = vmatprep.mubr.f32.mxu1 %v12677_v0  ;;  %7703 = vmatprep.subr.bf16.mxu0 %v8991_v31  ;;  %v9141_v31 = vld [vmem:[%s12670_s0 + $0x78] sm:$0xff] }
  0x7b   :  { %693 = vmatmul.mubr.f32.gmra.mrb[8].mxu0 %v8968_v12  ;;  %8690 = vmatprep.subr.bf16.mxu1 %v9115_v13 }
  0x7c   :  { %902 = vmatmul.mubr.f32.gmra.mrb[24].mxu1 %v9124_v17  ;;  %7705 = vmatpush1.bf16.msra.mxu0 %v9002_v40  ;;  %v9149_v40 = vpack.c.bf16 %v512_v15, %v507_v14  ;;  %v571_v15 = vld [vmem:[#allocation3 + $0x678] sm:$0xff] }
  0x7d   :  { %8706 = vmatpush1.bf16.msra.mxu1 %v9126_v7  ;;  %698 = vmatprep.mubr.f32.mxu0 %v9000_v39 }
  0x7e   :  { %907 = vmatprep.mubr.f32.mxu1 %v12677_v0  ;;  %7707 = vmatprep.subr.bf16.mxu0 %v9005_v45  ;;  %v9158_v45 = vld [vmem:[%s12670_s0 + $0x80] sm:$0xff] }
  0x7f   :  { %699 = vmatmul.mubr.f32.gmra.mrb[10].mxu0 %v8979_v24  ;;  %8691 = vmatprep.subr.bf16.mxu1 %v9132_v26 }
  0x80   :  { %908 = vmatmul.mubr.f32.gmra.mrb[26].mxu1 %v9141_v31  ;;  %7709 = vmatpush1.bf16.msra.mxu0 %v9015_v57  ;;  %v9166_v57 = vpack.c.bf16 %v522_v22, %v517_v21  ;;  %v581_v22 = vld [vmem:[#allocation3 + $0x6c8] sm:$0xff] }
  0x81   :  { %8707 = vmatpush1.bf16.msra.mxu1 %v9143_v18  ;;  %704 = vmatprep.mubr.f32.mxu0 %v9013_v56 }
  0x82   :  { %913 = vmatprep.mubr.f32.mxu1 %v12677_v0  ;;  %7711 = vmatprep.subr.bf16.mxu0 %v9018_v61  ;;  %v9175_v61 = vld [vmem:[%s12670_s0 + $0x88] sm:$0xff] }
  0x83   :  { %705 = vmatmul.mubr.f32.gmra.mrb[12].mxu0 %v9000_v39  ;;  %8692 = vmatprep.subr.bf16.mxu1 %v9149_v40 }
  0x84   :  { %914 = vmatmul.mubr.f32.gmra.mrb[28].mxu1 %v9158_v45  ;;  %7713 = vmatpush1.bf16.msra.mxu0 %v9028_v10  ;;  %v7750_v10 = vpack.c.bf16 %v532_v37, %v527_v34  ;;  %v591_v37 = vld [vmem:[#allocation3 + $0x718] sm:$0xff] }
  0x85   :  { %8708 = vmatpush1.bf16.msra.mxu1 %v9160_v28  ;;  %710 = vmatprep.mubr.f32.mxu0 %v9026_v9 }
  0x86   :  { %919 = vmatprep.mubr.f32.mxu1 %v12677_v0  ;;  %7715 = vmatprep.subr.bf16.mxu0 %v9031_v16  ;;  %v536_v16 = vld [vmem:[#allocation3 + $0x560] sm:$0xff] }
  0x87   :  { %711 = vmatmul.mubr.f32.gmra.mrb[14].mxu0 %v9013_v56  ;;  %8693 = vmatprep.subr.bf16.mxu1 %v9166_v57  ;;  %v7756_v59 = vpack.c.bf16 %v541_v52, %v536_v16  ;;  %v453_v16 = vld [vmem:[#allocation3 + $0x2c8] sm:$0xff] }
  0x88   :  { %920 = vmatmul.mubr.f32.gmra.mrb[30].mxu1 %v9175_v61  ;;  %7717 = vmatpush1.bf16.msra.mxu0 %v9041_v25  ;;  %v547_v25 = vld [vmem:[#allocation3 + $0x5b8] sm:$0xff]  ;;  %v533_v52 = vld [vmem:[#allocation3 + $0x548] sm:$0xff] }
  0x89   :  { %8709 = vmatpush1.bf16.msra.mxu1 %v9177_v38  ;;  %716 = vmatprep.mubr.f32.mxu0 %v9039_v23  ;;  %v7758_v2 = vpack.c.bf16 %v552_v58, %v547_v25  ;;  %v368_v25 = vld [vmem:[#allocation3 + $0x20] sm:$0xff] }
  0x8a   :  { %1038 = vmatprep.mubr.f32.mxu1 %v9039_v23  ;;  %7719 = vmatprep.subr.bf16.mxu0 %v9044_v27  ;;  %v546_v27 = vld [vmem:[#allocation3 + $0x5b0] sm:$0xff] }
  0x8b   :  { %717 = vmatmul.mubr.f32.gmra.mrb[16].mxu0 %v9026_v9  ;;  %7751 = vmatprep.subr.bf16.mxu1 %v7750_v10  ;;  %v7760_v5 = vpack.c.bf16 %v551_v60, %v546_v27  ;;  %v458_v27 = vld [vmem:[#allocation3 + $0x2f0] sm:$0xff]  ;;  %v463_v60 = vld [vmem:[#allocation3 + $0x318] sm:$0xff] }
  0x8c   :  { %1039 = vmatmul.mubr.f32.vlgmr.msra.gmra.mrb[32].mxu1 %v9026_v9  ;;  %7721 = vmatpush1.bf16.msra.mxu0 %v9059_v36  ;;  %v557_v36 = vld [vmem:[#allocation3 + $0x608] sm:$0xff] }
  0x8d   :  { %7753 = vmatpush1.bf16.msra.mxu1 %v7752_v51  ;;  %722 = vmatprep.mubr.f32.mxu0 %v9057_v35  ;;  %v7762_v8 = vpack.c.bf16 %v562_v3, %v557_v36  ;;  %v448_v51 = vld [vmem:[#allocation3 + $0x2a0] sm:$0xff]  ;;  %v543_v36 = vld [vmem:[#allocation3 + $0x598] sm:$0xff]  ;;  %v378_v3 = vld [vmem:[#allocation3 + $0x70] sm:$0xff] }
  0x8e   :  { %1044 = vmatprep.mubr.f32.mxu1 %v9057_v35  ;;  %7723 = vmatprep.subr.bf16.mxu0 %v9064_v42  ;;  %v556_v42 = vld [vmem:[#allocation3 + $0x600] sm:$0xff]  ;;  %v7782_v58 = vpack.c.bf16 %v453_v16, %v448_v51  ;;  %v503_v51 = vld [vmem:[#allocation3 + $0x458] sm:$0xff] }
  0x8f   :  { %723 = vmatmul.mubr.f32.gmra.mrb[18].mxu0 %v9039_v23  ;;  %7755 = vmatprep.subr.bf16.mxu1 %v7754_v55  ;;  %v7764_v14 = vpack.c.bf16 %v561_v6, %v556_v42  ;;  %v468_v42 = vld [vmem:[#allocation3 + $0x340] sm:$0xff]  ;;  %v473_v6 = vld [vmem:[#allocation3 + $0x368] sm:$0xff] }
  0x90   :  { %1045 = vmatmul.mubr.f32.gmra.mrb[34].mxu1 %v9039_v23  ;;  %7725 = vmatpush1.bf16.msra.mxu0 %v9075_v46  ;;  %v567_v46 = vld [vmem:[#allocation3 + $0x658] sm:$0xff] }
  0x91   :  { %7757 = vmatpush1.bf16.msra.mxu1 %v7756_v59  ;;  %728 = vmatprep.mubr.f32.mxu0 %v9073_v41  ;;  %v7766_v19 = vpack.c.bf16 %v572_v11, %v567_v46  ;;  %v548_v46 = vld [vmem:[#allocation3 + $0x5c0] sm:$0xff]  ;;  %v553_v11 = vld [vmem:[#allocation3 + $0x5e8] sm:$0xff] }
  0x92   :  { %1050 = vmatprep.mubr.f32.mxu1 %v9073_v41  ;;  %7727 = vmatprep.subr.bf16.mxu0 %v9081_v50  ;;  %v566_v50 = vld [vmem:[#allocation3 + $0x650] sm:$0xff] }
  0x93   :  { %729 = vmatmul.mubr.f32.gmra.mrb[20].mxu0 %v9057_v35  ;;  %7759 = vmatprep.subr.bf16.mxu1 %v7758_v2  ;;  %v7768_v21 = vpack.c.bf16 %v571_v15, %v566_v50  ;;  %v538_v2 = vld [vmem:[#allocation3 + $0x570] sm:$0xff]  ;;  %v393_v50 = vld [vmem:[#allocation3 + $0xe8] sm:$0xff]  ;;  %v7790_v15 = vpack.c.bf16 %v473_v6, %v468_v42  ;;  %v523_v6 = vld [vmem:[#allocation3 + $0x4f8] sm:$0xff] }
  0x94   :  { %1051 = vmatmul.mubr.f32.gmra.mrb[36].mxu1 %v9057_v35  ;;  %7729 = vmatpush1.bf16.msra.mxu0 %v9092_v53  ;;  %v577_v53 = vld [vmem:[#allocation3 + $0x6a8] sm:$0xff]  ;;  %v518_v42 = vld [vmem:[#allocation3 + $0x4d0] sm:$0xff] }
  0x95   :  { %7761 = vmatpush1.bf16.msra.mxu1 %v7760_v5  ;;  %734 = vmatprep.mubr.f32.mxu0 %v9090_v54  ;;  %v7770_v30 = vpack.c.bf16 %v582_v20, %v577_v53  ;;  %v383_v5 = vld [vmem:[#allocation3 + $0x98] sm:$0xff]  ;;  %v7822_v20 = vpack.c.bf16 %v553_v11, %v548_v46  ;;  %v598_v46 = vld [vmem:[#allocation3 + $0x750] sm:$0xff] }
  0x96   :  { %1056 = vmatprep.mubr.f32.mxu1 %v9090_v54  ;;  %7731 = vmatprep.subr.bf16.mxu0 %v9098_v63  ;;  %v576_v63 = vld [vmem:[#allocation3 + $0x6a0] sm:$0xff]  ;;  %v483_v53 = vld [vmem:[#allocation3 + $0x3b8] sm:$0xff] }
  0x97   :  { %735 = vmatmul.mubr.f32.gmra.mrb[22].mxu0 %v9073_v41  ;;  %7763 = vmatprep.subr.bf16.mxu1 %v7762_v8  ;;  %v7772_v34 = vpack.c.bf16 %v581_v22, %v576_v63  ;;  %v7818_v8 = vpack.c.bf16 %v543_v36, %v538_v2  ;;  %v558_v63 = vld [vmem:[#allocation3 + $0x610] sm:$0xff]  ;;  %v563_v22 = vld [vmem:[#allocation3 + $0x638] sm:$0xff]  ;;  %v588_v2 = vld [vmem:[#allocation3 + $0x700] sm:$0xff] }
  0x98   :  { %1057 = vmatmul.mubr.f32.gmra.mrb[38].mxu1 %v9073_v41  ;;  %7733 = vmatpush1.bf16.msra.mxu0 %v9109_v1  ;;  %v587_v1 = vld [vmem:[#allocation3 + $0x6f8] sm:$0xff]  ;;  %v593_v36 = vld [vmem:[#allocation3 + $0x728] sm:$0xff] }
  0x99   :  { %7765 = vmatpush1.bf16.msra.mxu1 %v7764_v14  ;;  %740 = vmatprep.mubr.f32.mxu0 %v9107_v4  ;;  %v7774_v43 = vpack.c.bf16 %v592_v33, %v587_v1  ;;  %v388_v14 = vld [vmem:[#allocation3 + $0xc0] sm:$0xff]  ;;  %v403_v1 = vld [vmem:[#allocation3 + $0x138] sm:$0xff] }
  0x9a   :  { %1062 = vmatprep.mubr.f32.mxu1 %v9107_v4  ;;  %7735 = vmatprep.subr.bf16.mxu0 %v9115_v13  ;;  %v586_v13 = vld [vmem:[#allocation3 + $0x6f0] sm:$0xff]  ;;  %v603_v11 = vld [vmem:[#allocation3 + $0x778] sm:$0xff] }
  0x9b   :  { %741 = vmatmul.mubr.f32.gmra.mrb[24].mxu0 %v9090_v54  ;;  %7767 = vmatprep.subr.bf16.mxu1 %v7766_v19  ;;  %v7776_v10 = vpack.c.bf16 %v591_v37, %v586_v13  ;;  %v478_v19 = vld [vmem:[#allocation3 + $0x390] sm:$0xff]  ;;  %v493_v13 = vld [vmem:[#allocation3 + $0x408] sm:$0xff]  ;;  %v7826_v37 = vpack.c.bf16 %v563_v22, %v558_v63 }
  0x9c   :  { %1063 = vmatmul.mubr.f32.gmra.mrb[40].mxu1 %v9090_v54  ;;  %7737 = vmatpush1.bf16.msra.mxu0 %v9126_v7  ;;  %v597_v7 = vld [vmem:[#allocation3 + $0x748] sm:$0xff]  ;;  %v7794_v33 = vpack.c.bf16 %v483_v53, %v478_v19  ;;  %v7842_v19 = vpack.c.bf16 %v603_v11, %v598_v46 }
  0x9d   :  { %7769 = vmatpush1.bf16.msra.mxu1 %v7768_v21  ;;  %746 = vmatprep.mubr.f32.mxu0 %v9124_v17  ;;  %v7778_v48 = vpack.c.bf16 %v602_v44, %v597_v7  ;;  %v7792_v21 = vpack.c.bf16 %v393_v50, %v388_v14  ;;  %v568_v7 = vld [vmem:[#allocation3 + $0x660] sm:$0xff]  ;;  %v573_v44 = vld [vmem:[#allocation3 + $0x688] sm:$0xff]  ;;  %v438_v14 = vld [vmem:[#allocation3 + $0x250] sm:$0xff] }
  0x9e   :  { %1068 = vmatprep.mubr.f32.mxu1 %v9124_v17  ;;  %7739 = vmatprep.subr.bf16.mxu0 %v9132_v26  ;;  %v596_v26 = vld [vmem:[#allocation3 + $0x740] sm:$0xff]  ;;  %v7830_v16 = vpack.c.bf16 %v573_v44, %v568_v7  ;;  %v443_v50 = vld [vmem:[#allocation3 + $0x278] sm:$0xff]  ;;  %v1539_v63 = vld [vmem:[%s12673_s3 + $0x8] sm:$0xff] }
  0x9f   :  { %747 = vmatmul.mubr.f32.gmra.mrb[26].mxu0 %v9107_v4  ;;  %7771 = vmatprep.subr.bf16.mxu1 %v7770_v30  ;;  %v7780_v55 = vpack.c.bf16 %v601_v47, %v596_v26  ;;  %v398_v30 = vld [vmem:[#allocation3 + $0x110] sm:$0xff]  ;;  %v413_v26 = vld [vmem:[#allocation3 + $0x188] sm:$0xff]  ;;  %v7812_v53 = vpack.c.bf16 %v443_v50, %v438_v14  ;;  %v1589_v50 = vld [vmem:[%s12673_s3 + $0x198] sm:$0xff] }
  0xa0   :  { %1069 = vmatmul.mubr.f32.gmra.mrb[42].mxu1 %v9107_v4  ;;  %7741 = vmatpush1.bf16.msra.mxu0 %v9143_v18  ;;  %v528_v18 = vld [vmem:[#allocation3 + $0x520] sm:$0xff]  ;;  %v1543_v7 = vld [vmem:[%s12673_s3 + $0x28] sm:$0xff]  ;;  %v1588_v14 = vld [vmem:[%s12673_s3 + $0x190] sm:$0xff] }
  0xa1   :  { %7773 = vmatpush1.bf16.msra.mxu1 %v7772_v34  ;;  %752 = vmatprep.mubr.f32.mxu0 %v9141_v31  ;;  %v7814_v59 = vpack.c.bf16 %v533_v52, %v528_v18  ;;  %v488_v34 = vld [vmem:[#allocation3 + $0x3e0] sm:$0xff]  ;;  %v578_v52 = vld [vmem:[#allocation3 + $0x6b0] sm:$0xff] }
  0xa2   :  { %1074 = vmatprep.mubr.f32.mxu1 %v9141_v31  ;;  %7743 = vmatprep.subr.bf16.mxu0 %v9149_v40  ;;  %v373_v40 = vld [vmem:[#allocation3 + $0x48] sm:$0xff]  ;;  %v7798_v47 = vpack.c.bf16 %v493_v13, %v488_v34  ;;  %v1541_v34 = vld [vmem:[%s12673_s3 + $0x18] sm:$0xff] }
  0xa3   :  { %753 = vmatmul.mubr.f32.gmra.mrb[28].mxu0 %v9124_v17  ;;  %7775 = vmatprep.subr.bf16.mxu1 %v7774_v43  ;;  %v7796_v43 = vpack.c.bf16 %v403_v1, %v398_v30  ;;  %v1556_v30 = vld [vmem:[%s12673_s3 + $0x90] sm:$0xff]  ;;  %v1557_v1 = vld [vmem:[%s12673_s3 + $0x98] sm:$0xff] }
  0xa4   :  { %1075 = vmatmul.mubr.f32.gmra.mrb[44].mxu1 %v9124_v17  ;;  %7745 = vmatpush1.bf16.msra.mxu0 %v9160_v28  ;;  %v7784_v28 = vpack.c.bf16 %v373_v40, %v368_v25  ;;  %v418_v25 = vld [vmem:[#allocation3 + $0x1b0] sm:$0xff]  ;;  %v423_v40 = vld [vmem:[#allocation3 + $0x1d8] sm:$0xff] }
  0xa5   :  { %7777 = vmatpush1.bf16.msra.mxu1 %v7776_v10  ;;  %758 = vmatprep.mubr.f32.mxu0 %v9158_v45  ;;  %v408_v10 = vld [vmem:[#allocation3 + $0x160] sm:$0xff] }
  0xa6   :  { %1080 = vmatprep.mubr.f32.mxu1 %v9158_v45  ;;  %7747 = vmatprep.subr.bf16.mxu0 %v9166_v57  ;;  %v7786_v57 = vpack.c.bf16 %v463_v60, %v458_v27  ;;  %v7800_v18 = vpack.c.bf16 %v413_v26, %v408_v10  ;;  %v513_v27 = vld [vmem:[#allocation3 + $0x4a8] sm:$0xff]  ;;  %v1561_v10 = vld [vmem:[%s12673_s3 + $0xb8] sm:$0xff]  ;;  %v1544_v26 = vld [vmem:[%s12673_s3 + $0x30] sm:$0xff] }
  0xa7   :  { %759 = vmatmul.mubr.f32.gmra.mrb[30].mxu0 %v9141_v31  ;;  %7779 = vmatprep.subr.bf16.mxu1 %v7778_v48  ;;  %v498_v48 = vld [vmem:[#allocation3 + $0x430] sm:$0xff] }
  0xa8   :  { %1081 = vmatmul.mubr.f32.gmra.mrb[46].mxu1 %v9141_v31  ;;  %7749 = vmatpush1.bf16.msra.mxu0 %v9177_v38  ;;  %v7788_v38 = vpack.c.bf16 %v383_v5, %v378_v3  ;;  %v428_v3 = vld [vmem:[#allocation3 + $0x200] sm:$0xff]  ;;  %v433_v5 = vld [vmem:[#allocation3 + $0x228] sm:$0xff] }
  0xa9   :  { %7781 = vmatpush1.bf16.msra.mxu1 %v7780_v55  ;;  %990 = vmatprep.mubr.f32.mxu0 %v8988_v29  ;;  %v583_v55 = vld [vmem:[#allocation3 + $0x6d8] sm:$0xff] }
  0xaa   :  { %1151 = vmatprep.mubr.f32.mxu1 %v12677_v0  ;;  %7783 = vmatprep.subr.bf16.mxu0 %v7782_v58  ;;  %v7802_v58 = vpack.c.bf16 %v503_v51, %v498_v48  ;;  %v7834_v60 = vpack.c.bf16 %v583_v55, %v578_v52  ;;  %v1563_v51 = vld [vmem:[%s12673_s3 + $0xc8] sm:$0xff]  ;;  %v1565_v55 = vld [vmem:[%s12673_s3 + $0xd8] sm:$0xff] }
  0xab   :  { %991 = vmatmul.mubr.f32.vlgmr.msra.gmra.mrb[32].mxu0 %v9050_v32  ;;  %7815 = vmatprep.subr.bf16.mxu1 %v7814_v59 }
  0xac   :  { %1152 = vmatmul.mubr.f32.vlgmr.msra.gmra.mrb[48].mxu1 %v8942_v49  ;;  %7785 = vmatpush3.bf16.msra.mxu0 %v7784_v28  ;;  %v7804_v28 = vpack.c.bf16 %v423_v40, %v418_v25  ;;  %v1548_v25 = vld [vmem:[%s12673_s3 + $0x50] sm:$0xff]  ;;  %v1549_v40 = vld [vmem:[%s12673_s3 + $0x58] sm:$0xff] }
  0xad   :  { %7817 = vmatpush3.bf16.msra.mxu1 %v7814_v59  ;;  %996 = vmatprep.mubr.f32.mxu0 %v8942_v49  ;;  %v508_v59 = vld [vmem:[#allocation3 + $0x480] sm:$0xff] }
  0xae   :  { %1157 = vmatprep.mubr.f32.mxu1 %v12677_v0  ;;  %7787 = vmatprep.subr.bf16.mxu0 %v7786_v57  ;;  %v7806_v57 = vpack.c.bf16 %v513_v27, %v508_v59  ;;  %v1567_v59 = vld [vmem:[%s12673_s3 + $0xe8] sm:$0xff] }
  0xaf   :  { %997 = vmatmul.mubr.f32.gmra.mrb[34].mxu0 %v8988_v29  ;;  %7819 = vmatprep.subr.bf16.mxu1 %v7818_v8 }
  0xb0   :  { %1158 = vmatmul.mubr.f32.gmra.mrb[50].mxu1 %v8955_v62  ;;  %7789 = vmatpush3.bf16.msra.mxu0 %v7788_v38  ;;  %v7808_v38 = vpack.c.bf16 %v433_v5, %v428_v3 }
  0xb1   :  { %1002 = vmatprep.mubr.f32.mxu0 %v8955_v62  ;;  %1163 = vmatprep.mubr.f32.mxu1 %v12677_v0 }
  0xb2   :  { %7791 = vmatprep.subr.bf16.mxu0 %v7790_v15  ;;  %7821 = vmatpush3.bf16.msra.mxu1 %v7818_v8  ;;  %v7838_v8 = vpack.c.bf16 %v593_v36, %v588_v2  ;;  %v7810_v15 = vpack.c.bf16 %v523_v6, %v518_v42  ;;  %v1568_v2 = vld [vmem:[%s12673_s3 + $0xf0] sm:$0xff]  ;;  %v1569_v36 = vld [vmem:[%s12673_s3 + $0xf8] sm:$0xff]  ;;  %v1570_v42 = vld [vmem:[%s12673_s3 + $0x100] sm:$0xff] }
  0xb3   :  { %1003 = vmatmul.mubr.f32.gmra.mrb[36].mxu0 %v8942_v49  ;;  %7823 = vmatprep.subr.bf16.mxu1 %v7822_v20  ;;  %v9465_v3 = vpack.c.bf16 %v1569_v36, %v1568_v2 }
  0xb4   :  { %1164 = vmatmul.mubr.f32.gmra.mrb[52].mxu1 %v8968_v12  ;;  %7793 = vmatpush3.bf16.msra.mxu0 %v7792_v21  ;;  %v1538_v21 = vld [vmem:[%s12673_s3] sm:$0xff] }
  0xb5   :  { %1008 = vmatprep.mubr.f32.mxu0 %v8968_v12  ;;  %1169 = vmatprep.mubr.f32.mxu1 %v12677_v0  ;;  %v9321_v22 = vpack.c.bf16 %v1539_v63, %v1538_v21  ;;  %12981 = vst [vmem:[#allocation22_spill] sm:$0xff] %v9465_v3  ;;  %v1590_v21 = vld [vmem:[%s12673_s3 + $0x1a0] sm:$0xff]  ;;  %v1591_v63 = vld [vmem:[%s12673_s3 + $0x1a8] sm:$0xff] }
  0xb6   :  { %7795 = vmatprep.subr.bf16.mxu0 %v7794_v33  ;;  %7825 = vmatpush3.bf16.msra.mxu1 %v7822_v20  ;;  %v8789_v20 = vld [vmem:[%s12670_s0 + $0x10] sm:$0xff] }
  0xb7   :  { %1009 = vmatmul.mubr.f32.gmra.mrb[38].mxu0 %v8955_v62  ;;  %7827 = vmatprep.subr.bf16.mxu1 %v7826_v37  ;;  %v1540_v33 = vld [vmem:[%s12673_s3 + $0x10] sm:$0xff] }
  0xb8   :  { %1170 = vmatmul.mubr.f32.gmra.mrb[54].mxu1 %v8979_v24  ;;  %7797 = vmatpush3.bf16.msra.mxu0 %v7796_v43  ;;  %v9343_v13 = vpack.c.bf16 %v1541_v34, %v1540_v33  ;;  %v1542_v43 = vld [vmem:[%s12673_s3 + $0x20] sm:$0xff]  ;;  %v9528_v33 = vpack.c.bf16 %v1591_v63, %v1590_v21  ;;  %v1575_v34 = vld [vmem:[%s12673_s3 + $0x128] sm:$0xff] }
  0xb9   :  { %1014 = vmatprep.mubr.f32.mxu0 %v8979_v24  ;;  %1175 = vmatprep.mubr.f32.mxu1 %v12677_v0  ;;  %v9365_v44 = vpack.c.bf16 %v1543_v7, %v1542_v43 }
  0xba   :  { %7799 = vmatprep.subr.bf16.mxu0 %v7798_v47  ;;  %7829 = vmatpush3.bf16.msra.mxu1 %v7826_v37  ;;  %v1559_v37 = vld [vmem:[%s12673_s3 + $0xa8] sm:$0xff]  ;;  %v1545_v47 = vld [vmem:[%s12673_s3 + $0x38] sm:$0xff]  ;;  %12986 = vst [vmem:[#allocation27_spill] sm:$0xff] %v9528_v33 }
  0xbb   :  { %1015 = vmatmul.mubr.f32.gmra.mrb[40].mxu0 %v8968_v12  ;;  %7831 = vmatprep.subr.bf16.mxu1 %v7830_v16  ;;  %12972 = vst [vmem:[#allocation13_spill] sm:$0xff] %v9365_v44  ;;  %v9387_v48 = vpack.c.bf16 %v1545_v47, %v1544_v26  ;;  %v1576_v26 = vld [vmem:[%s12673_s3 + $0x130] sm:$0xff] }
  0xbc   :  { %1176 = vmatmul.mubr.f32.gmra.mrb[56].mxu1 %v9000_v39  ;;  %7801 = vmatpush3.bf16.msra.mxu0 %v7800_v18  ;;  %v1547_v18 = vld [vmem:[%s12673_s3 + $0x48] sm:$0xff] }
  0xbd   :  { %1020 = vmatprep.mubr.f32.mxu0 %v9000_v39  ;;  %1181 = vmatprep.mubr.f32.mxu1 %v12677_v0  ;;  %12974 = vst [vmem:[#allocation15_spill] sm:$0xff] %v9387_v48 }
  0xbe   :  { %7803 = vmatprep.subr.bf16.mxu0 %v7802_v58  ;;  %7833 = vmatpush3.bf16.msra.mxu1 %v7830_v16  ;;  %v1546_v16 = vld [vmem:[%s12673_s3 + $0x40] sm:$0xff]  ;;  %v9431_v58 = vpack.c.bf16 %v1549_v40, %v1548_v25  ;;  %v1595_v40 = vld [vmem:[%s12673_s3 + $0x1c8] sm:$0xff] }
  0xbf   :  { %1021 = vmatmul.mubr.f32.gmra.mrb[42].mxu0 %v8979_v24  ;;  %7835 = vmatprep.subr.bf16.mxu1 %v7834_v60  ;;  %v9409_v52 = vpack.c.bf16 %v1547_v18, %v1546_v16  ;;  %v1594_v25 = vld [vmem:[%s12673_s3 + $0x1c0] sm:$0xff] }
  0xc0   :  { %1182 = vmatmul.mubr.f32.gmra.mrb[58].mxu1 %v9013_v56  ;;  %7805 = vmatpush3.bf16.msra.mxu0 %v7804_v28  ;;  %12978 = vst [vmem:[#allocation19_spill] sm:$0xff] %v9431_v58 }
  0xc1   :  { %1026 = vmatprep.mubr.f32.mxu0 %v9013_v56  ;;  %1187 = vmatprep.mubr.f32.mxu1 %v12677_v0  ;;  %12976 = vst [vmem:[#allocation17_spill] sm:$0xff] %v9409_v52 }
  0xc2   :  { %7807 = vmatprep.subr.bf16.mxu0 %v7806_v57  ;;  %7837 = vmatpush3.bf16.msra.mxu1 %v7834_v60  ;;  %v1551_v60 = vld [vmem:[%s12673_s3 + $0x68] sm:$0xff] }
  0xc3   :  { %1027 = vmatmul.mubr.f32.gmra.mrb[44].mxu0 %v9000_v39  ;;  %7839 = vmatprep.subr.bf16.mxu1 %v7838_v8  ;;  %v1587_v57 = vld [vmem:[%s12673_s3 + $0x188] sm:$0xff] }
  0xc4   :  { %1188 = vmatmul.mubr.f32.gmra.mrb[60].mxu1 %v9026_v9  ;;  %7809 = vmatpush3.bf16.msra.mxu0 %v7808_v38 }
  0xc5   :  { %1032 = vmatprep.mubr.f32.mxu0 %v9026_v9  ;;  %1193 = vmatprep.mubr.f32.mxu1 %v12677_v0 }
  0xc6   :  { %7811 = vmatprep.subr.bf16.mxu0 %v7810_v15  ;;  %7841 = vmatpush3.bf16.msra.mxu1 %v7838_v8  ;;  %v1571_v8 = vld [vmem:[%s12673_s3 + $0x108] sm:$0xff]  ;;  %v1572_v15 = vld [vmem:[%s12673_s3 + $0x110] sm:$0xff] }
  0xc7   :  { %1033 = vmatmul.mubr.f32.gmra.mrb[46].mxu0 %v9013_v56  ;;  %7843 = vmatprep.subr.bf16.mxu1 %v7842_v19  ;;  %v9491_v38 = vpack.c.bf16 %v1571_v8, %v1570_v42  ;;  %v1580_v42 = vld [vmem:[%s12673_s3 + $0x150] sm:$0xff]  ;;  %v1581_v8 = vld [vmem:[%s12673_s3 + $0x158] sm:$0xff] }
  0xc8   :  { %1194 = vmatmul.mubr.f32.gmra.mrb[62].mxu1 %v9039_v23  ;;  %7813 = vmatpush3.bf16.msra.mxu0 %v7812_v53  ;;  %v1573_v53 = vld [vmem:[%s12673_s3 + $0x118] sm:$0xff] }
  0xc9   :  { %1199 = vmatprep.mubr.f32.mxu1 %v12677_v0  ;;  %1312 = vmatprep.mubr.f32.mxu0 %v8988_v29  ;;  %12983 = vst [vmem:[#allocation24_spill] sm:$0xff] %v9491_v38 }
  0xca   :  { %7845 = vmatpush3.bf16.msra.mxu1 %v7842_v19  ;;  %v9504_v19 = vpack.c.bf16 %v1589_v50, %v1588_v14  ;;  %v9607_v50 = vpack.c.bf16 %v1581_v8, %v1580_v42  ;;  %v1601_v42 = vld [vmem:[%s12673_s3 + $0x1f8] sm:$0xff]  ;;  %v1584_v8 = vld [vmem:[%s12673_s3 + $0x170] sm:$0xff] }
  0xcb   :  { %1313 = vmatmul.mubr.f32.vlgmr.msra.gmra.mrb[48].mxu0 %v9050_v32 }
  0xcc   :  { %1200 = vmatmul.mubr.f32.gmra.mrb[32].mxu1 %v9057_v35  ;;  %1317 = vmatprep.mubr.f32.mxu0 %v8942_v49  ;;  %v1554_v49 = vld [vmem:[%s12673_s3 + $0x80] sm:$0xff]  ;;  %12984 = vst [vmem:[#allocation25_spill] sm:$0xff] %v9504_v19  ;;  %12993 = vst [vmem:[#allocation34_spill] sm:$0xff] %v9607_v50 }
  0xcd   :  { %1205 = vmatprep.mubr.f32.mxu1 %v12677_v0 }
  0xcf   :  { %1318 = vmatmul.mubr.f32.gmra.mrb[50].mxu0 %v8988_v29  ;;  %v8790_v29 = vld [vmem:[%s12670_s0 + $0x18] sm:$0xff] }
  0xd0   :  { %1206 = vmatmul.mubr.f32.gmra.mrb[34].mxu1 %v9073_v41  ;;  %1322 = vmatprep.mubr.f32.mxu0 %v8955_v62 }
  0xd1   :  { %1211 = vmatprep.mubr.f32.mxu1 %v12677_v0 }
  0xd3   :  { %1323 = vmatmul.mubr.f32.gmra.mrb[52].mxu0 %v8789_v20 }
  0xd4   :  { %1212 = vmatmul.mubr.f32.gmra.mrb[36].mxu1 %v9090_v54  ;;  %1327 = vmatprep.mubr.f32.mxu0 %v8968_v12 }
  0xd5   :  { %1217 = vmatprep.mubr.f32.mxu1 %v12677_v0 }
  0xd7   :  { %1328 = vmatmul.mubr.f32.gmra.mrb[54].mxu0 %v8955_v62  ;;  %v1555_v62 = vld [vmem:[%s12673_s3 + $0x88] sm:$0xff] }
  0xd8   :  { %1218 = vmatmul.mubr.f32.gmra.mrb[38].mxu1 %v9107_v4  ;;  %1332 = vmatprep.mubr.f32.mxu0 %v8979_v24  ;;  %v9312_v32 = vpack.c.bf16 %v1555_v62, %v1554_v49  ;;  %v9509_v49 = vpack.c.bf16 %v1573_v53, %v1572_v15 }
  0xd9   :  { %1223 = vmatprep.mubr.f32.mxu1 %v12677_v0 }
  0xda   :  { %12971 = vst [vmem:[#allocation12_spill] sm:$0xff] %v9312_v32  ;;  %7847 = vmatprep.subr.bf16.mxu1 %v9312_v32  ;;  %12985 = vst [vmem:[#allocation26_spill] sm:$0xff] %v9509_v49 }
  0xdb   :  { %1333 = vmatmul.mubr.f32.gmra.mrb[56].mxu0 %v8968_v12 }
  0xdc   :  { %1224 = vmatmul.mubr.f32.gmra.mrb[40].mxu1 %v9124_v17  ;;  %1337 = vmatprep.mubr.f32.mxu0 %v9000_v39 }
  0xdd   :  { %1229 = vmatprep.mubr.f32.mxu1 %v12677_v0 }
  0xdf   :  { %1338 = vmatmul.mubr.f32.gmra.mrb[58].mxu0 %v8979_v24 }
  0xe0   :  { %1230 = vmatmul.mubr.f32.gmra.mrb[42].mxu1 %v9141_v31  ;;  %1342 = vmatprep.mubr.f32.mxu0 %v9013_v56 }
  0xe1   :  { %1235 = vmatprep.mubr.f32.mxu1 %v12677_v0 }
  0xe3   :  { %1343 = vmatmul.mubr.f32.gmra.mrb[60].mxu0 %v9000_v39 }
  0xe4   :  { %1236 = vmatmul.mubr.f32.gmra.mrb[44].mxu1 %v9158_v45  ;;  %1347 = vmatprep.mubr.f32.mxu0 %v9026_v9 }
  0xe5   :  { %1241 = vmatprep.mubr.f32.mxu1 %v12677_v0 }
  0xe7   :  { %1348 = vmatmul.mubr.f32.gmra.mrb[62].mxu0 %v9013_v56 }
  0xe8   :  { %1242 = vmatmul.mubr.f32.gmra.mrb[46].mxu1 %v9175_v61  ;;  %1352 = vmatprep.mubr.f32.mxu0 %v9039_v23 }
  0xe9   :  { %7174 = vmatprep.mubr.f32.mxu1 %v8789_v20 }
  0xeb   :  { %1353 = vmatmul.mubr.f32.gmra.mrb[64].mxu0 %v9026_v9 }
  0xec   :  { %7175 = vmatmul.mubr.f32.vlgmr.msra.gmra.mrb[64].mxu1 %v8790_v29  ;;  %1357 = vmatprep.mubr.f32.mxu0 %v9057_v35 }
  0xed   :  { %7177 = vmatprep.mubr.f32.mxu1 %v8968_v12  ;;  %7849 = vmatpush3.bf16.msra.mxu1 %v9321_v22  ;;  %v9334_v12 = vpack.c.bf16 %v1557_v1, %v1556_v30  ;;  %v1574_v30 = vld [vmem:[%s12673_s3 + $0x120] sm:$0xff] }
  0xef   :  { %1358 = vmatmul.mubr.f32.gmra.mrb[66].mxu0 %v9039_v23  ;;  %7851 = vmatprep.subr.bf16.mxu1 %v9334_v12 }
  0xf0   :  { %7178 = vmatmul.mubr.f32.gmra.mrb[66].mxu1 %v8979_v24  ;;  %1362 = vmatprep.mubr.f32.mxu0 %v9073_v41  ;;  %v1558_v24 = vld [vmem:[%s12673_s3 + $0xa0] sm:$0xff] }
  0xf1   :  { %7180 = vmatprep.mubr.f32.mxu1 %v9000_v39  ;;  %7853 = vmatpush3.bf16.msra.mxu1 %v9343_v13  ;;  %v9356_v39 = vpack.c.bf16 %v1559_v37, %v1558_v24  ;;  %v9533_v24 = vpack.c.bf16 %v1575_v34, %v1574_v30  ;;  %v1598_v34 = vld [vmem:[%s12673_s3 + $0x1e0] sm:$0xff] }
  0xf3   :  { %1363 = vmatmul.mubr.f32.gmra.mrb[68].mxu0 %v9057_v35  ;;  %7855 = vmatprep.subr.bf16.mxu1 %v9356_v39  ;;  %12987 = vst [vmem:[#allocation28_spill] sm:$0xff] %v9533_v24 }
  0xf4   :  { %7181 = vmatmul.mubr.f32.gmra.mrb[68].mxu1 %v9013_v56  ;;  %1367 = vmatprep.mubr.f32.mxu0 %v9090_v54  ;;  %v1560_v56 = vld [vmem:[%s12673_s3 + $0xb0] sm:$0xff] }
  0xf5   :  { %7183 = vmatprep.mubr.f32.mxu1 %v9026_v9  ;;  %7857 = vmatpush3.bf16.msra.mxu1 %v9365_v44  ;;  %v9378_v9 = vpack.c.bf16 %v1561_v10, %v1560_v56  ;;  %v1592_v56 = vld [vmem:[%s12673_s3 + $0x1b0] sm:$0xff]  ;;  %v1593_v10 = vld [vmem:[%s12673_s3 + $0x1b8] sm:$0xff] }
  0xf7   :  { %1368 = vmatmul.mubr.f32.gmra.mrb[70].mxu0 %v9073_v41  ;;  %12973 = vst [vmem:[#allocation14_spill] sm:$0xff] %v9378_v9  ;;  %7859 = vmatprep.subr.bf16.mxu1 %v9378_v9 }
  0xf8   :  { %7184 = vmatmul.mubr.f32.gmra.mrb[70].mxu1 %v9039_v23  ;;  %1372 = vmatprep.mubr.f32.mxu0 %v9107_v4  ;;  %v1562_v23 = vld [vmem:[%s12673_s3 + $0xc0] sm:$0xff] }
  0xf9   :  { %7186 = vmatprep.mubr.f32.mxu1 %v9057_v35  ;;  %7861 = vmatpush3.bf16.msra.mxu1 %v9387_v48  ;;  %v9400_v35 = vpack.c.bf16 %v1563_v51, %v1562_v23  ;;  %v9554_v23 = vpack.c.bf16 %v1593_v10, %v1592_v56  ;;  %v1577_v51 = vld [vmem:[%s12673_s3 + $0x138] sm:$0xff]  ;;  %v1582_v10 = vld [vmem:[%s12673_s3 + $0x160] sm:$0xff] }
  0xfa   :  { %v9559_v16 = vpack.c.bf16 %v1577_v51, %v1576_v26 }
  0xfb   :  { %1373 = vmatmul.mubr.f32.gmra.mrb[72].mxu0 %v9090_v54  ;;  %12975 = vst [vmem:[#allocation16_spill] sm:$0xff] %v9400_v35  ;;  %7863 = vmatprep.subr.bf16.mxu1 %v9400_v35  ;;  %12988 = vst [vmem:[#allocation29_spill] sm:$0xff] %v9554_v23 }
  0xfc   :  { %7187 = vmatmul.mubr.f32.gmra.mrb[72].mxu1 %v9073_v41  ;;  %1377 = vmatprep.mubr.f32.mxu0 %v9124_v17  ;;  %v1564_v41 = vld [vmem:[%s12673_s3 + $0xd0] sm:$0xff]  ;;  %12989 = vst [vmem:[#allocation30_spill] sm:$0xff] %v9559_v16 }
  0xfd   :  { %7189 = vmatprep.mubr.f32.mxu1 %v9090_v54  ;;  %7865 = vmatpush3.bf16.msra.mxu1 %v9409_v52  ;;  %v9422_v54 = vpack.c.bf16 %v1565_v55, %v1564_v41 }
  0xff   :  { %1378 = vmatmul.mubr.f32.gmra.mrb[74].mxu0 %v9107_v4  ;;  %12977 = vst [vmem:[#allocation18_spill] sm:$0xff] %v9422_v54  ;;  %7867 = vmatprep.subr.bf16.mxu1 %v9422_v54 }
 0x100   :  { %7190 = vmatmul.mubr.f32.gmra.mrb[74].mxu1 %v9107_v4  ;;  %1382 = vmatprep.mubr.f32.mxu0 %v9141_v31  ;;  %v1566_v4 = vld [vmem:[%s12673_s3 + $0xe0] sm:$0xff] }
 0x101   :  { %7192 = vmatprep.mubr.f32.mxu1 %v9124_v17  ;;  %7869 = vmatpush3.bf16.msra.mxu1 %v9431_v58  ;;  %v9444_v27 = vpack.c.bf16 %v1567_v59, %v1566_v4  ;;  %v1578_v4 = vld [vmem:[%s12673_s3 + $0x140] sm:$0xff] }
 0x103   :  { %1383 = vmatmul.mubr.f32.gmra.mrb[76].mxu0 %v9124_v17  ;;  %12979 = vst [vmem:[#allocation20_spill] sm:$0xff] %v9444_v27  ;;  %v1550_v17 = vld [vmem:[%s12673_s3 + $0x60] sm:$0xff]  ;;  %7871 = vmatprep.subr.bf16.mxu1 %v9444_v27 }
 0x104   :  { %7193 = vmatmul.mubr.f32.gmra.mrb[76].mxu1 %v9141_v31  ;;  %1387 = vmatprep.mubr.f32.mxu0 %v9158_v45  ;;  %v9453_v28 = vpack.c.bf16 %v1551_v60, %v1550_v17  ;;  %v9580_v17 = vpack.c.bf16 %v1595_v40, %v1594_v25  ;;  %v1579_v60 = vld [vmem:[%s12673_s3 + $0x148] sm:$0xff] }
 0x105   :  { %7195 = vmatprep.mubr.f32.mxu1 %v9158_v45  ;;  %v1552_v45 = vld [vmem:[%s12673_s3 + $0x70] sm:$0xff]  ;;  %v9585_v2 = vpack.c.bf16 %v1579_v60, %v1578_v4 }
 0x106   :  { %12980 = vst [vmem:[#allocation21_spill] sm:$0xff] %v9453_v28  ;;  %7873 = vmatpush3.bf16.msra.mxu1 %v9453_v28  ;;  %12990 = vst [vmem:[#allocation31_spill] sm:$0xff] %v9580_v17 }
 0x107   :  { %1388 = vmatmul.mubr.f32.gmra.mrb[78].mxu0 %v9141_v31  ;;  %v1553_v31 = vld [vmem:[%s12673_s3 + $0x78] sm:$0xff]  ;;  %7875 = vmatprep.subr.bf16.mxu1 %v9465_v3  ;;  %12991 = vst [vmem:[#allocation32_spill] sm:$0xff] %v9585_v2 }
 0x108   :  { %7196 = vmatmul.mubr.f32.gmra.mrb[78].mxu1 %v9175_v61  ;;  %v9473_v5 = vpack.c.bf16 %v1553_v31, %v1552_v45  ;;  %v1586_v61 = vld [vmem:[%s12673_s3 + $0x180] sm:$0xff]  ;;  %v1596_v31 = vld [vmem:[%s12673_s3 + $0x1d0] sm:$0xff] }
 0x109   :  { %v9486_v6 = vpack.c.bf16 %v1587_v57, %v1586_v61  ;;  %v1597_v61 = vld [vmem:[%s12673_s3 + $0x1d8] sm:$0xff] }
 0x10a   :  { %12982 = vst [vmem:[#allocation23_spill] sm:$0xff] %v9473_v5  ;;  %7877 = vmatpush3.bf16.msra.mxu1 %v9473_v5  ;;  %v9599_v57 = vpack.c.bf16 %v1597_v61, %v1596_v31  ;;  %v1600_v61 = vld [vmem:[%s12673_s3 + $0x1f0] sm:$0xff] }
 0x10b   :  { %7879 = vmatprep.subr.bf16.mxu0 %v9486_v6 }
 0x10c   :  { %7881 = vmatpush3.bf16.msra.mxu0 %v9491_v38  ;;  %12992 = vst [vmem:[#allocation33_spill] sm:$0xff] %v9599_v57 }
 0x10d   :  { %7883 = vmatprep.subr.bf16.mxu0 %v9504_v19 }
 0x110   :  { %7885 = vmatpush3.bf16.msra.mxu0 %v9509_v49 }
 0x111   :  { %7887 = vmatprep.subr.bf16.mxu0 %v9528_v33 }
 0x114   :  { %7889 = vmatpush3.bf16.msra.mxu0 %v9533_v24 }
 0x115   :  { %7891 = vmatprep.subr.bf16.mxu0 %v9554_v23 }
 0x118   :  { %7893 = vmatpush3.bf16.msra.mxu0 %v9559_v16 }
 0x119   :  { %7895 = vmatprep.subr.bf16.mxu0 %v9580_v17 }
 0x11c   :  { %7897 = vmatpush3.bf16.msra.mxu0 %v9585_v2 }
 0x11d   :  { %7899 = vmatprep.subr.bf16.mxu0 %v9599_v57 }
 0x11f   :  { %v831_v46 = vpop.f32.mrb[0].mxu1 }
 0x120   :  { %v833_v11 = vpop.f32.mrb[1].mxu1  ;;  %7901 = vmatpush3.bf16.msra.mxu0 %v9607_v50 }
 0x123   :  { %v837_v20 = vpop.f32.mrb[2].mxu1 }
 0x124   :  { %v9511_v62 = vpop.f32.mrb[3].mxu1 }
 0x127   :  { %v9515_v29 = vpop.f32.mrb[4].mxu1 }
 0x128   :  { %v9526_v1 = vpop.f32.mrb[5].mxu1 }
 0x12b   :  { %v9536_v37 = vpop.f32.mrb[6].mxu1 }
 0x12c   :  { %v9539_v43 = vpop.f32.mrb[7].mxu1 }
 0x12f   :  { %v9541_v7 = vpop.f32.mrb[8].mxu1 }
 0x130   :  { %v9552_v47 = vpop.f32.mrb[9].mxu1 }
 0x133   :  { %v9562_v18 = vpop.f32.mrb[10].mxu1 }
 0x134   :  { %v9565_v41 = vpop.f32.mrb[11].mxu1 }
 0x137   :  { %v9567_v55 = vpop.f32.mrb[12].mxu1 }
 0x138   :  { %v9578_v59 = vpop.f32.mrb[13].mxu1 }
 0x13b   :  { %v9588_v36 = vpop.f32.mrb[14].mxu1 }
 0x13c   :  { %v9591_v45 = vpop.f32.mrb[15].mxu1 }
 0x13e   :  { %v670_v14 = vpop.f32.mrb[0].mxu0 }
 0x13f   :  { %v9609_v15 = vadd.f32 %v831_v46, %v670_v14  ;;  %v9611_v53 = vpop.f32.mrb[16].mxu1  ;;  %v672_v21 = vpop.f32.mrb[1].mxu0  ;;  %v1599_v46 = vld [vmem:[%s12673_s3 + $0x1e8] sm:$0xff] }
 0x140   :  { %v9614_v63 = vadd.f32 %v833_v11, %v672_v21  ;;  %v9616_v30 = vpop.f32.mrb[17].mxu1  ;;  %v9625_v56 = vpack.c.bf16 %v1599_v46, %v1598_v34  ;;  %v1583_v11 = vld [vmem:[%s12673_s3 + $0x168] sm:$0xff] }
 0x141   :  { %12994 = vst [vmem:[#allocation35_spill] sm:$0xff] %v9609_v15  ;;  %v9633_v51 = vpack.c.bf16 %v1583_v11, %v1582_v10 }
 0x142   :  { %12995 = vst [vmem:[#allocation36_spill] sm:$0xff] %v9614_v63  ;;  %12996 = vst [vmem:[#allocation37_spill] sm:$0xff] %v9625_v56  ;;  %v676_v26 = vpop.f32.mrb[2].mxu0  ;;  %7903 = vmatprep.subr.bf16.mxu0 %v9625_v56 }
 0x143   :  { %12997 = vst [vmem:[#allocation38_spill] sm:$0xff] %v9633_v51  ;;  %v9635_v25 = vadd.f32 %v837_v20, %v676_v26  ;;  %v885_v40 = vpop.f32.mrb[18].mxu1  ;;  %v678_v4 = vpop.f32.mrb[3].mxu0  ;;  %7905 = vmatpush3.bf16.msra.mxu0 %v9633_v51  ;;  %v9648_v20 = vpack.c.bf16 %v1601_v42, %v1600_v61 }
 0x144   :  { %v9639_v60 = vadd.f32 %v9511_v62, %v678_v4  ;;  %v887_v31 = vpop.f32.mrb[19].mxu1  ;;  %v1585_v62 = vld [vmem:[%s12673_s3 + $0x178] sm:$0xff] }
 0x145   :  { %12998 = vst [vmem:[#allocation39_spill] sm:$0xff] %v9635_v25  ;;  %13000 = vst [vmem:[#allocation41_spill] sm:$0xff] %v9648_v20  ;;  %v9656_v21 = vpack.c.bf16 %v1585_v62, %v1584_v8  ;;  %7907 = vmatprep.subr.bf16.mxu0 %v9648_v20  ;;  %v12691_v20 = vmov 0.0|0.0  }
 0x146   :  { %12999 = vst [vmem:[#allocation40_spill] sm:$0xff] %v9639_v60  ;;  %v682_v14 = vpop.f32.mrb[4].mxu0  ;;  %7910 = vmatprep.subr.bf16.mxu1 %v12691_v20  ;;  %v1731_v27 = vmul.f32 %v9639_v60, %v9639_v60 }
 0x147   :  { %13001 = vst [vmem:[#allocation42_spill] sm:$0xff] %v9656_v21  ;;  %v9659_v34 = vadd.f32 %v9515_v29, %v682_v14  ;;  %v891_v46 = vpop.f32.mrb[20].mxu1  ;;  %v684_v10 = vpop.f32.mrb[5].mxu0  ;;  %7909 = vmatpush3.bf16.msra.mxu0 %v9656_v21 }
 0x148   :  { %v9663_v11 = vadd.f32 %v9526_v1, %v684_v10  ;;  %v893_v26 = vpop.f32.mrb[21].mxu1  ;;  %7935 = vmatprep.subr.bf16.mxu0 %v9312_v32 }
 0x149   :  { %13002 = vst [vmem:[#allocation43_spill] sm:$0xff] %v9659_v34 }
 0x14a   :  { %13003 = vst [vmem:[#allocation44_spill] sm:$0xff] %v9663_v11  ;;  %v688_v4 = vpop.f32.mrb[6].mxu0 }
 0x14b   :  { %v9668_v61 = vadd.f32 %v9536_v37, %v688_v4  ;;  %v897_v42 = vpop.f32.mrb[22].mxu1  ;;  %v690_v8 = vpop.f32.mrb[7].mxu0 }
 0x14c   :  { %v9671_v29 = vadd.f32 %v9539_v43, %v690_v8  ;;  %v899_v62 = vpop.f32.mrb[23].mxu1 }
 0x14d   :  { %13004 = vst [vmem:[#allocation45_spill] sm:$0xff] %v9668_v61 }
 0x14e   :  { %13005 = vst [vmem:[#allocation46_spill] sm:$0xff] %v9671_v29  ;;  %v694_v14 = vpop.f32.mrb[8].mxu0 }
 0x14f   :  { %v9674_v0 = vadd.f32 %v9541_v7, %v694_v14  ;;  %v903_v1 = vpop.f32.mrb[24].mxu1  ;;  %v696_v10 = vpop.f32.mrb[9].mxu0 }
 0x150   :  { %v9678_v32 = vadd.f32 %v9552_v47, %v696_v10  ;;  %v905_v37 = vpop.f32.mrb[25].mxu1 }
 0x151   :  { %13006 = vst [vmem:[#allocation47_spill] sm:$0xff] %v9674_v0 }
 0x152   :  { %13007 = vst [vmem:[#allocation48_spill] sm:$0xff] %v9678_v32  ;;  %v700_v4 = vpop.f32.mrb[10].mxu0  ;;  %v1746_v52 = vmul.f32 %v9678_v32, %v9678_v32 }
 0x153   :  { %v9681_v21 = vadd.f32 %v9562_v18, %v700_v4  ;;  %v909_v43 = vpop.f32.mrb[26].mxu1  ;;  %v702_v8 = vpop.f32.mrb[11].mxu0 }
 0x154   :  { %v9684_v51 = vadd.f32 %v9565_v41, %v702_v8  ;;  %v911_v7 = vpop.f32.mrb[27].mxu1 }
 0x155   :  { %13008 = vst [vmem:[#allocation49_spill] sm:$0xff] %v9681_v21 }
 0x156   :  { %13009 = vst [vmem:[#allocation50_spill] sm:$0xff] %v9684_v51  ;;  %v706_v14 = vpop.f32.mrb[12].mxu0 }
 0x157   :  { %v9687_v56 = vadd.f32 %v9567_v55, %v706_v14  ;;  %v915_v50 = vpop.f32.mrb[28].mxu1  ;;  %v708_v20 = vpop.f32.mrb[13].mxu0 }
 0x158   :  { %v9690_v47 = vadd.f32 %v9578_v59, %v708_v20  ;;  %v917_v10 = vpop.f32.mrb[29].mxu1  ;;  %v1620_v59 = vadd.f32 %v9635_v25, %v9609_v15 }
 0x159   :  { %13010 = vst [vmem:[#allocation51_spill] sm:$0xff] %v9687_v56 }
 0x15a   :  { %13011 = vst [vmem:[#allocation52_spill] sm:$0xff] %v9690_v47  ;;  %v712_v57 = vpop.f32.mrb[14].mxu0  ;;  %v1621_v20 = vadd.f32 %v1620_v59, %v9659_v34 }
 0x15b   :  { %v9693_v18 = vadd.f32 %v9588_v36, %v712_v57  ;;  %v921_v4 = vpop.f32.mrb[30].mxu1  ;;  %v714_v2 = vpop.f32.mrb[15].mxu0  ;;  %v1641_v36 = vadd.f32 %v9639_v60, %v9614_v63 }
 0x15c   :  { %v9696_v41 = vadd.f32 %v9591_v45, %v714_v2  ;;  %v923_v8 = vpop.f32.mrb[31].mxu1 }
 0x15d   :  { %13012 = vst [vmem:[#allocation53_spill] sm:$0xff] %v9693_v18  ;;  %v1642_v23 = vadd.f32 %v1641_v36, %v9663_v11 }
 0x15e   :  { %13013 = vst [vmem:[#allocation54_spill] sm:$0xff] %v9696_v41  ;;  %v718_v17 = vpop.f32.mrb[16].mxu0 }
 0x15f   :  { %v9699_v55 = vadd.f32 %v9611_v53, %v718_v17  ;;  %v720_v14 = vpop.f32.mrb[17].mxu0  ;;  %v1622_v53 = vadd.f32 %v1621_v20, %v9668_v61 }
 0x160   :  { %v9702_v16 = vadd.f32 %v9616_v30, %v720_v14  ;;  %v1643_v30 = vadd.f32 %v1642_v23, %v9671_v29 }
 0x161   :  { %13014 = vst [vmem:[#allocation55_spill] sm:$0xff] %v9699_v55  ;;  %v1623_v24 = vadd.f32 %v1622_v53, %v9674_v0 }
 0x162   :  { %13015 = vst [vmem:[#allocation56_spill] sm:$0xff] %v9702_v16  ;;  %v724_v57 = vpop.f32.mrb[18].mxu0  ;;  %v1644_v19 = vadd.f32 %v1643_v30, %v9678_v32 }
 0x163   :  { %v9709_v2 = vadd.f32 %v885_v40, %v724_v57  ;;  %v726_v45 = vpop.f32.mrb[19].mxu0  ;;  %v1624_v40 = vadd.f32 %v1623_v24, %v9681_v21 }
 0x164   :  { %v9712_v17 = vadd.f32 %v887_v31, %v726_v45  ;;  %v1645_v36 = vadd.f32 %v1644_v19, %v9684_v51 }
 0x165   :  { %13016 = vst [vmem:[#allocation57_spill] sm:$0xff] %v9709_v2  ;;  %v1625_v57 = vadd.f32 %v1624_v40, %v9687_v56 }
 0x166   :  { %13017 = vst [vmem:[#allocation58_spill] sm:$0xff] %v9712_v17  ;;  %v730_v14 = vpop.f32.mrb[20].mxu0  ;;  %v1646_v45 = vadd.f32 %v1645_v36, %v9690_v47 }
 0x167   :  { %v9717_v33 = vadd.f32 %v891_v46, %v730_v14  ;;  %v732_v49 = vpop.f32.mrb[21].mxu0  ;;  %v1626_v46 = vadd.f32 %v1625_v57, %v9693_v18 }
 0x168   :  { %v9720_v59 = vadd.f32 %v893_v26, %v732_v49  ;;  %v1647_v30 = vadd.f32 %v1646_v45, %v9696_v41 }
 0x169   :  { %13018 = vst [vmem:[#allocation59_spill] sm:$0xff] %v9717_v33  ;;  %v1627_v26 = vadd.f32 %v1626_v46, %v9699_v55 }
 0x16a   :  { %13019 = vst [vmem:[#allocation60_spill] sm:$0xff] %v9720_v59  ;;  %v736_v31 = vpop.f32.mrb[22].mxu0  ;;  %v1648_v14 = vadd.f32 %v1647_v30, %v9702_v16 }
 0x16b   :  { %v9725_v20 = vadd.f32 %v897_v42, %v736_v31  ;;  %v738_v23 = vpop.f32.mrb[23].mxu0  ;;  %v1628_v42 = vadd.f32 %v1627_v26, %v9709_v2 }
 0x16c   :  { %v9728_v53 = vadd.f32 %v899_v62, %v738_v23  ;;  %v1649_v36 = vadd.f32 %v1648_v14, %v9712_v17 }
 0x16d   :  { %13020 = vst [vmem:[#allocation61_spill] sm:$0xff] %v9725_v20  ;;  %v1629_v31 = vadd.f32 %v1628_v42, %v9717_v33 }
 0x16e   :  { %13021 = vst [vmem:[#allocation62_spill] sm:$0xff] %v9728_v53  ;;  %v742_v49 = vpop.f32.mrb[24].mxu0  ;;  %v1650_v45 = vadd.f32 %v1649_v36, %v9720_v59 }
 0x16f   :  { %v9733_v24 = vadd.f32 %v903_v1, %v742_v49  ;;  %v744_v19 = vpop.f32.mrb[25].mxu0  ;;  %v1630_v1 = vadd.f32 %v1629_v31, %v9725_v20 }
 0x170   :  { %v9736_v40 = vadd.f32 %v905_v37, %v744_v19  ;;  %v1651_v30 = vadd.f32 %v1650_v45, %v9728_v53 }
 0x171   :  { %13022 = vst [vmem:[#allocation63_spill] sm:$0xff] %v9733_v24  ;;  %v1631_v49 = vadd.f32 %v1630_v1, %v9733_v24 }
 0x172   :  { %13023 = vst [vmem:[#allocation64_spill] sm:$0xff] %v9736_v40  ;;  %v748_v62 = vpop.f32.mrb[26].mxu0  ;;  %v1652_v14 = vadd.f32 %v1651_v30, %v9736_v40 }
 0x173   :  { %v9741_v57 = vadd.f32 %v909_v43, %v748_v62  ;;  %v750_v23 = vpop.f32.mrb[27].mxu0 }
 0x174   :  { %v9744_v46 = vadd.f32 %v911_v7, %v750_v23 }
 0x175   :  { %13024 = vst [vmem:[#allocation65_spill] sm:$0xff] %v9741_v57  ;;  %v1632_v43 = vadd.f32 %v1631_v49, %v9741_v57 }
 0x176   :  { %13025 = vst [vmem:[#allocation66_spill] sm:$0xff] %v9744_v46  ;;  %v754_v37 = vpop.f32.mrb[28].mxu0  ;;  %v1653_v36 = vadd.f32 %v1652_v14, %v9744_v46 }
 0x177   :  { %v9749_v26 = vadd.f32 %v915_v50, %v754_v37  ;;  %v756_v19 = vpop.f32.mrb[29].mxu0 }
 0x178   :  { %v9752_v42 = vadd.f32 %v917_v10, %v756_v19 }
 0x179   :  { %13026 = vst [vmem:[#allocation67_spill] sm:$0xff] %v9749_v26  ;;  %v1633_v62 = vadd.f32 %v1632_v43, %v9749_v26 }
 0x17a   :  { %13027 = vst [vmem:[#allocation68_spill] sm:$0xff] %v9752_v42  ;;  %v760_v7 = vpop.f32.mrb[30].mxu0  ;;  %v1654_v45 = vadd.f32 %v1653_v36, %v9752_v42 }
 0x17b   :  { %v9757_v31 = vadd.f32 %v921_v4, %v760_v7  ;;  %v762_v23 = vpop.f32.mrb[31].mxu0 }
 0x17c   :  { %v9760_v1 = vadd.f32 %v923_v8, %v762_v23 }
 0x17d   :  { %13028 = vst [vmem:[#allocation69_spill] sm:$0xff] %v9757_v31  ;;  %v1634_v50 = vadd.f32 %v1633_v62, %v9757_v31 }
 0x17e   :  { %13029 = vst [vmem:[#allocation70_spill] sm:$0xff] %v9760_v1  ;;  %v1655_v30 = vadd.f32 %v1654_v45, %v9760_v1  ;;  %v992_v10 = vpop.f32.mrb[32].mxu0 }
 0x17f   :  { %v1635_v37 = vrot.slane %v1634_v50, 4  ;;  %v1153_v19 = vpop.f32.mrb[48].mxu1  ;;  %v994_v49 = vpop.f32.mrb[33].mxu0 }
 0x180   :  { %v1656_v38 = vrot.slane %v1655_v30, 4  ;;  %v9764_v14 = vadd.f32 %v1153_v19, %v992_v10  ;;  %v1155_v5 = vpop.f32.mrb[49].mxu1 }
 0x181   :  { %v1636_v43 = vadd.f32 %v1635_v37, %v1634_v50  ;;  %v9766_v4 = vadd.f32 %v1155_v5, %v994_v49  ;;  %v1726_v5 = vmul.f32 %v9614_v63, %v9614_v63  ;;  %v1602_v37 = vld [vmem:[%s12673_s3 + $0x200] sm:$0xff]  ;;  %v1603_v49 = vld [vmem:[%s12673_s3 + $0x208] sm:$0xff] }
 0x182   :  { %13030 = vst [vmem:[#allocation71_spill] sm:$0xff] %v9764_v14  ;;  %v1657_v7 = vadd.f32 %v1656_v38, %v1655_v30  ;;  %v998_v3 = vpop.f32.mrb[34].mxu0  ;;  %v1736_v38 = vmul.f32 %v9663_v11, %v9663_v11  ;;  %v9790_v60 = vpack.c.bf16 %v1603_v49, %v1602_v37  ;;  %v1606_v49 = vld [vmem:[%s12673_s3 + $0x220] sm:$0xff] }
 0x183   :  { %13031 = vst [vmem:[#allocation72_spill] sm:$0xff] %v9766_v4  ;;  %v1637_v36 = vrot.slane %v1636_v43, 2  ;;  %v1159_v8 = vpop.f32.mrb[50].mxu1  ;;  %v1000_v23 = vpop.f32.mrb[35].mxu0 }
 0x184   :  { %v9768_v28 = vadd.f32 %v1159_v8, %v998_v3  ;;  %v1161_v62 = vpop.f32.mrb[51].mxu1  ;;  %v1658_v45 = vrot.slane %v1657_v7, 2  ;;  %v1826_v8 = vadd.f32 %v1731_v27, %v1726_v5  ;;  %13036 = vst [vmem:[#allocation77_spill] sm:$0xff] %v9790_v60  ;;  %v1604_v27 = vld [vmem:[%s12673_s3 + $0x210] sm:$0xff]  ;;  %v1605_v5 = vld [vmem:[%s12673_s3 + $0x218] sm:$0xff] }
 0x185   :  { %v1638_v58 = vadd.f32 %v1637_v36, %v1636_v43  ;;  %v9772_v54 = vadd.f32 %v1161_v62, %v1000_v23  ;;  %v1741_v23 = vmul.f32 %v9671_v29, %v9671_v29 }
 0x186   :  { %13032 = vst [vmem:[#allocation73_spill] sm:$0xff] %v9768_v28  ;;  %v1004_v10 = vpop.f32.mrb[36].mxu0  ;;  %v1659_v19 = vadd.f32 %v1658_v45, %v1657_v7  ;;  %v1827_v63 = vadd.f32 %v1826_v8, %v1736_v38  ;;  %v1751_v38 = vmul.f32 %v9684_v51, %v9684_v51  ;;  %v1732_v8 = vmul.f32 %v9768_v28, %v9768_v28 }
 0x187   :  { %13033 = vst [vmem:[#allocation74_spill] sm:$0xff] %v9772_v54  ;;  %v1639_v50 = vrot.slane %v1638_v58, 1  ;;  %v1165_v30 = vpop.f32.mrb[52].mxu1  ;;  %v1006_v3 = vpop.f32.mrb[37].mxu0  ;;  %v1662_v51 = vadd.f32 %v9768_v28, %v9764_v14 }
 0x188   :  { %v9784_v43 = vadd.f32 %v1165_v30, %v1004_v10  ;;  %v1167_v7 = vpop.f32.mrb[53].mxu1  ;;  %v1660_v36 = vrot.slane %v1659_v19, 1 }
 0x189   :  { %v9788_v62 = vadd.f32 %v1167_v7, %v1006_v3  ;;  %v1640_v35 = vadd.f32 %v1639_v50, %v1638_v58  ;;  %v1828_v3 = vadd.f32 %v1827_v63, %v1741_v23  ;;  %v9807_v50 = vpack.c.bf16 %v1605_v5, %v1604_v27  ;;  %v1609_v27 = vld [vmem:[%s12673_s3 + $0x238] sm:$0xff] }
 0x18a   :  { %13034 = vst [vmem:[#allocation75_spill] sm:$0xff] %v9784_v43  ;;  %v1010_v45 = vpop.f32.mrb[38].mxu0  ;;  %v1661_v11 = vadd.f32 %v1660_v36, %v1659_v19  ;;  %v13040_v63 = vmov 0.0   ;;  %v13041_v36 = vmov 0.0|0.0   ;;  %v1737_v32 = vmul.f32 %v9784_v43, %v9784_v43 }
 0x18b   :  { %13035 = vst [vmem:[#allocation76_spill] sm:$0xff] %v9788_v62  ;;  %v1171_v48 = vpop.f32.mrb[54].mxu1  ;;  %v1012_v10 = vpop.f32.mrb[39].mxu0  ;;  %13039 = vst [vmem:[#allocation80_spill] sm:$0xff] %v9807_v50 }
 0x18c   :  { %v9800_v30 = vadd.f32 %v1171_v48, %v1010_v45  ;;  %v1173_v19 = vpop.f32.mrb[55].mxu1  ;;  %1974 = vmatprep.mubr.f32.mxu1 %v1661_v11  ;;  %v1607_v48 = vld [vmem:[%s12673_s3 + $0x228] sm:$0xff]  ;;  %v1829_v11 = vadd.f32 %v1828_v3, %v1746_v52  ;;  %v1733_v52 = vmul.f32 %v9772_v54, %v9772_v54 }
 0x18d   :  { %v9804_v37 = vadd.f32 %v1173_v19, %v1012_v10  ;;  %1975 = vmatmul.mubr.f32.vlgmr.msra.gmra.mrb[80].mxu1 %v1640_v35  ;;  %v1608_v10 = vld [vmem:[%s12673_s3 + $0x230] sm:$0xff]  ;;  %v9832_v3 = vpack.c.bf16 %v1607_v48, %v1606_v49  ;;  %v1683_v49 = vadd.f32 %v9772_v54, %v9766_v4  ;;  %v1738_v48 = vmul.f32 %v9788_v62, %v9788_v62 }
 0x18e   :  { %13037 = vst [vmem:[#allocation78_spill] sm:$0xff] %v9800_v30  ;;  %v1016_v58 = vpop.f32.mrb[40].mxu0  ;;  %7912 = vmatpush3.bf16.msra.mxu1 %v9790_v60  ;;  %7230 = vmatprep.mubr.msk.f32.mxu1 %vm8871_vm0, %v13040_v63  ;;  %v1830_v5 = vadd.f32 %v1829_v11, %v1751_v38  ;;  %v1728_v11 = vmul.f32 %v9766_v4, %v9766_v4 }
 0x18f   :  { %13038 = vst [vmem:[#allocation79_spill] sm:$0xff] %v9804_v37  ;;  %v1177_v7 = vpop.f32.mrb[56].mxu1  ;;  %v1018_v35 = vpop.f32.mrb[41].mxu0  ;;  %7913 = vmatprep.subr.bf16.mxu1 %v13041_v36  ;;  %v9850_v28 = vpack.c.bf16 %v1609_v27, %v1608_v10  ;;  %v1742_v29 = vmul.f32 %v9800_v30, %v9800_v30  ;;  %v1684_v54 = vadd.f32 %v1683_v49, %v9788_v62 }
 0x190   :  { %v9820_v23 = vadd.f32 %v1177_v7, %v1016_v58  ;;  %v1179_v45 = vpop.f32.mrb[57].mxu1  ;;  %v1756_v58 = vmul.f32 %v9690_v47, %v9690_v47  ;;  %v1727_v7 = vmul.f32 %v9764_v14, %v9764_v14  ;;  %v1663_v47 = vadd.f32 %v1662_v51, %v9784_v43 }
 0x191   :  { %v9830_v19 = vadd.f32 %v1179_v45, %v1018_v35  ;;  %v1868_v60 = vadd.f32 %v1733_v52, %v1728_v11  ;;  %v1743_v4 = vmul.f32 %v9804_v37, %v9804_v37  ;;  %v1761_v52 = vmul.f32 %v9696_v41, %v9696_v41 }
 0x192   :  { %13042 = vst [vmem:[#allocation81_spill] sm:$0xff] %v9820_v23  ;;  %v1022_v38 = vpop.f32.mrb[42].mxu0  ;;  %7915 = vmatpush3.bf16.msra.mxu1 %v9807_v50  ;;  %v1847_v14 = vadd.f32 %v1732_v8, %v1727_v7  ;;  %v1831_v44 = vadd.f32 %v1830_v5, %v1756_v58  ;;  %v1664_v8 = vadd.f32 %v1663_v47, %v9800_v30  ;;  %v1611_v47 = vld [vmem:[%s12673_s3 + $0x248] sm:$0xff] }
 0x193   :  { %13043 = vst [vmem:[#allocation82_spill] sm:$0xff] %v9830_v19  ;;  %v1183_v35 = vpop.f32.mrb[58].mxu1  ;;  %v1024_v45 = vpop.f32.mrb[43].mxu0  ;;  %7916 = vmatprep.subr.bf16.mxu1 %v13041_v36  ;;  %v1747_v51 = vmul.f32 %v9820_v23, %v9820_v23  ;;  %v1869_v7 = vadd.f32 %v1868_v60, %v1738_v48 }
 0x194   :  { %v9855_v50 = vadd.f32 %v1183_v35, %v1022_v38  ;;  %v1185_v63 = vpop.f32.mrb[59].mxu1  ;;  %v1848_v10 = vadd.f32 %v1847_v14, %v1737_v32  ;;  %v1685_v38 = vadd.f32 %v1684_v54, %v9804_v37  ;;  %v1610_v32 = vld [vmem:[%s12673_s3 + $0x240] sm:$0xff]  ;;  %v1665_v60 = vadd.f32 %v1664_v8, %v9820_v23 }
 0x195   :  { %v9860_v9 = vadd.f32 %v1185_v63, %v1024_v45  ;;  %v1748_v63 = vmul.f32 %v9830_v19, %v9830_v19  ;;  %v1870_v48 = vadd.f32 %v1869_v7, %v1743_v4  ;;  %v9892_v8 = vpack.c.bf16 %v1611_v47, %v1610_v32 }
 0x196   :  { %13044 = vst [vmem:[#allocation83_spill] sm:$0xff] %v9855_v50  ;;  %v1028_v27 = vpop.f32.mrb[44].mxu0  ;;  %7918 = vmatpush3.bf16.msra.mxu1 %v9832_v3  ;;  %v1849_v14 = vadd.f32 %v1848_v10, %v1742_v29  ;;  %v1752_v54 = vmul.f32 %v9855_v50, %v9855_v50  ;;  %v1686_v35 = vadd.f32 %v1685_v38, %v9830_v19 }
 0x197   :  { %13045 = vst [vmem:[#allocation84_spill] sm:$0xff] %v9860_v9  ;;  %v1189_v11 = vpop.f32.mrb[60].mxu1  ;;  %v1030_v5 = vpop.f32.mrb[45].mxu0  ;;  %7919 = vmatprep.subr.bf16.mxu1 %v13041_v36  ;;  %v1753_v45 = vmul.f32 %v9860_v9, %v9860_v9  ;;  %v1666_v43 = vadd.f32 %v1665_v60, %v9855_v50  ;;  %v1832_v32 = vadd.f32 %v1831_v44, %v1761_v52 }
 0x198   :  { %v9881_v58 = vadd.f32 %v1189_v11, %v1028_v27  ;;  %v1191_v49 = vpop.f32.mrb[61].mxu1  ;;  %v1850_v37 = vadd.f32 %v1849_v14, %v1747_v51  ;;  %v1871_v27 = vadd.f32 %v1870_v48, %v1748_v63  ;;  %v1687_v4 = vadd.f32 %v1686_v35, %v9860_v9  ;;  %v1612_v51 = vld [vmem:[%s12673_s3 + $0x250] sm:$0xff] }
 0x199   :  { %v9886_v30 = vadd.f32 %v1191_v49, %v1030_v5  ;;  %v1613_v5 = vld [vmem:[%s12673_s3 + $0x258] sm:$0xff]  ;;  %v1766_v49 = vmul.f32 %v9702_v16, %v9702_v16  ;;  %v1771_v52 = vmul.f32 %v9712_v17, %v9712_v17 }
 0x19a   :  { %13046 = vst [vmem:[#allocation85_spill] sm:$0xff] %v9881_v58  ;;  %v1757_v29 = vmul.f32 %v9881_v58, %v9881_v58  ;;  %v1034_v10 = vpop.f32.mrb[46].mxu0  ;;  %7921 = vmatpush3.bf16.msra.mxu1 %v9850_v28  ;;  %v1851_v47 = vadd.f32 %v1850_v37, %v1752_v54  ;;  %v1667_v63 = vadd.f32 %v1666_v43, %v9881_v58 }
 0x19b   :  { %13047 = vst [vmem:[#allocation86_spill] sm:$0xff] %v9886_v30  ;;  %v1758_v7 = vmul.f32 %v9886_v30, %v9886_v30  ;;  %v1195_v38 = vpop.f32.mrb[62].mxu1  ;;  %v1036_v11 = vpop.f32.mrb[47].mxu0  ;;  %7922 = vmatprep.subr.bf16.mxu1 %v13041_v36  ;;  %v1872_v48 = vadd.f32 %v1871_v27, %v1753_v45  ;;  %v1688_v35 = vadd.f32 %v1687_v4, %v9886_v30  ;;  %v1614_v4 = vld [vmem:[%s12673_s3 + $0x260] sm:$0xff] }
 0x19c   :  { %v9905_v14 = vadd.f32 %v1195_v38, %v1034_v10  ;;  %v1197_v60 = vpop.f32.mrb[63].mxu1  ;;  %v1852_v9 = vadd.f32 %v1851_v47, %v1757_v29  ;;  %v9916_v43 = vpack.c.bf16 %v1613_v5, %v1612_v51  ;;  %v1615_v38 = vld [vmem:[%s12673_s3 + $0x268] sm:$0xff]  ;;  %v1833_v47 = vadd.f32 %v1832_v32, %v1766_v49  ;;  %v1617_v49 = vld [vmem:[%s12673_s3 + $0x278] sm:$0xff] }
 0x19d   :  { %v9910_v50 = vadd.f32 %v1197_v60, %v1036_v11  ;;  %v1873_v54 = vadd.f32 %v1872_v48, %v1758_v7 }
 0x19e   :  { %13048 = vst [vmem:[#allocation87_spill] sm:$0xff] %v9905_v14  ;;  %v1668_v23 = vadd.f32 %v1667_v63, %v9905_v14  ;;  %v1762_v44 = vmul.f32 %v9905_v14, %v9905_v14  ;;  %v6026_v37 = vpop.f32.mrb[48].mxu0  ;;  %7924 = vmatpush3.bf16.msra.mxu1 %v9892_v8  ;;  %v9942_v14 = vpack.c.bf16 %v1615_v38, %v1614_v4 }
 0x19f   :  { %13049 = vst [vmem:[#allocation88_spill] sm:$0xff] %v9910_v50  ;;  %v1689_v45 = vadd.f32 %v1688_v35, %v9910_v50  ;;  %v1763_v10 = vmul.f32 %v9910_v50, %v9910_v50  ;;  %v9923_v29 = vpop.f32.mrb[32].mxu1  ;;  %v6027_v27 = vpop.f32.mrb[49].mxu0  ;;  %7925 = vmatprep.subr.bf16.mxu1 %v13041_v36  ;;  %v1781_v4 = vmul.f32 %v9728_v53, %v9728_v53 }
 0x1a0   :  { %13050 = vst [vmem:[#allocation89_spill] sm:$0xff] %v9923_v29  ;;  %v1853_v11 = vadd.f32 %v1852_v9, %v1762_v44  ;;  %v1767_v7 = vmul.f32 %v9923_v29, %v9923_v29  ;;  %v9934_v51 = vpop.f32.mrb[33].mxu1  ;;  %v9936_v5 = vadd.f32 %v6027_v27, %v6026_v37  ;;  %v1669_v48 = vadd.f32 %v1668_v23, %v9923_v29  ;;  %v1616_v23 = vld [vmem:[%s12673_s3 + $0x270] sm:$0xff] }
 0x1a1   :  { %13051 = vst [vmem:[#allocation90_spill] sm:$0xff] %v9934_v51  ;;  %v1874_v63 = vadd.f32 %v1873_v54, %v1763_v10  ;;  %v1768_v60 = vmul.f32 %v9934_v51, %v9934_v51  ;;  %v1834_v9 = vadd.f32 %v1833_v47, %v1771_v52  ;;  %v1776_v44 = vmul.f32 %v9720_v59, %v9720_v59 }
 0x1a2   :  { %v6029_v35 = vpop.f32.mrb[50].mxu0  ;;  %7927 = vmatpush3.bf16.msra.mxu1 %v9916_v43  ;;  %v1690_v50 = vadd.f32 %v1689_v45, %v9934_v51  ;;  %v1854_v54 = vadd.f32 %v1853_v11, %v1767_v7  ;;  %v9969_v7 = vpack.c.bf16 %v1617_v49, %v1616_v23 }
 0x1a3   :  { %v9947_v37 = vpop.f32.mrb[34].mxu1  ;;  %v6030_v32 = vpop.f32.mrb[51].mxu0  ;;  %7928 = vmatprep.subr.bf16.mxu1 %v13041_v36  ;;  %v1875_v38 = vadd.f32 %v1874_v63, %v1768_v60 }
 0x1a4   :  { %13052 = vst [vmem:[#allocation91_spill] sm:$0xff] %v9947_v37  ;;  %v1670_v52 = vadd.f32 %v1669_v48, %v9947_v37  ;;  %v1772_v10 = vmul.f32 %v9947_v37, %v9947_v37  ;;  %v9959_v45 = vpop.f32.mrb[35].mxu1  ;;  %v9961_v27 = vadd.f32 %v6030_v32, %v6029_v35  ;;  %v1835_v48 = vadd.f32 %v1834_v9, %v1776_v44 }
 0x1a5   :  { %13053 = vst [vmem:[#allocation92_spill] sm:$0xff] %v9959_v45  ;;  %v1691_v47 = vadd.f32 %v1690_v50, %v9959_v45  ;;  %v1773_v58 = vmul.f32 %v9959_v45, %v9959_v45  ;;  %v1786_v35 = vmul.f32 %v9736_v40, %v9736_v40  ;;  %v1791_v44 = vmul.f32 %v9744_v46, %v9744_v46 }
 0x1a6   :  { %v1855_v30 = vadd.f32 %v1854_v54, %v1772_v10  ;;  %v6032_v11 = vpop.f32.mrb[52].mxu0  ;;  %7930 = vmatpush3.bf16.msra.mxu1 %v9942_v14  ;;  %v1836_v23 = vadd.f32 %v1835_v48, %v1781_v4 }
 0x1a7   :  { %v1876_v32 = vadd.f32 %v1875_v38, %v1773_v58  ;;  %v9973_v19 = vpop.f32.mrb[36].mxu1  ;;  %v6033_v62 = vpop.f32.mrb[53].mxu0  ;;  %7931 = vmatprep.subr.bf16.mxu1 %v13041_v36 }
 0x1a8   :  { %13054 = vst [vmem:[#allocation93_spill] sm:$0xff] %v9973_v19  ;;  %v1671_v50 = vadd.f32 %v1670_v52, %v9973_v19  ;;  %v1777_v63 = vmul.f32 %v9973_v19, %v9973_v19  ;;  %v9979_v60 = vpop.f32.mrb[37].mxu1  ;;  %v9981_v54 = vadd.f32 %v6033_v62, %v6032_v11  ;;  %v1837_v52 = vadd.f32 %v1836_v23, %v1786_v35 }
 0x1a9   :  { %13055 = vst [vmem:[#allocation94_spill] sm:$0xff] %v9979_v60  ;;  %v1692_v9 = vadd.f32 %v1691_v47, %v9979_v60  ;;  %v1778_v58 = vmul.f32 %v9979_v60, %v9979_v60  ;;  %v1796_v62 = vmul.f32 %v9752_v42, %v9752_v42 }
 0x1aa   :  { %v1856_v49 = vadd.f32 %v1855_v30, %v1777_v63  ;;  %v6035_v10 = vpop.f32.mrb[54].mxu0  ;;  %7933 = vmatpush3.bf16.msra.mxu1 %v9969_v7  ;;  %v1801_v63 = vmul.f32 %v9760_v1, %v9760_v1  ;;  %v1740_v1 = vmul.f32 %v9668_v61, %v9668_v61 }
 0x1ab   :  { %v1877_v38 = vadd.f32 %v1876_v32, %v1778_v58  ;;  %v9989_v40 = vpop.f32.mrb[38].mxu1  ;;  %v6036_v53 = vpop.f32.mrb[55].mxu0  ;;  %7967 = vmatprep.subr.bf16.mxu1 %v9486_v6  ;;  %v1838_v32 = vadd.f32 %v1837_v52, %v1791_v44  ;;  %v1735_v52 = vmul.f32 %v9659_v34, %v9659_v34 }
 0x1ac   :  { %13056 = vst [vmem:[#allocation95_spill] sm:$0xff] %v9989_v40  ;;  %v1672_v4 = vadd.f32 %v1671_v50, %v9989_v40  ;;  %v1782_v47 = vmul.f32 %v9989_v40, %v9989_v40  ;;  %v9997_v11 = vpop.f32.mrb[39].mxu1  ;;  %v9999_v30 = vadd.f32 %v6036_v53, %v6035_v10  ;;  %v1730_v50 = vmul.f32 %v9635_v25, %v9635_v25 }
 0x1ad   :  { %13057 = vst [vmem:[#allocation96_spill] sm:$0xff] %v9997_v11  ;;  %v1693_v48 = vadd.f32 %v1692_v9, %v9997_v11  ;;  %v1783_v35 = vmul.f32 %v9997_v11, %v9997_v11  ;;  %v1839_v53 = vadd.f32 %v1838_v32, %v1796_v62 }
 0x1ae   :  { %v1857_v23 = vadd.f32 %v1856_v49, %v1782_v47  ;;  %v6038_v58 = vpop.f32.mrb[56].mxu0  ;;  %v1725_v49 = vmul.f32 %v9609_v15, %v9609_v15 }
 0x1af   :  { %v1878_v42 = vadd.f32 %v1877_v38, %v1783_v35  ;;  %v10008_v46 = vpop.f32.mrb[40].mxu1  ;;  %v6039_v59 = vpop.f32.mrb[57].mxu0  ;;  %v1840_v47 = vadd.f32 %v1839_v53, %v1801_v63 }
 0x1b0   :  { %13058 = vst [vmem:[#allocation97_spill] sm:$0xff] %v10008_v46  ;;  %v1673_v10 = vadd.f32 %v1672_v4, %v10008_v46  ;;  %v1787_v9 = vmul.f32 %v10008_v46, %v10008_v46  ;;  %v10013_v17 = vpop.f32.mrb[41].mxu1  ;;  %v10015_v44 = vadd.f32 %v6039_v59, %v6038_v58  ;;  %v1805_v32 = vadd.f32 %v1730_v50, %v1725_v49 }
 0x1b1   :  { %13059 = vst [vmem:[#allocation98_spill] sm:$0xff] %v10013_v17  ;;  %v1694_v38 = vadd.f32 %v1693_v48, %v10013_v17  ;;  %v1788_v62 = vmul.f32 %v10013_v17, %v10013_v17  ;;  %v1841_v53 = vrot.slane %v1840_v47, 4 }
 0x1b2   :  { %v1858_v4 = vadd.f32 %v1857_v23, %v1787_v9  ;;  %v6041_v35 = vpop.f32.mrb[58].mxu0  ;;  %v1806_v63 = vadd.f32 %v1805_v32, %v1735_v52  ;;  %v1745_v23 = vmul.f32 %v9674_v0, %v9674_v0 }
 0x1b3   :  { %v1879_v59 = vadd.f32 %v1878_v42, %v1788_v62  ;;  %v10026_v58 = vpop.f32.mrb[42].mxu1  ;;  %v6042_v16 = vpop.f32.mrb[59].mxu0  ;;  %v1750_v62 = vmul.f32 %v9681_v21, %v9681_v21  ;;  %v1760_v21 = vmul.f32 %v9693_v18, %v9693_v18  ;;  %v1770_v18 = vmul.f32 %v9709_v2, %v9709_v2 }
 0x1b4   :  { %13060 = vst [vmem:[#allocation99_spill] sm:$0xff] %v10026_v58  ;;  %v1674_v41 = vadd.f32 %v1673_v10, %v10026_v58  ;;  %v1792_v34 = vmul.f32 %v10026_v58, %v10026_v58  ;;  %v10031_v48 = vpop.f32.mrb[43].mxu1  ;;  %v10033_v25 = vadd.f32 %v6042_v16, %v6041_v35  ;;  %v1807_v10 = vadd.f32 %v1806_v63, %v1740_v1 }
 0x1b5   :  { %13061 = vst [vmem:[#allocation100_spill] sm:$0xff] %v10031_v48  ;;  %v1695_v50 = vadd.f32 %v1694_v38, %v10031_v48  ;;  %v1793_v42 = vmul.f32 %v10031_v48, %v10031_v48 }
 0x1b6   :  { %v1859_v9 = vadd.f32 %v1858_v4, %v1792_v34  ;;  %v6044_v49 = vpop.f32.mrb[60].mxu0  ;;  %v1808_v0 = vadd.f32 %v1807_v10, %v1745_v23  ;;  %v1755_v34 = vmul.f32 %v9687_v56, %v9687_v56 }
 0x1b7   :  { %v1880_v61 = vadd.f32 %v1879_v59, %v1793_v42  ;;  %v10042_v15 = vpop.f32.mrb[44].mxu1  ;;  %v6045_v16 = vpop.f32.mrb[61].mxu0  ;;  %v1842_v42 = vadd.f32 %v1841_v53, %v1840_v47 }
 0x1b8   :  { %13062 = vst [vmem:[#allocation101_spill] sm:$0xff] %v10042_v15  ;;  %v1675_v52 = vadd.f32 %v1674_v41, %v10042_v15  ;;  %v1797_v35 = vmul.f32 %v10042_v15, %v10042_v15  ;;  %v10047_v38 = vpop.f32.mrb[45].mxu1  ;;  %v10049_v32 = vadd.f32 %v6045_v16, %v6044_v49  ;;  %v1809_v41 = vadd.f32 %v1808_v0, %v1750_v62 }
 0x1b9   :  { %13063 = vst [vmem:[#allocation102_spill] sm:$0xff] %v10047_v38  ;;  %v1696_v1 = vadd.f32 %v1695_v50, %v10047_v38  ;;  %v1798_v4 = vmul.f32 %v10047_v38, %v10047_v38  ;;  %v1765_v0 = vmul.f32 %v9699_v55, %v9699_v55 }
 0x1ba   :  { %v1860_v59 = vadd.f32 %v1859_v9, %v1797_v35  ;;  %v6047_v63 = vpop.f32.mrb[62].mxu0  ;;  %v1810_v9 = vadd.f32 %v1809_v41, %v1755_v34  ;;  %v1843_v35 = vrot.slane %v1842_v42, 2 }
 0x1bb   :  { %v1881_v15 = vadd.f32 %v1880_v61, %v1798_v4  ;;  %v10058_v58 = vpop.f32.mrb[46].mxu1  ;;  %v6048_v49 = vpop.f32.mrb[63].mxu0 }
 0x1bc   :  { %13064 = vst [vmem:[#allocation103_spill] sm:$0xff] %v10058_v58  ;;  %v1676_v23 = vadd.f32 %v1675_v52, %v10058_v58  ;;  %v1802_v10 = vmul.f32 %v10058_v58, %v10058_v58  ;;  %v10063_v50 = vpop.f32.mrb[47].mxu1  ;;  %v10065_v16 = vadd.f32 %v6048_v49, %v6047_v63  ;;  %v1811_v4 = vadd.f32 %v1810_v9, %v1760_v21 }
 0x1bd   :  { %13065 = vst [vmem:[#allocation104_spill] sm:$0xff] %v10063_v50  ;;  %v1697_v47 = vadd.f32 %v1696_v1, %v10063_v50  ;;  %v1803_v61 = vmul.f32 %v10063_v50, %v10063_v50  ;;  %v1775_v21 = vmul.f32 %v9717_v33, %v9717_v33 }
 0x1be   :  { %v1677_v53 = vrot.slane %v1676_v23, 4  ;;  %v10072_v62 = vadd.f32 %v1860_v59, %v1802_v10  ;;  %v6050_v52 = vpop.f32.mrb[64].mxu0  ;;  %v1812_v59 = vadd.f32 %v1811_v4, %v1765_v0 }
 0x1bf   :  { %v1698_v63 = vrot.slane %v1697_v47, 4  ;;  %v10076_v49 = vadd.f32 %v1881_v15, %v1803_v61  ;;  %v7176_v34 = vpop.f32.mrb[64].mxu1  ;;  %v6051_v41 = vpop.f32.mrb[65].mxu0  ;;  %v1844_v61 = vadd.f32 %v1843_v35, %v1842_v42 }
 0x1c0   :  { %v1678_v55 = vadd.f32 %v1677_v53, %v1676_v23  ;;  %v10079_v1 = vadd.f32 %v7176_v34, %v9961_v27  ;;  %v10081_v56 = vadd.f32 %v6051_v41, %v6050_v52  ;;  %v1459_v50 = vpop.f32.mrb[65].mxu1  ;;  %v1813_v2 = vadd.f32 %v1812_v59, %v1770_v18 }
 0x1c1   :  { %v1699_v10 = vadd.f32 %v1698_v63, %v1697_v47  ;;  %v10084_v58 = vadd.f32 %v9936_v5, %v1459_v50  ;;  %v1780_v5 = vmul.f32 %v9725_v20, %v9725_v20  ;;  %v1785_v34 = vmul.f32 %v9733_v24, %v9733_v24 }
 0x1c2   :  { %13066 = vst [vmem:[#allocation105_spill] sm:$0xff] %v10079_v1  ;;  %v1679_v9 = vrot.slane %v1678_v55, 2  ;;  %v6053_v15 = vpop.f32.mrb[66].mxu0  ;;  %v1734_v27 = vmul.f32 %v10079_v1, %v10079_v1  ;;  %v1814_v63 = vadd.f32 %v1813_v2, %v1775_v21  ;;  %v1845_v20 = vrot.slane %v1844_v61, 1 }
 0x1c3   :  { %13067 = vst [vmem:[#allocation106_spill] sm:$0xff] %v10084_v58  ;;  %v1700_v38 = vrot.slane %v1699_v10, 2  ;;  %v1729_v23 = vmul.f32 %v10084_v58, %v10084_v58  ;;  %v7179_v53 = vpop.f32.mrb[66].mxu1  ;;  %v6054_v0 = vpop.f32.mrb[67].mxu0  ;;  %v1704_v18 = vadd.f32 %v10079_v1, %v10084_v58 }
 0x1c4   :  { %v1680_v50 = vadd.f32 %v1679_v9, %v1678_v55  ;;  %v10095_v47 = vadd.f32 %v7179_v53, %v9999_v30  ;;  %v6055_v52 = vadd.f32 %v6054_v0, %v6053_v15  ;;  %v1469_v4 = vpop.f32.mrb[67].mxu1  ;;  %v1815_v1 = vadd.f32 %v1814_v63, %v1780_v5 }
 0x1c5   :  { %v10100_v42 = vadd.f32 %v9981_v54, %v1469_v4  ;;  %v1701_v35 = vadd.f32 %v1700_v38, %v1699_v10  ;;  %v1889_v55 = vadd.f32 %v1734_v27, %v1729_v23 }
 0x1c6   :  { %13068 = vst [vmem:[#allocation107_spill] sm:$0xff] %v10095_v47  ;;  %v1681_v41 = vrot.slane %v1680_v50, 1  ;;  %v6056_v59 = vpop.f32.mrb[68].mxu0  ;;  %v1744_v54 = vmul.f32 %v10095_v47, %v10095_v47 }
 0x1c7   :  { %13069 = vst [vmem:[#allocation108_spill] sm:$0xff] %v10100_v42  ;;  %v1705_v30 = vadd.f32 %v1704_v18, %v10100_v42  ;;  %v1739_v9 = vmul.f32 %v10100_v42, %v10100_v42  ;;  %v7182_v15 = vpop.f32.mrb[68].mxu1  ;;  %v6057_v53 = vpop.f32.mrb[69].mxu0  ;;  %v1702_v0 = vrot.slane %v1701_v35, 1  ;;  %v1816_v18 = vadd.f32 %v1815_v1, %v1785_v34 }
 0x1c8   :  { %v10110_v2 = vadd.f32 %v7182_v15, %v10033_v25  ;;  %v6058_v38 = vadd.f32 %v6057_v53, %v6056_v59  ;;  %v1479_v10 = vpop.f32.mrb[69].mxu1  ;;  %v1790_v42 = vmul.f32 %v9741_v57, %v9741_v57  ;;  %v1682_v5 = vadd.f32 %v1681_v41, %v1680_v50 }
 0x1c9   :  { %v1890_v21 = vadd.f32 %v1889_v55, %v1739_v9  ;;  %v10113_v27 = vadd.f32 %v10015_v44, %v1479_v10  ;;  %v1706_v23 = vadd.f32 %v1705_v30, %v10095_v47  ;;  %v1703_v4 = vadd.f32 %v1702_v0, %v1701_v35 }
 0x1ca   :  { %13070 = vst [vmem:[#allocation109_spill] sm:$0xff] %v10110_v2  ;;  %v6059_v63 = vpop.f32.mrb[70].mxu0  ;;  %v1846_v44 = vadd.f32 %v1845_v20, %v1844_v61  ;;  %v1795_v30 = vmul.f32 %v9749_v26, %v9749_v26  ;;  %v1754_v1 = vmul.f32 %v10110_v2, %v10110_v2  ;;  %v1817_v20 = vadd.f32 %v1816_v18, %v1790_v42  ;;  %v13110_v26 = vld [vmem:[#allocation42_spill] sm:$0xff] }
 0x1cb   :  { %13071 = vst [vmem:[#allocation110_spill] sm:$0xff] %v10113_v27  ;;  %v1707_v58 = vadd.f32 %v1706_v23, %v10113_v27  ;;  %v1749_v25 = vmul.f32 %v10113_v27, %v10113_v27  ;;  %v1891_v59 = vadd.f32 %v1890_v21, %v1744_v54  ;;  %v7185_v15 = vpop.f32.mrb[70].mxu1  ;;  %2044 = vmatprep.mubr.f32.mxu0 %v1703_v4  ;;  %v6060_v55 = vpop.f32.mrb[71].mxu0  ;;  %v13109_v27 = vld [vmem:[#allocation41_spill] sm:$0xff] }
 0x1cc   :  { %v10126_v35 = vadd.f32 %v7185_v15, %v10065_v16  ;;  %v6061_v50 = vadd.f32 %v6060_v55, %v6059_v63  ;;  %v1489_v34 = vpop.f32.mrb[71].mxu1  ;;  %2045 = vmatmul.mubr.f32.vlgmr.msra.gmra.mrb[80].mxu0 %v1682_v5  ;;  %v1800_v61 = vmul.f32 %v9757_v31, %v9757_v31  ;;  %v1818_v23 = vadd.f32 %v1817_v20, %v1795_v30 }
 0x1cd   :  { %v1892_v41 = vadd.f32 %v1891_v59, %v1749_v25  ;;  %v10129_v9 = vadd.f32 %v10049_v32, %v1489_v34  ;;  %v1708_v53 = vadd.f32 %v1707_v58, %v10110_v2  ;;  %7937 = vmatpush3.bf16.msra.mxu0 %v9321_v22  ;;  %2184 = vmatprep.mubr.f32.mxu0 %v1846_v44  ;;  %v13108_v2 = vld [vmem:[#allocation38_spill] sm:$0xff] }
 0x1ce   :  { %13072 = vst [vmem:[#allocation111_spill] sm:$0xff] %v10126_v35  ;;  %v6062_v0 = vpop.f32.mrb[72].mxu0  ;;  %7939 = vmatprep.subr.bf16.mxu0 %v9334_v12  ;;  %v1764_v42 = vmul.f32 %v10126_v35, %v10126_v35  ;;  %v1819_v59 = vadd.f32 %v1818_v23, %v1800_v61  ;;  %v13078_v61 = vld [vmem:[#allocation13_spill] sm:$0xff] }
 0x1cf   :  { %13073 = vst [vmem:[#allocation112_spill] sm:$0xff] %v10129_v9  ;;  %v1709_v16 = vadd.f32 %v1708_v53, %v10129_v9  ;;  %v1759_v54 = vmul.f32 %v10129_v9, %v10129_v9  ;;  %v1893_v10 = vadd.f32 %v1892_v41, %v1754_v1  ;;  %v7188_v32 = vpop.f32.mrb[72].mxu1  ;;  %v6063_v21 = vpop.f32.mrb[73].mxu0  ;;  %v13092_v9 = vld [vmem:[#allocation23_spill] sm:$0xff] }
 0x1d0   :  { %v10139_v58 = vadd.f32 %v7188_v32, %v6055_v52  ;;  %v6064_v4 = vadd.f32 %v6063_v21, %v6062_v0  ;;  %v1499_v5 = vpop.f32.mrb[73].mxu1  ;;  %v1820_v0 = vrot.slane %v1819_v59, 4 }
 0x1d1   :  { %v1894_v18 = vadd.f32 %v1893_v10, %v1759_v54  ;;  %v10144_v63 = vadd.f32 %v10081_v56, %v1499_v5  ;;  %v1710_v25 = vadd.f32 %v1709_v16, %v10126_v35  ;;  %7941 = vmatpush3.bf16.msra.mxu0 %v9343_v13  ;;  %v13079_v10 = vld [vmem:[#allocation14_spill] sm:$0xff] }
 0x1d2   :  { %13074 = vst [vmem:[#allocation113_spill] sm:$0xff] %v10139_v58  ;;  %v6065_v15 = vpop.f32.mrb[74].mxu0  ;;  %7943 = vmatprep.subr.bf16.mxu0 %v9356_v39 }
 0x1d3   :  { %13075 = vst [vmem:[#allocation114_spill] sm:$0xff] %v10144_v63  ;;  %v1711_v52 = vadd.f32 %v1710_v25, %v10144_v63  ;;  %v1769_v55 = vmul.f32 %v10144_v63, %v10144_v63  ;;  %v1895_v44 = vadd.f32 %v1894_v18, %v1764_v42  ;;  %v7191_v30 = vpop.f32.mrb[74].mxu1  ;;  %v6066_v1 = vpop.f32.mrb[75].mxu0 }
 0x1d4   :  { %v10152_v34 = vadd.f32 %v7191_v30, %v6061_v50  ;;  %v6067_v56 = vadd.f32 %v6066_v1, %v6065_v15  ;;  %v1509_v41 = vpop.f32.mrb[75].mxu1  ;;  %v1774_v50 = vmul.f32 %v10139_v58, %v10139_v58  ;;  %v13082_v15 = vld [vmem:[#allocation15_spill] sm:$0xff] }
 0x1d5   :  { %v10154_v53 = vadd.f32 %v6058_v38, %v1509_v41  ;;  %v1712_v20 = vadd.f32 %v1711_v52, %v10139_v58  ;;  %7945 = vmatpush3.bf16.msra.mxu0 %v13078_v61  ;;  %v1896_v16 = vadd.f32 %v1895_v44, %v1769_v55  ;;  %v1821_v52 = vadd.f32 %v1820_v0, %v1819_v59  ;;  %v13083_v41 = vld [vmem:[#allocation16_spill] sm:$0xff]  ;;  %v13085_v59 = vld [vmem:[#allocation17_spill] sm:$0xff] }
 0x1d6   :  { %13076 = vst [vmem:[#allocation115_spill] sm:$0xff] %v10152_v34  ;;  %v6068_v54 = vpop.f32.mrb[76].mxu0  ;;  %7947 = vmatprep.subr.bf16.mxu0 %v13079_v10  ;;  %v1883_v55 = vrot.slane %v10076_v49, 4  ;;  %v13089_v58 = vld [vmem:[#allocation20_spill] sm:$0xff] }
 0x1d7   :  { %13077 = vst [vmem:[#allocation116_spill] sm:$0xff] %v10154_v53  ;;  %v1713_v32 = vadd.f32 %v1712_v20, %v10154_v53  ;;  %v7194_v21 = vpop.f32.mrb[76].mxu1  ;;  %v6069_v23 = vpop.f32.mrb[77].mxu0  ;;  %v1779_v44 = vmul.f32 %v10154_v53, %v10154_v53  ;;  %v1897_v30 = vadd.f32 %v1896_v16, %v1774_v50  ;;  %v1822_v0 = vrot.slane %v1821_v52, 2  ;;  %v13087_v50 = vld [vmem:[#allocation18_spill] sm:$0xff] }
 0x1d8   :  { %v10162_v5 = vadd.f32 %v7194_v21, %v6067_v56  ;;  %v6070_v38 = vadd.f32 %v6069_v23, %v6068_v54  ;;  %v1519_v42 = vpop.f32.mrb[77].mxu1 }
 0x1d9   :  { %v10164_v18 = vadd.f32 %v6064_v4, %v1519_v42  ;;  %v1714_v25 = vadd.f32 %v1713_v32, %v10152_v34  ;;  %7949 = vmatpush3.bf16.msra.mxu0 %v13082_v15  ;;  %v1884_v42 = vadd.f32 %v1883_v55, %v10076_v49  ;;  %v1898_v53 = vadd.f32 %v1897_v30, %v1779_v44 }
 0x1da   :  { %13080 = vst [vmem:[#allocation13_spill] sm:$0xff] %v10162_v5  ;;  %v6071_v1 = vpop.f32.mrb[78].mxu0  ;;  %7951 = vmatprep.subr.bf16.mxu0 %v13083_v41  ;;  %v1823_v49 = vadd.f32 %v1822_v0, %v1821_v52  ;;  %v1794_v35 = vmul.f32 %v10162_v5, %v10162_v5 }
 0x1db   :  { %13081 = vst [vmem:[#allocation14_spill] sm:$0xff] %v10164_v18  ;;  %v1715_v56 = vadd.f32 %v1714_v25, %v10164_v18  ;;  %v7197_v20 = vpop.f32.mrb[78].mxu1  ;;  %v6072_v54 = vpop.f32.mrb[79].mxu0  ;;  %v1885_v55 = vrot.slane %v1884_v42, 2 }
 0x1dc   :  { %v6073_v4 = vadd.f32 %v6072_v54, %v6071_v1  ;;  %v1529_v21 = vpop.f32.mrb[79].mxu1  ;;  %v1784_v1 = vmul.f32 %v10152_v34, %v10152_v34  ;;  %v13088_v54 = vld [vmem:[#allocation19_spill] sm:$0xff]  ;;  %v1824_v34 = vrot.slane %v1823_v49, 1 }
 0x1dd   :  { %v10173_v23 = vadd.f32 %v6070_v38, %v1529_v21  ;;  %v1716_v32 = vadd.f32 %v1715_v56, %v10162_v5  ;;  %7953 = vmatpush3.bf16.msra.mxu0 %v13085_v59  ;;  %v1789_v56 = vmul.f32 %v10164_v18, %v10164_v18  ;;  %v1886_v63 = vadd.f32 %v1885_v55, %v1884_v42  ;;  %v13105_v5 = vld [vmem:[#allocation33_spill] sm:$0xff] }
 0x1de   :  { %v10178_v16 = vadd.f32 %v7197_v20, %v6073_v4  ;;  %7955 = vmatprep.subr.bf16.mxu0 %v13087_v50  ;;  %v1899_v21 = vadd.f32 %v1898_v53, %v1784_v1  ;;  %v13090_v20 = vld [vmem:[#allocation21_spill] sm:$0xff]  ;;  %v1825_v1 = vadd.f32 %v1824_v34, %v1823_v49  ;;  %v13094_v55 = vmov 0.0   ;;  %v13096_v34 = vld [vmem:[#allocation80_spill] sm:$0xff] }
 0x1df   :  { %13084 = vst [vmem:[#allocation15_spill] sm:$0xff] %v10173_v23  ;;  %v1717_v25 = vadd.f32 %v1716_v32, %v10173_v23  ;;  %v13091_v32 = vld [vmem:[#allocation22_spill] sm:$0xff]  ;;  %v1799_v52 = vmul.f32 %v10173_v23, %v10173_v23  ;;  %v13097_v49 = vld [vmem:[#allocation25_spill] sm:$0xff] }
 0x1e0   :  { %13086 = vst [vmem:[#allocation16_spill] sm:$0xff] %v10178_v16  ;;  %v1900_v4 = vadd.f32 %v1899_v21, %v1789_v56  ;;  %v13093_v21 = vld [vmem:[#allocation77_spill] sm:$0xff] }
 0x1e1   :  { %v1718_v38 = vadd.f32 %v1717_v25, %v10178_v16  ;;  %7957 = vmatpush3.bf16.msra.mxu0 %v13088_v54 }
 0x1e2   :  { %7959 = vmatprep.subr.bf16.mxu0 %v13089_v58  ;;  %v1901_v0 = vadd.f32 %v1900_v4, %v1794_v35  ;;  %v13095_v35 = vld [vmem:[#allocation24_spill] sm:$0xff] }
 0x1e3   :  { %v1719_v44 = vrot.slane %v1718_v38, 4 }
 0x1e5   :  { %v1720_v30 = vadd.f32 %v1719_v44, %v1718_v38  ;;  %7961 = vmatpush3.bf16.msra.mxu0 %v13090_v20  ;;  %v1887_v38 = vrot.slane %v1886_v63, 1  ;;  %v1804_v44 = vmul.f32 %v10178_v16, %v10178_v16  ;;  %v13104_v16 = vld [vmem:[#allocation32_spill] sm:$0xff] }
 0x1e6   :  { %7963 = vmatprep.subr.bf16.mxu0 %v13091_v32 }
 0x1e7   :  { %v1721_v25 = vrot.slane %v1720_v30, 2 }
 0x1e9   :  { %7965 = vmatpush3.bf16.msra.mxu0 %v13092_v9  ;;  %v1722_v53 = vadd.f32 %v1721_v25, %v1720_v30  ;;  %v1902_v30 = vadd.f32 %v1901_v0, %v1799_v52  ;;  %v1888_v25 = vadd.f32 %v1887_v38, %v1886_v63  ;;  %v13100_v63 = vld [vmem:[#allocation28_spill] sm:$0xff]  ;;  %v1862_v0 = vrot.slane %v10072_v62, 4  ;;  %v13101_v38 = vld [vmem:[#allocation29_spill] sm:$0xff] }
 0x1ea   :  { %7998 = vmatprep.subr.bf16.mxu0 %v13041_v36 }
 0x1eb   :  { %v1723_v56 = vrot.slane %v1722_v53, 1  ;;  %v1903_v4 = vadd.f32 %v1902_v30, %v1804_v44  ;;  %v1863_v44 = vadd.f32 %v1862_v0, %v10072_v62  ;;  %v13103_v30 = vld [vmem:[#allocation31_spill] sm:$0xff]  ;;  %v13107_v62 = vld [vmem:[#allocation37_spill] sm:$0xff] }
 0x1ec   :  { %2185 = vmatmul.mubr.f32.vlgmr.msra.gmra.mrb[82].mxu0 %v1825_v1  ;;  %v13099_v1 = vld [vmem:[#allocation27_spill] sm:$0xff] }
 0x1ed   :  { %8000 = vmatpush3.bf16.msra.mxu0 %v13093_v21  ;;  %v1724_v42 = vadd.f32 %v1723_v56, %v1722_v53  ;;  %7265 = vmatprep.mubr.msk.f32.mxu0 %vm8871_vm0, %v13094_v55  ;;  %v13098_v53 = vld [vmem:[#allocation26_spill] sm:$0xff]  ;;  %v1904_v52 = vrot.slane %v1903_v4, 4  ;;  %v1864_v23 = vrot.slane %v1863_v44, 2 }
 0x1ee   :  { %8001 = vmatprep.subr.bf16.mxu0 %v13041_v36 }
 0x1ef   :  { %7231 = vmatmul.mubr.f32.vlgmr.msra.gmra.mrb[82].mxu1 %v1724_v42  ;;  %v1905_v56 = vadd.f32 %v1904_v52, %v1903_v4  ;;  %v13102_v42 = vld [vmem:[#allocation30_spill] sm:$0xff]  ;;  %v1865_v0 = vadd.f32 %v1864_v23, %v1863_v44  ;;  %v13113_v44 = vld [vmem:[#allocation12_spill] sm:$0xff] }
 0x1f0   :  { %7969 = vmatpush3.bf16.msra.mxu1 %v13095_v35  ;;  %2254 = vmatprep.mubr.f32.mxu1 %v1888_v25  ;;  %v13106_v52 = vld [vmem:[#allocation34_spill] sm:$0xff] }
 0x1f1   :  { %8003 = vmatpush3.bf16.msra.mxu0 %v13096_v34  ;;  %7971 = vmatprep.subr.bf16.mxu1 %v13097_v49  ;;  %v1906_v25 = vrot.slane %v1905_v56, 2  ;;  %v1866_v47 = vrot.slane %v1865_v0, 1 }
 0x1f2   :  { %8004 = vmatprep.subr.bf16.mxu0 %v13041_v36 }
 0x1f3   :  { %v1907_v4 = vadd.f32 %v1906_v25, %v1905_v56  ;;  %v1867_v56 = vadd.f32 %v1866_v47, %v1865_v0 }
 0x1f4   :  { %7973 = vmatpush3.bf16.msra.mxu1 %v13098_v53 }
 0x1f5   :  { %8006 = vmatpush3.bf16.msra.mxu0 %v9832_v3  ;;  %7975 = vmatprep.subr.bf16.mxu1 %v13099_v1  ;;  %v1908_v18 = vrot.slane %v1907_v4, 1 }
 0x1f6   :  { %8007 = vmatprep.subr.bf16.mxu0 %v13041_v36 }
 0x1f7   :  { %v1909_v31 = vadd.f32 %v1908_v18, %v1907_v4 }
 0x1f8   :  { %7977 = vmatpush3.bf16.msra.mxu1 %v13100_v63 }
 0x1f9   :  { %8009 = vmatpush3.bf16.msra.mxu0 %v9850_v28  ;;  %7979 = vmatprep.subr.bf16.mxu1 %v13101_v38 }
 0x1fa   :  { %8010 = vmatprep.subr.bf16.mxu0 %v13041_v36 }
 0x1fc   :  { %7981 = vmatpush3.bf16.msra.mxu1 %v13102_v42 }
 0x1fd   :  { %8012 = vmatpush3.bf16.msra.mxu0 %v9892_v8  ;;  %7983 = vmatprep.subr.bf16.mxu1 %v13103_v30 }
 0x1fe   :  { %8013 = vmatprep.subr.bf16.mxu0 %v13041_v36 }
 0x200   :  { %7985 = vmatpush3.bf16.msra.mxu1 %v13104_v16 }
 0x201   :  { %8015 = vmatpush3.bf16.msra.mxu0 %v9916_v43  ;;  %7987 = vmatprep.subr.bf16.mxu1 %v13105_v5 }
 0x202   :  { %8016 = vmatprep.subr.bf16.mxu0 %v13041_v36 }
 0x204   :  { %7989 = vmatpush3.bf16.msra.mxu1 %v13106_v52 }
 0x205   :  { %8018 = vmatpush3.bf16.msra.mxu0 %v9942_v14  ;;  %7991 = vmatprep.subr.bf16.mxu1 %v13107_v62 }
 0x206   :  { %8019 = vmatprep.subr.bf16.mxu0 %v13041_v36 }
 0x208   :  { %7993 = vmatpush3.bf16.msra.mxu1 %v13108_v2 }
 0x209   :  { %8021 = vmatpush3.bf16.msra.mxu0 %v9969_v7  ;;  %7995 = vmatprep.subr.bf16.mxu1 %v13109_v27 }
 0x20a   :  { %8072 = vmatprep.subr.msk.bf16.mxu0 %vm10235_vm2, %v9486_v6 }
 0x20c   :  { %7997 = vmatpush3.bf16.msra.mxu1 %v13110_v26  ;;  %7266 = vmatmul.mubr.f32.vlgmr.msra.gmra.mrb[84].mxu0 %v1909_v31 }
 0x20d   :  { %8024 = vmatprep.subr.msk.bf16.mxu1 %vm10235_vm2, %v13113_v44 }
 0x20f   :  { %2255 = vmatmul.mubr.f32.vlgmr.msra.gmra.mrb[84].mxu1 %v1867_v56 }
 0x212   :  { %8075 = vmatpush3.bf16.xpose.msk.msra.mxu0 %vm10235_vm2, %v13095_v35 }
 0x213   :  { %8078 = vmatprep.subr.msk.bf16.mxu0 %vm10235_vm2, %v13097_v49 }
 0x215   :  { %8027 = vmatpush3.bf16.xpose.msk.msra.mxu1 %vm10235_vm2, %v9321_v22 }
 0x216   :  { %8030 = vmatprep.subr.msk.bf16.mxu1 %vm10235_vm2, %v9334_v12 }
 0x21a   :  { %8081 = vmatpush3.bf16.xpose.msk.msra.mxu0 %vm10235_vm2, %v13098_v53 }
 0x21b   :  { %8084 = vmatprep.subr.msk.bf16.mxu0 %vm10235_vm2, %v13099_v1 }
 0x21d   :  { %8033 = vmatpush3.bf16.xpose.msk.msra.mxu1 %vm10235_vm2, %v9343_v13 }
 0x21e   :  { %8036 = vmatprep.subr.msk.bf16.mxu1 %vm10235_vm2, %v9356_v39 }
 0x222   :  { %8087 = vmatpush3.bf16.xpose.msk.msra.mxu0 %vm10235_vm2, %v13100_v63 }
 0x223   :  { %8090 = vmatprep.subr.msk.bf16.mxu0 %vm10235_vm2, %v13101_v38 }
 0x225   :  { %8039 = vmatpush3.bf16.xpose.msk.msra.mxu1 %vm10235_vm2, %v13078_v61 }
 0x226   :  { %8042 = vmatprep.subr.msk.bf16.mxu1 %vm10235_vm2, %v13079_v10 }
 0x22a   :  { %8093 = vmatpush3.bf16.xpose.msk.msra.mxu0 %vm10235_vm2, %v13102_v42 }
 0x22b   :  { %8096 = vmatprep.subr.msk.bf16.mxu0 %vm10235_vm2, %v13103_v30 }
 0x22d   :  { %8045 = vmatpush3.bf16.xpose.msk.msra.mxu1 %vm10235_vm2, %v13082_v15 }
 0x22e   :  { %8048 = vmatprep.subr.msk.bf16.mxu1 %vm10235_vm2, %v13083_v41 }
 0x232   :  { %8099 = vmatpush3.bf16.xpose.msk.msra.mxu0 %vm10235_vm2, %v13104_v16 }
 0x233   :  { %8102 = vmatprep.subr.msk.bf16.mxu0 %vm10235_vm2, %v13105_v5 }
 0x235   :  { %8051 = vmatpush3.bf16.xpose.msk.msra.mxu1 %vm10235_vm2, %v13085_v59 }
 0x236   :  { %8054 = vmatprep.subr.msk.bf16.mxu1 %vm10235_vm2, %v13087_v50 }
 0x23a   :  { %8105 = vmatpush3.bf16.xpose.msk.msra.mxu0 %vm10235_vm2, %v13106_v52 }
 0x23b   :  { %8108 = vmatprep.subr.msk.bf16.mxu0 %vm10235_vm2, %v13107_v62 }
 0x23d   :  { %8057 = vmatpush3.bf16.xpose.msk.msra.mxu1 %vm10235_vm2, %v13088_v54 }
 0x23e   :  { %8060 = vmatprep.subr.msk.bf16.mxu1 %vm10235_vm2, %v13089_v58 }
 0x242   :  { %8111 = vmatpush3.bf16.xpose.msk.msra.mxu0 %vm10235_vm2, %v13108_v2 }
 0x243   :  { %8114 = vmatprep.subr.msk.bf16.mxu0 %vm10235_vm2, %v13109_v27 }
 0x245   :  { %8063 = vmatpush3.bf16.xpose.msk.msra.mxu1 %vm10235_vm2, %v13090_v20 }
 0x246   :  { %8066 = vmatprep.subr.msk.bf16.mxu1 %vm10235_vm2, %v13091_v32 }
 0x24a   :  { %8117 = vmatpush3.bf16.xpose.msk.msra.mxu0 %vm10235_vm2, %v13110_v26 }
 0x24b   :  { %8152 = vmatprep.subr.msk.bf16.mxu0 %vm10235_vm2, %v13113_v44 }
 0x24d   :  { %8069 = vmatpush3.bf16.xpose.msk.msra.mxu1 %vm10235_vm2, %v13092_v9 }
 0x24e   :  { %8118 = vmatprep.subr.bf16.mxu1 %v13041_v36 }
 0x260   :  { %v6138_v31 = vpop.f32.mrb[80].mxu1 }
 0x261   :  { %v6139_v47 = vpop.f32.mrb[81].mxu1 }
 0x262   :  { %v6140_v18 = vadd.f32 %v6139_v47, %v6138_v31 }
 0x29f   :  { %v6173_v25 = vpop.f32.mrb[80].mxu0 }
 0x2a0   :  { %v6174_v4 = vpop.f32.mrb[81].mxu0 }
 0x2a1   :  { %v6175_v0 = vadd.f32 %v6174_v4, %v6173_v25  ;;  %v3675_v4 = vld [vmem:[#allocation6 + $0x188] sm:$0xff] }
 0x2a3   :  { %v2047_v56 = vadd.f32 %v6175_v0, %v6140_v18  ;;  %v1618_v18 = vld [vmem:[%s12674_s4] sm:$0x1] }
 0x2a4   :  { %v3658_v0 = vld [vmem:[#allocation6 + $0x100] sm:$0xff] }
 0x2bf   :  { %v6225_v31 = vpop.f32.mrb[82].mxu0 }
 0x2c0   :  { %v6226_v47 = vpop.f32.mrb[83].mxu0 }
 0x2c1   :  { %v6227_v57 = vadd.f32 %v6226_v47, %v6225_v31 }
 0x2c2   :  { %v2116_v24 = vpop.f32.mrb[82].mxu1 }
 0x2c3   :  { %v2117_v33 = vadd.f32 %v2116_v24, %v2047_v56  ;;  %v7232_v48 = vpop.f32.mrb[83].mxu1  ;;  %v3659_v56 = vld [vmem:[#allocation6 + $0x108] sm:$0xff] }
 0x2c4   :  { %v8312_v47 = vpack.c.bf16 %v3659_v56, %v3658_v0  ;;  %v3694_v0 = vld [vmem:[#allocation6 + $0x220] sm:$0xff]  ;;  %v3695_v56 = vld [vmem:[#allocation6 + $0x228] sm:$0xff] }
 0x2c5   :  { %v2330_v60 = vmul.f32 0.001953125, %v2117_v33 }
 0x2c7   :  { %v2332_v29 = vmul.f32 %v2330_v60, %v2330_v60 }
 0x2df   :  { %v2326_v46 = vpop.f32.mrb[84].mxu0 }
 0x2e0   :  { %v7267_v17 = vpop.f32.mrb[85].mxu0 }
 0x2e1   :  { %v1619_v17 = vld [vmem:[%s12674_s4 + $0x1] sm:$0x1] }
 0x2e2   :  { %v6260_v40 = vpop.f32.mrb[84].mxu1 }
 0x2e3   :  { %v6261_v11 = vpop.f32.mrb[85].mxu1 }
 0x2e4   :  { %v6262_v19 = vadd.f32 %v6261_v11, %v6260_v40 }
 0x2e6   :  { %v2257_v37 = vadd.f32 %v6262_v19, %v6227_v57  ;;  %v3644_v57 = vld [vmem:[#allocation6 + $0x90] sm:$0xff] }
 0x2e8   :  { %v2327_v45 = vadd.f32 %v2326_v46, %v2257_v37  ;;  %v3645_v46 = vld [vmem:[#allocation6 + $0x98] sm:$0xff]  ;;  %v3630_v37 = vld [vmem:[#allocation6 + $0x20] sm:$0xff] }
 0x2e9   :  { %v8282_v19 = vpack.c.bf16 %v3645_v46, %v3644_v57  ;;  %v3681_v57 = vld [vmem:[#allocation6 + $0x1b8] sm:$0xff] }
 0x2ea   :  { %v2331_v44 = vmul.f32 0.001953125, %v2327_v45  ;;  %v3631_v45 = vld [vmem:[#allocation6 + $0x28] sm:$0xff] }
 0x2eb   :  { %v8288_v11 = vpack.c.bf16 %v3631_v45, %v3630_v37  ;;  %v3684_v45 = vld [vmem:[#allocation6 + $0x1d0] sm:$0xff] }
 0x2ec   :  { %v2333_v51 = vsub.f32 %v2331_v44, %v2332_v29  ;;  %v3676_v44 = vld [vmem:[#allocation6 + $0x190] sm:$0xff] }
 0x2ee   :  { %v2334_v26 = vmax.f32 %v2333_v51, 0.0 }
 0x2f0   :  { %v2335_v25 = vadd.f32 1e-05, %v2334_v26 }
 0x2f2   :  { %8785 = vrsqrt.f32 %v2335_v25  ;;  %v3677_v25 = vld [vmem:[#allocation6 + $0x198] sm:$0xff] }
 0x2fc   :  { %v8786_v24 = vpop.eup %8785 }
 0x2fd   :  { %v2337_v48 = vmul.f32 %v8786_v24, %v1618_v18  ;;  %v8314_v18 = vpack.c.bf16 %v3677_v25, %v3676_v44  ;;  %v3713_v44 = vld [vmem:[#allocation6 + $0x2b8] sm:$0xff] }
 0x2ff   :  { %6312 = vmatprep.mubr.msk.f32.mxu1 %vm2340_vm1, %v2337_v48  ;;  %6346 = vmatprep.mubr.msk.f32.mxu0 %vm2340_vm1, %v2337_v48  ;;  %v2338_v33 = vmul.f32 %v2337_v48, %v2330_v60  ;;  %v3649_v60 = vld [vmem:[#allocation6 + $0xb8] sm:$0xff] }
 0x300   :  { %6313 = vmatmul.mubr.msk.f32.vlgmr.msra.gmra.mrb[86].mxu1 %vm2340_vm1, %v2337_v48  ;;  %6347 = vmatmul.mubr.msk.f32.vlgmr.msra.gmra.mrb[86].mxu0 %vm2340_vm1, %v2337_v48 }
 0x301   :  { %8121 = vmatpush3.bf16.xpose.msk.msra.mxu1 %vm10235_vm2, %v13093_v21  ;;  %8155 = vmatpush3.bf16.xpose.msk.msra.mxu0 %vm10235_vm2, %v9321_v22  ;;  %v10355_v40 = vsub.f32 %v1619_v17, %v2338_v33  ;;  %v3642_v22 = vld [vmem:[#allocation6 + $0x80] sm:$0xff]  ;;  %v3661_v17 = vld [vmem:[#allocation6 + $0x118] sm:$0xff] }
 0x302   :  { %8122 = vmatprep.subr.bf16.mxu1 %v13041_v36  ;;  %8158 = vmatprep.subr.msk.bf16.mxu0 %vm10235_vm2, %v9334_v12  ;;  %v3643_v12 = vld [vmem:[#allocation6 + $0x88] sm:$0xff] }
 0x303   :  { %6397 = vmatprep.mubr.msk.f32.mxu0 %vm2340_vm1, %v10355_v40  ;;  %7300 = vmatprep.mubr.msk.f32.mxu1 %vm8871_vm0, %v13094_v55 }
 0x309   :  { %8125 = vmatpush3.bf16.xpose.msk.msra.mxu1 %vm10235_vm2, %v13096_v34  ;;  %8161 = vmatpush3.bf16.xpose.msk.msra.mxu0 %vm10235_vm2, %v9343_v13  ;;  %v8278_v13 = vpack.c.bf16 %v3643_v12, %v3642_v22  ;;  %v3679_v22 = vld [vmem:[#allocation6 + $0x1a8] sm:$0xff] }
 0x30a   :  { %8126 = vmatprep.subr.bf16.mxu1 %v13041_v36  ;;  %8164 = vmatprep.subr.msk.bf16.mxu0 %vm10235_vm2, %v9356_v39  ;;  %v13114_v39 = vld [vmem:[#allocation42_spill] sm:$0xff] }
 0x311   :  { %8129 = vmatpush3.bf16.xpose.msk.msra.mxu1 %vm10235_vm2, %v9832_v3  ;;  %8167 = vmatpush3.bf16.xpose.msk.msra.mxu0 %vm10235_vm2, %v13078_v61  ;;  %v3651_v61 = vld [vmem:[#allocation6 + $0xc8] sm:$0xff] }
 0x312   :  { %8130 = vmatprep.subr.bf16.mxu1 %v13041_v36  ;;  %8170 = vmatprep.subr.msk.bf16.mxu0 %vm10235_vm2, %v13079_v10 }
 0x319   :  { %8133 = vmatpush3.bf16.xpose.msk.msra.mxu1 %vm10235_vm2, %v9850_v28  ;;  %8173 = vmatpush3.bf16.xpose.msk.msra.mxu0 %vm10235_vm2, %v13082_v15  ;;  %v3634_v15 = vld [vmem:[#allocation6 + $0x40] sm:$0xff] }
 0x31a   :  { %8134 = vmatprep.subr.bf16.mxu1 %v13041_v36  ;;  %8176 = vmatprep.subr.msk.bf16.mxu0 %vm10235_vm2, %v13083_v41  ;;  %v3635_v41 = vld [vmem:[#allocation6 + $0x48] sm:$0xff] }
 0x321   :  { %8137 = vmatpush3.bf16.xpose.msk.msra.mxu1 %vm10235_vm2, %v9892_v8  ;;  %8179 = vmatpush3.bf16.xpose.msk.msra.mxu0 %vm10235_vm2, %v13085_v59  ;;  %v3652_v59 = vld [vmem:[#allocation6 + $0xd0] sm:$0xff] }
 0x322   :  { %8138 = vmatprep.subr.bf16.mxu1 %v13041_v36  ;;  %8182 = vmatprep.subr.msk.bf16.mxu0 %vm10235_vm2, %v13087_v50  ;;  %v8296_v50 = vpack.c.bf16 %v3635_v41, %v3634_v15  ;;  %v3688_v41 = vld [vmem:[#allocation6 + $0x1f0] sm:$0xff] }
 0x329   :  { %8141 = vmatpush3.bf16.xpose.msk.msra.mxu1 %vm10235_vm2, %v9916_v43  ;;  %8185 = vmatpush3.bf16.xpose.msk.msra.mxu0 %vm10235_vm2, %v13088_v54 }
 0x32a   :  { %8142 = vmatprep.subr.bf16.mxu1 %v13041_v36  ;;  %8188 = vmatprep.subr.msk.bf16.mxu0 %vm10235_vm2, %v13089_v58  ;;  %v3650_v58 = vld [vmem:[#allocation6 + $0xc0] sm:$0xff] }
 0x331   :  { %8145 = vmatpush3.bf16.xpose.msk.msra.mxu1 %vm10235_vm2, %v9942_v14  ;;  %8191 = vmatpush3.bf16.xpose.msk.msra.mxu0 %vm10235_vm2, %v13090_v20  ;;  %v3636_v20 = vld [vmem:[#allocation6 + $0x50] sm:$0xff] }
 0x332   :  { %8146 = vmatprep.subr.bf16.mxu1 %v13041_v36  ;;  %8194 = vmatprep.subr.msk.bf16.mxu0 %vm10235_vm2, %v13091_v32  ;;  %v3637_v32 = vld [vmem:[#allocation6 + $0x58] sm:$0xff] }
 0x339   :  { %8149 = vmatpush3.bf16.xpose.msk.msra.mxu1 %vm10235_vm2, %v9969_v7  ;;  %8197 = vmatpush3.bf16.xpose.msk.msra.mxu0 %vm10235_vm2, %v13092_v9  ;;  %v3633_v9 = vld [vmem:[#allocation6 + $0x38] sm:$0xff] }
 0x33a   :  { %8200 = vmatprep.subr.msk.bf16.mxu1 %vm10235_vm2, %v9486_v6  ;;  %8246 = vmatprep.subr.bf16.mxu0 %v13041_v36  ;;  %v3627_v6 = vld [vmem:[#allocation6 + $0x8] sm:$0xff] }
 0x340   :  { %7301 = vmatmul.mubr.msk.f32.vlgmr.msra.gmra.mrb[88].mxu1 %vm2340_vm1, %v2337_v48  ;;  %6398 = vmatmul.mubr.msk.f32.vlgmr.msra.gmra.mrb[88].mxu0 %vm2340_vm1, %v10355_v40  ;;  %v3660_v48 = vld [vmem:[#allocation6 + $0x110] sm:$0xff] }
 0x341   :  { %8203 = vmatpush3.bf16.xpose.msk.msra.mxu1 %vm10235_vm2, %v13095_v35  ;;  %6431 = vmatprep.mubr.msk.f32.mxu1 %vm2340_vm1, %v10355_v40  ;;  %v3655_v35 = vld [vmem:[#allocation6 + $0xe8] sm:$0xff]  ;;  %v8316_v33 = vpack.c.bf16 %v3661_v17, %v3660_v48  ;;  %v3714_v17 = vld [vmem:[#allocation6 + $0x2c0] sm:$0xff] }
 0x342   :  { %8249 = vmatpush3.bf16.xpose.msk.msra.mxu0 %vm10235_vm2, %v13093_v21  ;;  %8206 = vmatprep.subr.msk.bf16.mxu1 %vm10235_vm2, %v13097_v49  ;;  %v3654_v21 = vld [vmem:[#allocation6 + $0xe0] sm:$0xff] }
 0x343   :  { %8250 = vmatprep.subr.bf16.mxu0 %v13041_v36  ;;  %7335 = vmatprep.mubr.msk.f32.mxu0 %vm8871_vm0, %v13094_v55  ;;  %v8302_v49 = vpack.c.bf16 %v3655_v35, %v3654_v21  ;;  %v3707_v21 = vld [vmem:[#allocation6 + $0x288] sm:$0xff]  ;;  %v3690_v35 = vld [vmem:[#allocation6 + $0x200] sm:$0xff] }
 0x349   :  { %8209 = vmatpush3.bf16.xpose.msk.msra.mxu1 %vm10235_vm2, %v13098_v53  ;;  %v3638_v53 = vld [vmem:[#allocation6 + $0x60] sm:$0xff] }
 0x34a   :  { %8253 = vmatpush3.bf16.xpose.msk.msra.mxu0 %vm10235_vm2, %v13096_v34  ;;  %8212 = vmatprep.subr.msk.bf16.mxu1 %vm10235_vm2, %v13099_v1  ;;  %v8300_v34 = vpack.c.bf16 %v3637_v32, %v3636_v20  ;;  %v3639_v1 = vld [vmem:[#allocation6 + $0x68] sm:$0xff]  ;;  %v3706_v32 = vld [vmem:[#allocation6 + $0x280] sm:$0xff] }
 0x34b   :  { %8254 = vmatprep.subr.bf16.mxu0 %v13041_v36 }
 0x351   :  { %8215 = vmatpush3.bf16.xpose.msk.msra.mxu1 %vm10235_vm2, %v13100_v63  ;;  %v3656_v63 = vld [vmem:[#allocation6 + $0xf0] sm:$0xff] }
 0x352   :  { %8257 = vmatpush3.bf16.xpose.msk.msra.mxu0 %vm10235_vm2, %v9832_v3  ;;  %8218 = vmatprep.subr.msk.bf16.mxu1 %vm10235_vm2, %v13101_v38  ;;  %v3628_v3 = vld [vmem:[#allocation6 + $0x10] sm:$0xff]  ;;  %v3657_v38 = vld [vmem:[#allocation6 + $0xf8] sm:$0xff] }
 0x353   :  { %8258 = vmatprep.subr.bf16.mxu0 %v13041_v36  ;;  %v8306_v23 = vpack.c.bf16 %v3657_v38, %v3656_v63  ;;  %v3709_v63 = vld [vmem:[#allocation6 + $0x298] sm:$0xff] }
 0x359   :  { %8221 = vmatpush3.bf16.xpose.msk.msra.mxu1 %vm10235_vm2, %v13102_v42  ;;  %v8304_v42 = vpack.c.bf16 %v3639_v1, %v3638_v53  ;;  %v3708_v1 = vld [vmem:[#allocation6 + $0x290] sm:$0xff] }
 0x35a   :  { %8261 = vmatpush3.bf16.xpose.msk.msra.mxu0 %vm10235_vm2, %v9850_v28  ;;  %8224 = vmatprep.subr.msk.bf16.mxu1 %vm10235_vm2, %v13103_v30  ;;  %v3626_v28 = vld [vmem:[#allocation6] sm:$0xff]  ;;  %v3640_v30 = vld [vmem:[#allocation6 + $0x70] sm:$0xff]  ;;  %v8346_v38 = vpack.c.bf16 %v3709_v63, %v3708_v1 }
 0x35b   :  { %8262 = vmatprep.subr.bf16.mxu0 %v13041_v36  ;;  %v8280_v26 = vpack.c.bf16 %v3627_v6, %v3626_v28  ;;  %v3680_v6 = vld [vmem:[#allocation6 + $0x1b0] sm:$0xff] }
 0x35c   :  { %v8322_v46 = vpack.c.bf16 %v3681_v57, %v3680_v6  ;;  %v3700_v57 = vld [vmem:[#allocation6 + $0x250] sm:$0xff] }
 0x35d   :  { %v13117_v1 = vld [vmem:[#allocation90_spill] sm:$0xff] }
 0x361   :  { %8227 = vmatpush3.bf16.xpose.msk.msra.mxu1 %vm10235_vm2, %v13104_v16  ;;  %v3653_v16 = vld [vmem:[#allocation6 + $0xd8] sm:$0xff] }
 0x362   :  { %8265 = vmatpush3.bf16.xpose.msk.msra.mxu0 %vm10235_vm2, %v9892_v8  ;;  %8230 = vmatprep.subr.msk.bf16.mxu1 %vm10235_vm2, %v13105_v5  ;;  %v3629_v8 = vld [vmem:[#allocation6 + $0x18] sm:$0xff]  ;;  %v8294_v5 = vpack.c.bf16 %v3651_v61, %v3650_v58  ;;  %v8298_v54 = vpack.c.bf16 %v3653_v16, %v3652_v59  ;;  %v3687_v58 = vld [vmem:[#allocation6 + $0x1e8] sm:$0xff]  ;;  %v3670_v61 = vld [vmem:[#allocation6 + $0x160] sm:$0xff] }
 0x363   :  { %8266 = vmatprep.subr.bf16.mxu0 %v13041_v36  ;;  %v8284_v29 = vpack.c.bf16 %v3629_v8, %v3628_v3  ;;  %v3682_v8 = vld [vmem:[#allocation6 + $0x1c0] sm:$0xff]  ;;  %v3689_v59 = vld [vmem:[#allocation6 + $0x1f8] sm:$0xff]  ;;  %v3672_v16 = vld [vmem:[#allocation6 + $0x170] sm:$0xff] }
 0x369   :  { %8233 = vmatpush3.bf16.xpose.msk.msra.mxu1 %vm10235_vm2, %v13106_v52  ;;  %v3641_v52 = vld [vmem:[#allocation6 + $0x78] sm:$0xff] }
 0x36a   :  { %8269 = vmatpush3.bf16.xpose.msk.msra.mxu0 %vm10235_vm2, %v9916_v43  ;;  %8236 = vmatprep.subr.msk.bf16.mxu1 %vm10235_vm2, %v13107_v62  ;;  %v3647_v43 = vld [vmem:[#allocation6 + $0xa8] sm:$0xff]  ;;  %v3674_v62 = vld [vmem:[#allocation6 + $0x180] sm:$0xff]  ;;  %v8308_v24 = vpack.c.bf16 %v3641_v52, %v3640_v30  ;;  %v3693_v30 = vld [vmem:[#allocation6 + $0x218] sm:$0xff] }
 0x36b   :  { %8270 = vmatprep.subr.bf16.mxu0 %v13041_v36  ;;  %v8310_v31 = vpack.c.bf16 %v3675_v4, %v3674_v62  ;;  %v3710_v62 = vld [vmem:[#allocation6 + $0x2a0] sm:$0xff] }
 0x371   :  { %8239 = vmatpush3.bf16.xpose.msk.msra.mxu1 %vm10235_vm2, %v13108_v2 }
 0x372   :  { %8273 = vmatpush3.bf16.xpose.msk.msra.mxu0 %vm10235_vm2, %v9942_v14  ;;  %8242 = vmatprep.subr.msk.bf16.mxu1 %vm10235_vm2, %v13109_v27  ;;  %v3646_v14 = vld [vmem:[#allocation6 + $0xa0] sm:$0xff]  ;;  %v3632_v27 = vld [vmem:[#allocation6 + $0x30] sm:$0xff] }
 0x373   :  { %8274 = vmatprep.subr.bf16.mxu0 %v13041_v36  ;;  %v8286_v51 = vpack.c.bf16 %v3647_v43, %v3646_v14  ;;  %v8292_v10 = vpack.c.bf16 %v3633_v9, %v3632_v27  ;;  %v3683_v14 = vld [vmem:[#allocation6 + $0x1c8] sm:$0xff]  ;;  %v3686_v9 = vld [vmem:[#allocation6 + $0x1e0] sm:$0xff] }
 0x374   :  { %v8326_v43 = vpack.c.bf16 %v3683_v14, %v3682_v8  ;;  %v12820_v8 = vlaneseq }
 0x379   :  { %8245 = vmatpush3.bf16.xpose.msk.msra.mxu1 %vm10235_vm2, %v13114_v39  ;;  %v3663_v39 = vld [vmem:[#allocation6 + $0x128] sm:$0xff] }
 0x37a   :  { %8277 = vmatpush3.bf16.xpose.msk.msra.mxu0 %vm10235_vm2, %v9969_v7  ;;  %8279 = vmatprep.subr.bf16.mxu1 %v8278_v13  ;;  %v3648_v7 = vld [vmem:[#allocation6 + $0xb0] sm:$0xff]  ;;  %v3662_v13 = vld [vmem:[#allocation6 + $0x120] sm:$0xff] }
 0x37b   :  { %v8290_v2 = vpack.c.bf16 %v3649_v60, %v3648_v7  ;;  %8311 = vmatprep.subr.bf16.mxu0 %v8310_v31  ;;  %v8320_v28 = vpack.c.bf16 %v3663_v39, %v3662_v13  ;;  %v3685_v7 = vld [vmem:[#allocation6 + $0x1d8] sm:$0xff]  ;;  %v3668_v60 = vld [vmem:[#allocation6 + $0x150] sm:$0xff]  ;;  %v8352_v31 = vpack.c.bf16 %v3695_v56, %v3694_v0 }
 0x37c   :  { %v3716_v39 = vld [vmem:[#allocation6 + $0x2d0] sm:$0xff] }
 0x37d   :  { %v13121_v0 = vld [vmem:[#allocation94_spill] sm:$0xff] }
 0x380   :  { %6432 = vmatmul.mubr.msk.f32.vlgmr.msra.gmra.mrb[90].mxu1 %vm2340_vm1, %v10355_v40 }
 0x381   :  { %7336 = vmatmul.mubr.msk.f32.vlgmr.msra.gmra.mrb[90].mxu0 %vm2340_vm1, %v10355_v40  ;;  %8281 = vmatpush3.bf16.msra.mxu1 %v8280_v26  ;;  %v3678_v40 = vld [vmem:[#allocation6 + $0x1a0] sm:$0xff]  ;;  %v3664_v26 = vld [vmem:[#allocation6 + $0x130] sm:$0xff] }
 0x382   :  { %8283 = vmatprep.subr.bf16.mxu1 %v8282_v19  ;;  %3930 = vmatprep.mubr.f32.mxu1 %v13094_v55  ;;  %v8318_v12 = vpack.c.bf16 %v3679_v22, %v3678_v40  ;;  %v3665_v19 = vld [vmem:[#allocation6 + $0x138] sm:$0xff]  ;;  %v3698_v22 = vld [vmem:[#allocation6 + $0x240] sm:$0xff] }
 0x383   :  { %4075 = vmatprep.mubr.f32.mxu0 %v13094_v55  ;;  %8313 = vmatpush3.bf16.msra.mxu0 %v8312_v47  ;;  %v8324_v3 = vpack.c.bf16 %v3665_v19, %v3664_v26  ;;  %v3712_v47 = vld [vmem:[#allocation6 + $0x2b0] sm:$0xff]  ;;  %v3718_v19 = vld [vmem:[#allocation6 + $0x2e0] sm:$0xff] }
 0x384   :  { %8315 = vmatprep.subr.bf16.mxu0 %v8314_v18  ;;  %v8354_v25 = vpack.c.bf16 %v3713_v44, %v3712_v47  ;;  %v3696_v18 = vld [vmem:[#allocation6 + $0x230] sm:$0xff]  ;;  %v13123_v44 = vld [vmem:[#allocation96_spill] sm:$0xff] }
 0x385   :  { %8285 = vmatpush3.bf16.msra.mxu1 %v8284_v29  ;;  %v3666_v29 = vld [vmem:[#allocation6 + $0x140] sm:$0xff] }
 0x386   :  { %8287 = vmatprep.subr.bf16.mxu1 %v8286_v51  ;;  %v3667_v51 = vld [vmem:[#allocation6 + $0x148] sm:$0xff] }
 0x387   :  { %8317 = vmatpush3.bf16.msra.mxu0 %v8316_v33  ;;  %v8328_v37 = vpack.c.bf16 %v3667_v51, %v3666_v29  ;;  %v3715_v33 = vld [vmem:[#allocation6 + $0x2c8] sm:$0xff] }
 0x388   :  { %8319 = vmatprep.subr.bf16.mxu0 %v8318_v12  ;;  %v8358_v40 = vpack.c.bf16 %v3715_v33, %v3714_v17  ;;  %v3699_v12 = vld [vmem:[#allocation6 + $0x248] sm:$0xff] }
 0x389   :  { %8289 = vmatpush3.bf16.msra.mxu1 %v8288_v11  ;;  %v8330_v11 = vpack.c.bf16 %v3685_v7, %v3684_v45  ;;  %v8360_v13 = vpack.c.bf16 %v3699_v12, %v3698_v22  ;;  %v10531_v45 = vshrl.u32 %v12820_v8, 7  ;;  %v3702_v7 = vld [vmem:[#allocation6 + $0x260] sm:$0xff]  ;;  %v13126_v33 = vld [vmem:[#allocation97_spill] sm:$0xff] }
 0x38a   :  { %8291 = vmatprep.subr.bf16.mxu1 %v8290_v2  ;;  %v3669_v2 = vld [vmem:[#allocation6 + $0x158] sm:$0xff]  ;;  %v13127_v22 = vld [vmem:[#allocation100_spill] sm:$0xff] }
 0x38b   :  { %8321 = vmatpush3.bf16.msra.mxu0 %v8320_v28  ;;  %v8332_v27 = vpack.c.bf16 %v3669_v2, %v3668_v60  ;;  %v3717_v28 = vld [vmem:[#allocation6 + $0x2d8] sm:$0xff]  ;;  %13115 = vst [vmem:[#allocation17_spill] sm:$0xff] %v10531_v45  ;;  %v3703_v60 = vld [vmem:[#allocation6 + $0x268] sm:$0xff] }
 0x38c   :  { %8323 = vmatprep.subr.bf16.mxu0 %v8322_v46  ;;  %v8362_v6 = vpack.c.bf16 %v3717_v28, %v3716_v39  ;;  %v3701_v46 = vld [vmem:[#allocation6 + $0x258] sm:$0xff]  ;;  %v13131_v28 = vld [vmem:[#allocation102_spill] sm:$0xff] }
 0x38d   :  { %8293 = vmatpush3.bf16.msra.mxu1 %v8292_v10  ;;  %v8334_v10 = vpack.c.bf16 %v3687_v58, %v3686_v9  ;;  %v8364_v26 = vpack.c.bf16 %v3701_v46, %v3700_v57  ;;  %v3721_v2 = vld [vmem:[#allocation6 + $0x2f8] sm:$0xff]  ;;  %v10534_v9 = vsub.s32 0, %v10531_v45  ;;  %v3739_v58 = vld [vmem:[#allocation6 + $0x388] sm:$0xff] }
 0x38e   :  { %8295 = vmatprep.subr.bf16.mxu1 %v8294_v5  ;;  %v3671_v5 = vld [vmem:[#allocation6 + $0x168] sm:$0xff] }
 0x38f   :  { %8325 = vmatpush3.bf16.msra.mxu0 %v8324_v3  ;;  %v8336_v15 = vpack.c.bf16 %v3671_v5, %v3670_v61  ;;  %v3719_v3 = vld [vmem:[#allocation6 + $0x2e8] sm:$0xff]  ;;  %13116 = vst [vmem:[#allocation18_spill] sm:$0xff] %v10534_v9  ;;  %v3722_v61 = vld [vmem:[#allocation6 + $0x300] sm:$0xff]  ;;  %v3704_v5 = vld [vmem:[#allocation6 + $0x270] sm:$0xff] }
 0x390   :  { %8327 = vmatprep.subr.bf16.mxu0 %v8326_v43  ;;  %v8366_v29 = vpack.c.bf16 %v3719_v3, %v3718_v19  ;;  %v13133_v57 = vld [vmem:[#allocation101_spill] sm:$0xff]  ;;  %v13137_v3 = vld [vmem:[#allocation104_spill] sm:$0xff] }
 0x391   :  { %8297 = vmatpush3.bf16.msra.mxu1 %v8296_v50  ;;  %v8338_v50 = vpack.c.bf16 %v3689_v59, %v3688_v41  ;;  %v8368_v41 = vpack.c.bf16 %v3703_v60, %v3702_v7  ;;  %v3726_v60 = vld [vmem:[#allocation6 + $0x320] sm:$0xff] }
 0x392   :  { %8299 = vmatprep.subr.bf16.mxu1 %v8298_v54  ;;  %v3673_v54 = vld [vmem:[#allocation6 + $0x178] sm:$0xff] }
 0x393   :  { %8329 = vmatpush3.bf16.msra.mxu0 %v8328_v37  ;;  %v8340_v20 = vpack.c.bf16 %v3673_v54, %v3672_v16 }
 0x394   :  { %8331 = vmatprep.subr.bf16.mxu0 %v8330_v11  ;;  %v3720_v11 = vld [vmem:[#allocation6 + $0x2f0] sm:$0xff] }
 0x395   :  { %8301 = vmatpush3.bf16.msra.mxu1 %v8300_v34  ;;  %v8342_v34 = vpack.c.bf16 %v3707_v21, %v3706_v32  ;;  %v8370_v59 = vpack.c.bf16 %v3721_v2, %v3720_v11  ;;  %v3740_v21 = vld [vmem:[#allocation6 + $0x390] sm:$0xff]  ;;  %v3727_v11 = vld [vmem:[#allocation6 + $0x328] sm:$0xff] }
 0x396   :  { %8303 = vmatprep.subr.bf16.mxu1 %v8302_v49  ;;  %v3691_v49 = vld [vmem:[#allocation6 + $0x208] sm:$0xff]  ;;  %v8384_v2 = vpack.c.bf16 %v3727_v11, %v3726_v60 }
 0x397   :  { %8333 = vmatpush3.bf16.msra.mxu0 %v8332_v27  ;;  %v8344_v53 = vpack.c.bf16 %v3691_v49, %v3690_v35  ;;  %v3738_v27 = vld [vmem:[#allocation6 + $0x380] sm:$0xff]  ;;  %v3741_v35 = vld [vmem:[#allocation6 + $0x398] sm:$0xff]  ;;  %v3724_v49 = vld [vmem:[#allocation6 + $0x310] sm:$0xff] }
 0x398   :  { %8335 = vmatprep.subr.bf16.mxu0 %v8334_v10  ;;  %v3723_v10 = vld [vmem:[#allocation6 + $0x308] sm:$0xff]  ;;  %v8374_v16 = vpack.c.bf16 %v3739_v58, %v3738_v27  ;;  %v3744_v27 = vld [vmem:[#allocation6 + $0x3b0] sm:$0xff]  ;;  %v3745_v58 = vld [vmem:[#allocation6 + $0x3b8] sm:$0xff] }
 0x399   :  { %8305 = vmatpush3.bf16.msra.mxu1 %v8304_v42  ;;  %v3692_v42 = vld [vmem:[#allocation6 + $0x210] sm:$0xff] }
 0x39a   :  { %8307 = vmatprep.subr.bf16.mxu1 %v8306_v23  ;;  %v8348_v52 = vpack.c.bf16 %v3693_v30, %v3692_v42  ;;  %v3711_v23 = vld [vmem:[#allocation6 + $0x2a8] sm:$0xff]  ;;  %v13119_v30 = vld [vmem:[#allocation92_spill] sm:$0xff] }
 0x39b   :  { %8337 = vmatpush3.bf16.msra.mxu0 %v8336_v15  ;;  %v8350_v4 = vpack.c.bf16 %v3711_v23, %v3710_v62  ;;  %v3705_v15 = vld [vmem:[#allocation6 + $0x278] sm:$0xff] }
 0x39c   :  { %8339 = vmatprep.subr.bf16.mxu0 %v8338_v50  ;;  %v8376_v50 = vpack.c.bf16 %v3723_v10, %v3722_v61  ;;  %v8372_v32 = vpack.c.bf16 %v3705_v15, %v3704_v5  ;;  %v13120_v23 = vld [vmem:[#allocation91_spill] sm:$0xff]  ;;  %v8386_v61 = vpack.c.bf16 %v3745_v58, %v3744_v27  ;;  %v3728_v10 = vld [vmem:[#allocation6 + $0x330] sm:$0xff] }
 0x39d   :  { %8309 = vmatpush3.bf16.msra.mxu1 %v8308_v24  ;;  %v3697_v24 = vld [vmem:[#allocation6 + $0x238] sm:$0xff] }
 0x39e   :  { %8343 = vmatprep.subr.bf16.mxu1 %v8342_v34  ;;  %v8356_v48 = vpack.c.bf16 %v3697_v24, %v3696_v18  ;;  %v8378_v34 = vpack.c.bf16 %v3741_v35, %v3740_v21  ;;  %v13124_v18 = vld [vmem:[#allocation95_spill] sm:$0xff]  ;;  %v3730_v35 = vld [vmem:[#allocation6 + $0x340] sm:$0xff] }
 0x39f   :  { %8341 = vmatpush3.bf16.msra.mxu0 %v8340_v20  ;;  %v3729_v5 = vld [vmem:[#allocation6 + $0x338] sm:$0xff] }
 0x3a0   :  { %3931 = vmatmul.mubr.f32.vlgmr.msra.gmra.mrb[92].mxu1 %v13094_v55  ;;  %8375 = vmatprep.subr.bf16.mxu0 %v8374_v16  ;;  %v8388_v15 = vpack.c.bf16 %v3729_v5, %v3728_v10  ;;  %v3753_v10 = vld [vmem:[#allocation6 + $0x3f8] sm:$0xff] }
 0x3a1   :  { %8345 = vmatpush3.bf16.msra.mxu1 %v8344_v53  ;;  %v3725_v53 = vld [vmem:[#allocation6 + $0x318] sm:$0xff] }
 0x3a2   :  { %4076 = vmatmul.mubr.f32.vlgmr.msra.gmra.mrb[92].mxu0 %v13094_v55  ;;  %8347 = vmatprep.subr.bf16.mxu1 %v8346_v38  ;;  %v13118_v38 = vld [vmem:[#allocation89_spill] sm:$0xff]  ;;  %v8380_v62 = vpack.c.bf16 %v3725_v53, %v3724_v49  ;;  %v3748_v53 = vld [vmem:[#allocation6 + $0x3d0] sm:$0xff] }
 0x3a3   :  { %8377 = vmatpush3.bf16.msra.mxu0 %v8376_v50  ;;  %v3746_v50 = vld [vmem:[#allocation6 + $0x3c0] sm:$0xff] }
 0x3a4   :  { %8379 = vmatprep.subr.bf16.mxu0 %v8378_v34  ;;  %v3731_v34 = vld [vmem:[#allocation6 + $0x348] sm:$0xff] }
 0x3a5   :  { %8349 = vmatpush3.bf16.msra.mxu1 %v8348_v52  ;;  %v8392_v49 = vpack.c.bf16 %v3731_v34, %v3730_v35  ;;  %v3736_v34 = vld [vmem:[#allocation6 + $0x370] sm:$0xff] }
 0x3a6   :  { %8351 = vmatprep.subr.bf16.mxu1 %v8350_v4 }
 0x3a7   :  { %8381 = vmatpush3.bf16.msra.mxu0 %v8380_v62  ;;  %v3733_v62 = vld [vmem:[#allocation6 + $0x358] sm:$0xff] }
 0x3a9   :  { %8353 = vmatpush3.bf16.msra.mxu1 %v8352_v31  ;;  %v13122_v31 = vld [vmem:[#allocation93_spill] sm:$0xff] }
 0x3aa   :  { %8355 = vmatprep.subr.bf16.mxu1 %v8354_v25 }
 0x3ad   :  { %8357 = vmatpush3.bf16.msra.mxu1 %v8356_v48  ;;  %v13125_v48 = vld [vmem:[#allocation98_spill] sm:$0xff] }
 0x3ae   :  { %8359 = vmatprep.subr.bf16.mxu1 %v8358_v40 }
 0x3b1   :  { %8361 = vmatpush3.bf16.msra.mxu1 %v8360_v13  ;;  %v13129_v13 = vld [vmem:[#allocation99_spill] sm:$0xff] }
 0x3b2   :  { %8363 = vmatprep.subr.bf16.mxu1 %v8362_v6 }
 0x3b5   :  { %8365 = vmatpush3.bf16.msra.mxu1 %v8364_v26  ;;  %v13135_v26 = vld [vmem:[#allocation103_spill] sm:$0xff] }
 0x3b6   :  { %8367 = vmatprep.subr.bf16.mxu1 %v8366_v29  ;;  %v3742_v29 = vld [vmem:[#allocation6 + $0x3a0] sm:$0xff] }
 0x3b9   :  { %8369 = vmatpush3.bf16.msra.mxu1 %v8368_v41  ;;  %v3770_v41 = vld [vmem:[#allocation6 + $0x480] sm:$0xff] }
 0x3ba   :  { %8371 = vmatprep.subr.bf16.mxu1 %v8370_v59  ;;  %v3771_v59 = vld [vmem:[#allocation6 + $0x488] sm:$0xff] }
 0x3bb   :  { %v8406_v16 = vpack.c.bf16 %v3771_v59, %v3770_v41  ;;  %v13149_v41 = vld [vmem:[#allocation35_spill] sm:$0xff] }
 0x3bd   :  { %8373 = vmatpush3.bf16.msra.mxu1 %v8372_v32  ;;  %v3747_v32 = vld [vmem:[#allocation6 + $0x3c8] sm:$0xff] }
 0x3be   :  { %8407 = vmatprep.subr.bf16.mxu1 %v8406_v16  ;;  %v8390_v21 = vpack.c.bf16 %v3747_v32, %v3746_v50  ;;  %v13150_v16 = vld [vmem:[#allocation39_spill] sm:$0xff] }
 0x3bf   :  { %v13151_v32 = vld [vmem:[#allocation43_spill] sm:$0xff] }
 0x3d3   :  { %v10526_v14 = vpop.f32.mrb[86].mxu1  ;;  %v2721_v43 = vpop.f32.mrb[86].mxu0 }
 0x3d4   :  { %v10528_v51 = vpop.f32.mrb[87].mxu1  ;;  %v2723_v37 = vpop.f32.mrb[87].mxu0  ;;  %v10537_v54 = vrot.slane %v2721_v43, %v10534_v9 }
 0x3d5   :  { %v10540_v20 = vrot.slane %v2723_v37, %v10534_v9  ;;  %v3743_v37 = vld [vmem:[#allocation6 + $0x3a8] sm:$0xff]  ;;  %v10640_v60 = vrot.slane %v10528_v51, %v10534_v9  ;;  %v3752_v51 = vld [vmem:[#allocation6 + $0x3f0] sm:$0xff] }
 0x3d6   :  { %v10548_v42 = vmul.f32 %v10537_v54, %v13118_v38  ;;  %v10556_v4 = vmul.f32 %v10537_v54, %v13120_v23  ;;  %v10564_v47 = vmul.f32 %v10537_v54, %v13122_v31  ;;  %v10572_v24 = vmul.f32 %v10537_v54, %v13124_v18 }
 0x3d7   :  { %v10544_v63 = vmul.f32 %v10540_v20, %v13117_v1  ;;  %v10552_v52 = vmul.f32 %v10540_v20, %v13119_v30  ;;  %v10560_v56 = vmul.f32 %v10540_v20, %v13121_v0  ;;  %v10568_v25 = vmul.f32 %v10540_v20, %v13123_v44  ;;  %v3749_v1 = vld [vmem:[#allocation6 + $0x3d8] sm:$0xff]  ;;  %v3732_v30 = vld [vmem:[#allocation6 + $0x350] sm:$0xff] }
 0x3d8   :  { %v10576_v17 = vmul.f32 %v10540_v20, %v13125_v48  ;;  %v10580_v40 = vmul.f32 %v10537_v54, %v13126_v33  ;;  %v10584_v12 = vmul.f32 %v10540_v20, %v13127_v22  ;;  %v10588_v39 = vmul.f32 %v10537_v54, %v13129_v13  ;;  %v3750_v48 = vld [vmem:[#allocation6 + $0x3e0] sm:$0xff]  ;;  %v3751_v33 = vld [vmem:[#allocation6 + $0x3e8] sm:$0xff] }
 0x3d9   :  { %v10592_v6 = vmul.f32 %v10540_v20, %v13131_v28  ;;  %v10596_v46 = vmul.f32 %v10537_v54, %v13133_v57  ;;  %v10600_v19 = vmul.f32 %v10537_v54, %v13135_v26  ;;  %v10604_v43 = vmul.f32 %v10540_v20, %v13137_v3  ;;  %v3734_v26 = vld [vmem:[#allocation6 + $0x360] sm:$0xff]  ;;  %v3735_v3 = vld [vmem:[#allocation6 + $0x368] sm:$0xff] }
 0x3da   :  { %13128 = vst [vmem:[#allocation19_spill] sm:$0xff] %v10584_v12  ;;  %13130 = vst [vmem:[#allocation20_spill] sm:$0xff] %v10588_v39  ;;  %v8382_v7 = vpack.c.bf16 %v3743_v37, %v3742_v29  ;;  %v8394_v38 = vpack.c.bf16 %v3749_v1, %v3748_v53  ;;  %v8396_v23 = vpack.c.bf16 %v3733_v62, %v3732_v30  ;;  %v10607_v0 = vadd.s32 8, %v10531_v45  ;;  %v13152_v30 = vld [vmem:[#allocation36_spill] sm:$0xff] }
 0x3db   :  { %13132 = vst [vmem:[#allocation21_spill] sm:$0xff] %v10592_v6  ;;  %13134 = vst [vmem:[#allocation22_spill] sm:$0xff] %v10596_v46  ;;  %v10610_v31 = vadd.s32 16, %v10531_v45  ;;  %v10613_v44 = vadd.s32 24, %v10531_v45  ;;  %v10616_v18 = vand.u32 7, %v10531_v45  ;;  %v8398_v57 = vpack.c.bf16 %v3751_v33, %v3750_v48 }
 0x3dc   :  { %13136 = vst [vmem:[#allocation23_spill] sm:$0xff] %v10600_v19  ;;  %13138 = vst [vmem:[#allocation77_spill] sm:$0xff] %v10604_v43  ;;  %8383 = vmatprep.subr.bf16.mxu0 %v8382_v7  ;;  %v10619_v22 = vand.u32 7, %v10607_v0  ;;  %v8400_v29 = vpack.c.bf16 %v3735_v3, %v3734_v26  ;;  %v10628_v37 = vadd.s32 32, %v10531_v45  ;;  %v10633_v7 = vrot.slane %v10526_v14, %v10534_v9  ;;  %v13154_v26 = vld [vmem:[#allocation40_spill] sm:$0xff]  ;;  %v13186_v43 = vld [vmem:[#allocation65_spill] sm:$0xff] }
 0x3dd   :  { %8385 = vmatpush3.bf16.msra.mxu0 %v8384_v2  ;;  %13139 = vst [vmem:[#allocation24_spill] sm:$0xff] %v10607_v0  ;;  %13140 = vst [vmem:[#allocation80_spill] sm:$0xff] %v10610_v31  ;;  %v10622_v13 = vand.u32 7, %v10610_v31  ;;  %v10625_v28 = vand.u32 7, %v10613_v44  ;;  %vm85_vm3 = vcmp.lt.s32.totalorder %v10616_v18, 2  ;;  %v8402_v35 = vpack.c.bf16 %v3753_v10, %v3752_v51  ;;  %v13156_v10 = vld [vmem:[#allocation46_spill] sm:$0xff] }
 0x3de   :  { %8387 = vmatprep.subr.bf16.mxu0 %v8386_v61  ;;  %13141 = vst [vmem:[#allocation25_spill] sm:$0xff] %v10613_v44  ;;  %13142 = vst [vmem:[#allocation26_spill] sm:$0xff] %v10616_v18  ;;  %vm86_vm4 = vcmp.lt.s32.totalorder %v10619_v22, 2  ;;  %v10643_v11 = vsel %vm85_vm3, 1.0, %v13094_v55  ;;  %v10646_v2 = vand.u32 7, %v10628_v37  ;;  %v10658_v61 = vadd.s32 40, %v10531_v45 }
 0x3df   :  { %13143 = vst [vmem:[#allocation27_spill] sm:$0xff] %v10619_v22  ;;  %13144 = vst [vmem:[#allocation28_spill] sm:$0xff] %v10622_v13  ;;  %vm87_vm5 = vcmp.lt.s32.totalorder %v10622_v13, 2  ;;  %vm88_vm6 = vcmp.lt.s32.totalorder %v10625_v28, 2  ;;  %v10649_v27 = vsel %vm86_vm4, 1.0, %v13094_v55  ;;  %v3031_v59 = vmul.f32 %v10633_v7, %v13149_v41  ;;  %v13164_v44 = vld [vmem:[#allocation53_spill] sm:$0xff] }
 0x3e0   :  { %13145 = vst [vmem:[#allocation29_spill] sm:$0xff] %v10625_v28  ;;  %13146 = vst [vmem:[#allocation30_spill] sm:$0xff] %v10628_v37  ;;  %v10652_v14 = vsel %vm87_vm5, 1.0, %v13094_v55  ;;  %v10655_v58 = vsel %vm88_vm6, 1.0, %v13094_v55  ;;  %v3036_v50 = vmul.f32 %v10633_v7, %v13150_v16  ;;  %v3032_v62 = vmul.f32 %v10640_v60, %v13152_v30  ;;  %v13163_v37 = vld [vmem:[#allocation54_spill] sm:$0xff]  ;;  %v13173_v0 = vld [vmem:[#allocation60_spill] sm:$0xff] }
 0x3e1   :  { %8389 = vmatpush3.bf16.msra.mxu0 %v8388_v15  ;;  %13147 = vst [vmem:[#allocation31_spill] sm:$0xff] %v10646_v2  ;;  %13148 = vst [vmem:[#allocation32_spill] sm:$0xff] %v10658_v61  ;;  %v3037_v3 = vmul.f32 %v10640_v60, %v13154_v26  ;;  %v13158_v26 = vld [vmem:[#allocation47_spill] sm:$0xff]  ;;  %vm89_vm7 = vcmp.lt.s32.totalorder %v10646_v2, 2  ;;  %v13176_v18 = vld [vmem:[#allocation62_spill] sm:$0xff] }
 0x3e2   :  { %8391 = vmatprep.subr.bf16.mxu0 %v8390_v21  ;;  %v3041_v21 = vmul.f32 %v10633_v7, %v13151_v32  ;;  %v13175_v22 = vld [vmem:[#allocation59_spill] sm:$0xff]  ;;  %v3087_v36 = vmul.f32 %v10640_v60, %v13176_v18  ;;  %v13185_v2 = vld [vmem:[#allocation66_spill] sm:$0xff]  ;;  %v13188_v19 = vld [vmem:[#allocation68_spill] sm:$0xff] }
 0x3e3   :  { %v3102_v46 = vmul.f32 %v10640_v60, %v13188_v19 }
 0x3e5   :  { %8393 = vmatpush3.bf16.msra.mxu0 %v8392_v49  ;;  %v3737_v49 = vld [vmem:[#allocation6 + $0x378] sm:$0xff] }
 0x3e6   :  { %8395 = vmatprep.subr.bf16.mxu0 %v8394_v38  ;;  %v8404_v33 = vpack.c.bf16 %v3737_v49, %v3736_v34 }
 0x3e9   :  { %8397 = vmatpush3.bf16.msra.mxu0 %v8396_v23  ;;  %v13153_v23 = vld [vmem:[#allocation45_spill] sm:$0xff] }
 0x3ea   :  { %8399 = vmatprep.subr.bf16.mxu0 %v8398_v57  ;;  %v3046_v48 = vmul.f32 %v10633_v7, %v13153_v23 }
 0x3ed   :  { %8401 = vmatpush3.bf16.msra.mxu0 %v8400_v29  ;;  %v13155_v29 = vld [vmem:[#allocation44_spill] sm:$0xff] }
 0x3ee   :  { %v3042_v51 = vmul.f32 %v10640_v60, %v13155_v29  ;;  %8403 = vmatprep.subr.bf16.mxu0 %v8402_v35  ;;  %v13157_v35 = vld [vmem:[#allocation48_spill] sm:$0xff] }
 0x3f1   :  { %8405 = vmatpush3.bf16.msra.mxu0 %v8404_v33 }
 0x413   :  { %v10660_v5 = vpop.f32.mrb[88].mxu1  ;;  %v2865_v15 = vpop.f32.mrb[88].mxu0 }
 0x414   :  { %v10669_v53 = vrot.slane %v2865_v15, %v10534_v9  ;;  %v7302_v1 = vpop.f32.mrb[89].mxu1  ;;  %v2867_v38 = vpop.f32.mrb[89].mxu0  ;;  %v3047_v15 = vmul.f32 %v10640_v60, %v13156_v10  ;;  %v13160_v10 = vld [vmem:[#allocation49_spill] sm:$0xff] }
 0x415   :  { %v10676_v57 = vrot.slane %v2867_v38, %v10534_v9 }
 0x416   :  { %v3131_v41 = vadd.f32 %v10669_v53, %v3031_v59  ;;  %v3136_v16 = vadd.f32 %v10669_v53, %v3036_v50  ;;  %v3141_v32 = vadd.f32 %v10669_v53, %v3041_v21  ;;  %v10688_v34 = vadd.f32 %v10669_v53, %v3046_v48  ;;  %v13159_v21 = vld [vmem:[#allocation50_spill] sm:$0xff] }
 0x417   :  { %v3132_v49 = vadd.f32 %v10676_v57, %v3032_v62  ;;  %v3137_v1 = vadd.f32 %v10676_v57, %v3037_v3  ;;  %v3142_v38 = vadd.f32 %v10676_v57, %v3042_v51  ;;  %v3147_v30 = vadd.f32 %v10676_v57, %v3047_v15  ;;  %v13161_v3 = vld [vmem:[#allocation52_spill] sm:$0xff]  ;;  %v13162_v15 = vld [vmem:[#allocation51_spill] sm:$0xff] }
 0x418   :  { %v3211_v23 = vmax.f32 %v3131_v41, 0.0  ;;  %v3052_v59 = vmul.f32 %v10640_v60, %v13157_v35  ;;  %v3051_v50 = vmul.f32 %v10633_v7, %v13158_v26  ;;  %v3057_v48 = vmul.f32 %v10640_v60, %v13159_v21 }
 0x419   :  { %v3212_v29 = vmax.f32 %v3132_v49, 0.0  ;;  %v3217_v33 = vmax.f32 %v3137_v1, 0.0  ;;  %v3056_v62 = vmul.f32 %v10633_v7, %v13160_v10  ;;  %v3062_v51 = vmul.f32 %v10640_v60, %v13161_v3 }
 0x41a   :  { %v3216_v8 = vmax.f32 %v3136_v16, 0.0  ;;  %v3061_v41 = vmul.f32 %v10633_v7, %v13162_v15  ;;  %v3067_v35 = vmul.f32 %v10640_v60, %v13163_v37  ;;  %v3066_v26 = vmul.f32 %v10633_v7, %v13164_v44 }
 0x41b   :  { %v10711_v21 = vmul.f32 %v10643_v11, %v3212_v29  ;;  %v10714_v49 = vmul.f32 %v10643_v11, %v3211_v23  ;;  %v10717_v1 = vmul.f32 %v10649_v27, %v3217_v33  ;;  %v3222_v10 = vmax.f32 %v3142_v38, 0.0  ;;  %v13169_v33 = vld [vmem:[#allocation56_spill] sm:$0xff] }
 0x41c   :  { %v3152_v16 = vadd.f32 %v10676_v57, %v3052_v59  ;;  %v10721_v3 = vadd.f32 %v10669_v53, %v3051_v50  ;;  %v10724_v37 = vadd.f32 %v10676_v57, %v3057_v48  ;;  %v10727_v44 = vadd.f32 %v10669_v53, %v3056_v62 }
 0x41d   :  { %13165 = vst [vmem:[#allocation33_spill] sm:$0xff] %v10711_v21  ;;  %13166 = vst [vmem:[#allocation34_spill] sm:$0xff] %v10717_v1  ;;  %3935 = vmatprep.mubr.f32.mxu1 %v10711_v21  ;;  %v10731_v23 = vadd.f32 %v10676_v57, %v3062_v51  ;;  %v10734_v29 = vadd.f32 %v10669_v53, %v3061_v41  ;;  %v10737_v38 = vadd.f32 %v10676_v57, %v3067_v35  ;;  %v13170_v51 = vld [vmem:[#allocation55_spill] sm:$0xff]  ;;  %v13171_v41 = vld [vmem:[#allocation58_spill] sm:$0xff] }
 0x41e   :  { %v10740_v59 = vadd.f32 %v10669_v53, %v3066_v26  ;;  %3936 = vmatmul.mubr.f32.gmra.mrb[94].mxu1 %v10714_v49  ;;  %v10745_v50 = vand.u32 7, %v10658_v61  ;;  %v10748_v48 = vadd.s32 48, %v10531_v45  ;;  %v3072_v62 = vmul.f32 %v10640_v60, %v13169_v33  ;;  %v13172_v26 = vld [vmem:[#allocation57_spill] sm:$0xff] }
 0x41f   :  { %3940 = vmatprep.mubr.f32.mxu1 %v10717_v1  ;;  %v3071_v15 = vmul.f32 %v10633_v7, %v13170_v51  ;;  %v3077_v35 = vmul.f32 %v10640_v60, %v13171_v41  ;;  %v3076_v31 = vmul.f32 %v10633_v7, %v13172_v26  ;;  %v3082_v61 = vmul.f32 %v10640_v60, %v13173_v0  ;;  %v13178_v26 = vld [vmem:[#allocation61_spill] sm:$0xff] }
 0x420   :  { %13167 = vst [vmem:[#allocation37_spill] sm:$0xff] %v10745_v50  ;;  %13168 = vst [vmem:[#allocation38_spill] sm:$0xff] %v10748_v48  ;;  %v10762_v28 = vmul.f32 %v10649_v27, %v3216_v8  ;;  %v3221_v13 = vmax.f32 %v3141_v32, 0.0  ;;  %v3081_v33 = vmul.f32 %v10633_v7, %v13175_v22  ;;  %v10769_v51 = vmul.f32 %v10652_v14, %v3222_v10 }
 0x421   :  { %v3227_v41 = vmax.f32 %v3147_v30, 0.0  ;;  %v3226_v1 = vmax.f32 %v10688_v34, 0.0  ;;  %v3086_v21 = vmul.f32 %v10633_v7, %v13178_v26  ;;  %v10776_v8 = vadd.f32 %v10676_v57, %v3072_v62 }
 0x422   :  { %13174 = vst [vmem:[#allocation41_spill] sm:$0xff] %v10762_v28  ;;  %13177 = vst [vmem:[#allocation12_spill] sm:$0xff] %v10769_v51  ;;  %3941 = vmatmul.mubr.f32.gmra.mrb[96].mxu1 %v10762_v28  ;;  %v10779_v0 = vadd.f32 %v10669_v53, %v3071_v15  ;;  %v10782_v22 = vadd.f32 %v10676_v57, %v3077_v35  ;;  %v10785_v18 = vadd.f32 %v10669_v53, %v3076_v31 }
 0x423   :  { %3945 = vmatprep.mubr.f32.mxu1 %v10769_v51  ;;  %v10789_v32 = vadd.f32 %v10676_v57, %v3082_v61  ;;  %v10792_v34 = vadd.f32 %v10669_v53, %v3081_v33  ;;  %v10795_v30 = vadd.f32 %v10676_v57, %v3087_v36  ;;  %v10798_v10 = vadd.f32 %v10669_v53, %v3086_v21  ;;  %v13184_v33 = vld [vmem:[#allocation63_spill] sm:$0xff] }
 0x424   :  { %v10801_v62 = vmul.f32 %v10652_v14, %v3221_v13  ;;  %v10806_v31 = vsel %vm89_vm7, 1.0, %v13094_v55  ;;  %v10809_v61 = vadd.s32 56, %v10531_v45  ;;  %v10812_v15 = vmul.f32 %v10655_v58, %v3227_v41  ;;  %v13183_v13 = vld [vmem:[#allocation64_spill] sm:$0xff] }
 0x425   :  { %v3232_v35 = vmax.f32 %v3152_v16, 0.0  ;;  %vm90_vm8 = vcmp.lt.s32.totalorder %v10745_v50, 2  ;;  %v10816_v36 = vand.u32 7, %v10748_v48  ;;  %v3092_v21 = vmul.f32 %v10640_v60, %v13183_v13  ;;  %v13189_v13 = vld [vmem:[#allocation67_spill] sm:$0xff]  ;;  %v3802_v50 = vld [vmem:[#allocation6 + $0x580] sm:$0xff] }
 0x426   :  { %13179 = vst [vmem:[#allocation42_spill] sm:$0xff] %v10801_v62  ;;  %13180 = vst [vmem:[#allocation90_spill] sm:$0xff] %v10809_v61  ;;  %3946 = vmatmul.mubr.f32.gmra.mrb[98].mxu1 %v10801_v62  ;;  %v3091_v26 = vmul.f32 %v10633_v7, %v13184_v33  ;;  %v3097_v51 = vmul.f32 %v10640_v60, %v13185_v2  ;;  %v3096_v41 = vmul.f32 %v10633_v7, %v13186_v43 }
 0x427   :  { %13181 = vst [vmem:[#allocation89_spill] sm:$0xff] %v10812_v15  ;;  %13182 = vst [vmem:[#allocation92_spill] sm:$0xff] %v10816_v36  ;;  %3950 = vmatprep.mubr.f32.mxu1 %v10812_v15  ;;  %v10829_v16 = vmul.f32 %v10655_v58, %v3226_v1  ;;  %v3231_v48 = vmax.f32 %v10721_v3, 0.0  ;;  %v3101_v6 = vmul.f32 %v10633_v7, %v13189_v13  ;;  %v3237_v19 = vmax.f32 %v10724_v37, 0.0 }
 0x428   :  { %v10837_v33 = vadd.f32 %v10676_v57, %v3092_v21  ;;  %v10840_v2 = vadd.f32 %v10669_v53, %v3091_v26  ;;  %v10843_v43 = vadd.f32 %v10676_v57, %v3097_v51  ;;  %v10846_v1 = vadd.f32 %v10669_v53, %v3096_v41 }
 0x429   :  { %13187 = vst [vmem:[#allocation91_spill] sm:$0xff] %v10829_v16  ;;  %v10849_v3 = vmul.f32 %v10806_v31, %v3232_v35  ;;  %v10853_v15 = vadd.f32 %v10676_v57, %v3102_v46  ;;  %v10856_v21 = vadd.f32 %v10669_v53, %v3101_v6  ;;  %v10862_v51 = vsel %vm90_vm8, 1.0, %v13094_v55 }
 0x42a   :  { %3951 = vmatmul.mubr.f32.gmra.mrb[100].mxu1 %v10829_v16  ;;  %vm91_vm9 = vcmp.lt.s32.totalorder %v10816_v36, 2  ;;  %v10867_v35 = vand.u32 7, %v10809_v61  ;;  %v10870_v46 = vadd.s32 64, %v10531_v45  ;;  %v10873_v6 = vmul.f32 %v10806_v31, %v3231_v48  ;;  %v13195_v61 = vld [vmem:[#allocation69_spill] sm:$0xff] }
 0x42b   :  { %13190 = vst [vmem:[#allocation94_spill] sm:$0xff] %v10849_v3  ;;  %3955 = vmatprep.mubr.f32.mxu1 %v10849_v3  ;;  %v3236_v37 = vmax.f32 %v10727_v44, 0.0  ;;  %v10877_v26 = vmul.f32 %v10862_v51, %v3237_v19  ;;  %v3242_v41 = vmax.f32 %v10731_v23, 0.0  ;;  %v10882_v13 = vsel %vm91_vm9, 1.0, %v13094_v55  ;;  %v3803_v3 = vld [vmem:[#allocation6 + $0x588] sm:$0xff] }
 0x42c   :  { %13191 = vst [vmem:[#allocation93_spill] sm:$0xff] %v10867_v35  ;;  %13192 = vst [vmem:[#allocation96_spill] sm:$0xff] %v10870_v46  ;;  %v3106_v36 = vmul.f32 %v10633_v7, %v13195_v61  ;;  %vm92_vm10 = vcmp.lt.s32.totalorder %v10867_v35, 2  ;;  %v10889_v44 = vand.u32 7, %v10870_v46  ;;  %v10892_v48 = vadd.s32 72, %v10531_v45 }
 0x42d   :  { %13193 = vst [vmem:[#allocation95_spill] sm:$0xff] %v10873_v6  ;;  %13194 = vst [vmem:[#allocation98_spill] sm:$0xff] %v10877_v26  ;;  %v10895_v23 = vmul.f32 %v10862_v51, %v3236_v37  ;;  %v3241_v19 = vmax.f32 %v10734_v29, 0.0  ;;  %v10902_v7 = vmul.f32 %v10882_v13, %v3242_v41  ;;  %v3247_v61 = vmax.f32 %v10737_v38, 0.0 }
 0x42e   :  { %3956 = vmatmul.mubr.f32.gmra.mrb[102].mxu1 %v10873_v6  ;;  %13196 = vst [vmem:[#allocation97_spill] sm:$0xff] %v10889_v44  ;;  %13197 = vst [vmem:[#allocation100_spill] sm:$0xff] %v10892_v48  ;;  %v10899_v39 = vadd.f32 %v10669_v53, %v3106_v36  ;;  %v8438_v35 = vpack.c.bf16 %v3803_v3, %v3802_v50  ;;  %v10909_v12 = vsel %vm92_vm10, 1.0, %v13094_v55  ;;  %vm93_vm11 = vcmp.lt.s32.totalorder %v10889_v44, 2  ;;  %v13237_v44 = vld [vmem:[#allocation71_spill] sm:$0xff] }
 0x42f   :  { %3960 = vmatprep.mubr.f32.mxu1 %v10877_v26  ;;  %13198 = vst [vmem:[#allocation99_spill] sm:$0xff] %v10895_v23  ;;  %13200 = vst [vmem:[#allocation101_spill] sm:$0xff] %v10902_v7  ;;  %v13201_v26 = vld [vmem:[#allocation70_spill] sm:$0xff]  ;;  %v10914_v53 = vand.u32 7, %v10892_v48  ;;  %v10917_v29 = vadd.s32 80, %v10531_v45  ;;  %v3246_v50 = vmax.f32 %v10740_v59, 0.0  ;;  %v10927_v36 = vmul.f32 %v10909_v12, %v3247_v61 }
 0x430   :  { %13199 = vst [vmem:[#allocation102_spill] sm:$0xff] %v10899_v39  ;;  %v3107_v46 = vmul.f32 %v10640_v60, %v13201_v26  ;;  %13202 = vst [vmem:[#allocation103_spill] sm:$0xff] %v10909_v12  ;;  %8439 = vmatprep.subr.bf16.mxu0 %v8438_v35  ;;  %v10923_v60 = vmul.f32 %v10882_v13, %v3241_v19  ;;  %v3252_v3 = vmax.f32 %v10776_v8, 0.0  ;;  %v10932_v37 = vsel %vm93_vm11, 1.0, %v13094_v55 }
 0x431   :  { %13203 = vst [vmem:[#allocation104_spill] sm:$0xff] %v10914_v53  ;;  %13204 = vst [vmem:[#allocation35_spill] sm:$0xff] %v10917_v29  ;;  %vm94_vm12 = vcmp.lt.s32.totalorder %v10914_v53, 2  ;;  %v10940_v35 = vadd.s32 88, %v10531_v45  ;;  %v10943_v59 = vmul.f32 %v10909_v12, %v3246_v50  ;;  %v3251_v8 = vmax.f32 %v10779_v0, 0.0 }
 0x432   :  { %3961 = vmatmul.mubr.f32.gmra.mrb[104].mxu1 %v10895_v23  ;;  %v10920_v38 = vadd.f32 %v10676_v57, %v3107_v46  ;;  %13206 = vst [vmem:[#allocation43_spill] sm:$0xff] %v10923_v60  ;;  %13207 = vst [vmem:[#allocation36_spill] sm:$0xff] %v10927_v36  ;;  %v10937_v57 = vand.u32 7, %v10917_v29  ;;  %v10947_v46 = vmul.f32 %v10932_v37, %v3252_v3  ;;  %v3257_v26 = vmax.f32 %v10782_v22, 0.0 }
 0x433   :  { %3965 = vmatprep.mubr.f32.mxu1 %v10902_v7  ;;  %13208 = vst [vmem:[#allocation45_spill] sm:$0xff] %v10932_v37  ;;  %13210 = vst [vmem:[#allocation44_spill] sm:$0xff] %v10940_v35  ;;  %v10952_v41 = vsel %vm94_vm12, 1.0, %v13094_v55  ;;  %v10957_v19 = vand.u32 7, %v10940_v35  ;;  %v10960_v61 = vadd.s32 96, %v10531_v45  ;;  %v10963_v0 = vmul.f32 %v10932_v37, %v3251_v8 }
 0x434   :  { %13205 = vst [vmem:[#allocation39_spill] sm:$0xff] %v10920_v38  ;;  %13209 = vst [vmem:[#allocation40_spill] sm:$0xff] %v10937_v57  ;;  %vm95_vm13 = vcmp.lt.s32.totalorder %v10937_v57, 2  ;;  %v3256_v22 = vmax.f32 %v10785_v18, 0.0  ;;  %v10967_v50 = vmul.f32 %v10952_v41, %v3257_v26  ;;  %v3262_v3 = vmax.f32 %v10789_v32, 0.0  ;;  %v13239_v38 = vld [vmem:[#allocation74_spill] sm:$0xff] }
 0x435   :  { %13211 = vst [vmem:[#allocation46_spill] sm:$0xff] %v10943_v59  ;;  %13212 = vst [vmem:[#allocation48_spill] sm:$0xff] %v10947_v46  ;;  %v10972_v29 = vsel %vm95_vm13, 1.0, %v13094_v55  ;;  %vm96_vm14 = vcmp.lt.s32.totalorder %v10957_v19, 2  ;;  %v10977_v35 = vand.u32 7, %v10960_v61  ;;  %v10980_v8 = vadd.s32 104, %v10531_v45 }
 0x436   :  { %3966 = vmatmul.mubr.f32.gmra.mrb[106].mxu1 %v10923_v60  ;;  %13213 = vst [vmem:[#allocation47_spill] sm:$0xff] %v10952_v41  ;;  %13214 = vst [vmem:[#allocation50_spill] sm:$0xff] %v10957_v19  ;;  %v10983_v18 = vmul.f32 %v10952_v41, %v3256_v22  ;;  %v3261_v32 = vmax.f32 %v10792_v34, 0.0  ;;  %v10987_v26 = vmul.f32 %v10972_v29, %v3262_v3  ;;  %v3267_v48 = vmax.f32 %v10795_v30, 0.0 }
 0x437   :  { %3970 = vmatprep.mubr.f32.mxu1 %v10927_v36  ;;  %13215 = vst [vmem:[#allocation49_spill] sm:$0xff] %v10960_v61  ;;  %13216 = vst [vmem:[#allocation52_spill] sm:$0xff] %v10963_v0  ;;  %v10992_v19 = vsel %vm96_vm14, 1.0, %v13094_v55  ;;  %vm97_vm15 = vcmp.lt.s32.totalorder %v10977_v35, 2  ;;  %v10997_v61 = vand.u32 7, %v10980_v8  ;;  %v11000_v22 = vadd.s32 112, %v10531_v45 }
 0x438   :  { %13217 = vst [vmem:[#allocation51_spill] sm:$0xff] %v10967_v50  ;;  %13218 = vst [vmem:[#allocation54_spill] sm:$0xff] %v10972_v29  ;;  %v11003_v34 = vmul.f32 %v10972_v29, %v3261_v32  ;;  %v3266_v30 = vmax.f32 %v10798_v10, 0.0  ;;  %v11007_v3 = vmul.f32 %v10992_v19, %v3267_v48  ;;  %v3272_v57 = vmax.f32 %v10837_v33, 0.0  ;;  %v3754_v45 = vld [vmem:[#allocation6 + $0x400] sm:$0xff] }
 0x439   :  { %13219 = vst [vmem:[#allocation53_spill] sm:$0xff] %v10977_v35  ;;  %13220 = vst [vmem:[#allocation56_spill] sm:$0xff] %v10980_v8  ;;  %v11012_v35 = vsel %vm97_vm15, 1.0, %v13094_v55  ;;  %vm98_vm1 = vcmp.lt.s32.totalorder %v10997_v61, 2  ;;  %v11017_v8 = vand.u32 7, %v11000_v22  ;;  %v3271_v10 = vmax.f32 %v10840_v2, 0.0 }
 0x43a   :  { %3971 = vmatmul.mubr.f32.gmra.mrb[108].mxu1 %v10943_v59  ;;  %13221 = vst [vmem:[#allocation55_spill] sm:$0xff] %v10983_v18  ;;  %13222 = vst [vmem:[#allocation58_spill] sm:$0xff] %v10987_v26  ;;  %v11020_v32 = vmul.f32 %v10992_v19, %v3266_v30  ;;  %v11024_v48 = vmul.f32 %v11012_v35, %v3272_v57  ;;  %v3277_v33 = vmax.f32 %v10843_v43, 0.0  ;;  %v11029_v53 = vsel %vm98_vm1, 1.0, %v13094_v55 }
 0x43b   :  { %3975 = vmatprep.mubr.f32.mxu1 %v10947_v46  ;;  %13223 = vst [vmem:[#allocation57_spill] sm:$0xff] %v10992_v19  ;;  %13224 = vst [vmem:[#allocation60_spill] sm:$0xff] %v10997_v61  ;;  %vm99_vm2 = vcmp.lt.s32.totalorder %v11017_v8, 2  ;;  %v3276_v30 = vmax.f32 %v10846_v1, 0.0  ;;  %v3282_v57 = vmax.f32 %v10853_v15, 0.0  ;;  %v13236_v61 = vld [vmem:[#allocation72_spill] sm:$0xff]  ;;  %v3039_v15 = vmul.f32 %v10540_v20, %v13239_v38 }
 0x43c   :  { %13225 = vst [vmem:[#allocation59_spill] sm:$0xff] %v11000_v22  ;;  %13226 = vst [vmem:[#allocation62_spill] sm:$0xff] %v11003_v34  ;;  %v11034_v22 = vmul.f32 %v11012_v35, %v3271_v10  ;;  %v11038_v2 = vmul.f32 %v11029_v53, %v3277_v33  ;;  %v11043_v43 = vsel %vm99_vm2, 1.0, %v13094_v55  ;;  %v3033_v10 = vmul.f32 %v10537_v54, %v13237_v44  ;;  %v13253_v19 = vld [vmem:[#allocation88_spill] sm:$0xff] }
 0x43d   :  { %13227 = vst [vmem:[#allocation61_spill] sm:$0xff] %v11007_v3  ;;  %13228 = vst [vmem:[#allocation64_spill] sm:$0xff] %v11012_v35  ;;  %v11051_v1 = vmul.f32 %v11029_v53, %v3276_v30  ;;  %v3281_v33 = vmax.f32 %v10856_v21, 0.0  ;;  %v13243_v30 = vld [vmem:[#allocation75_spill] sm:$0xff] }
 0x43e   :  { %3976 = vmatmul.mubr.f32.gmra.mrb[110].mxu1 %v10963_v0  ;;  %13229 = vst [vmem:[#allocation63_spill] sm:$0xff] %v11017_v8  ;;  %13230 = vst [vmem:[#allocation66_spill] sm:$0xff] %v11020_v32  ;;  %v3034_v8 = vmul.f32 %v10540_v20, %v13236_v61  ;;  %v11063_v61 = vmul.f32 %v11043_v43, %v3282_v57  ;;  %v13244_v21 = vld [vmem:[#allocation79_spill] sm:$0xff]  ;;  %v13247_v57 = vld [vmem:[#allocation81_spill] sm:$0xff] }
 0x43f   :  { %3980 = vmatprep.mubr.f32.mxu1 %v10967_v50  ;;  %13231 = vst [vmem:[#allocation65_spill] sm:$0xff] %v11024_v48  ;;  %13232 = vst [vmem:[#allocation68_spill] sm:$0xff] %v11029_v53  ;;  %v3043_v50 = vmul.f32 %v10537_v54, %v13243_v30  ;;  %v11072_v38 = vmul.f32 %v10540_v20, %v13244_v21  ;;  %v11082_v7 = vmul.f32 %v10537_v54, %v13247_v57  ;;  %v13248_v30 = vld [vmem:[#allocation84_spill] sm:$0xff]  ;;  %v13249_v21 = vld [vmem:[#allocation83_spill] sm:$0xff] }
 0x440   :  { %13233 = vst [vmem:[#allocation67_spill] sm:$0xff] %v11034_v22  ;;  %13234 = vst [vmem:[#allocation69_spill] sm:$0xff] %v11038_v2  ;;  %v11087_v39 = vmul.f32 %v10540_v20, %v13248_v30  ;;  %v11091_v53 = vmul.f32 %v10537_v54, %v13249_v21  ;;  %v11105_v30 = vmul.f32 %v11043_v43, %v3281_v33 }
 0x441   :  { %13235 = vst [vmem:[#allocation70_spill] sm:$0xff] %v11043_v43  ;;  %13238 = vst [vmem:[#allocation72_spill] sm:$0xff] %v11051_v1  ;;  %v11109_v21 = vmul.f32 %v10540_v20, %v13253_v19  ;;  %v13256_v43 = vld [vmem:[#allocation105_spill] sm:$0xff]  ;;  %v11125_v19 = vld [vmem:[#allocation6 + $0x490] sm:$0xff] }
 0x442   :  { %3981 = vmatmul.mubr.f32.gmra.mrb[112].mxu1 %v10983_v18  ;;  %13241 = vst [vmem:[#allocation71_spill] sm:$0xff] %v11063_v61  ;;  %13252 = vst [vmem:[#allocation74_spill] sm:$0xff] %v11105_v30  ;;  %v11127_v18 = vld [vmem:[#allocation6 + $0x498] sm:$0xff] }
 0x443   :  { %3985 = vmatprep.mubr.f32.mxu1 %v10987_v26  ;;  %v13242_v26 = vld [vmem:[#allocation76_spill] sm:$0xff] }
 0x444   :  { %v3044_v44 = vmul.f32 %v10540_v20, %v13242_v26 }
 0x446   :  { %3986 = vmatmul.mubr.f32.gmra.mrb[114].mxu1 %v11003_v34  ;;  %v13255_v34 = vld [vmem:[#allocation106_spill] sm:$0xff] }
 0x447   :  { %3990 = vmatprep.mubr.f32.mxu1 %v11007_v3 }
 0x44a   :  { %3991 = vmatmul.mubr.f32.gmra.mrb[116].mxu1 %v11020_v32  ;;  %v13254_v32 = vld [vmem:[#allocation87_spill] sm:$0xff] }
 0x44b   :  { %3995 = vmatprep.mubr.f32.mxu1 %v11024_v48  ;;  %v13240_v48 = vld [vmem:[#allocation73_spill] sm:$0xff] }
 0x44c   :  { %v3038_v3 = vmul.f32 %v10537_v54, %v13240_v48  ;;  %v13245_v48 = vld [vmem:[#allocation78_spill] sm:$0xff] }
 0x44d   :  { %v3048_v46 = vmul.f32 %v10537_v54, %v13245_v48  ;;  %v13250_v48 = vld [vmem:[#allocation86_spill] sm:$0xff] }
 0x44e   :  { %3996 = vmatmul.mubr.f32.gmra.mrb[118].mxu1 %v11034_v22 }
 0x44f   :  { %4000 = vmatprep.mubr.f32.mxu1 %v11038_v2  ;;  %v11060_v2 = vrot.slane %v10660_v5, %v10534_v9  ;;  %v13246_v5 = vld [vmem:[#allocation82_spill] sm:$0xff] }
 0x450   :  { %v11078_v36 = vmul.f32 %v10540_v20, %v13246_v5  ;;  %v13251_v5 = vld [vmem:[#allocation85_spill] sm:$0xff] }
 0x451   :  { %v11099_v35 = vmul.f32 %v10537_v54, %v13251_v5  ;;  %v3035_v33 = vmul.f32 %v11060_v2, %v13255_v34  ;;  %v3040_v41 = vmul.f32 %v11060_v2, %v13256_v43  ;;  %v11138_v34 = vld [vmem:[#allocation6 + $0x410] sm:$0xff]  ;;  %v11140_v43 = vld [vmem:[#allocation6 + $0x418] sm:$0xff] }
 0x452   :  { %4001 = vmatmul.mubr.f32.gmra.mrb[120].mxu1 %v11051_v1  ;;  %v11095_v1 = vmul.f32 %v10540_v20, %v13250_v48  ;;  %v11113_v48 = vmul.f32 %v10537_v54, %v13254_v32  ;;  %v3755_v20 = vld [vmem:[#allocation6 + $0x408] sm:$0xff] }
 0x453   :  { %v2936_v26 = vpop.f32.mrb[90].mxu1  ;;  %4005 = vmatprep.mubr.f32.mxu1 %v11063_v61  ;;  %v8408_v37 = vpack.c.bf16 %v3755_v20, %v3754_v45  ;;  %v11159_v20 = vld [vmem:[#allocation6 + $0x4a0] sm:$0xff] }
 0x454   :  { %v11102_v57 = vrot.slane %v2936_v26, %v10534_v9  ;;  %v3007_v61 = vpop.f32.mrb[90].mxu0  ;;  %v2938_v22 = vpop.f32.mrb[91].mxu1 }
 0x455   :  { %v11116_v5 = vrot.slane %v3007_v61, %v10534_v9  ;;  %v11119_v26 = vrot.slane %v2938_v22, %v10534_v9  ;;  %v7337_v29 = vpop.f32.mrb[91].mxu0 }
 0x456   :  { %4006 = vmatmul.mubr.f32.gmra.mrb[122].mxu1 %v11105_v30  ;;  %v3133_v54 = vadd.f32 %v11102_v57, %v3033_v10  ;;  %v3138_v32 = vadd.f32 %v11102_v57, %v3038_v3  ;;  %v11133_v22 = vadd.f32 %v11102_v57, %v3043_v50  ;;  %v11136_v29 = vadd.f32 %v11102_v57, %v3048_v46 }
 0x457   :  { %4220 = vmatprep.mubr.f32.mxu1 %v10714_v49  ;;  %v3134_v61 = vadd.f32 %v11119_v26, %v3034_v8  ;;  %v3135_v9 = vadd.f32 %v11116_v5, %v3035_v33  ;;  %v3139_v10 = vadd.f32 %v11119_v26, %v3039_v15  ;;  %v3140_v3 = vadd.f32 %v11116_v5, %v3040_v41  ;;  %v13257_v33 = vld [vmem:[#allocation108_spill] sm:$0xff]  ;;  %v13258_v41 = vld [vmem:[#allocation107_spill] sm:$0xff] }
 0x458   :  { %v3213_v30 = vmax.f32 %v3133_v54, 0.0  ;;  %v3144_v50 = vadd.f32 %v11119_v26, %v3044_v44  ;;  %v8410_v46 = vpack.c.bf16 %v11127_v18, %v11125_v19  ;;  %v8412_v49 = vpack.c.bf16 %v11140_v43, %v11138_v34  ;;  %v13259_v44 = vld [vmem:[#allocation110_spill] sm:$0xff]  ;;  %v11161_v18 = vld [vmem:[#allocation6 + $0x4a8] sm:$0xff]  ;;  %v3758_v43 = vld [vmem:[#allocation6 + $0x420] sm:$0xff] }
 0x459   :  { %v3214_v0 = vmax.f32 %v3134_v61, 0.0  ;;  %v3215_v12 = vmax.f32 %v3135_v9, 0.0  ;;  %v3219_v59 = vmax.f32 %v3139_v10, 0.0  ;;  %v3218_v8 = vmax.f32 %v3138_v32, 0.0  ;;  %v3759_v61 = vld [vmem:[#allocation6 + $0x428] sm:$0xff]  ;;  %v11170_v10 = vld [vmem:[#allocation6 + $0x4b0] sm:$0xff] }
 0x45a   :  { %4221 = vmatmul.mubr.f32.vlgmr.msra.gmra.mrb[124].mxu1 %v13094_v55  ;;  %v3045_v15 = vmul.f32 %v11060_v2, %v13257_v33  ;;  %v3050_v54 = vmul.f32 %v11060_v2, %v13258_v41  ;;  %v3055_v45 = vmul.f32 %v11060_v2, %v13259_v44  ;;  %v11168_v19 = vmul.f32 %v10643_v11, %v3213_v30  ;;  %v11181_v30 = vld [vmem:[#allocation6 + $0x4b8] sm:$0xff] }
 0x45b   :  { %4225 = vmatprep.mubr.f32.mxu1 %v10762_v28  ;;  %v11165_v9 = vmul.f32 %v10643_v11, %v3214_v0  ;;  %v3220_v32 = vmax.f32 %v3140_v3, 0.0  ;;  %v3224_v34 = vmax.f32 %v3144_v50, 0.0  ;;  %v11173_v33 = vmul.f32 %v10643_v11, %v3215_v12  ;;  %8409 = vmatpush3.bf16.msra.mxu1 %v8408_v37  ;;  %v11183_v3 = vld [vmem:[#allocation6 + $0x430] sm:$0xff]  ;;  %v11185_v50 = vld [vmem:[#allocation6 + $0x438] sm:$0xff]  ;;  %v11212_v28 = vld [vmem:[#allocation6 + $0x4c8] sm:$0xff] }
 0x45c   :  { %v11176_v41 = vmul.f32 %v10649_v27, %v3219_v59  ;;  %v3145_v44 = vadd.f32 %v11116_v5, %v3045_v15  ;;  %v3149_v0 = vadd.f32 %v11119_v26, %v11072_v38  ;;  %v11189_v12 = vadd.f32 %v11116_v5, %v3050_v54  ;;  %v11210_v54 = vld [vmem:[#allocation6 + $0x4c0] sm:$0xff]  ;;  %8411 = vmatprep.subr.bf16.mxu1 %v8410_v46  ;;  %v13264_v46 = vld [vmem:[#allocation111_spill] sm:$0xff] }
 0x45d   :  { %13260 = vst [vmem:[#allocation73_spill] sm:$0xff] %v11165_v9  ;;  %4080 = vmatprep.mubr.f32.mxu0 %v11165_v9  ;;  %v11193_v11 = vadd.f32 %v11119_v26, %v11078_v36  ;;  %v11197_v59 = vadd.f32 %v11102_v57, %v11082_v7  ;;  %v11200_v37 = vadd.f32 %v11116_v5, %v3055_v45  ;;  %v3223_v7 = vmax.f32 %v11133_v22, 0.0  ;;  %v13261_v45 = vld [vmem:[#allocation109_spill] sm:$0xff] }
 0x45e   :  { %4081 = vmatmul.mubr.f32.gmra.mrb[94].mxu0 %v11168_v19  ;;  %4226 = vmatmul.mubr.f32.gmra.mrb[126].mxu1 %v11173_v33  ;;  %v11206_v38 = vadd.f32 %v11119_v26, %v11087_v39  ;;  %v8414_v15 = vpack.c.bf16 %v11161_v18, %v11159_v20  ;;  %v8416_v36 = vpack.c.bf16 %v3759_v61, %v3758_v43  ;;  %v3225_v61 = vmax.f32 %v3145_v44, 0.0 }
 0x45f   :  { %4085 = vmatprep.mubr.f32.mxu0 %v11176_v41  ;;  %4230 = vmatprep.mubr.f32.mxu1 %v10801_v62  ;;  %v3060_v9 = vmul.f32 %v11060_v2, %v13261_v45  ;;  %v8418_v39 = vpack.c.bf16 %v11181_v30, %v11170_v10  ;;  %v8420_v20 = vpack.c.bf16 %v11185_v50, %v11183_v3  ;;  %v3229_v45 = vmax.f32 %v3149_v0, 0.0  ;;  %v13263_v10 = vld [vmem:[#allocation112_spill] sm:$0xff]  ;;  %v11269_v3 = vld [vmem:[#allocation6 + $0x4d0] sm:$0xff]  ;;  %v11271_v50 = vld [vmem:[#allocation6 + $0x4d8] sm:$0xff] }
 0x460   :  { %v11224_v18 = vmul.f32 %v10649_v27, %v3218_v8  ;;  %v11227_v43 = vmul.f32 %v10649_v27, %v3220_v32  ;;  %v11231_v62 = vadd.f32 %v11102_v57, %v11091_v53  ;;  %v11234_v22 = vmul.f32 %v10652_v14, %v3224_v34  ;;  %8413 = vmatpush3.bf16.msra.mxu1 %v8412_v49  ;;  %v11251_v34 = vld [vmem:[#allocation6 + $0x440] sm:$0xff]  ;;  %v11253_v49 = vld [vmem:[#allocation6 + $0x448] sm:$0xff] }
 0x461   :  { %v3065_v30 = vmul.f32 %v11060_v2, %v13263_v10  ;;  %v11243_v27 = vadd.f32 %v11116_v5, %v3060_v9  ;;  %v11247_v53 = vadd.f32 %v11119_v26, %v11095_v1  ;;  %v3070_v32 = vmul.f32 %v11060_v2, %v13264_v46  ;;  %8415 = vmatprep.subr.bf16.mxu1 %v8414_v15 }
 0x462   :  { %13262 = vst [vmem:[#allocation76_spill] sm:$0xff] %v11227_v43  ;;  %4086 = vmatmul.mubr.f32.gmra.mrb[96].mxu0 %v11224_v18  ;;  %4231 = vmatmul.mubr.f32.gmra.mrb[128].mxu1 %v11227_v43  ;;  %v3228_v44 = vmax.f32 %v11136_v29, 0.0  ;;  %v11260_v9 = vadd.f32 %v11102_v57, %v11099_v35  ;;  %v11267_v0 = vadd.f32 %v11119_v26, %v11109_v21  ;;  %v3230_v35 = vmax.f32 %v11189_v12, 0.0  ;;  %v13266_v12 = vld [vmem:[#allocation114_spill] sm:$0xff] }
 0x463   :  { %4090 = vmatprep.mubr.f32.mxu0 %v11234_v22  ;;  %4235 = vmatprep.mubr.f32.mxu1 %v10829_v16  ;;  %v11263_v1 = vadd.f32 %v11116_v5, %v3065_v30  ;;  %v11274_v10 = vmul.f32 %v10652_v14, %v3223_v7  ;;  %v11277_v29 = vmul.f32 %v10652_v14, %v3225_v61  ;;  %v3234_v46 = vmax.f32 %v11193_v11, 0.0 }
 0x464   :  { %v11282_v30 = vadd.f32 %v11102_v57, %v11113_v48  ;;  %v11285_v21 = vmul.f32 %v10655_v58, %v3229_v45  ;;  %v11289_v8 = vadd.f32 %v11116_v5, %v3070_v32  ;;  %8417 = vmatpush3.bf16.msra.mxu1 %v8416_v36  ;;  %v8424_v14 = vpack.c.bf16 %v11253_v49, %v11251_v34  ;;  %v13267_v45 = vld [vmem:[#allocation113_spill] sm:$0xff]  ;;  %v3764_v32 = vld [vmem:[#allocation6 + $0x450] sm:$0xff]  ;;  %v3765_v34 = vld [vmem:[#allocation6 + $0x458] sm:$0xff] }
 0x465   :  { %13265 = vst [vmem:[#allocation75_spill] sm:$0xff] %v11277_v29  ;;  %v11297_v48 = vadd.f32 %v11119_v26, %v10544_v63  ;;  %v3075_v15 = vmul.f32 %v11060_v2, %v13266_v12  ;;  %v8426_v11 = vpack.c.bf16 %v11271_v50, %v11269_v3  ;;  %v11306_v36 = vmul.f32 %v10655_v58, %v3228_v44 }
 0x466   :  { %4091 = vmatmul.mubr.f32.gmra.mrb[98].mxu0 %v11274_v10  ;;  %4236 = vmatmul.mubr.f32.gmra.mrb[130].mxu1 %v11277_v29  ;;  %v3233_v7 = vmax.f32 %v11197_v59, 0.0  ;;  %v3235_v61 = vmax.f32 %v11200_v37, 0.0  ;;  %v3080_v63 = vmul.f32 %v11060_v2, %v13267_v45  ;;  %v11313_v49 = vmul.f32 %v10655_v58, %v3230_v35  ;;  %v11323_v59 = vld [vmem:[#allocation6 + $0x4e0] sm:$0xff]  ;;  %v11325_v37 = vld [vmem:[#allocation6 + $0x4e8] sm:$0xff] }
 0x467   :  { %4095 = vmatprep.mubr.f32.mxu0 %v11285_v21  ;;  %4240 = vmatprep.mubr.f32.mxu1 %v10873_v6  ;;  %v3239_v3 = vmax.f32 %v11206_v38, 0.0  ;;  %v11318_v50 = vadd.f32 %v11102_v57, %v10548_v42  ;;  %v11321_v44 = vadd.f32 %v11116_v5, %v3075_v15  ;;  %v11328_v12 = vmul.f32 %v10806_v31, %v3234_v46  ;;  %v13269_v35 = vld [vmem:[#allocation116_spill] sm:$0xff] }
 0x468   :  { %13268 = vst [vmem:[#allocation79_spill] sm:$0xff] %v11313_v49  ;;  %8419 = vmatprep.subr.bf16.mxu1 %v8418_v39  ;;  %v11332_v58 = vadd.f32 %v11119_v26, %v10552_v52  ;;  %v11336_v38 = vadd.f32 %v11102_v57, %v10556_v4  ;;  %v11339_v42 = vadd.f32 %v11116_v5, %v3080_v63  ;;  %v11349_v15 = vld [vmem:[#allocation6 + $0x460] sm:$0xff]  ;;  %v11351_v4 = vld [vmem:[#allocation6 + $0x468] sm:$0xff] }
 0x469   :  { %8421 = vmatpush3.bf16.msra.mxu1 %v8420_v20  ;;  %v11345_v39 = vadd.f32 %v11119_v26, %v10560_v56  ;;  %v3085_v52 = vmul.f32 %v11060_v2, %v13269_v35  ;;  %v8428_v46 = vpack.c.bf16 %v3765_v34, %v3764_v32  ;;  %v11356_v20 = vmul.f32 %v10806_v31, %v3233_v7 }
 0x46a   :  { %4096 = vmatmul.mubr.f32.gmra.mrb[100].mxu0 %v11306_v36  ;;  %4241 = vmatmul.mubr.f32.gmra.mrb[132].mxu1 %v11313_v49  ;;  %v11360_v45 = vadd.f32 %v11102_v57, %v10564_v47  ;;  %v8430_v56 = vpack.c.bf16 %v11325_v37, %v11323_v59  ;;  %v11365_v63 = vmul.f32 %v10806_v31, %v3235_v61  ;;  %v3238_v32 = vmax.f32 %v11231_v62, 0.0  ;;  %v13272_v59 = vld [vmem:[#allocation115_spill] sm:$0xff]  ;;  %v3784_v37 = vld [vmem:[#allocation6 + $0x4f0] sm:$0xff] }
 0x46b   :  { %4100 = vmatprep.mubr.f32.mxu0 %v11328_v12  ;;  %4245 = vmatprep.mubr.f32.mxu1 %v10895_v23  ;;  %v3240_v34 = vmax.f32 %v11243_v27, 0.0  ;;  %v11370_v35 = vadd.f32 %v11116_v5, %v3085_v52  ;;  %v13271_v7 = vpack.c.bf16 %v11212_v28, %v11210_v54  ;;  %v11376_v47 = vmul.f32 %v10862_v51, %v3239_v3  ;;  %v13273_v27 = vld [vmem:[#allocation14_spill] sm:$0xff]  ;;  %v13274_v3 = vld [vmem:[#allocation13_spill] sm:$0xff]  ;;  %v3785_v52 = vld [vmem:[#allocation6 + $0x4f8] sm:$0xff] }
 0x46c   :  { %13270 = vst [vmem:[#allocation78_spill] sm:$0xff] %v11365_v63  ;;  %v3244_v23 = vmax.f32 %v11247_v53, 0.0  ;;  %v3090_v31 = vmul.f32 %v11060_v2, %v13272_v59  ;;  %v8432_v62 = vpack.c.bf16 %v11351_v4, %v11349_v15  ;;  %v11387_v28 = vadd.f32 %v11119_v26, %v10568_v25  ;;  %v3769_v59 = vld [vmem:[#allocation6 + $0x478] sm:$0xff] }
 0x46d   :  { %8423 = vmatprep.subr.bf16.mxu1 %v13271_v7  ;;  %v11391_v54 = vadd.f32 %v11102_v57, %v10572_v24  ;;  %v3095_v53 = vmul.f32 %v11060_v2, %v13273_v27  ;;  %v11403_v25 = vadd.f32 %v11119_v26, %v10576_v17  ;;  %v3100_v24 = vmul.f32 %v11060_v2, %v13274_v3  ;;  %v3768_v17 = vld [vmem:[#allocation6 + $0x470] sm:$0xff]  ;;  %v13277_v3 = vld [vmem:[#allocation19_spill] sm:$0xff] }
 0x46e   :  { %8425 = vmatpush3.bf16.msra.mxu1 %v8424_v14  ;;  %4101 = vmatmul.mubr.f32.gmra.mrb[102].mxu0 %v11356_v20  ;;  %v3243_v14 = vmax.f32 %v11260_v9, 0.0  ;;  %v11399_v61 = vadd.f32 %v11116_v5, %v3090_v31  ;;  %v11408_v15 = vmul.f32 %v10862_v51, %v3238_v32  ;;  %v11411_v4 = vmul.f32 %v10862_v51, %v3240_v34  ;;  %v13280_v34 = vld [vmem:[#allocation46_spill] sm:$0xff] }
 0x46f   :  { %4246 = vmatmul.mubr.f32.gmra.mrb[134].mxu1 %v11365_v63  ;;  %4105 = vmatprep.mubr.f32.mxu0 %v11376_v47  ;;  %v3245_v9 = vmax.f32 %v11263_v1, 0.0  ;;  %v11416_v7 = vadd.f32 %v11102_v57, %v10580_v40  ;;  %v11419_v31 = vmul.f32 %v10882_v13, %v3244_v23  ;;  %v3249_v27 = vmax.f32 %v11267_v0, 0.0  ;;  %v13278_v40 = vld [vmem:[#allocation20_spill] sm:$0xff]  ;;  %v13279_v23 = vld [vmem:[#allocation15_spill] sm:$0xff] }
 0x470   :  { %4250 = vmatprep.mubr.f32.mxu1 %v10923_v60  ;;  %13275 = vst [vmem:[#allocation82_spill] sm:$0xff] %v11411_v4  ;;  %8427 = vmatprep.subr.bf16.mxu1 %v8426_v11  ;;  %v11423_v32 = vadd.f32 %v11116_v5, %v3095_v53  ;;  %v11427_v51 = vadd.f32 %v11119_v26, %v13277_v3  ;;  %v13281_v60 = vld [vmem:[#allocation16_spill] sm:$0xff] }
 0x471   :  { %13276 = vst [vmem:[#allocation81_spill] sm:$0xff] %v11419_v31  ;;  %v11433_v1 = vadd.f32 %v11102_v57, %v13278_v40  ;;  %v3105_v11 = vmul.f32 %v11060_v2, %v13279_v23  ;;  %v8434_v0 = vpack.c.bf16 %v3785_v52, %v3784_v37  ;;  %v11440_v53 = vmul.f32 %v10882_v13, %v3243_v14  ;;  %v13282_v52 = vld [vmem:[#allocation21_spill] sm:$0xff] }
 0x472   :  { %8429 = vmatpush3.bf16.msra.mxu1 %v8428_v46  ;;  %4106 = vmatmul.mubr.f32.gmra.mrb[104].mxu0 %v11408_v15  ;;  %v3248_v46 = vmax.f32 %v11282_v30, 0.0  ;;  %v8436_v3 = vpack.c.bf16 %v3769_v59, %v3768_v17  ;;  %v3110_v6 = vmul.f32 %v11060_v2, %v13281_v60  ;;  %v11446_v40 = vmul.f32 %v10882_v13, %v3245_v9  ;;  %v3835_v30 = vld [vmem:[#allocation6 + $0x688] sm:$0xff]  ;;  %v13283_v59 = vld [vmem:[#allocation103_spill] sm:$0xff]  ;;  %v13284_v13 = vld [vmem:[#allocation22_spill] sm:$0xff] }
 0x473   :  { %4251 = vmatmul.mubr.f32.gmra.mrb[136].mxu1 %v11411_v4  ;;  %4110 = vmatprep.mubr.f32.mxu0 %v11419_v31  ;;  %v6482_v16 = vpop.f32.mrb[92].mxu1  ;;  %v3250_v23 = vmax.f32 %v11289_v8, 0.0  ;;  %v11450_v37 = vadd.f32 %v11116_v5, %v3100_v24  ;;  %v11454_v14 = vadd.f32 %v11119_v26, %v13282_v52  ;;  %v11457_v31 = vmul.f32 %v13283_v59, %v3249_v27  ;;  %v13286_v9 = vld [vmem:[#allocation52_spill] sm:$0xff]  ;;  %v13287_v27 = vld [vmem:[#allocation77_spill] sm:$0xff] }
 0x474   :  { %4255 = vmatprep.mubr.f32.mxu1 %v13280_v34  ;;  %8431 = vmatprep.subr.bf16.mxu1 %v8430_v56  ;;  %v3834_v34 = vld [vmem:[#allocation6 + $0x680] sm:$0xff]  ;;  %v6483_v17 = vpop.f32.mrb[93].mxu1  ;;  %v3254_v60 = vmax.f32 %v11297_v48, 0.0  ;;  %v11462_v2 = vadd.f32 %v11102_v57, %v13284_v13  ;;  %v11465_v8 = vadd.f32 %v11116_v5, %v3105_v11  ;;  %v13285_v56 = vld [vmem:[#allocation23_spill] sm:$0xff]  ;;  %v11480_v11 = vadd.f32 %v11119_v26, %v13287_v27 }
 0x475   :  { %v11471_v24 = vadd.f32 %v11102_v57, %v13285_v56  ;;  %v8470_v48 = vpack.c.bf16 %v3835_v30, %v3834_v34  ;;  %v11483_v52 = vmul.f32 %v13283_v59, %v3248_v46  ;;  %v11486_v13 = vmul.f32 %v13283_v59, %v3250_v23  ;;  %v13291_v46 = vld [vmem:[#allocation47_spill] sm:$0xff]  ;;  %v13293_v59 = vld [vmem:[#allocation54_spill] sm:$0xff] }
 0x476   :  { %8433 = vmatpush3.bf16.msra.mxu1 %v8432_v62  ;;  %4111 = vmatmul.mubr.f32.gmra.mrb[106].mxu0 %v11440_v53  ;;  %v11476_v62 = vadd.f32 %v11116_v5, %v3110_v6  ;;  %13288 = vst [vmem:[#allocation84_spill] sm:$0xff] %v11480_v11  ;;  %v3253_v57 = vmax.f32 %v11318_v50, 0.0  ;;  %v3255_v56 = vmax.f32 %v11321_v44, 0.0  ;;  %v3259_v6 = vmax.f32 %v11332_v58, 0.0  ;;  %v13290_v5 = vld [vmem:[#allocation55_spill] sm:$0xff]  ;;  %v3807_v11 = vld [vmem:[#allocation6 + $0x5a8] sm:$0xff] }
 0x477   :  { %4256 = vmatmul.mubr.f32.gmra.mrb[138].mxu1 %v11446_v40  ;;  %4115 = vmatprep.mubr.f32.mxu0 %v11457_v31  ;;  %v3258_v26 = vmax.f32 %v11336_v38, 0.0  ;;  %v6484_v58 = vadd.f32 %v6483_v17, %v6482_v16  ;;  %v3264_v23 = vmax.f32 %v11345_v39, 0.0  ;;  %v13292_v38 = vld [vmem:[#allocation62_spill] sm:$0xff]  ;;  %v3263_v16 = vmax.f32 %v11360_v45, 0.0 }
 0x478   :  { %4260 = vmatprep.mubr.f32.mxu1 %v13286_v9  ;;  %8435 = vmatprep.subr.bf16.mxu1 %v8434_v0  ;;  %v13289_v9 = vld [vmem:[#allocation45_spill] sm:$0xff]  ;;  %v3260_v0 = vmax.f32 %v11339_v42, 0.0  ;;  %v3265_v17 = vmax.f32 %v11370_v35, 0.0 }
 0x479   :  { %v11491_v34 = vmul.f32 %v13289_v9, %v3254_v60  ;;  %v11500_v50 = vmul.f32 %v13289_v9, %v3253_v57  ;;  %v11503_v44 = vmul.f32 %v13289_v9, %v3255_v56  ;;  %v11515_v30 = vmul.f32 %v13291_v46, %v3258_v26  ;;  %v13294_v9 = vld [vmem:[#allocation66_spill] sm:$0xff]  ;;  %v13297_v56 = vld [vmem:[#allocation57_spill] sm:$0xff] }
 0x47a   :  { %8437 = vmatpush3.bf16.msra.mxu1 %v8436_v3  ;;  %4116 = vmatmul.mubr.f32.gmra.mrb[108].mxu0 %v11483_v52  ;;  %v11507_v3 = vmul.f32 %v13291_v46, %v3259_v6  ;;  %v11518_v42 = vmul.f32 %v13291_v46, %v3260_v0  ;;  %v11523_v39 = vmul.f32 %v13293_v59, %v3264_v23  ;;  %v3269_v60 = vmax.f32 %v11387_v28, 0.0  ;;  %v13298_v0 = vld [vmem:[#allocation67_spill] sm:$0xff] }
 0x47b   :  { %4261 = vmatmul.mubr.f32.gmra.mrb[140].mxu1 %v11486_v13  ;;  %4120 = vmatprep.mubr.f32.mxu0 %v11491_v34  ;;  %v11534_v45 = vmul.f32 %v13293_v59, %v3263_v16  ;;  %v11537_v35 = vmul.f32 %v13293_v59, %v3265_v17  ;;  %v3268_v57 = vmax.f32 %v11391_v54, 0.0  ;;  %v3270_v28 = vmax.f32 %v11399_v61, 0.0  ;;  %v13300_v16 = vld [vmem:[#allocation64_spill] sm:$0xff] }
 0x47c   :  { %4265 = vmatprep.mubr.f32.mxu1 %v13290_v5  ;;  %8471 = vmatprep.subr.bf16.mxu1 %v8470_v48  ;;  %v13295_v48 = vld [vmem:[#allocation17_spill] sm:$0xff]  ;;  %v11542_v6 = vmul.f32 %v13297_v56, %v3269_v60  ;;  %v3274_v26 = vmax.f32 %v11403_v25, 0.0  ;;  %v3273_v23 = vmax.f32 %v11416_v7, 0.0  ;;  %v3275_v25 = vmax.f32 %v11423_v32, 0.0  ;;  %v13301_v60 = vld [vmem:[#allocation72_spill] sm:$0xff]  ;;  %v3821_v5 = vld [vmem:[#allocation6 + $0x618] sm:$0xff] }
 0x47d   :  { %v11531_v27 = vadd.s32 120, %v13295_v48  ;;  %v11553_v54 = vmul.f32 %v13297_v56, %v3268_v57  ;;  %v11556_v61 = vmul.f32 %v13297_v56, %v3270_v28  ;;  %v3279_v59 = vmax.f32 %v11427_v51, 0.0  ;;  %v13302_v28 = vld [vmem:[#allocation68_spill] sm:$0xff] }
 0x47e   :  { %4121 = vmatmul.mubr.f32.gmra.mrb[110].mxu0 %v11500_v50  ;;  %v11561_v17 = vmul.f32 %v13300_v16, %v3274_v26  ;;  %v11570_v57 = vmul.f32 %v13300_v16, %v3273_v23  ;;  %v11573_v7 = vmul.f32 %v13300_v16, %v3275_v25  ;;  %v3278_v32 = vmax.f32 %v11433_v1, 0.0  ;;  %v13305_v1 = vld [vmem:[#allocation74_spill] sm:$0xff] }
 0x47f   :  { %4266 = vmatmul.mubr.f32.gmra.mrb[142].mxu1 %v11503_v44  ;;  %4125 = vmatprep.mubr.f32.mxu0 %v11507_v3  ;;  %13296 = vst [vmem:[#allocation83_spill] sm:$0xff] %v11531_v27  ;;  %v11550_v46 = vand.u32 7, %v11531_v27  ;;  %v3280_v51 = vmax.f32 %v11450_v37, 0.0  ;;  %v11578_v56 = vmul.f32 %v13302_v28, %v3279_v59  ;;  %v3284_v26 = vmax.f32 %v11454_v14, 0.0  ;;  %v13303_v27 = vld [vmem:[#allocation102_spill] sm:$0xff] }
 0x480   :  { %4270 = vmatprep.mubr.f32.mxu1 %v13292_v38  ;;  %v3286_v48 = vmax.f32 %v13303_v27, 0.0  ;;  %v11590_v16 = vmul.f32 %v13302_v28, %v3278_v32  ;;  %v3283_v27 = vmax.f32 %v11462_v2, 0.0  ;;  %v3285_v59 = vmax.f32 %v11465_v8, 0.0  ;;  %v3787_v32 = vld [vmem:[#allocation6 + $0x508] sm:$0xff]  ;;  %v3820_v38 = vld [vmem:[#allocation6 + $0x610] sm:$0xff] }
 0x481   :  { %13299 = vst [vmem:[#allocation86_spill] sm:$0xff] %v11550_v46  ;;  %vm100_vm3 = vcmp.lt.s32.totalorder %v11550_v46, 2  ;;  %v11593_v14 = vmul.f32 %v13302_v28, %v3280_v51  ;;  %v13306_v46 = vld [vmem:[#allocation70_spill] sm:$0xff]  ;;  %v3818_v51 = vld [vmem:[#allocation6 + $0x600] sm:$0xff]  ;;  %v3805_v28 = vld [vmem:[#allocation6 + $0x598] sm:$0xff] }
 0x482   :  { %4126 = vmatmul.mubr.f32.gmra.mrb[112].mxu0 %v11515_v30  ;;  %v11585_v23 = vsel %vm100_vm3, 1.0, %v13094_v55  ;;  %v11610_v2 = vmul.f32 %v13306_v46, %v3283_v27  ;;  %v11613_v8 = vmul.f32 %v13306_v46, %v3285_v59  ;;  %v3788_v27 = vld [vmem:[#allocation6 + $0x510] sm:$0xff] }
 0x483   :  { %4271 = vmatmul.mubr.f32.gmra.mrb[144].mxu1 %v11518_v42  ;;  %4130 = vmatprep.mubr.f32.mxu0 %v11523_v39  ;;  %13304 = vst [vmem:[#allocation85_spill] sm:$0xff] %v11585_v23  ;;  %v11601_v55 = vmul.f32 %v11585_v23, %v3286_v48  ;;  %v3804_v48 = vld [vmem:[#allocation6 + $0x590] sm:$0xff]  ;;  %v13313_v23 = vld [vmem:[#allocation73_spill] sm:$0xff] }
 0x484   :  { %4275 = vmatprep.mubr.f32.mxu1 %v13294_v9  ;;  %13310 = vst [vmem:[#allocation105_spill] sm:$0xff] %v11610_v2  ;;  %13311 = vst [vmem:[#allocation108_spill] sm:$0xff] %v11613_v8 }
 0x485   :  { %13308 = vst [vmem:[#allocation87_spill] sm:$0xff] %v11601_v55 }
 0x486   :  { %4131 = vmatmul.mubr.f32.gmra.mrb[114].mxu0 %v11534_v45 }
 0x487   :  { %4276 = vmatmul.mubr.f32.gmra.mrb[146].mxu1 %v11537_v35  ;;  %4135 = vmatprep.mubr.f32.mxu0 %v11542_v6 }
 0x488   :  { %4280 = vmatprep.mubr.f32.mxu1 %v13298_v0  ;;  %v11598_v0 = vmul.f32 %v13306_v46, %v3284_v26  ;;  %v3836_v26 = vld [vmem:[#allocation6 + $0x690] sm:$0xff]  ;;  %v3789_v46 = vld [vmem:[#allocation6 + $0x518] sm:$0xff] }
 0x48a   :  { %4136 = vmatmul.mubr.f32.gmra.mrb[116].mxu0 %v11553_v54  ;;  %13307 = vst [vmem:[#allocation88_spill] sm:$0xff] %v11598_v0 }
 0x48b   :  { %4281 = vmatmul.mubr.f32.gmra.mrb[148].mxu1 %v11556_v61  ;;  %4140 = vmatprep.mubr.f32.mxu0 %v11561_v17 }
 0x48c   :  { %4285 = vmatprep.mubr.f32.mxu1 %v13301_v60  ;;  %v6562_v60 = vpop.f32.mrb[92].mxu0 }
 0x48d   :  { %v6563_v25 = vpop.f32.mrb[93].mxu0 }
 0x48e   :  { %4141 = vmatmul.mubr.f32.gmra.mrb[118].mxu0 %v11570_v57  ;;  %v6564_v37 = vadd.f32 %v6563_v25, %v6562_v60  ;;  %v3786_v60 = vld [vmem:[#allocation6 + $0x500] sm:$0xff]  ;;  %v3837_v25 = vld [vmem:[#allocation6 + $0x698] sm:$0xff] }
 0x48f   :  { %4286 = vmatmul.mubr.f32.gmra.mrb[150].mxu1 %v11573_v7  ;;  %4145 = vmatprep.mubr.f32.mxu0 %v11578_v56 }
 0x490   :  { %4290 = vmatprep.mubr.f32.mxu1 %v13305_v1  ;;  %v11603_v9 = vadd.f32 %v6564_v37, %v6484_v58  ;;  %v3819_v58 = vld [vmem:[#allocation6 + $0x608] sm:$0xff]  ;;  %v8440_v37 = vpack.c.bf16 %v3787_v32, %v3786_v60  ;;  %v8474_v1 = vpack.c.bf16 %v3837_v25, %v3836_v26  ;;  %v8476_v32 = vpack.c.bf16 %v3821_v5, %v3820_v38  ;;  %v3809_v26 = vld [vmem:[#allocation6 + $0x5b8] sm:$0xff]  ;;  %v3840_v25 = vld [vmem:[#allocation6 + $0x6b0] sm:$0xff] }
 0x491   :  { %v8472_v59 = vpack.c.bf16 %v3819_v58, %v3818_v51  ;;  %v3791_v60 = vld [vmem:[#allocation6 + $0x528] sm:$0xff]  ;;  %v3808_v51 = vld [vmem:[#allocation6 + $0x5b0] sm:$0xff]  ;;  %v3822_v58 = vld [vmem:[#allocation6 + $0x620] sm:$0xff] }
 0x492   :  { %13309 = vst [vmem:[#allocation106_spill] sm:$0xff] %v11603_v9  ;;  %4146 = vmatmul.mubr.f32.gmra.mrb[120].mxu0 %v11590_v16  ;;  %v8442_v9 = vpack.c.bf16 %v3805_v28, %v3804_v48  ;;  %v13314_v28 = vld [vmem:[#allocation34_spill] sm:$0xff] }
 0x493   :  { %4291 = vmatmul.mubr.f32.gmra.mrb[152].mxu1 %v11593_v14  ;;  %4150 = vmatprep.mubr.f32.mxu0 %v11598_v0  ;;  %v13312_v0 = vld [vmem:[#allocation33_spill] sm:$0xff]  ;;  %v3792_v38 = vld [vmem:[#allocation6 + $0x530] sm:$0xff] }
 0x494   :  { %4295 = vmatprep.mubr.f32.mxu1 %v11601_v55  ;;  %v3806_v55 = vld [vmem:[#allocation6 + $0x5a0] sm:$0xff] }
 0x495   :  { %v8446_v48 = vpack.c.bf16 %v3807_v11, %v3806_v55  ;;  %v3793_v55 = vld [vmem:[#allocation6 + $0x538] sm:$0xff] }
 0x496   :  { %4151 = vmatmul.mubr.f32.gmra.mrb[122].mxu0 %v11610_v2  ;;  %v3839_v2 = vld [vmem:[#allocation6 + $0x6a8] sm:$0xff] }
 0x497   :  { %4296 = vmatmul.mubr.f32.gmra.mrb[154].mxu1 %v11613_v8  ;;  %4365 = vmatprep.mubr.f32.mxu0 %v11168_v19  ;;  %v3838_v8 = vld [vmem:[#allocation6 + $0x6a0] sm:$0xff]  ;;  %v8444_v19 = vpack.c.bf16 %v3789_v46, %v3788_v27  ;;  %v3811_v46 = vld [vmem:[#allocation6 + $0x5c8] sm:$0xff] }
 0x498   :  { %4510 = vmatprep.mubr.f32.mxu1 %v11173_v33  ;;  %v3790_v33 = vld [vmem:[#allocation6 + $0x520] sm:$0xff] }
 0x499   :  { %v8448_v5 = vpack.c.bf16 %v3791_v60, %v3790_v33  ;;  %v13315_v27 = vld [vmem:[#allocation12_spill] sm:$0xff]  ;;  %v3795_v60 = vld [vmem:[#allocation6 + $0x548] sm:$0xff] }
 0x49a   :  { %4366 = vmatmul.mubr.f32.vlgmr.msra.gmra.mrb[124].mxu0 %v13312_v0  ;;  %v8478_v0 = vpack.c.bf16 %v3839_v2, %v3838_v8  ;;  %v3824_v8 = vld [vmem:[#allocation6 + $0x630] sm:$0xff]  ;;  %v3794_v33 = vld [vmem:[#allocation6 + $0x540] sm:$0xff] }
 0x49b   :  { %4511 = vmatmul.mubr.f32.vlgmr.msra.gmra.mrb[156].mxu1 %v13313_v23  ;;  %4370 = vmatprep.mubr.f32.mxu0 %v11224_v18  ;;  %v3823_v23 = vld [vmem:[#allocation6 + $0x628] sm:$0xff] }
 0x49c   :  { %4515 = vmatprep.mubr.f32.mxu1 %v11227_v43  ;;  %8441 = vmatpush3.bf16.msra.mxu0 %v8440_v37  ;;  %v3841_v43 = vld [vmem:[#allocation6 + $0x6b8] sm:$0xff]  ;;  %v8480_v11 = vpack.c.bf16 %v3823_v23, %v3822_v58  ;;  %v3827_v58 = vld [vmem:[#allocation6 + $0x648] sm:$0xff] }
 0x49d   :  { %8473 = vmatpush3.bf16.msra.mxu1 %v8472_v59  ;;  %8443 = vmatprep.subr.bf16.mxu0 %v8442_v9  ;;  %v8450_v9 = vpack.c.bf16 %v3809_v26, %v3808_v51  ;;  %v8482_v2 = vpack.c.bf16 %v3841_v43, %v3840_v25  ;;  %v3825_v37 = vld [vmem:[#allocation6 + $0x638] sm:$0xff]  ;;  %v3842_v59 = vld [vmem:[#allocation6 + $0x6c0] sm:$0xff]  ;;  %v13316_v23 = vld [vmem:[#allocation89_spill] sm:$0xff] }
 0x49e   :  { %8475 = vmatprep.subr.bf16.mxu1 %v8474_v1  ;;  %4371 = vmatmul.mubr.f32.gmra.mrb[126].mxu0 %v13314_v28  ;;  %v3810_v1 = vld [vmem:[#allocation6 + $0x5c0] sm:$0xff]  ;;  %v3813_v26 = vld [vmem:[#allocation6 + $0x5d8] sm:$0xff]  ;;  %v3844_v25 = vld [vmem:[#allocation6 + $0x6d0] sm:$0xff] }
 0x49f   :  { %4516 = vmatmul.mubr.f32.gmra.mrb[158].mxu1 %v11176_v41  ;;  %4375 = vmatprep.mubr.f32.mxu0 %v11274_v10  ;;  %v8454_v43 = vpack.c.bf16 %v3811_v46, %v3810_v1  ;;  %v3815_v46 = vld [vmem:[#allocation6 + $0x5e8] sm:$0xff] }
 0x4a0   :  { %4520 = vmatprep.mubr.f32.mxu1 %v11277_v29  ;;  %8445 = vmatpush3.bf16.msra.mxu0 %v8444_v19  ;;  %v3843_v29 = vld [vmem:[#allocation6 + $0x6c8] sm:$0xff]  ;;  %v8452_v19 = vpack.c.bf16 %v3793_v55, %v3792_v38  ;;  %v3796_v38 = vld [vmem:[#allocation6 + $0x550] sm:$0xff]  ;;  %v3797_v55 = vld [vmem:[#allocation6 + $0x558] sm:$0xff] }
 0x4a1   :  { %8477 = vmatpush3.bf16.msra.mxu1 %v8476_v32  ;;  %8447 = vmatprep.subr.bf16.mxu0 %v8446_v48  ;;  %v8484_v32 = vpack.c.bf16 %v3825_v37, %v3824_v8  ;;  %v3812_v48 = vld [vmem:[#allocation6 + $0x5d0] sm:$0xff]  ;;  %v8486_v51 = vpack.c.bf16 %v3843_v29, %v3842_v59  ;;  %v3829_v8 = vld [vmem:[#allocation6 + $0x658] sm:$0xff]  ;;  %v3846_v59 = vld [vmem:[#allocation6 + $0x6e0] sm:$0xff] }
 0x4a2   :  { %8479 = vmatprep.subr.bf16.mxu1 %v8478_v0  ;;  %4376 = vmatmul.mubr.f32.gmra.mrb[128].mxu0 %v13315_v27  ;;  %v3826_v0 = vld [vmem:[#allocation6 + $0x640] sm:$0xff]  ;;  %v8458_v29 = vpack.c.bf16 %v3813_v26, %v3812_v48  ;;  %v13317_v37 = vld [vmem:[#allocation94_spill] sm:$0xff]  ;;  %v3817_v26 = vld [vmem:[#allocation6 + $0x5f8] sm:$0xff] }
 0x4a3   :  { %4521 = vmatmul.mubr.f32.gmra.mrb[160].mxu1 %v11234_v22  ;;  %4380 = vmatprep.mubr.f32.mxu0 %v11306_v36 }
 0x4a4   :  { %4525 = vmatprep.mubr.f32.mxu1 %v11313_v49  ;;  %8449 = vmatpush3.bf16.msra.mxu0 %v8448_v5  ;;  %v3845_v49 = vld [vmem:[#allocation6 + $0x6d8] sm:$0xff]  ;;  %v8456_v5 = vpack.c.bf16 %v3795_v60, %v3794_v33  ;;  %v3798_v33 = vld [vmem:[#allocation6 + $0x560] sm:$0xff]  ;;  %v3799_v60 = vld [vmem:[#allocation6 + $0x568] sm:$0xff] }
 0x4a5   :  { %8481 = vmatpush3.bf16.msra.mxu1 %v8480_v11  ;;  %8451 = vmatprep.subr.bf16.mxu0 %v8450_v9  ;;  %v8488_v11 = vpack.c.bf16 %v3827_v58, %v3826_v0  ;;  %v3814_v9 = vld [vmem:[#allocation6 + $0x5e0] sm:$0xff]  ;;  %v8490_v1 = vpack.c.bf16 %v3845_v49, %v3844_v25  ;;  %v3831_v0 = vld [vmem:[#allocation6 + $0x668] sm:$0xff]  ;;  %v13318_v58 = vld [vmem:[#allocation98_spill] sm:$0xff] }
 0x4a6   :  { %8483 = vmatprep.subr.bf16.mxu1 %v8482_v2  ;;  %4381 = vmatmul.mubr.f32.gmra.mrb[130].mxu0 %v13316_v23  ;;  %v3828_v2 = vld [vmem:[#allocation6 + $0x650] sm:$0xff]  ;;  %v8462_v49 = vpack.c.bf16 %v3815_v46, %v3814_v9  ;;  %v3850_v46 = vld [vmem:[#allocation6 + $0x700] sm:$0xff] }
 0x4a7   :  { %4526 = vmatmul.mubr.f32.gmra.mrb[162].mxu1 %v11285_v21  ;;  %4385 = vmatprep.mubr.f32.mxu0 %v11356_v20  ;;  %v3848_v25 = vld [vmem:[#allocation6 + $0x6f0] sm:$0xff] }
 0x4a8   :  { %4530 = vmatprep.mubr.f32.mxu1 %v11365_v63  ;;  %8453 = vmatpush3.bf16.msra.mxu0 %v8452_v19  ;;  %v3847_v63 = vld [vmem:[#allocation6 + $0x6e8] sm:$0xff]  ;;  %v8460_v19 = vpack.c.bf16 %v3797_v55, %v3796_v38  ;;  %v3800_v38 = vld [vmem:[#allocation6 + $0x570] sm:$0xff] }
 0x4a9   :  { %8485 = vmatpush3.bf16.msra.mxu1 %v8484_v32  ;;  %8455 = vmatprep.subr.bf16.mxu0 %v8454_v43  ;;  %v8492_v32 = vpack.c.bf16 %v3829_v8, %v3828_v2  ;;  %v3816_v43 = vld [vmem:[#allocation6 + $0x5f0] sm:$0xff]  ;;  %v8494_v48 = vpack.c.bf16 %v3847_v63, %v3846_v59  ;;  %v13319_v2 = vld [vmem:[#allocation101_spill] sm:$0xff] }
 0x4aa   :  { %8487 = vmatprep.subr.bf16.mxu1 %v8486_v51  ;;  %4386 = vmatmul.mubr.f32.gmra.mrb[132].mxu0 %v13317_v37  ;;  %v3830_v51 = vld [vmem:[#allocation6 + $0x660] sm:$0xff]  ;;  %v8466_v63 = vpack.c.bf16 %v3817_v26, %v3816_v43  ;;  %v3832_v9 = vld [vmem:[#allocation6 + $0x670] sm:$0xff]  ;;  %v13320_v8 = vld [vmem:[#allocation81_spill] sm:$0xff]  ;;  %v3288_v26 = vmax.f32 %v11471_v24, 0.0 }
 0x4ab   :  { %4531 = vmatmul.mubr.f32.gmra.mrb[164].mxu1 %v11328_v12  ;;  %4390 = vmatprep.mubr.f32.mxu0 %v11408_v15  ;;  %v8496_v55 = vpack.c.bf16 %v3831_v0, %v3830_v51  ;;  %v3851_v59 = vld [vmem:[#allocation6 + $0x708] sm:$0xff]  ;;  %v13324_v43 = vld [vmem:[#allocation51_spill] sm:$0xff] }
 0x4ac   :  { %4535 = vmatprep.mubr.f32.mxu1 %v11411_v4  ;;  %8457 = vmatpush3.bf16.msra.mxu0 %v8456_v5  ;;  %v3849_v4 = vld [vmem:[#allocation6 + $0x6f8] sm:$0xff]  ;;  %v8464_v5 = vpack.c.bf16 %v3799_v60, %v3798_v33  ;;  %v8502_v60 = vpack.c.bf16 %v3851_v59, %v3850_v46  ;;  %v13326_v51 = vld [vmem:[#allocation61_spill] sm:$0xff] }
 0x4ad   :  { %8489 = vmatpush3.bf16.msra.mxu1 %v8488_v11  ;;  %8459 = vmatprep.subr.bf16.mxu0 %v8458_v29  ;;  %v3801_v11 = vld [vmem:[#allocation6 + $0x578] sm:$0xff]  ;;  %v8498_v29 = vpack.c.bf16 %v3849_v4, %v3848_v25  ;;  %v13321_v4 = vld [vmem:[#allocation36_spill] sm:$0xff]  ;;  %v13327_v0 = vld [vmem:[#allocation65_spill] sm:$0xff]  ;;  %v3290_v25 = vmax.f32 %v11476_v62, 0.0 }
 0x4ae   :  { %8491 = vmatprep.subr.bf16.mxu1 %v8490_v1  ;;  %4391 = vmatmul.mubr.f32.gmra.mrb[134].mxu0 %v13318_v58  ;;  %v3833_v1 = vld [vmem:[#allocation6 + $0x678] sm:$0xff]  ;;  %v13336_v62 = vld [vmem:[#allocation88_spill] sm:$0xff] }
 0x4af   :  { %4536 = vmatmul.mubr.f32.gmra.mrb[166].mxu1 %v11376_v47  ;;  %4395 = vmatprep.mubr.f32.mxu0 %v11440_v53  ;;  %v8500_v33 = vpack.c.bf16 %v3833_v1, %v3832_v9  ;;  %v13333_v1 = vld [vmem:[#allocation85_spill] sm:$0xff]  ;;  %v13335_v24 = vld [vmem:[#allocation71_spill] sm:$0xff] }
 0x4b0   :  { %4540 = vmatprep.mubr.f32.mxu1 %v11446_v40  ;;  %8461 = vmatpush3.bf16.msra.mxu0 %v8460_v19  ;;  %v8468_v19 = vpack.c.bf16 %v3801_v11, %v3800_v38  ;;  %v13329_v38 = vld [vmem:[#allocation105_spill] sm:$0xff]  ;;  %v11681_v46 = vmul.f32 %v13333_v1, %v3288_v26  ;;  %v11684_v59 = vmul.f32 %v13333_v1, %v3290_v25  ;;  %v3852_v26 = vld [vmem:[#allocation6 + $0x710] sm:$0xff]  ;;  %v3853_v25 = vld [vmem:[#allocation6 + $0x718] sm:$0xff] }
 0x4b1   :  { %8493 = vmatpush3.bf16.msra.mxu1 %v8492_v32  ;;  %8463 = vmatprep.subr.bf16.mxu0 %v8462_v49  ;;  %v13322_v32 = vmov 0.0|0.0   ;;  %v13323_v49 = vld [vmem:[#allocation48_spill] sm:$0xff] }
 0x4b2   :  { %8495 = vmatprep.subr.bf16.mxu1 %v8494_v48  ;;  %4396 = vmatmul.mubr.f32.gmra.mrb[136].mxu0 %v13319_v2  ;;  %v13325_v48 = vld [vmem:[#allocation58_spill] sm:$0xff]  ;;  %13334 = vst [vmem:[#allocation107_spill] sm:$0xff] %v11684_v59 }
 0x4b3   :  { %4541 = vmatmul.mubr.f32.gmra.mrb[168].mxu1 %v13320_v8  ;;  %4400 = vmatprep.mubr.f32.mxu0 %v11483_v52 }
 0x4b4   :  { %4545 = vmatprep.mubr.f32.mxu1 %v11486_v13  ;;  %8465 = vmatpush3.bf16.msra.mxu0 %v8464_v5  ;;  %v13328_v5 = vld [vmem:[#allocation69_spill] sm:$0xff] }
 0x4b5   :  { %8497 = vmatpush3.bf16.msra.mxu1 %v8496_v55  ;;  %8467 = vmatprep.subr.bf16.mxu0 %v8466_v63  ;;  %v13330_v55 = vld [vmem:[#allocation108_spill] sm:$0xff]  ;;  %v13331_v63 = vld [vmem:[#allocation39_spill] sm:$0xff] }
 0x4b6   :  { %8499 = vmatprep.subr.bf16.mxu1 %v8498_v29  ;;  %4401 = vmatmul.mubr.f32.gmra.mrb[138].mxu0 %v13321_v4  ;;  %v3287_v11 = vmax.f32 %v13331_v63, 0.0  ;;  %v13332_v29 = vld [vmem:[#allocation84_spill] sm:$0xff]  ;;  %v8506_v63 = vpack.c.bf16 %v3853_v25, %v3852_v26  ;;  %v13339_v26 = vld [vmem:[#allocation91_spill] sm:$0xff] }
 0x4b7   :  { %4546 = vmatmul.mubr.f32.gmra.mrb[170].mxu1 %v11457_v31  ;;  %4405 = vmatprep.mubr.f32.mxu0 %v11500_v50  ;;  %v3289_v9 = vmax.f32 %v13332_v29, 0.0  ;;  %v13337_v29 = vld [vmem:[#allocation41_spill] sm:$0xff]  ;;  %v13342_v25 = vld [vmem:[#allocation43_spill] sm:$0xff] }
 0x4b8   :  { %4550 = vmatprep.mubr.f32.mxu1 %v11503_v44  ;;  %8469 = vmatpush3.bf16.msra.mxu0 %v8468_v19  ;;  %v11691_v19 = vmul.f32 %v13333_v1, %v3287_v11  ;;  %v3854_v11 = vld [vmem:[#allocation6 + $0x720] sm:$0xff] }
 0x4b9   :  { %8501 = vmatpush3.bf16.msra.mxu1 %v8500_v33  ;;  %8503 = vmatprep.subr.bf16.mxu0 %v8502_v60  ;;  %v11694_v33 = vmul.f32 %v13333_v1, %v3289_v9  ;;  %v13338_v1 = vld [vmem:[#allocation42_spill] sm:$0xff] }
 0x4ba   :  { %8558 = vmatprep.subr.bf16.mxu1 %v13322_v32  ;;  %4406 = vmatmul.mubr.f32.gmra.mrb[140].mxu0 %v13323_v49 }
 0x4bb   :  { %4551 = vmatmul.mubr.f32.gmra.mrb[172].mxu1 %v11491_v34  ;;  %4410 = vmatprep.mubr.f32.mxu0 %v11515_v30 }
 0x4bc   :  { %4555 = vmatprep.mubr.f32.mxu1 %v11518_v42 }
 0x4be   :  { %4411 = vmatmul.mubr.f32.gmra.mrb[142].mxu0 %v13324_v43 }
 0x4bf   :  { %4556 = vmatmul.mubr.f32.gmra.mrb[174].mxu1 %v11507_v3  ;;  %4415 = vmatprep.mubr.f32.mxu0 %v11534_v45 }
 0x4c0   :  { %4560 = vmatprep.mubr.f32.mxu1 %v11537_v35 }
 0x4c2   :  { %4416 = vmatmul.mubr.f32.gmra.mrb[144].mxu0 %v13325_v48 }
 0x4c3   :  { %4561 = vmatmul.mubr.f32.gmra.mrb[176].mxu1 %v11523_v39  ;;  %4420 = vmatprep.mubr.f32.mxu0 %v11553_v54 }
 0x4c4   :  { %4565 = vmatprep.mubr.f32.mxu1 %v11556_v61 }
 0x4c6   :  { %4421 = vmatmul.mubr.f32.gmra.mrb[146].mxu0 %v13326_v51 }
 0x4c7   :  { %4566 = vmatmul.mubr.f32.gmra.mrb[178].mxu1 %v11542_v6  ;;  %4425 = vmatprep.mubr.f32.mxu0 %v11570_v57 }
 0x4c8   :  { %4570 = vmatprep.mubr.f32.mxu1 %v11573_v7 }
 0x4ca   :  { %4426 = vmatmul.mubr.f32.gmra.mrb[148].mxu0 %v13327_v0 }
 0x4cb   :  { %4571 = vmatmul.mubr.f32.gmra.mrb[180].mxu1 %v11561_v17  ;;  %4430 = vmatprep.mubr.f32.mxu0 %v11590_v16 }
 0x4cc   :  { %4575 = vmatprep.mubr.f32.mxu1 %v11593_v14 }
 0x4ce   :  { %4431 = vmatmul.mubr.f32.gmra.mrb[150].mxu0 %v13328_v5 }
 0x4cf   :  { %4576 = vmatmul.mubr.f32.gmra.mrb[182].mxu1 %v11578_v56  ;;  %4435 = vmatprep.mubr.f32.mxu0 %v13329_v38 }
 0x4d0   :  { %4580 = vmatprep.mubr.f32.mxu1 %v13330_v55 }
 0x4d2   :  { %4436 = vmatmul.mubr.f32.gmra.mrb[152].mxu0 %v13335_v24 }
 0x4d3   :  { %4581 = vmatmul.mubr.f32.gmra.mrb[184].mxu1 %v13336_v62  ;;  %4440 = vmatprep.mubr.f32.mxu0 %v11681_v46 }
 0x4d4   :  { %4585 = vmatprep.mubr.f32.mxu1 %v11684_v59  ;;  %v3855_v59 = vld [vmem:[#allocation6 + $0x728] sm:$0xff] }
 0x4d5   :  { %v8510_v9 = vpack.c.bf16 %v3855_v59, %v3854_v11  ;;  %v13341_v59 = vld [vmem:[#allocation99_spill] sm:$0xff] }
 0x4d6   :  { %4441 = vmatmul.mubr.f32.gmra.mrb[154].mxu0 %v11691_v19 }
 0x4d7   :  { %4586 = vmatmul.mubr.f32.gmra.mrb[186].mxu1 %v11694_v33  ;;  %4655 = vmatprep.mubr.f32.mxu0 %v13314_v28  ;;  %v3856_v28 = vld [vmem:[#allocation6 + $0x730] sm:$0xff] }
 0x4d8   :  { %4800 = vmatprep.mubr.f32.mxu1 %v11176_v41  ;;  %v3857_v41 = vld [vmem:[#allocation6 + $0x738] sm:$0xff] }
 0x4da   :  { %4656 = vmatmul.mubr.f32.vlgmr.msra.gmra.mrb[156].mxu0 %v13337_v29  ;;  %v13343_v29 = vld [vmem:[#allocation46_spill] sm:$0xff] }
 0x4db   :  { %4801 = vmatmul.mubr.f32.vlgmr.msra.gmra.mrb[188].mxu1 %v11224_v18  ;;  %4660 = vmatprep.mubr.f32.mxu0 %v13315_v27  ;;  %v8514_v18 = vpack.c.bf16 %v3857_v41, %v3856_v28  ;;  %v3859_v27 = vld [vmem:[#allocation6 + $0x748] sm:$0xff]  ;;  %v13347_v41 = vld [vmem:[#allocation66_spill] sm:$0xff] }
 0x4dc   :  { %4805 = vmatprep.mubr.f32.mxu1 %v11234_v22  ;;  %8505 = vmatpush3.bf16.msra.mxu0 %v8502_v60  ;;  %v3858_v22 = vld [vmem:[#allocation6 + $0x740] sm:$0xff]  ;;  %v13340_v60 = vld [vmem:[#allocation95_spill] sm:$0xff] }
 0x4dd   :  { %8507 = vmatprep.subr.bf16.mxu0 %v8506_v63 }
 0x4de   :  { %4661 = vmatmul.mubr.f32.gmra.mrb[158].mxu0 %v13338_v1 }
 0x4df   :  { %4806 = vmatmul.mubr.f32.gmra.mrb[190].mxu1 %v11274_v10  ;;  %4665 = vmatprep.mubr.f32.mxu0 %v13316_v23  ;;  %v8518_v10 = vpack.c.bf16 %v3859_v27, %v3858_v22  ;;  %v3861_v23 = vld [vmem:[#allocation6 + $0x758] sm:$0xff]  ;;  %v13350_v22 = vld [vmem:[#allocation74_spill] sm:$0xff] }
 0x4e0   :  { %4810 = vmatprep.mubr.f32.mxu1 %v11285_v21  ;;  %8509 = vmatpush3.bf16.msra.mxu0 %v8506_v63  ;;  %v3860_v21 = vld [vmem:[#allocation6 + $0x750] sm:$0xff]  ;;  %v13351_v27 = vld [vmem:[#allocation87_spill] sm:$0xff] }
 0x4e1   :  { %8511 = vmatprep.subr.bf16.mxu0 %v8510_v9 }
 0x4e2   :  { %4666 = vmatmul.mubr.f32.gmra.mrb[160].mxu0 %v13339_v26  ;;  %v13349_v26 = vld [vmem:[#allocation72_spill] sm:$0xff] }
 0x4e3   :  { %4811 = vmatmul.mubr.f32.gmra.mrb[192].mxu1 %v11306_v36  ;;  %4670 = vmatprep.mubr.f32.mxu0 %v13317_v37  ;;  %v8522_v36 = vpack.c.bf16 %v3861_v23, %v3860_v21  ;;  %v3863_v37 = vld [vmem:[#allocation6 + $0x768] sm:$0xff]  ;;  %v13354_v21 = vld [vmem:[#allocation75_spill] sm:$0xff] }
 0x4e4   :  { %4815 = vmatprep.mubr.f32.mxu1 %v11328_v12  ;;  %8513 = vmatpush3.bf16.msra.mxu0 %v8510_v9  ;;  %v3862_v12 = vld [vmem:[#allocation6 + $0x760] sm:$0xff] }
 0x4e5   :  { %8515 = vmatprep.subr.bf16.mxu0 %v8514_v18 }
 0x4e6   :  { %4671 = vmatmul.mubr.f32.gmra.mrb[162].mxu0 %v13340_v60 }
 0x4e7   :  { %4816 = vmatmul.mubr.f32.gmra.mrb[194].mxu1 %v11356_v20  ;;  %4675 = vmatprep.mubr.f32.mxu0 %v13318_v58  ;;  %v8526_v20 = vpack.c.bf16 %v3863_v37, %v3862_v12  ;;  %v3865_v58 = vld [vmem:[#allocation6 + $0x778] sm:$0xff]  ;;  %v13356_v37 = vld [vmem:[#allocation78_spill] sm:$0xff] }
 0x4e8   :  { %4820 = vmatprep.mubr.f32.mxu1 %v11376_v47  ;;  %8517 = vmatpush3.bf16.msra.mxu0 %v8514_v18  ;;  %v3864_v47 = vld [vmem:[#allocation6 + $0x770] sm:$0xff]  ;;  %v13348_v18 = vld [vmem:[#allocation67_spill] sm:$0xff] }
 0x4e9   :  { %8519 = vmatprep.subr.bf16.mxu0 %v8518_v10  ;;  %v8530_v63 = vpack.c.bf16 %v3865_v58, %v3864_v47 }
 0x4ea   :  { %4676 = vmatmul.mubr.f32.gmra.mrb[164].mxu0 %v13341_v59 }
 0x4eb   :  { %4821 = vmatmul.mubr.f32.gmra.mrb[196].mxu1 %v11408_v15  ;;  %4680 = vmatprep.mubr.f32.mxu0 %v13319_v2 }
 0x4ec   :  { %4825 = vmatprep.mubr.f32.mxu1 %v13320_v8  ;;  %8521 = vmatpush3.bf16.msra.mxu0 %v8518_v10 }
 0x4ed   :  { %8523 = vmatprep.subr.bf16.mxu0 %v8522_v36 }
 0x4ee   :  { %4681 = vmatmul.mubr.f32.gmra.mrb[166].mxu0 %v13342_v25  ;;  %v13357_v25 = vld [vmem:[#allocation82_spill] sm:$0xff] }
 0x4ef   :  { %4826 = vmatmul.mubr.f32.gmra.mrb[198].mxu1 %v11440_v53  ;;  %4685 = vmatprep.mubr.f32.mxu0 %v13321_v4 }
 0x4f0   :  { %4830 = vmatprep.mubr.f32.mxu1 %v11457_v31  ;;  %8525 = vmatpush3.bf16.msra.mxu0 %v8522_v36  ;;  %v13344_v31 = vld [vmem:[#allocation52_spill] sm:$0xff]  ;;  %v13355_v36 = vld [vmem:[#allocation79_spill] sm:$0xff] }
 0x4f1   :  { %v6485_v15 = vpop.f32.mrb[94].mxu1  ;;  %8527 = vmatprep.subr.bf16.mxu0 %v8526_v20 }
 0x4f2   :  { %v6486_v2 = vpop.f32.mrb[95].mxu1  ;;  %4686 = vmatmul.mubr.f32.gmra.mrb[168].mxu0 %v13343_v29 }
 0x4f3   :  { %4831 = vmatmul.mubr.f32.gmra.mrb[200].mxu1 %v11483_v52  ;;  %v11726_v8 = vadd.f32 %v6486_v2, %v6485_v15  ;;  %4690 = vmatprep.mubr.f32.mxu0 %v13323_v49 }
 0x4f4   :  { %4835 = vmatprep.mubr.f32.mxu1 %v11491_v34  ;;  %8529 = vmatpush3.bf16.msra.mxu0 %v8526_v20  ;;  %v13345_v34 = vld [vmem:[#allocation55_spill] sm:$0xff] }
 0x4f5   :  { %v6488_v53 = vpop.f32.mrb[96].mxu1  ;;  %8531 = vmatprep.subr.bf16.mxu0 %v8530_v63 }
 0x4f6   :  { %v6489_v4 = vpop.f32.mrb[97].mxu1  ;;  %4691 = vmatmul.mubr.f32.gmra.mrb[170].mxu0 %v13344_v31 }
 0x4f7   :  { %4836 = vmatmul.mubr.f32.gmra.mrb[202].mxu1 %v11500_v50  ;;  %v11732_v11 = vadd.f32 %v6489_v4, %v6488_v53  ;;  %4695 = vmatprep.mubr.f32.mxu0 %v13324_v43  ;;  %v13346_v43 = vld [vmem:[#allocation62_spill] sm:$0xff] }
 0x4f8   :  { %4840 = vmatprep.mubr.f32.mxu1 %v11507_v3  ;;  %8533 = vmatpush3.bf16.msra.mxu0 %v8530_v63 }
 0x4f9   :  { %v6491_v52 = vpop.f32.mrb[98].mxu1  ;;  %8534 = vmatprep.subr.bf16.mxu0 %v13322_v32 }
 0x4fa   :  { %v6492_v49 = vpop.f32.mrb[99].mxu1  ;;  %4696 = vmatmul.mubr.f32.gmra.mrb[172].mxu0 %v13345_v34 }
 0x4fb   :  { %4841 = vmatmul.mubr.f32.gmra.mrb[204].mxu1 %v11515_v30  ;;  %v11739_v9 = vadd.f32 %v6492_v49, %v6491_v52  ;;  %4700 = vmatprep.mubr.f32.mxu0 %v13325_v48 }
 0x4fc   :  { %4845 = vmatprep.mubr.f32.mxu1 %v11523_v39 }
 0x4fd   :  { %v6494_v50 = vpop.f32.mrb[100].mxu1 }
 0x4fe   :  { %v6495_v1 = vpop.f32.mrb[101].mxu1  ;;  %4701 = vmatmul.mubr.f32.gmra.mrb[174].mxu0 %v13346_v43 }
 0x4ff   :  { %4846 = vmatmul.mubr.f32.gmra.mrb[206].mxu1 %v11534_v45  ;;  %v11745_v3 = vadd.f32 %v6495_v1, %v6494_v50  ;;  %4705 = vmatprep.mubr.f32.mxu0 %v13326_v51 }
 0x500   :  { %4850 = vmatprep.mubr.f32.mxu1 %v11542_v6 }
 0x501   :  { %v6497_v28 = vpop.f32.mrb[102].mxu1 }
 0x502   :  { %v6498_v30 = vpop.f32.mrb[103].mxu1  ;;  %4706 = vmatmul.mubr.f32.gmra.mrb[176].mxu0 %v13347_v41 }
 0x503   :  { %4851 = vmatmul.mubr.f32.gmra.mrb[208].mxu1 %v11553_v54  ;;  %v11751_v48 = vadd.f32 %v6498_v30, %v6497_v28  ;;  %4710 = vmatprep.mubr.f32.mxu0 %v13327_v0  ;;  %v13359_v28 = vld [vmem:[#allocation107_spill] sm:$0xff] }
 0x504   :  { %4855 = vmatprep.mubr.f32.mxu1 %v11561_v17 }
 0x505   :  { %v6500_v39 = vpop.f32.mrb[104].mxu1 }
 0x506   :  { %v6501_v45 = vpop.f32.mrb[105].mxu1  ;;  %4711 = vmatmul.mubr.f32.gmra.mrb[178].mxu0 %v13348_v18 }
 0x507   :  { %4856 = vmatmul.mubr.f32.gmra.mrb[210].mxu1 %v11570_v57  ;;  %v11757_v51 = vadd.f32 %v6501_v45, %v6500_v39  ;;  %4715 = vmatprep.mubr.f32.mxu0 %v13328_v5 }
 0x508   :  { %4860 = vmatprep.mubr.f32.mxu1 %v11578_v56 }
 0x509   :  { %v6503_v6 = vpop.f32.mrb[106].mxu1 }
 0x50a   :  { %v6504_v54 = vpop.f32.mrb[107].mxu1  ;;  %4716 = vmatmul.mubr.f32.gmra.mrb[180].mxu0 %v13349_v26 }
 0x50b   :  { %4861 = vmatmul.mubr.f32.gmra.mrb[212].mxu1 %v11590_v16  ;;  %v11763_v0 = vadd.f32 %v6504_v54, %v6503_v6  ;;  %4720 = vmatprep.mubr.f32.mxu0 %v13335_v24 }
 0x50c   :  { %4865 = vmatprep.mubr.f32.mxu1 %v13336_v62  ;;  %v13352_v62 = vmov 0.0  }
 0x50d   :  { %v6506_v17 = vpop.f32.mrb[108].mxu1 }
 0x50e   :  { %v6507_v57 = vpop.f32.mrb[109].mxu1  ;;  %4721 = vmatmul.mubr.f32.gmra.mrb[182].mxu0 %v13350_v22 }
 0x50f   :  { %4866 = vmatmul.mubr.f32.gmra.mrb[214].mxu1 %v13329_v38  ;;  %v11769_v5 = vadd.f32 %v6507_v57, %v6506_v17  ;;  %4725 = vmatprep.mubr.f32.mxu0 %v11691_v19 }
 0x510   :  { %4870 = vmatprep.mubr.f32.mxu1 %v11694_v33  ;;  %v13353_v33 = vld [vmem:[#allocation76_spill] sm:$0xff] }
 0x511   :  { %v6509_v56 = vpop.f32.mrb[110].mxu1 }
 0x512   :  { %v6510_v16 = vpop.f32.mrb[111].mxu1  ;;  %4726 = vmatmul.mubr.f32.gmra.mrb[184].mxu0 %v13351_v27 }
 0x513   :  { %4871 = vmatmul.mubr.f32.gmra.mrb[216].mxu1 %v11681_v46  ;;  %v11775_v24 = vadd.f32 %v6510_v16, %v6509_v56  ;;  %4730 = vmatprep.mubr.f32.mxu0 %v13352_v62 }
 0x514   :  { %4875 = vmatprep.mubr.f32.mxu1 %v13352_v62 }
 0x515   :  { %v6512_v10 = vpop.f32.mrb[112].mxu1 }
 0x516   :  { %v6513_v38 = vpop.f32.mrb[113].mxu1  ;;  %4731 = vmatmul.mubr.f32.gmra.mrb[186].mxu0 %v13352_v62 }
 0x517   :  { %4876 = vmatmul.mubr.f32.gmra.mrb[218].mxu1 %v13352_v62  ;;  %v11781_v19 = vadd.f32 %v6513_v38, %v6512_v10  ;;  %7370 = vmatprep.mubr.f32.mxu0 %v13353_v33 }
 0x518   :  { %7461 = vmatprep.mubr.msk.f32.mxu1 %vm8871_vm0, %v13352_v62 }
 0x519   :  { %v6515_v46 = vpop.f32.mrb[114].mxu1 }
 0x51a   :  { %v6516_v60 = vpop.f32.mrb[115].mxu1  ;;  %7371 = vmatmul.mubr.f32.vlgmr.msra.gmra.mrb[188].mxu0 %v13354_v21 }
 0x51b   :  { %v11787_v23 = vadd.f32 %v6516_v60, %v6515_v46  ;;  %7373 = vmatprep.mubr.f32.mxu0 %v13355_v36 }
 0x51d   :  { %v6518_v59 = vpop.f32.mrb[116].mxu1 }
 0x51e   :  { %v6519_v12 = vpop.f32.mrb[117].mxu1  ;;  %7374 = vmatmul.mubr.f32.gmra.mrb[190].mxu0 %v13356_v37 }
 0x51f   :  { %v11791_v20 = vadd.f32 %v6519_v12, %v6518_v59  ;;  %7376 = vmatprep.mubr.f32.mxu0 %v13357_v25 }
 0x521   :  { %v6521_v47 = vpop.f32.mrb[118].mxu1 }
 0x522   :  { %v6522_v58 = vpop.f32.mrb[119].mxu1  ;;  %7377 = vmatmul.mubr.f32.gmra.mrb[192].mxu0 %v11446_v40 }
 0x523   :  { %v11795_v15 = vadd.f32 %v6522_v58, %v6521_v47  ;;  %7379 = vmatprep.mubr.f32.mxu0 %v11486_v13 }
 0x525   :  { %v6524_v63 = vpop.f32.mrb[120].mxu1 }
 0x526   :  { %v6525_v2 = vpop.f32.mrb[121].mxu1  ;;  %7380 = vmatmul.mubr.f32.gmra.mrb[194].mxu0 %v11503_v44  ;;  %v13358_v44 = vld [vmem:[#allocation106_spill] sm:$0xff] }
 0x527   :  { %v11799_v29 = vadd.f32 %v6525_v2, %v6524_v63  ;;  %7382 = vmatprep.mubr.f32.mxu0 %v11518_v42 }
 0x529   :  { %v6527_v53 = vpop.f32.mrb[122].mxu1 }
 0x52a   :  { %v6528_v4 = vpop.f32.mrb[123].mxu1  ;;  %7383 = vmatmul.mubr.f32.gmra.mrb[196].mxu0 %v11537_v35 }
 0x52b   :  { %v11803_v31 = vadd.f32 %v6528_v4, %v6527_v53  ;;  %7385 = vmatprep.mubr.f32.mxu0 %v11556_v61 }
 0x52d   :  { %v6642_v40 = vpop.f32.mrb[124].mxu1 }
 0x52e   :  { %v6643_v52 = vpop.f32.mrb[125].mxu1  ;;  %7386 = vmatmul.mubr.f32.gmra.mrb[198].mxu0 %v11573_v7 }
 0x52f   :  { %v6644_v13 = vadd.f32 %v6643_v52, %v6642_v40  ;;  %7388 = vmatprep.mubr.f32.mxu0 %v11593_v14 }
 0x531   :  { %v11809_v49 = vadd.f32 %v6644_v13, %v13358_v44  ;;  %v6565_v34 = vpop.f32.mrb[94].mxu0  ;;  %v6645_v42 = vpop.f32.mrb[126].mxu1 }
 0x532   :  { %v6566_v50 = vpop.f32.mrb[95].mxu0  ;;  %v6646_v1 = vpop.f32.mrb[127].mxu1  ;;  %7389 = vmatmul.mubr.f32.gmra.mrb[200].mxu0 %v13330_v55 }
 0x533   :  { %v6567_v35 = vadd.f32 %v6566_v50, %v6565_v34  ;;  %v6647_v43 = vadd.f32 %v6646_v1, %v6645_v42  ;;  %7391 = vmatprep.mubr.f32.mxu0 %v13359_v28 }
 0x535   :  { %v4083_v61 = vadd.f32 %v6567_v35, %v11726_v8  ;;  %v6568_v30 = vpop.f32.mrb[96].mxu0  ;;  %v6648_v7 = vpop.f32.mrb[128].mxu1 }
 0x536   :  { %v6569_v41 = vpop.f32.mrb[97].mxu0  ;;  %v6649_v39 = vpop.f32.mrb[129].mxu1  ;;  %7392 = vmatmul.mubr.f32.gmra.mrb[202].mxu0 %v13352_v62 }
 0x537   :  { %v11815_v14 = vadd.f32 %v6647_v43, %v4083_v61  ;;  %v6570_v45 = vadd.f32 %v6569_v41, %v6568_v30  ;;  %v6650_v18 = vadd.f32 %v6649_v39, %v6648_v7  ;;  %7426 = vmatprep.mubr.msk.f32.mxu0 %vm8871_vm0, %v13352_v62 }
 0x539   :  { %v4088_v55 = vadd.f32 %v6570_v45, %v11732_v11  ;;  %v6571_v6 = vpop.f32.mrb[98].mxu0  ;;  %v6651_v54 = vpop.f32.mrb[130].mxu1 }
 0x53a   :  { %v6572_v26 = vpop.f32.mrb[99].mxu0  ;;  %v6652_v17 = vpop.f32.mrb[131].mxu1 }
 0x53b   :  { %v11820_v8 = vadd.f32 %v6650_v18, %v4088_v55  ;;  %v6573_v57 = vadd.f32 %v6572_v26, %v6571_v6  ;;  %v6653_v22 = vadd.f32 %v6652_v17, %v6651_v54 }
 0x53d   :  { %v4093_v56 = vadd.f32 %v6573_v57, %v11739_v9  ;;  %v6574_v16 = vpop.f32.mrb[100].mxu0  ;;  %v6654_v27 = vpop.f32.mrb[132].mxu1 }
 0x53e   :  { %v6575_v10 = vpop.f32.mrb[101].mxu0  ;;  %v6655_v38 = vpop.f32.mrb[133].mxu1 }
 0x53f   :  { %v11823_v33 = vadd.f32 %v6653_v22, %v4093_v56  ;;  %v6576_v46 = vadd.f32 %v6575_v10, %v6574_v16  ;;  %v6656_v60 = vadd.f32 %v6655_v38, %v6654_v27 }
 0x541   :  { %v4098_v11 = vadd.f32 %v6576_v46, %v11745_v3  ;;  %v6577_v21 = vpop.f32.mrb[102].mxu0 }
 0x542   :  { %v6657_v36 = vpop.f32.mrb[134].mxu1  ;;  %v6578_v59 = vpop.f32.mrb[103].mxu0 }
 0x543   :  { %v6658_v12 = vpop.f32.mrb[135].mxu1  ;;  %v11826_v37 = vadd.f32 %v6656_v60, %v4098_v11  ;;  %v6579_v25 = vadd.f32 %v6578_v59, %v6577_v21 }
 0x544   :  { %v6659_v47 = vadd.f32 %v6658_v12, %v6657_v36 }
 0x545   :  { %v4103_v9 = vadd.f32 %v6579_v25, %v11751_v48  ;;  %v6580_v58 = vpop.f32.mrb[104].mxu0 }
 0x546   :  { %v6660_v63 = vpop.f32.mrb[136].mxu1  ;;  %v6581_v2 = vpop.f32.mrb[105].mxu0 }
 0x547   :  { %v6661_v53 = vpop.f32.mrb[137].mxu1  ;;  %v11829_v4 = vadd.f32 %v6659_v47, %v4103_v9  ;;  %v6582_v40 = vadd.f32 %v6581_v2, %v6580_v58 }
 0x548   :  { %v6662_v52 = vadd.f32 %v6661_v53, %v6660_v63 }
 0x549   :  { %v4108_v3 = vadd.f32 %v6582_v40, %v11757_v51  ;;  %v6583_v13 = vpop.f32.mrb[106].mxu0 }
 0x54a   :  { %v6663_v44 = vpop.f32.mrb[138].mxu1  ;;  %v6584_v34 = vpop.f32.mrb[107].mxu0 }
 0x54b   :  { %v6664_v42 = vpop.f32.mrb[139].mxu1  ;;  %v11832_v50 = vadd.f32 %v6662_v52, %v4108_v3  ;;  %v6585_v1 = vadd.f32 %v6584_v34, %v6583_v13  ;;  %v13360_v3 = vlaneseq }
 0x54c   :  { %v6665_v35 = vadd.f32 %v6664_v42, %v6663_v44 }
 0x54d   :  { %v4113_v48 = vadd.f32 %v6585_v1, %v11763_v0  ;;  %v6586_v43 = vpop.f32.mrb[108].mxu0  ;;  %v11851_v13 = vand.u32 127, %v13360_v3  ;;  %v13365_v3 = vld [vmem:[#allocation31_spill] sm:$0xff] }
 0x54e   :  { %v6666_v28 = vpop.f32.mrb[140].mxu1  ;;  %v6587_v61 = vpop.f32.mrb[109].mxu0 }
 0x54f   :  { %v6667_v30 = vpop.f32.mrb[141].mxu1  ;;  %v11835_v7 = vadd.f32 %v6665_v35, %v4113_v48  ;;  %v6588_v41 = vadd.f32 %v6587_v61, %v6586_v43  ;;  %v13361_v35 = vld [vmem:[#allocation26_spill] sm:$0xff]  ;;  %v13362_v48 = vld [vmem:[#allocation27_spill] sm:$0xff]  ;;  %vm139_vm10 = vcmp.eq.s32.totalorder %v13365_v3, %v11851_v13 }
 0x550   :  { %v6668_v39 = vadd.f32 %v6667_v30, %v6666_v28  ;;  %vm135_vm4 = vcmp.eq.s32.totalorder %v13361_v35, %v11851_v13  ;;  %vm136_vm5 = vcmp.eq.s32.totalorder %v13362_v48, %v11851_v13 }
 0x551   :  { %v4118_v51 = vadd.f32 %v6588_v41, %v11769_v5  ;;  %v6589_v45 = vpop.f32.mrb[110].mxu0  ;;  %v5714_v43 = vsel %vm135_vm4, 1.0, %v13352_v62  ;;  %v5715_v30 = vsel %vm136_vm5, 1.0, %v13352_v62  ;;  %vm8535_vm6 = vmpackc.low %vm136_vm5, %vm135_vm4 }
 0x552   :  { %v6669_v18 = vpop.f32.mrb[142].mxu1  ;;  %v6590_v55 = vpop.f32.mrb[111].mxu0 }
 0x553   :  { %v6670_v6 = vpop.f32.mrb[143].mxu1  ;;  %v11838_v54 = vadd.f32 %v6668_v39, %v4118_v51  ;;  %v6591_v26 = vadd.f32 %v6590_v55, %v6589_v45  ;;  %v12959_v51 = vmov 1.0|1.0   ;;  %v11863_v45 = vpack.c.bf16 %v5715_v30, %v5714_v43 }
 0x554   :  { %v6671_v17 = vadd.f32 %v6670_v6, %v6669_v18  ;;  %8560 = vmatpush3.bf16.msk.msra.mxu1 %vm8535_vm6, %v12959_v51  ;;  %8536 = vmatpush3.bf16.msk.msra.mxu0 %vm8535_vm6, %v12959_v51 }
 0x555   :  { %v4123_v0 = vadd.f32 %v6591_v26, %v11775_v24  ;;  %v6592_v57 = vpop.f32.mrb[112].mxu0  ;;  %8561 = vmatprep.subr.bf16.mxu1 %v13322_v32  ;;  %8537 = vmatprep.subr.bf16.mxu0 %v13322_v32 }
 0x556   :  { %v6672_v22 = vpop.f32.mrb[144].mxu1  ;;  %v6593_v56 = vpop.f32.mrb[113].mxu0 }
 0x557   :  { %v6673_v16 = vpop.f32.mrb[145].mxu1  ;;  %v11841_v27 = vadd.f32 %v6671_v17, %v4123_v0  ;;  %v6594_v10 = vadd.f32 %v6593_v56, %v6592_v57  ;;  %v13363_v0 = vld [vmem:[#allocation28_spill] sm:$0xff]  ;;  %v13364_v57 = vld [vmem:[#allocation29_spill] sm:$0xff] }
 0x558   :  { %v6674_v38 = vadd.f32 %v6673_v16, %v6672_v22  ;;  %vm137_vm7 = vcmp.eq.s32.totalorder %v13363_v0, %v11851_v13  ;;  %vm138_vm8 = vcmp.eq.s32.totalorder %v13364_v57, %v11851_v13 }
 0x559   :  { %v4128_v5 = vadd.f32 %v6594_v10, %v11781_v19  ;;  %v6595_v46 = vpop.f32.mrb[114].mxu0  ;;  %v5716_v16 = vsel %vm137_vm7, 1.0, %v13352_v62  ;;  %v5717_v10 = vsel %vm138_vm8, 1.0, %v13352_v62  ;;  %vm8538_vm9 = vmpackc.low %vm138_vm8, %vm137_vm7 }
 0x55a   :  { %v6675_v60 = vpop.f32.mrb[146].mxu1  ;;  %v6596_v11 = vpop.f32.mrb[115].mxu0  ;;  %8563 = vmatpush3.bf16.msk.msra.mxu1 %vm8538_vm9, %v12959_v51  ;;  %8539 = vmatpush3.bf16.msk.msra.mxu0 %vm8538_vm9, %v12959_v51 }
 0x55b   :  { %v6676_v21 = vpop.f32.mrb[147].mxu1  ;;  %v11844_v36 = vadd.f32 %v6674_v38, %v4128_v5  ;;  %v6597_v59 = vadd.f32 %v6596_v11, %v6595_v46  ;;  %8564 = vmatprep.subr.bf16.mxu1 %v13322_v32  ;;  %8540 = vmatprep.subr.bf16.mxu0 %v13322_v32 }
 0x55c   :  { %v6677_v12 = vadd.f32 %v6676_v21, %v6675_v60 }
 0x55d   :  { %v4133_v24 = vadd.f32 %v6597_v59, %v11787_v23  ;;  %v6598_v25 = vpop.f32.mrb[116].mxu0 }
 0x55e   :  { %v6678_v47 = vpop.f32.mrb[148].mxu1  ;;  %v6599_v9 = vpop.f32.mrb[117].mxu0 }
 0x55f   :  { %v6679_v58 = vpop.f32.mrb[149].mxu1  ;;  %v11847_v63 = vadd.f32 %v6677_v12, %v4133_v24  ;;  %v6600_v2 = vadd.f32 %v6599_v9, %v6598_v25 }
 0x560   :  { %v6680_v53 = vadd.f32 %v6679_v58, %v6678_v47 }
 0x561   :  { %v4138_v19 = vadd.f32 %v6600_v2, %v11791_v20  ;;  %v6601_v40 = vpop.f32.mrb[118].mxu0 }
 0x562   :  { %v6681_v52 = vpop.f32.mrb[150].mxu1  ;;  %v6602_v44 = vpop.f32.mrb[119].mxu0 }
 0x563   :  { %v6682_v34 = vpop.f32.mrb[151].mxu1  ;;  %v11853_v42 = vadd.f32 %v6680_v53, %v4138_v19  ;;  %v6603_v23 = vadd.f32 %v6602_v44, %v6601_v40  ;;  %v13366_v44 = vld [vmem:[#allocation37_spill] sm:$0xff] }
 0x564   :  { %v6683_v1 = vadd.f32 %v6682_v34, %v6681_v52  ;;  %vm140_vm11 = vcmp.eq.s32.totalorder %v13366_v44, %v11851_v13  ;;  %v5718_v34 = vsel %vm139_vm10, 1.0, %v13352_v62 }
 0x565   :  { %v4143_v20 = vadd.f32 %v6603_v23, %v11795_v15  ;;  %v6604_v28 = vpop.f32.mrb[120].mxu0  ;;  %v5719_v43 = vsel %vm140_vm11, 1.0, %v13352_v62  ;;  %vm8541_vm12 = vmpackc.low %vm140_vm11, %vm139_vm10 }
 0x566   :  { %v6684_v61 = vpop.f32.mrb[152].mxu1  ;;  %v6605_v41 = vpop.f32.mrb[121].mxu0  ;;  %8566 = vmatpush3.bf16.msk.msra.mxu1 %vm8541_vm12, %v12959_v51  ;;  %8542 = vmatpush3.bf16.msk.msra.mxu0 %vm8541_vm12, %v12959_v51 }
 0x567   :  { %v6685_v39 = vpop.f32.mrb[153].mxu1  ;;  %v11866_v18 = vadd.f32 %v6683_v1, %v4143_v20  ;;  %v6606_v55 = vadd.f32 %v6605_v41, %v6604_v28  ;;  %8567 = vmatprep.subr.bf16.mxu1 %v13322_v32  ;;  %8543 = vmatprep.subr.bf16.mxu0 %v13322_v32 }
 0x568   :  { %v6686_v6 = vadd.f32 %v6685_v39, %v6684_v61  ;;  %v11899_v61 = vpack.c.bf16 %v5719_v43, %v5718_v34 }
 0x569   :  { %v4148_v15 = vadd.f32 %v6606_v55, %v11799_v29  ;;  %v6607_v26 = vpop.f32.mrb[122].mxu0  ;;  %v11880_v29 = vpack.c.bf16 %v5717_v10, %v5716_v16  ;;  %v13367_v16 = vld [vmem:[#allocation92_spill] sm:$0xff]  ;;  %v13368_v10 = vld [vmem:[#allocation93_spill] sm:$0xff] }
 0x56a   :  { %v6687_v17 = vpop.f32.mrb[154].mxu1  ;;  %v6608_v22 = vpop.f32.mrb[123].mxu0  ;;  %vm141_vm13 = vcmp.eq.s32.totalorder %v13367_v16, %v11851_v13  ;;  %vm142_vm14 = vcmp.eq.s32.totalorder %v13368_v10, %v11851_v13 }
 0x56b   :  { %v6688_v56 = vpop.f32.mrb[155].mxu1  ;;  %v11877_v38 = vadd.f32 %v6686_v6, %v4148_v15  ;;  %v6609_v5 = vadd.f32 %v6608_v22, %v6607_v26  ;;  %vm8544_vm15 = vmpackc.low %vm142_vm14, %vm141_vm13 }
 0x56c   :  { %v6689_v46 = vadd.f32 %v6688_v56, %v6687_v17  ;;  %8569 = vmatpush3.bf16.msk.msra.mxu1 %vm8544_vm15, %v12959_v51  ;;  %8545 = vmatpush3.bf16.msk.msra.mxu0 %vm8544_vm15, %v12959_v51 }
 0x56d   :  { %v4153_v60 = vadd.f32 %v6609_v5, %v11803_v31  ;;  %v6722_v11 = vpop.f32.mrb[124].mxu0  ;;  %v5720_v5 = vsel %vm141_vm13, 1.0, %v13352_v62  ;;  %8570 = vmatprep.subr.bf16.mxu1 %v13322_v32  ;;  %8546 = vmatprep.subr.bf16.mxu0 %v13322_v32  ;;  %vm12962_vm13 = vcmask 64512  }
 0x56e   :  { %v6802_v21 = vpop.f32.mrb[156].mxu1  ;;  %v6723_v59 = vpop.f32.mrb[125].mxu0 }
 0x56f   :  { %v6803_v12 = vpop.f32.mrb[157].mxu1  ;;  %v11886_v24 = vadd.f32 %v6689_v46, %v4153_v60  ;;  %v6724_v25 = vadd.f32 %v6723_v59, %v6722_v11  ;;  %v5721_v11 = vsel %vm142_vm14, 1.0, %v13352_v62  ;;  %vm12157_vm14 = vmpackc.low %vm12962_vm13, %vm12962_vm13 }
 0x570   :  { %v6804_v47 = vadd.f32 %v6803_v12, %v6802_v21  ;;  %v11917_v12 = vpack.c.bf16 %v5721_v11, %v5720_v5  ;;  %v13371_v11 = vld [vmem:[#allocation40_spill] sm:$0xff] }
 0x571   :  { %v4368_v9 = vadd.f32 %v6724_v25, %v11809_v49  ;;  %v6725_v58 = vpop.f32.mrb[126].mxu0  ;;  %vm145_vm4 = vcmp.eq.s32.totalorder %v13371_v11, %v11851_v13 }
 0x572   :  { %v6805_v2 = vpop.f32.mrb[158].mxu1  ;;  %v6726_v53 = vpop.f32.mrb[127].mxu0 }
 0x573   :  { %v6806_v19 = vpop.f32.mrb[159].mxu1  ;;  %v11889_v40 = vadd.f32 %v6804_v47, %v4368_v9  ;;  %v6727_v52 = vadd.f32 %v6726_v53, %v6725_v58 }
 0x574   :  { %v6807_v31 = vadd.f32 %v6806_v19, %v6805_v2 }
 0x575   :  { %v4373_v23 = vadd.f32 %v6727_v52, %v11815_v14  ;;  %v6728_v1 = vpop.f32.mrb[128].mxu0 }
 0x576   :  { %v6808_v49 = vpop.f32.mrb[160].mxu1  ;;  %v6729_v20 = vpop.f32.mrb[129].mxu0 }
 0x577   :  { %v6809_v28 = vpop.f32.mrb[161].mxu1  ;;  %v11902_v30 = vadd.f32 %v6807_v31, %v4373_v23  ;;  %v6730_v41 = vadd.f32 %v6729_v20, %v6728_v1  ;;  %v13369_v23 = vld [vmem:[#allocation97_spill] sm:$0xff]  ;;  %v13370_v1 = vld [vmem:[#allocation104_spill] sm:$0xff] }
 0x578   :  { %v6810_v39 = vadd.f32 %v6809_v28, %v6808_v49  ;;  %vm143_vm1 = vcmp.eq.s32.totalorder %v13369_v23, %v11851_v13  ;;  %vm144_vm2 = vcmp.eq.s32.totalorder %v13370_v1, %v11851_v13 }
 0x579   :  { %v4378_v14 = vadd.f32 %v6730_v41, %v11820_v8  ;;  %v6731_v55 = vpop.f32.mrb[130].mxu0  ;;  %v5722_v49 = vsel %vm143_vm1, 1.0, %v13352_v62  ;;  %v5723_v28 = vsel %vm144_vm2, 1.0, %v13352_v62  ;;  %vm8547_vm3 = vmpackc.low %vm144_vm2, %vm143_vm1 }
 0x57a   :  { %v6811_v6 = vpop.f32.mrb[162].mxu1  ;;  %v6732_v15 = vpop.f32.mrb[131].mxu0  ;;  %8572 = vmatpush3.bf16.msk.msra.mxu1 %vm8547_vm3, %v12959_v51  ;;  %8548 = vmatpush3.bf16.msk.msra.mxu0 %vm8547_vm3, %v12959_v51 }
 0x57b   :  { %v6812_v26 = vpop.f32.mrb[163].mxu1  ;;  %v11907_v17 = vadd.f32 %v6810_v39, %v4378_v14  ;;  %v6733_v22 = vadd.f32 %v6732_v15, %v6731_v55  ;;  %v11935_v14 = vpack.c.bf16 %v5723_v28, %v5722_v49  ;;  %8573 = vmatprep.subr.bf16.mxu1 %v13322_v32  ;;  %8549 = vmatprep.subr.bf16.mxu0 %v13322_v32 }
 0x57c   :  { %v6813_v56 = vadd.f32 %v6812_v26, %v6811_v6 }
 0x57d   :  { %v4383_v46 = vadd.f32 %v6733_v22, %v11823_v33  ;;  %v6734_v60 = vpop.f32.mrb[132].mxu0 }
 0x57e   :  { %v6814_v8 = vpop.f32.mrb[164].mxu1  ;;  %v6735_v21 = vpop.f32.mrb[133].mxu0 }
 0x57f   :  { %v6815_v59 = vpop.f32.mrb[165].mxu1  ;;  %v11920_v25 = vadd.f32 %v6813_v56, %v4383_v46  ;;  %v6736_v47 = vadd.f32 %v6735_v21, %v6734_v60  ;;  %v13372_v21 = vld [vmem:[#allocation50_spill] sm:$0xff] }
 0x580   :  { %v6816_v9 = vadd.f32 %v6815_v59, %v6814_v8  ;;  %vm146_vm5 = vcmp.eq.s32.totalorder %v13372_v21, %v11851_v13  ;;  %v5724_v59 = vsel %vm145_vm4, 1.0, %v13352_v62 }
 0x581   :  { %v4388_v33 = vadd.f32 %v6736_v47, %v11826_v37  ;;  %v6737_v58 = vpop.f32.mrb[134].mxu0  ;;  %vm8550_vm6 = vmpackc.low %vm146_vm5, %vm145_vm4 }
 0x582   :  { %v6817_v2 = vpop.f32.mrb[166].mxu1  ;;  %v6738_v53 = vpop.f32.mrb[135].mxu0  ;;  %8575 = vmatpush3.bf16.msk.msra.mxu1 %vm8550_vm6, %v12959_v51  ;;  %8551 = vmatpush3.bf16.msk.msra.mxu0 %vm8550_vm6, %v12959_v51 }
 0x583   :  { %v6818_v19 = vpop.f32.mrb[167].mxu1  ;;  %v11925_v52 = vadd.f32 %v6816_v9, %v4388_v33  ;;  %v6739_v31 = vadd.f32 %v6738_v53, %v6737_v58  ;;  %v5725_v33 = vsel %vm146_vm5, 1.0, %v13352_v62  ;;  %8576 = vmatprep.subr.bf16.mxu1 %v13322_v32  ;;  %8552 = vmatprep.subr.bf16.mxu0 %v13322_v32 }
 0x584   :  { %v6819_v34 = vadd.f32 %v6818_v19, %v6817_v2  ;;  %v11953_v53 = vpack.c.bf16 %v5725_v33, %v5724_v59 }
 0x585   :  { %v4393_v43 = vadd.f32 %v6739_v31, %v11829_v4  ;;  %v6740_v20 = vpop.f32.mrb[136].mxu0 }
 0x586   :  { %v6820_v37 = vpop.f32.mrb[168].mxu1  ;;  %v6741_v41 = vpop.f32.mrb[137].mxu0 }
 0x587   :  { %v6821_v39 = vpop.f32.mrb[169].mxu1  ;;  %v11938_v55 = vadd.f32 %v6819_v34, %v4393_v43  ;;  %v6742_v6 = vadd.f32 %v6741_v41, %v6740_v20 }
 0x588   :  { %v6822_v15 = vadd.f32 %v6821_v39, %v6820_v37 }
 0x589   :  { %v4398_v4 = vadd.f32 %v6742_v6, %v11832_v50  ;;  %v6743_v26 = vpop.f32.mrb[138].mxu0 }
 0x58a   :  { %v6823_v22 = vpop.f32.mrb[170].mxu1  ;;  %v6744_v56 = vpop.f32.mrb[139].mxu0 }
 0x58b   :  { %v6824_v5 = vpop.f32.mrb[171].mxu1  ;;  %v11943_v46 = vadd.f32 %v6822_v15, %v4398_v4  ;;  %v6745_v60 = vadd.f32 %v6744_v56, %v6743_v26 }
 0x58c   :  { %v6825_v8 = vadd.f32 %v6824_v5, %v6823_v22 }
 0x58d   :  { %v4403_v47 = vadd.f32 %v6745_v60, %v11835_v7  ;;  %v6746_v9 = vpop.f32.mrb[140].mxu0 }
 0x58e   :  { %v6826_v50 = vpop.f32.mrb[172].mxu1  ;;  %v6747_v58 = vpop.f32.mrb[141].mxu0 }
 0x58f   :  { %v6827_v2 = vpop.f32.mrb[173].mxu1  ;;  %v11956_v19 = vadd.f32 %v6825_v8, %v4403_v47  ;;  %v6748_v31 = vadd.f32 %v6747_v58, %v6746_v9  ;;  %v13373_v47 = vld [vmem:[#allocation53_spill] sm:$0xff]  ;;  %v13374_v9 = vld [vmem:[#allocation60_spill] sm:$0xff] }
 0x590   :  { %v6828_v34 = vadd.f32 %v6827_v2, %v6826_v50  ;;  %vm147_vm7 = vcmp.eq.s32.totalorder %v13373_v47, %v11851_v13  ;;  %vm148_vm8 = vcmp.eq.s32.totalorder %v13374_v9, %v11851_v13 }
 0x591   :  { %v4408_v7 = vadd.f32 %v6748_v31, %v11838_v54  ;;  %v6749_v49 = vpop.f32.mrb[142].mxu0  ;;  %v5726_v58 = vsel %vm147_vm7, 1.0, %v13352_v62  ;;  %v5727_v2 = vsel %vm148_vm8, 1.0, %v13352_v62  ;;  %vm8553_vm10 = vmpackc.low %vm148_vm8, %vm147_vm7 }
 0x592   :  { %v6829_v43 = vpop.f32.mrb[174].mxu1  ;;  %v6750_v20 = vpop.f32.mrb[143].mxu0  ;;  %8578 = vmatpush3.bf16.msk.msra.mxu1 %vm8553_vm10, %v12959_v51  ;;  %8554 = vmatpush3.bf16.msk.msra.mxu0 %vm8553_vm10, %v12959_v51 }
 0x593   :  { %v6830_v37 = vpop.f32.mrb[175].mxu1  ;;  %v11961_v28 = vadd.f32 %v6828_v34, %v4408_v7  ;;  %v6751_v41 = vadd.f32 %v6750_v20, %v6749_v49  ;;  %8579 = vmatprep.subr.bf16.mxu1 %v13322_v32  ;;  %8555 = vmatprep.subr.bf16.mxu0 %v13322_v32 }
 0x594   :  { %v6831_v39 = vadd.f32 %v6830_v37, %v6829_v43  ;;  %v11984_v43 = vpack.c.bf16 %v5727_v2, %v5726_v58 }
 0x595   :  { %v4413_v6 = vadd.f32 %v6751_v41, %v11841_v27  ;;  %v6752_v15 = vpop.f32.mrb[144].mxu0  ;;  %v13375_v27 = vld [vmem:[#allocation63_spill] sm:$0xff] }
 0x596   :  { %v6832_v4 = vpop.f32.mrb[176].mxu1  ;;  %v6753_v26 = vpop.f32.mrb[145].mxu0  ;;  %vm149_vm9 = vcmp.eq.s32.totalorder %v13375_v27, %v11851_v13 }
 0x597   :  { %v6833_v22 = vpop.f32.mrb[177].mxu1  ;;  %v11964_v56 = vadd.f32 %v6831_v39, %v4413_v6  ;;  %v6754_v5 = vadd.f32 %v6753_v26, %v6752_v15  ;;  %v5728_v31 = vsel %vm149_vm9, 1.0, %v13352_v62 }
 0x598   :  { %v6834_v60 = vadd.f32 %v6833_v22, %v6832_v4 }
 0x599   :  { %v4418_v54 = vadd.f32 %v6754_v5, %v11844_v36  ;;  %v6755_v8 = vpop.f32.mrb[146].mxu0  ;;  %v13376_v36 = vld [vmem:[#allocation86_spill] sm:$0xff] }
 0x59a   :  { %v6835_v59 = vpop.f32.mrb[178].mxu1  ;;  %v6756_v50 = vpop.f32.mrb[147].mxu0  ;;  %vm150_vm11 = vcmp.eq.s32.totalorder %v13376_v36, %v11851_v13 }
 0x59b   :  { %v6836_v33 = vpop.f32.mrb[179].mxu1  ;;  %v11981_v34 = vadd.f32 %v6834_v60, %v4418_v54  ;;  %v6757_v7 = vadd.f32 %v6756_v50, %v6755_v8  ;;  %v5729_v20 = vsel %vm150_vm11, 1.0, %v13352_v62  ;;  %vm8556_vm12 = vmpackc.low %vm150_vm11, %vm149_vm9 }
 0x59c   :  { %v6837_v49 = vadd.f32 %v6836_v33, %v6835_v59  ;;  %v11993_v6 = vpack.c.bf16 %v5729_v20, %v5728_v31  ;;  %8581 = vmatpush3.bf16.msk.msra.mxu1 %vm8556_vm12, %v12959_v51  ;;  %8557 = vmatpush3.bf16.msk.msra.mxu0 %vm8556_vm12, %v12959_v51 }
 0x59d   :  { %v4423_v37 = vadd.f32 %v6757_v7, %v11847_v63  ;;  %v6758_v41 = vpop.f32.mrb[148].mxu0  ;;  %8614 = vmatprep.subr.bf16.mxu1 %v13322_v32  ;;  %8582 = vmatprep.subr.bf16.mxu0 %v13322_v32 }
 0x59e   :  { %v6838_v39 = vpop.f32.mrb[180].mxu1  ;;  %v6759_v15 = vpop.f32.mrb[149].mxu0 }
 0x59f   :  { %v6839_v4 = vpop.f32.mrb[181].mxu1  ;;  %v11996_v26 = vadd.f32 %v6837_v49, %v4423_v37  ;;  %v6760_v22 = vadd.f32 %v6759_v15, %v6758_v41 }
 0x5a0   :  { %v6840_v5 = vadd.f32 %v6839_v4, %v6838_v39 }
 0x5a1   :  { %v4428_v63 = vadd.f32 %v6760_v22, %v11853_v42  ;;  %v6761_v60 = vpop.f32.mrb[150].mxu0 }
 0x5a2   :  { %v6841_v54 = vpop.f32.mrb[182].mxu1  ;;  %v6762_v8 = vpop.f32.mrb[151].mxu0 }
 0x5a3   :  { %v6842_v59 = vpop.f32.mrb[183].mxu1  ;;  %v12003_v50 = vadd.f32 %v6840_v5, %v4428_v63  ;;  %v6763_v33 = vadd.f32 %v6762_v8, %v6761_v60 }
 0x5a4   :  { %v6843_v58 = vadd.f32 %v6842_v59, %v6841_v54 }
 0x5a5   :  { %v4433_v2 = vadd.f32 %v6763_v33, %v11866_v18  ;;  %v6764_v31 = vpop.f32.mrb[152].mxu0 }
 0x5a6   :  { %v6844_v7 = vpop.f32.mrb[184].mxu1  ;;  %v6765_v49 = vpop.f32.mrb[153].mxu0 }
 0x5a7   :  { %v6845_v20 = vpop.f32.mrb[185].mxu1  ;;  %v12006_v37 = vadd.f32 %v6843_v58, %v4433_v2  ;;  %v6766_v41 = vadd.f32 %v6765_v49, %v6764_v31 }
 0x5a8   :  { %v6846_v42 = vadd.f32 %v6845_v20, %v6844_v7 }
 0x5a9   :  { %v4438_v39 = vadd.f32 %v6766_v41, %v11877_v38  ;;  %v6767_v15 = vpop.f32.mrb[154].mxu0 }
 0x5aa   :  { %v6847_v4 = vpop.f32.mrb[186].mxu1  ;;  %v6768_v22 = vpop.f32.mrb[155].mxu0 }
 0x5ab   :  { %v6848_v51 = vpop.f32.mrb[187].mxu1  ;;  %v12009_v5 = vadd.f32 %v6846_v42, %v4438_v39  ;;  %v6769_v63 = vadd.f32 %v6768_v22, %v6767_v15 }
 0x5ac   :  { %v6849_v60 = vadd.f32 %v6848_v51, %v6847_v4 }
 0x5ad   :  { %v4443_v18 = vadd.f32 %v6769_v63, %v11886_v24  ;;  %v6882_v54 = vpop.f32.mrb[156].mxu0 }
 0x5ae   :  { %v6962_v8 = vpop.f32.mrb[188].mxu1  ;;  %v6883_v59 = vpop.f32.mrb[157].mxu0 }
 0x5af   :  { %v6963_v33 = vpop.f32.mrb[189].mxu1  ;;  %v12012_v58 = vadd.f32 %v6849_v60, %v4443_v18  ;;  %v6884_v2 = vadd.f32 %v6883_v59, %v6882_v54 }
 0x5b0   :  { %v6964_v31 = vadd.f32 %v6963_v33, %v6962_v8 }
 0x5b1   :  { %v4658_v38 = vadd.f32 %v6884_v2, %v11889_v40  ;;  %v6885_v7 = vpop.f32.mrb[158].mxu0 }
 0x5b2   :  { %v6965_v49 = vpop.f32.mrb[190].mxu1  ;;  %v6886_v20 = vpop.f32.mrb[159].mxu0 }
 0x5b3   :  { %v6966_v41 = vpop.f32.mrb[191].mxu1  ;;  %v6887_v42 = vadd.f32 %v6886_v20, %v6885_v7  ;;  %v12015_v15 = vadd.f32 %v6964_v31, %v4658_v38 }
 0x5b4   :  { %v6967_v39 = vadd.f32 %v6966_v41, %v6965_v49 }
 0x5b5   :  { %v4663_v51 = vadd.f32 %v6887_v42, %v11902_v30  ;;  %v6888_v24 = vpop.f32.mrb[160].mxu0 }
 0x5b6   :  { %v6968_v4 = vpop.f32.mrb[192].mxu1  ;;  %v6889_v22 = vpop.f32.mrb[161].mxu0 }
 0x5b7   :  { %v6969_v63 = vpop.f32.mrb[193].mxu1  ;;  %v6890_v60 = vadd.f32 %v6889_v22, %v6888_v24  ;;  %v12018_v54 = vadd.f32 %v6967_v39, %v4663_v51 }
 0x5b8   :  { %v6970_v18 = vadd.f32 %v6969_v63, %v6968_v4 }
 0x5b9   :  { %v4668_v40 = vadd.f32 %v6890_v60, %v11907_v17  ;;  %v6891_v8 = vpop.f32.mrb[162].mxu0 }
 0x5ba   :  { %v6971_v59 = vpop.f32.mrb[194].mxu1  ;;  %v6892_v33 = vpop.f32.mrb[163].mxu0 }
 0x5bb   :  { %v6972_v2 = vpop.f32.mrb[195].mxu1  ;;  %v6893_v7 = vadd.f32 %v6892_v33, %v6891_v8  ;;  %v12021_v31 = vadd.f32 %v6970_v18, %v4668_v40 }
 0x5bc   :  { %v6973_v49 = vadd.f32 %v6972_v2, %v6971_v59 }
 0x5bd   :  { %v4673_v30 = vadd.f32 %v6893_v7, %v11920_v25  ;;  %v6894_v38 = vpop.f32.mrb[164].mxu0 }
 0x5be   :  { %v6974_v20 = vpop.f32.mrb[196].mxu1  ;;  %v6895_v41 = vpop.f32.mrb[165].mxu0 }
 0x5bf   :  { %v6975_v42 = vpop.f32.mrb[197].mxu1  ;;  %v6896_v24 = vadd.f32 %v6895_v41, %v6894_v38  ;;  %v12024_v39 = vadd.f32 %v6973_v49, %v4673_v30 }
 0x5c0   :  { %v6976_v4 = vadd.f32 %v6975_v42, %v6974_v20 }
 0x5c1   :  { %v4678_v17 = vadd.f32 %v6896_v24, %v11925_v52  ;;  %v6897_v51 = vpop.f32.mrb[166].mxu0 }
 0x5c2   :  { %v6977_v22 = vpop.f32.mrb[198].mxu1  ;;  %v6898_v63 = vpop.f32.mrb[167].mxu0 }
 0x5c3   :  { %v6978_v60 = vpop.f32.mrb[199].mxu1  ;;  %v6899_v8 = vadd.f32 %v6898_v63, %v6897_v51  ;;  %v12027_v18 = vadd.f32 %v6976_v4, %v4678_v17 }
 0x5c4   :  { %v6979_v59 = vadd.f32 %v6978_v60, %v6977_v22 }
 0x5c5   :  { %v4683_v25 = vadd.f32 %v6899_v8, %v11938_v55  ;;  %v6900_v40 = vpop.f32.mrb[168].mxu0 }
 0x5c6   :  { %v6980_v33 = vpop.f32.mrb[200].mxu1  ;;  %v6901_v2 = vpop.f32.mrb[169].mxu0 }
 0x5c7   :  { %v6981_v7 = vpop.f32.mrb[201].mxu1  ;;  %v6902_v38 = vadd.f32 %v6901_v2, %v6900_v40  ;;  %v12030_v49 = vadd.f32 %v6979_v59, %v4683_v25 }
 0x5c8   :  { %v6982_v20 = vadd.f32 %v6981_v7, %v6980_v33 }
 0x5c9   :  { %v4688_v52 = vadd.f32 %v6902_v38, %v11943_v46  ;;  %v6903_v30 = vpop.f32.mrb[170].mxu0 }
 0x5ca   :  { %v6983_v41 = vpop.f32.mrb[202].mxu1  ;;  %v6904_v42 = vpop.f32.mrb[171].mxu0 }
 0x5cb   :  { %v6984_v24 = vpop.f32.mrb[203].mxu1  ;;  %v6905_v51 = vadd.f32 %v6904_v42, %v6903_v30  ;;  %v12033_v4 = vadd.f32 %v6982_v20, %v4688_v52 }
 0x5cc   :  { %v6985_v22 = vadd.f32 %v6984_v24, %v6983_v41 }
 0x5cd   :  { %v4693_v55 = vadd.f32 %v6905_v51, %v11956_v19  ;;  %v6906_v17 = vpop.f32.mrb[172].mxu0 }
 0x5ce   :  { %v6986_v63 = vpop.f32.mrb[204].mxu1  ;;  %v6907_v60 = vpop.f32.mrb[173].mxu0 }
 0x5cf   :  { %v6987_v8 = vpop.f32.mrb[205].mxu1  ;;  %v6908_v40 = vadd.f32 %v6907_v60, %v6906_v17  ;;  %v12036_v59 = vadd.f32 %v6985_v22, %v4693_v55 }
 0x5d0   :  { %v6988_v33 = vadd.f32 %v6987_v8, %v6986_v63 }
 0x5d1   :  { %v4698_v46 = vadd.f32 %v6908_v40, %v11961_v28  ;;  %v6909_v25 = vpop.f32.mrb[174].mxu0 }
 0x5d2   :  { %v6989_v2 = vpop.f32.mrb[206].mxu1  ;;  %v6910_v7 = vpop.f32.mrb[175].mxu0 }
 0x5d3   :  { %v6990_v38 = vpop.f32.mrb[207].mxu1  ;;  %v6911_v30 = vadd.f32 %v6910_v7, %v6909_v25  ;;  %v12039_v20 = vadd.f32 %v6988_v33, %v4698_v46 }
 0x5d4   :  { %v6991_v41 = vadd.f32 %v6990_v38, %v6989_v2 }
 0x5d5   :  { %v4703_v19 = vadd.f32 %v6911_v30, %v11964_v56  ;;  %v6912_v52 = vpop.f32.mrb[176].mxu0 }
 0x5d6   :  { %v6992_v42 = vpop.f32.mrb[208].mxu1  ;;  %v6913_v24 = vpop.f32.mrb[177].mxu0 }
 0x5d7   :  { %v6993_v51 = vpop.f32.mrb[209].mxu1  ;;  %v6914_v17 = vadd.f32 %v6913_v24, %v6912_v52  ;;  %v12042_v22 = vadd.f32 %v6991_v41, %v4703_v19 }
 0x5d8   :  { %v6994_v63 = vadd.f32 %v6993_v51, %v6992_v42 }
 0x5d9   :  { %v4708_v28 = vadd.f32 %v6914_v17, %v11981_v34  ;;  %v6915_v55 = vpop.f32.mrb[178].mxu0 }
 0x5da   :  { %v6995_v60 = vpop.f32.mrb[210].mxu1  ;;  %v6916_v8 = vpop.f32.mrb[179].mxu0 }
 0x5db   :  { %v6996_v40 = vpop.f32.mrb[211].mxu1  ;;  %v6917_v25 = vadd.f32 %v6916_v8, %v6915_v55  ;;  %v12045_v33 = vadd.f32 %v6994_v63, %v4708_v28 }
 0x5dc   :  { %v6997_v2 = vadd.f32 %v6996_v40, %v6995_v60 }
 0x5dd   :  { %v4713_v56 = vadd.f32 %v6917_v25, %v11996_v26  ;;  %v6918_v46 = vpop.f32.mrb[180].mxu0 }
 0x5de   :  { %v6998_v7 = vpop.f32.mrb[212].mxu1  ;;  %v6919_v38 = vpop.f32.mrb[181].mxu0 }
 0x5df   :  { %v6999_v30 = vpop.f32.mrb[213].mxu1  ;;  %v6920_v52 = vadd.f32 %v6919_v38, %v6918_v46  ;;  %v12048_v41 = vadd.f32 %v6997_v2, %v4713_v56 }
 0x5e0   :  { %v7000_v42 = vadd.f32 %v6999_v30, %v6998_v7 }
 0x5e1   :  { %v4718_v34 = vadd.f32 %v6920_v52, %v12003_v50  ;;  %v6921_v19 = vpop.f32.mrb[182].mxu0 }
 0x5e2   :  { %v7001_v24 = vpop.f32.mrb[214].mxu1  ;;  %v6922_v51 = vpop.f32.mrb[183].mxu0 }
 0x5e3   :  { %v7002_v17 = vpop.f32.mrb[215].mxu1  ;;  %v6923_v55 = vadd.f32 %v6922_v51, %v6921_v19  ;;  %v12051_v63 = vadd.f32 %v7000_v42, %v4718_v34 }
 0x5e4   :  { %v7003_v60 = vadd.f32 %v7002_v17, %v7001_v24 }
 0x5e5   :  { %v4723_v26 = vadd.f32 %v6923_v55, %v12006_v37  ;;  %v6924_v28 = vpop.f32.mrb[184].mxu0 }
 0x5e6   :  { %v7004_v8 = vpop.f32.mrb[216].mxu1  ;;  %v6925_v40 = vpop.f32.mrb[185].mxu0 }
 0x5e7   :  { %v7005_v25 = vpop.f32.mrb[217].mxu1  ;;  %v6926_v46 = vadd.f32 %v6925_v40, %v6924_v28  ;;  %v12054_v2 = vadd.f32 %v7003_v60, %v4723_v26 }
 0x5e8   :  { %v7006_v7 = vadd.f32 %v7005_v25, %v7004_v8 }
 0x5e9   :  { %v4728_v50 = vadd.f32 %v6926_v46, %v12009_v5  ;;  %v6927_v56 = vpop.f32.mrb[186].mxu0 }
 0x5ea   :  { %v7007_v38 = vpop.f32.mrb[218].mxu1  ;;  %v6928_v30 = vpop.f32.mrb[187].mxu0 }
 0x5eb   :  { %v7008_v52 = vpop.f32.mrb[219].mxu1  ;;  %v6929_v19 = vadd.f32 %v6928_v30, %v6927_v56  ;;  %v12057_v42 = vadd.f32 %v7006_v7, %v4728_v50 }
 0x5ec   :  { %v7009_v24 = vadd.f32 %v7008_v52, %v7007_v38 }
 0x5ed   :  { %v4733_v37 = vadd.f32 %v6929_v19, %v12012_v58  ;;  %v7372_v34 = vpop.f32.mrb[188].mxu0 }
 0x5ee   :  { %v12061_v51 = vadd.f32 %v7372_v34, %v12018_v54  ;;  %v4947_v17 = vpop.f32.mrb[189].mxu0 }
 0x5ef   :  { %v12064_v55 = vadd.f32 %v4947_v17, %v12015_v15  ;;  %v4878_v60 = vadd.f32 %v7009_v24, %v4733_v37 }
 0x5f0   :  { %v5050_v5 = vmul.f32 %v12061_v51, %v12061_v51 }
 0x5f1   :  { %v5049_v26 = vmul.f32 %v12064_v55, %v12064_v55  ;;  %v7375_v28 = vpop.f32.mrb[190].mxu0  ;;  %v5028_v54 = vadd.f32 %v12061_v51, %v12064_v55 }
 0x5f2   :  { %v12071_v8 = vadd.f32 %v7375_v28, %v12024_v39  ;;  %v4957_v58 = vpop.f32.mrb[191].mxu0 }
 0x5f3   :  { %v12076_v40 = vadd.f32 %v4957_v58, %v12021_v31  ;;  %v5065_v15 = vadd.f32 %v5050_v5, %v5049_v26 }
 0x5f4   :  { %v5052_v39 = vmul.f32 %v12071_v8, %v12071_v8 }
 0x5f5   :  { %v5029_v25 = vadd.f32 %v5028_v54, %v12076_v40  ;;  %v5051_v46 = vmul.f32 %v12076_v40, %v12076_v40  ;;  %v7378_v7 = vpop.f32.mrb[192].mxu0 }
 0x5f6   :  { %v12082_v50 = vadd.f32 %v7378_v7, %v12030_v49  ;;  %v4967_v56 = vpop.f32.mrb[193].mxu0 }
 0x5f7   :  { %v5066_v38 = vadd.f32 %v5065_v15, %v5051_v46  ;;  %v12087_v30 = vadd.f32 %v4967_v56, %v12027_v18  ;;  %v5030_v31 = vadd.f32 %v5029_v25, %v12071_v8 }
 0x5f8   :  { %v5054_v17 = vmul.f32 %v12082_v50, %v12082_v50 }
 0x5f9   :  { %v5031_v52 = vadd.f32 %v5030_v31, %v12087_v30  ;;  %v5053_v19 = vmul.f32 %v12087_v30, %v12087_v30  ;;  %v5067_v24 = vadd.f32 %v5066_v38, %v5052_v39  ;;  %v7381_v37 = vpop.f32.mrb[194].mxu0 }
 0x5fa   :  { %v12094_v49 = vadd.f32 %v7381_v37, %v12036_v59  ;;  %v4977_v34 = vpop.f32.mrb[195].mxu0 }
 0x5fb   :  { %v5068_v5 = vadd.f32 %v5067_v24, %v5053_v19  ;;  %v12099_v18 = vadd.f32 %v4977_v34, %v12033_v4  ;;  %v5032_v26 = vadd.f32 %v5031_v52, %v12082_v50 }
 0x5fc   :  { %v5056_v46 = vmul.f32 %v12094_v49, %v12094_v49 }
 0x5fd   :  { %v5033_v28 = vadd.f32 %v5032_v26, %v12099_v18  ;;  %v5055_v58 = vmul.f32 %v12099_v18, %v12099_v18  ;;  %v5069_v54 = vadd.f32 %v5068_v5, %v5054_v17  ;;  %v7384_v15 = vpop.f32.mrb[196].mxu0 }
 0x5fe   :  { %v12106_v59 = vadd.f32 %v7384_v15, %v12042_v22  ;;  %v4987_v25 = vpop.f32.mrb[197].mxu0 }
 0x5ff   :  { %v5070_v7 = vadd.f32 %v5069_v54, %v5055_v58  ;;  %v12111_v4 = vadd.f32 %v4987_v25, %v12039_v20  ;;  %v5034_v56 = vadd.f32 %v5033_v28, %v12094_v49 }
 0x600   :  { %v5058_v24 = vmul.f32 %v12106_v59, %v12106_v59 }
 0x601   :  { %v5035_v39 = vadd.f32 %v5034_v56, %v12111_v4  ;;  %v5057_v38 = vmul.f32 %v12111_v4, %v12111_v4  ;;  %v5071_v31 = vadd.f32 %v5070_v7, %v5056_v46  ;;  %v7387_v52 = vpop.f32.mrb[198].mxu0 }
 0x602   :  { %v12118_v22 = vadd.f32 %v7387_v52, %v12048_v41  ;;  %v4997_v19 = vpop.f32.mrb[199].mxu0 }
 0x603   :  { %v5072_v37 = vadd.f32 %v5071_v31, %v5057_v38  ;;  %v12123_v20 = vadd.f32 %v4997_v19, %v12045_v33  ;;  %v5036_v34 = vadd.f32 %v5035_v39, %v12106_v59 }
 0x604   :  { %v5060_v54 = vmul.f32 %v12118_v22, %v12118_v22 }
 0x605   :  { %v5037_v17 = vadd.f32 %v5036_v34, %v12123_v20  ;;  %v5059_v5 = vmul.f32 %v12123_v20, %v12123_v20  ;;  %v5073_v26 = vadd.f32 %v5072_v37, %v5058_v24  ;;  %v7390_v28 = vpop.f32.mrb[200].mxu0 }
 0x606   :  { %v12130_v41 = vadd.f32 %v7390_v28, %v12054_v2  ;;  %v5007_v58 = vpop.f32.mrb[201].mxu0 }
 0x607   :  { %v5074_v15 = vadd.f32 %v5073_v26, %v5059_v5  ;;  %v12135_v33 = vadd.f32 %v5007_v58, %v12051_v63  ;;  %v5038_v25 = vadd.f32 %v5037_v17, %v12118_v22 }
 0x608   :  { %v5062_v31 = vmul.f32 %v12130_v41, %v12130_v41 }
 0x609   :  { %v5039_v46 = vadd.f32 %v5038_v25, %v12135_v33  ;;  %v5061_v7 = vmul.f32 %v12135_v33, %v12135_v33  ;;  %v5075_v56 = vadd.f32 %v5074_v15, %v5060_v54  ;;  %v7393_v39 = vpop.f32.mrb[202].mxu0 }
 0x60a   :  { %v12141_v38 = vadd.f32 %v7393_v39, %v4878_v60  ;;  %v5017_v2 = vpop.f32.mrb[203].mxu0 }
 0x60b   :  { %v5076_v52 = vadd.f32 %v5075_v56, %v5061_v7  ;;  %v12146_v19 = vadd.f32 %v5017_v2, %v12057_v42  ;;  %v5040_v63 = vadd.f32 %v5039_v46, %v12130_v41 }
 0x60c   :  { %v5064_v60 = vmul.f32 %v12141_v38, %v12141_v38 }
 0x60d   :  { %v5041_v24 = vadd.f32 %v5040_v63, %v12146_v19  ;;  %v5063_v37 = vmul.f32 %v12146_v19, %v12146_v19  ;;  %v5077_v34 = vadd.f32 %v5076_v52, %v5062_v31  ;;  %v13387_v63 = vld [vmem:[#allocation25_spill] sm:$0xff]  ;;  %v13406_v31 = vld [vmem:[#allocation38_spill] sm:$0xff] }
 0x60f   :  { %v5042_v17 = vadd.f32 %v5041_v24, %v12141_v38  ;;  %v5078_v5 = vadd.f32 %v5077_v34, %v5063_v37  ;;  %v187_v24 = vsub.s32 %v13387_v63, %v13364_v57 }
 0x611   :  { %v5043_v26 = vrot.slane %v5042_v17, 4  ;;  %v5079_v28 = vadd.f32 %v5078_v5, %v5064_v60 }
 0x613   :  { %v5044_v58 = vadd.f32 %v5043_v26, %v5042_v17  ;;  %v5080_v54 = vrot.slane %v5079_v28, 4 }
 0x615   :  { %v5045_v42 = vrot.slane %v5044_v58, 2  ;;  %v5081_v15 = vadd.f32 %v5080_v54, %v5079_v28  ;;  %v13396_v54 = vld [vmem:[#allocation30_spill] sm:$0xff] }
 0x617   :  { %v5046_v25 = vadd.f32 %v5045_v42, %v5044_v58  ;;  %v5082_v46 = vrot.slane %v5081_v15, 2  ;;  %v188_v42 = vsub.s32 %v13396_v54, %v13365_v3  ;;  %v13428_v58 = vmov 0 }
 0x619   :  { %v5047_v7 = vrot.slane %v5046_v25, 1  ;;  %v5083_v56 = vadd.f32 %v5082_v46, %v5081_v15 }
 0x61b   :  { %v5048_v39 = vadd.f32 %v5047_v7, %v5046_v25  ;;  %v5084_v2 = vrot.slane %v5083_v56, 1  ;;  %v13397_v25 = vld [vmem:[#allocation32_spill] sm:$0xff] }
 0x61c   :  { %v189_v46 = vsub.s32 %v13397_v25, %v13366_v44  ;;  %v13441_v25 = vmov 0 }
 0x61d   :  { %7427 = vmatmul.mubr.f32.vlgmr.msra.gmra.mrb[204].mxu0 %v5048_v39  ;;  %v5085_v52 = vadd.f32 %v5084_v2, %v5083_v56  ;;  %v13458_v39 = vld [vmem:[#allocation83_spill] sm:$0xff] }
 0x61e   :  { %8585 = vmatpush3.bf16.xpose.msk.msra.mxu0 %vm12157_vm14, %v11863_v45  ;;  %7496 = vmatprep.mubr.msk.f32.mxu0 %vm8871_vm0, %v13352_v62  ;;  %v199_v2 = vsub.s32 %v13458_v39, %v13376_v36 }
 0x61f   :  { %7462 = vmatmul.mubr.f32.vlgmr.msra.gmra.mrb[220].mxu1 %v5085_v52  ;;  %8586 = vmatprep.subr.bf16.mxu0 %v13322_v32  ;;  %v190_v52 = vsub.s32 %v13406_v31, %v13367_v16 }
 0x620   :  { %8617 = vmatpush3.bf16.xpose.msk.msra.mxu1 %vm12157_vm14, %v11863_v45  ;;  %7531 = vmatprep.mubr.msk.f32.mxu1 %vm8871_vm0, %v13352_v62  ;;  %v12228_v62 = vand.u32 7, %v11851_v13  ;;  %v13379_v45 = vld [vmem:[#allocation17_spill] sm:$0xff] }
 0x621   :  { %8618 = vmatprep.subr.bf16.mxu1 %v13322_v32 }
 0x622   :  { %vm217_vm0 = vcmp.eq.s32.totalorder %v13361_v35, %v12228_v62  ;;  %vm218_vm15 = vcmp.eq.s32.totalorder %v13362_v48, %v12228_v62  ;;  %vm12970_vm7 = vcmp.lt.s32.totalorder %v12228_v62, 4 }
 0x626   :  { %8589 = vmatpush3.bf16.xpose.msk.msra.mxu0 %vm12157_vm14, %v11880_v29 }
 0x627   :  { %8590 = vmatprep.subr.bf16.mxu0 %v13322_v32 }
 0x628   :  { %8621 = vmatpush3.bf16.xpose.msk.msra.mxu1 %vm12157_vm14, %v11880_v29  ;;  %v184_v29 = vsub.s32 %v13379_v45, %v13361_v35 }
 0x629   :  { %8622 = vmatprep.subr.bf16.mxu1 %v13322_v32 }
 0x62e   :  { %8593 = vmatpush3.bf16.xpose.msk.msra.mxu0 %vm12157_vm14, %v11899_v61 }
 0x62f   :  { %8594 = vmatprep.subr.bf16.mxu0 %v13322_v32 }
 0x630   :  { %8625 = vmatpush3.bf16.xpose.msk.msra.mxu1 %vm12157_vm14, %v11899_v61  ;;  %v13380_v61 = vld [vmem:[#allocation24_spill] sm:$0xff] }
 0x631   :  { %8626 = vmatprep.subr.bf16.mxu1 %v13322_v32 }
 0x636   :  { %8597 = vmatpush3.bf16.xpose.msk.msra.mxu0 %vm12157_vm14, %v11917_v12 }
 0x637   :  { %8598 = vmatprep.subr.bf16.mxu0 %v13322_v32 }
 0x638   :  { %8629 = vmatpush3.bf16.xpose.msk.msra.mxu1 %vm12157_vm14, %v11917_v12  ;;  %v185_v12 = vsub.s32 %v13380_v61, %v13362_v48 }
 0x639   :  { %8630 = vmatprep.subr.bf16.mxu1 %v13322_v32 }
 0x63e   :  { %8601 = vmatpush3.bf16.xpose.msk.msra.mxu0 %vm12157_vm14, %v11935_v14 }
 0x63f   :  { %8602 = vmatprep.subr.bf16.mxu0 %v13322_v32 }
 0x640   :  { %8633 = vmatpush3.bf16.xpose.msk.msra.mxu1 %vm12157_vm14, %v11935_v14  ;;  %v12241_v14 = vadd.s32 4, %v12228_v62 }
 0x641   :  { %8634 = vmatprep.subr.bf16.mxu1 %v13322_v32 }
 0x642   :  { %vm234_vm2 = vcmp.eq.s32.totalorder %v13361_v35, %v12241_v14  ;;  %vm235_vm3 = vcmp.eq.s32.totalorder %v13362_v48, %v12241_v14  ;;  %v13385_v48 = vmov 1.0|1.0  }
 0x643   :  { %vm250_vm5 = vmor %vm217_vm0, %vm234_vm2  ;;  %vm236_vm0 = vcmp.eq.s32.totalorder %v13363_v0, %v12241_v14 }
 0x644   :  { %vm251_vm6 = vmor %vm218_vm15, %vm235_vm3  ;;  %vm220_vm15 = vcmp.eq.s32.totalorder %v13364_v57, %v12228_v62 }
 0x646   :  { %8605 = vmatpush3.bf16.xpose.msk.msra.mxu0 %vm12157_vm14, %v11953_v53 }
 0x647   :  { %8606 = vmatprep.subr.bf16.mxu0 %v13322_v32 }
 0x648   :  { %8637 = vmatpush3.bf16.xpose.msk.msra.mxu1 %vm12157_vm14, %v11953_v53  ;;  %v13386_v53 = vld [vmem:[#allocation80_spill] sm:$0xff] }
 0x649   :  { %8638 = vmatprep.subr.bf16.mxu1 %v13322_v32 }
 0x64e   :  { %8609 = vmatpush3.bf16.xpose.msk.msra.mxu0 %vm12157_vm14, %v11984_v43 }
 0x64f   :  { %8610 = vmatprep.subr.bf16.mxu0 %v13322_v32 }
 0x650   :  { %8641 = vmatpush3.bf16.xpose.msk.msra.mxu1 %vm12157_vm14, %v11984_v43  ;;  %v186_v43 = vsub.s32 %v13386_v53, %v13363_v0 }
 0x651   :  { %8642 = vmatprep.subr.bf16.mxu1 %v13322_v32  ;;  %v12236_v32 = vsub.s32 %v11851_v13, %v12228_v62  ;;  %v13381_v13 = vmov 0 }
 0x653   :  { %vm201_vm1 = vcmp.eq.s32.totalorder %v184_v29, %v12236_v32  ;;  %vm202_vm4 = vcmp.eq.s32.totalorder %v185_v12, %v12236_v32  ;;  %vm12291_vm2 = vcmp.eq.s32.totalorder %v186_v43, %v12236_v32  ;;  %v13409_v29 = vld [vmem:[#allocation90_spill] sm:$0xff]  ;;  %v13410_v12 = vmov 0 }
 0x654   :  { %vm266_vm8 = vmand %vm201_vm1, %vm250_vm5  ;;  %vm237_vm1 = vcmp.eq.s32.totalorder %v13364_v57, %v12241_v14  ;;  %v191_v61 = vsub.s32 %v13409_v29, %v13368_v10 }
 0x655   :  { %vm267_vm9 = vmand %vm202_vm4, %vm251_vm6  ;;  %vm12300_vm4 = vcmp.eq.s32.totalorder %v187_v24, %v12236_v32  ;;  %vm221_vm6 = vcmp.eq.s32.totalorder %v13365_v3, %v12228_v62  ;;  %v5026_v24 = vld [vmem:[%s12675_s5] sm:$0x1] }
 0x656   :  { %8613 = vmatpush3.bf16.xpose.msk.msra.mxu0 %vm12157_vm14, %v11993_v6  ;;  %vm12254_vm10 = vmand %vm266_vm8, %vm12970_vm7  ;;  %vm238_vm8 = vcmp.eq.s32.totalorder %v13365_v3, %v12241_v14  ;;  %vm12394_vm13 = vcmp.eq.s32.totalorder %v191_v61, %v12236_v32  ;;  %v13457_v3 = vld [vmem:[#allocation59_spill] sm:$0xff] }
 0x657   :  { %v13382_v13 = vsel %vm12254_vm10, 4294967295, %v13381_v13  ;;  %vm12260_vm11 = vmand %vm267_vm9, %vm12970_vm7 }
 0x658   :  { %8645 = vmatpush3.bf16.xpose.msk.msra.mxu1 %vm12157_vm14, %v11993_v6  ;;  %vm12961_vm12 = vmpackc.low %vm12260_vm11, %vm12254_vm10  ;;  %vm219_vm14 = vcmp.eq.s32.totalorder %v13363_v0, %v12228_v62  ;;  %v5027_v0 = vld [vmem:[%s12675_s5 + $0x1] sm:$0x1] }
 0x659   :  { %8647 = vmatprep.subr.msk.bf16.mxu0 %vm12961_vm12, %v13385_v48  ;;  %vm12295_vm3 = vmor %vm219_vm14, %vm236_vm0  ;;  %vm222_vm0 = vcmp.eq.s32.totalorder %v13366_v44, %v12228_v62 }
 0x65a   :  { %vm12304_vm5 = vmor %vm220_vm15, %vm237_vm1  ;;  %vm239_vm15 = vcmp.eq.s32.totalorder %v13366_v44, %v12241_v14  ;;  %vm12329_vm1 = vcmp.eq.s32.totalorder %v188_v42, %v12236_v32 }
 0x65b   :  { %vm268_vm9 = vmand %vm12291_vm2, %vm12295_vm3 }
 0x65c   :  { %vm269_vm14 = vmand %vm12300_vm4, %vm12304_vm5  ;;  %vm12340_vm4 = vcmp.eq.s32.totalorder %v189_v46, %v12236_v32  ;;  %v13456_v46 = vld [vmem:[#allocation56_spill] sm:$0xff] }
 0x65d   :  { %vm254_vm2 = vmor %vm221_vm6, %vm238_vm8 }
 0x65e   :  { %vm12335_vm3 = vmand %vm268_vm9, %vm12970_vm7  ;;  %vm223_vm9 = vcmp.eq.s32.totalorder %v13367_v16, %v12228_v62 }
 0x65f   :  { %vm12344_vm5 = vmor %vm222_vm0, %vm239_vm15  ;;  %vm240_vm0 = vcmp.eq.s32.totalorder %v13367_v16, %v12241_v14 }
 0x660   :  { %vm270_vm6 = vmand %vm12329_vm1, %vm254_vm2  ;;  %vm224_vm1 = vcmp.eq.s32.totalorder %v13368_v10, %v12228_v62  ;;  %vm241_vm2 = vcmp.eq.s32.totalorder %v13368_v10, %v12241_v14 }
 0x661   :  { %vm12354_vm8 = vmand %vm269_vm14, %vm12970_vm7 }
 0x662   :  { %vm271_vm15 = vmand %vm12340_vm4, %vm12344_vm5  ;;  %vm12383_vm5 = vcmp.eq.s32.totalorder %v190_v52, %v12236_v32 }
 0x663   :  { %vm12370_vm14 = vmand %vm270_vm6, %vm12970_vm7 }
 0x664   :  { %v13411_v12 = vsel %vm12370_vm14, 4294967295, %v13410_v12  ;;  %vm256_vm6 = vmor %vm223_vm9, %vm240_vm0  ;;  %vm225_vm0 = vcmp.eq.s32.totalorder %v13369_v23, %v12228_v62 }
 0x665   :  { %vm12389_vm12 = vmand %vm271_vm15, %vm12970_vm7  ;;  %vm242_vm15 = vcmp.eq.s32.totalorder %v13369_v23, %v12241_v14 }
 0x666   :  { %vm12398_vm10 = vmor %vm224_vm1, %vm241_vm2 }
 0x667   :  { %vm272_vm4 = vmand %vm12383_vm5, %vm256_vm6  ;;  %vm226_vm5 = vcmp.eq.s32.totalorder %v13370_v1, %v12228_v62  ;;  %vm243_vm6 = vcmp.eq.s32.totalorder %v13370_v1, %v12241_v14 }
 0x668   :  { %vm273_vm1 = vmand %vm12394_vm13, %vm12398_vm10 }
 0x669   :  { %vm12425_vm2 = vmand %vm272_vm4, %vm12970_vm7  ;;  %vm13430_vm4 = vcmask 64512  }
 0x66a   :  { %vm12438_vm13 = vmor %vm225_vm0, %vm242_vm15  ;;  %vm13435_vm15 = vnez %v13382_v13  ;;  %v13439_v13 = vld [vmem:[#allocation44_spill] sm:$0xff] }
 0x66b   :  { %vm12447_vm10 = vmand %vm273_vm1, %vm12970_vm7  ;;  %v195_v35 = vsub.s32 %v13439_v13, %v13372_v21  ;;  %v5621_v13 = vld [vmem:[%s12670_s0 + $0x30] sm:$0xff] }
 0x66c   :  { %v13429_v58 = vsel %vm12447_vm10, 4294967295, %v13428_v58  ;;  %vm12458_vm0 = vmor %vm226_vm5, %vm243_vm6  ;;  %vm244_vm6 = vcmp.eq.s32.totalorder %v13371_v11, %v12241_v14 }
 0x66d   :  { %vm13436_vm1 = vmpackc.low %vm12260_vm11, %vm13435_vm15  ;;  %vm228_vm15 = vcmp.eq.s32.totalorder %v13372_v21, %v12228_v62 }
 0x66e   :  { %vm13438_vm5 = vmpackc.low %vm12354_vm8, %vm12335_vm3 }
 0x6f0   :  { %v5152_v6 = vpop.f32.mrb[204].mxu0 }
 0x6f1   :  { %v12282_v37 = vmul.f32 0.001953125, %v5152_v6  ;;  %v7428_v34 = vpop.f32.mrb[205].mxu0  ;;  %v13420_v6 = vld [vmem:[#allocation96_spill] sm:$0xff] }
 0x6f2   :  { %v5222_v60 = vpop.f32.mrb[220].mxu1  ;;  %v192_v63 = vsub.s32 %v13420_v6, %v13369_v23  ;;  %v13421_v34 = vld [vmem:[#allocation100_spill] sm:$0xff] }
 0x6f3   :  { %v5228_v17 = vmul.f32 %v12282_v37, %v12282_v37  ;;  %v5227_v5 = vmul.f32 0.001953125, %v5222_v60  ;;  %v7463_v26 = vpop.f32.mrb[221].mxu1  ;;  %v193_v60 = vsub.s32 %v13421_v34, %v13370_v1 }
 0x6f4   :  { %vm12434_vm9 = vcmp.eq.s32.totalorder %v192_v63, %v12236_v32 }
 0x6f5   :  { %v5229_v15 = vsub.f32 %v5227_v5, %v5228_v17  ;;  %v13422_v5 = vmov 0  ;;  %vm12454_vm14 = vcmp.eq.s32.totalorder %v193_v60, %v12236_v32 }
 0x6f6   :  { %v13423_v5 = vsel %vm12425_vm2, 4294967295, %v13422_v5 }
 0x6f7   :  { %v5230_v7 = vmax.f32 %v5229_v15, 0.0 }
 0x6f9   :  { %v5231_v56 = vadd.f32 1e-05, %v5230_v7  ;;  %v197_v7 = vsub.s32 %v13456_v46, %v13374_v9 }
 0x6fb   :  { %8787 = vrsqrt.f32 %v5231_v56  ;;  %v198_v56 = vsub.s32 %v13457_v3, %v13375_v27 }
 0x705   :  { %v8788_v17 = vpop.eup %8787 }
 0x706   :  { %v5233_v23 = vmul.f32 %v8788_v17, %v5026_v24  ;;  %v5617_v17 = vld [vmem:[%s12670_s0 + $0x10] sm:$0xff] }
 0x708   :  { %7497 = vmatmul.mubr.msk.f32.vlgmr.msra.gmra.mrb[206].mxu0 %vm13430_vm4, %v5233_v23  ;;  %v5234_v1 = vmul.f32 %v5233_v23, %v12282_v37  ;;  %vm274_vm4 = vmand %vm12434_vm9, %vm12438_vm13  ;;  %v13437_v37 = vld [vmem:[#allocation35_spill] sm:$0xff]  ;;  %vm227_vm9 = vcmp.eq.s32.totalorder %v13371_v11, %v12228_v62 }
 0x709   :  { %8649 = vmatpush3.bf16.msk.msra.mxu0 %vm13436_vm1, %v13385_v48  ;;  %v194_v42 = vsub.s32 %v13437_v37, %v13371_v11  ;;  %vm275_vm13 = vmand %vm12454_vm14, %vm12458_vm0  ;;  %vm245_vm1 = vcmp.eq.s32.totalorder %v13372_v21, %v12241_v14  ;;  %v13455_v11 = vld [vmem:[#allocation49_spill] sm:$0xff] }
 0x70a   :  { %v5235_v15 = vsub.f32 %v5027_v0, %v5234_v1  ;;  %8651 = vmatprep.subr.msk.bf16.mxu0 %vm13438_vm5, %v13385_v48  ;;  %vm13440_vm5 = vcmask 64512   ;;  %vm12501_vm11 = vmand %vm274_vm4, %vm12970_vm7  ;;  %vm212_vm4 = vcmp.eq.s32.totalorder %v195_v35, %v12236_v32  ;;  %v196_v21 = vsub.s32 %v13455_v11, %v13373_v47  ;;  %v5619_v0 = vld [vmem:[%s12670_s0 + $0x20] sm:$0xff]  ;;  %v5618_v1 = vld [vmem:[%s12670_s0 + $0x18] sm:$0xff] }
 0x70b   :  { %v13442_v25 = vsel %vm12501_vm11, 4294967295, %v13441_v25  ;;  %vm13443_vm14 = vmpackc.low %vm12354_vm8, %vm12335_vm3  ;;  %vm211_vm0 = vcmp.eq.s32.totalorder %v194_v42, %v12236_v32  ;;  %vm13446_vm11 = vcmp.lt.s32.totalorder %v12228_v62, 4 }
 0x70c   :  { %7532 = vmatmul.mubr.msk.f32.vlgmr.msra.gmra.mrb[222].mxu1 %vm13440_vm5, %v5235_v15  ;;  %vm260_vm2 = vmor %vm227_vm9, %vm244_vm6  ;;  %vm13444_vm5 = vnez %v13411_v12 }
 0x70d   :  { %8653 = vmatpush3.bf16.msk.msra.mxu0 %vm13443_vm14, %v13385_v48  ;;  %vm13445_vm10 = vmpackc.low %vm12389_vm12, %vm13444_vm5  ;;  %vm13448_vm14 = vnez %v13429_v58 }
 0x70e   :  { %8655 = vmatprep.subr.msk.bf16.mxu0 %vm13445_vm10, %v13385_v48  ;;  %vm261_vm7 = vmor %vm228_vm15, %vm245_vm1  ;;  %vm13451_vm15 = vnez %v13442_v25  ;;  %v5620_v25 = vld [vmem:[%s12670_s0 + $0x28] sm:$0xff] }
 0x70f   :  { %vm292_vm3 = vmand %vm275_vm13, %vm13446_vm11 }
 0x710   :  { %vm276_vm8 = vmand %vm211_vm0, %vm260_vm2  ;;  %vm13452_vm2 = vcmp.lt.s32.totalorder %v12228_v62, 4 }
 0x711   :  { %vm13447_vm9 = vmmov %vm13445_vm10  ;;  %vm13449_vm10 = vnez %v13423_v5 }
 0x712   :  { %8657 = vmatpush3.bf16.msk.msra.mxu0 %vm13447_vm9, %v13385_v48  ;;  %vm277_vm6 = vmand %vm212_vm4, %vm261_vm7  ;;  %vm229_vm4 = vcmp.eq.s32.totalorder %v13373_v47, %v12228_v62  ;;  %vm247_vm9 = vcmp.eq.s32.totalorder %v13374_v9, %v12241_v14 }
 0x713   :  { %vm13450_vm1 = vmpackc.low %vm13448_vm14, %vm13449_vm10  ;;  %vm214_vm14 = vcmp.eq.s32.totalorder %v197_v7, %v12236_v32 }
 0x714   :  { %8659 = vmatprep.subr.msk.bf16.mxu0 %vm13450_vm1, %v13385_v48  ;;  %vm8662_vm11 = vmpackc.low %vm292_vm3, %vm13451_vm15  ;;  %vm230_vm3 = vcmp.eq.s32.totalorder %v13374_v9, %v12228_v62  ;;  %v13462_v9 = vld [vmem:[#allocation18_spill] sm:$0xff] }
 0x715   :  { %vm293_vm13 = vmand %vm276_vm8, %vm13452_vm2  ;;  %vm246_vm8 = vcmp.eq.s32.totalorder %v13373_v47, %v12241_v14 }
 0x716   :  { %vm13453_vm0 = vmmov %vm13452_vm2 }
 0x717   :  { %vm294_vm5 = vmand %vm277_vm6, %vm13453_vm0  ;;  %vm213_vm6 = vcmp.eq.s32.totalorder %v196_v21, %v12236_v32 }
 0x718   :  { %vm13454_vm7 = vmmov %vm13450_vm1 }
 0x719   :  { %8661 = vmatpush3.bf16.msk.msra.mxu0 %vm13454_vm7, %v13385_v48  ;;  %vm8666_vm12 = vmpackc.low %vm294_vm5, %vm293_vm13  ;;  %vm248_vm5 = vcmp.eq.s32.totalorder %v13375_v27, %v12241_v14 }
 0x71a   :  { %8663 = vmatprep.subr.msk.bf16.mxu0 %vm8662_vm11, %v13385_v48  ;;  %vm262_vm10 = vmor %vm229_vm4, %vm246_vm8  ;;  %vm232_vm4 = vcmp.eq.s32.totalorder %v13376_v36, %v12228_v62 }
 0x71b   :  { %vm263_vm1 = vmor %vm230_vm3, %vm247_vm9  ;;  %vm249_vm3 = vcmp.eq.s32.totalorder %v13376_v36, %v12241_v14  ;;  %vm215_vm9 = vcmp.eq.s32.totalorder %v198_v56, %v12236_v32  ;;  %v5623_v56 = vld [vmem:[%s12670_s0 + $0x40] sm:$0xff] }
 0x71c   :  { %vm278_vm15 = vmand %vm213_vm6, %vm262_vm10  ;;  %vm216_vm6 = vcmp.eq.s32.totalorder %v199_v2, %v12236_v32  ;;  %v5622_v2 = vld [vmem:[%s12670_s0 + $0x38] sm:$0xff] }
 0x71d   :  { %8665 = vmatpush3.bf16.msk.msra.mxu0 %vm8662_vm11, %v13385_v48  ;;  %vm279_vm11 = vmand %vm214_vm14, %vm263_vm1 }
 0x71e   :  { %8667 = vmatprep.subr.msk.bf16.mxu0 %vm8666_vm12, %v13385_v48  ;;  %vm13459_vm2 = vmmov %vm13453_vm0  ;;  %vm231_vm0 = vcmp.eq.s32.totalorder %v13375_v27, %v12228_v62 }
 0x71f   :  { %vm295_vm13 = vmand %vm278_vm15, %vm13459_vm2 }
 0x720   :  { %vm13460_vm7 = vmmov %vm13459_vm2 }
 0x721   :  { %8669 = vmatpush3.bf16.msk.msra.mxu0 %vm8666_vm12, %v13385_v48  ;;  %vm296_vm12 = vmand %vm279_vm11, %vm13460_vm7 }
 0x722   :  { %vm8670_vm8 = vmpackc.low %vm296_vm12, %vm295_vm13 }
 0x723   :  { %8671 = vmatprep.subr.msk.bf16.mxu0 %vm8670_vm8, %v13385_v48  ;;  %vm264_vm14 = vmor %vm231_vm0, %vm248_vm5 }
 0x724   :  { %vm265_vm10 = vmor %vm232_vm4, %vm249_vm3 }
 0x725   :  { %8673 = vmatpush3.bf16.msk.msra.mxu0 %vm8670_vm8, %v13385_v48  ;;  %vm280_vm1 = vmand %vm215_vm9, %vm264_vm14 }
 0x726   :  { %vm281_vm15 = vmand %vm216_vm6, %vm265_vm10 }
 0x727   :  { %vm13461_vm11 = vmmov %vm13459_vm2 }
 0x728   :  { %vm297_vm2 = vmand %vm280_vm1, %vm13461_vm11 }
 0x729   :  { %vm298_vm12 = vmand %vm281_vm15, %vm13460_vm7 }
 0x72a   :  { %vm8674_vm13 = vmpackc.low %vm298_vm12, %vm297_vm2 }
 0x72b   :  { %8675 = vmatprep.subr.msk.bf16.mxu0 %vm8674_vm13, %v13385_v48 }
 0x72c   :  { %8677 = vmatpush3.bf16.msk.msra.mxu0 %vm8674_vm13, %v13385_v48 }
 0x7db   :  { %v5354_v47 = vpop.f32.mrb[206].mxu0 }
 0x7dc   :  { %v5434_v27 = vrot.slane %v5354_v47, %v13462_v9  ;;  %v7498_v36 = vpop.f32.mrb[207].mxu0 }
 0x7de   :  { %v5435_v32 = vmul.f32 %v5434_v27, %v12064_v55  ;;  %v5436_v14 = vmul.f32 %v5434_v27, %v12061_v51  ;;  %v5437_v44 = vmul.f32 %v5434_v27, %v12076_v40  ;;  %v5438_v31 = vmul.f32 %v5434_v27, %v12071_v8 }
 0x7df   :  { %v5427_v52 = vpop.f32.mrb[222].mxu1  ;;  %v5439_v62 = vmul.f32 %v5434_v27, %v12087_v30  ;;  %v5440_v45 = vmul.f32 %v5434_v27, %v12082_v50  ;;  %v5441_v29 = vmul.f32 %v5434_v27, %v12099_v18  ;;  %v5442_v48 = vmul.f32 %v5434_v27, %v12094_v49 }
 0x7e0   :  { %v5454_v61 = vrot.slane %v5427_v52, %v13462_v9  ;;  %v7533_v12 = vpop.f32.mrb[223].mxu1  ;;  %v5443_v55 = vmul.f32 %v5434_v27, %v12111_v4  ;;  %v5444_v51 = vmul.f32 %v5434_v27, %v12106_v59  ;;  %v5445_v40 = vmul.f32 %v5434_v27, %v12123_v20 }
 0x7e1   :  { %v5446_v8 = vmul.f32 %v5434_v27, %v12118_v22  ;;  %v5447_v16 = vmul.f32 %v5434_v27, %v12135_v33  ;;  %v5448_v30 = vmul.f32 %v5434_v27, %v12130_v41  ;;  %v5449_v50 = vmul.f32 %v5434_v27, %v12146_v19 }
 0x7e2   :  { %v5455_v18 = vadd.f32 %v5454_v61, %v5435_v32  ;;  %v5456_v53 = vadd.f32 %v5454_v61, %v5436_v14  ;;  %v5457_v49 = vadd.f32 %v5454_v61, %v5437_v44  ;;  %v5458_v10 = vadd.f32 %v5454_v61, %v5438_v31  ;;  %v5625_v14 = vld [vmem:[%s12670_s0 + $0x50] sm:$0xff]  ;;  %v5624_v31 = vld [vmem:[%s12670_s0 + $0x48] sm:$0xff] }
 0x7e3   :  { %v5459_v43 = vadd.f32 %v5454_v61, %v5439_v62  ;;  %v5460_v6 = vadd.f32 %v5454_v61, %v5440_v45  ;;  %v5461_v63 = vadd.f32 %v5454_v61, %v5441_v29  ;;  %v5462_v4 = vadd.f32 %v5454_v61, %v5442_v48 }
 0x7e4   :  { %7566 = vmatprep.mubr.f32.mxu0 %v5455_v18  ;;  %v5463_v59 = vadd.f32 %v5454_v61, %v5443_v55  ;;  %v5464_v24 = vadd.f32 %v5454_v61, %v5444_v51  ;;  %v5465_v20 = vadd.f32 %v5454_v61, %v5445_v40  ;;  %v5466_v34 = vadd.f32 %v5454_v61, %v5446_v8  ;;  %v5626_v55 = vld [vmem:[%s12670_s0 + $0x58] sm:$0xff] }
 0x7e5   :  { %7567 = vmatmul.mubr.f32.vlgmr.msra.gmra.mrb[208].mxu0 %v5456_v53  ;;  %v5467_v22 = vadd.f32 %v5454_v61, %v5447_v16  ;;  %v5468_v33 = vadd.f32 %v5454_v61, %v5448_v30  ;;  %v5469_v60 = vadd.f32 %v5454_v61, %v5449_v50  ;;  %v5450_v41 = vmul.f32 %v5434_v27, %v12141_v38  ;;  %v5616_v38 = vld [vmem:[%s12670_s0 + $0x8] sm:$0xff]  ;;  %v5629_v50 = vld [vmem:[%s12670_s0 + $0x70] sm:$0xff] }
 0x7e6   :  { %7569 = vmatprep.mubr.f32.mxu0 %v5457_v49  ;;  %v5628_v53 = vld [vmem:[%s12670_s0 + $0x68] sm:$0xff] }
 0x7e7   :  { %v5470_v19 = vadd.f32 %v5454_v61, %v5450_v41  ;;  %v5627_v61 = vld [vmem:[%s12670_s0 + $0x60] sm:$0xff] }
 0x7e9   :  { %7570 = vmatmul.mubr.f32.gmra.mrb[210].mxu0 %v5458_v10 }
 0x7ea   :  { %7572 = vmatprep.mubr.f32.mxu0 %v5459_v43 }
 0x7ed   :  { %7573 = vmatmul.mubr.f32.gmra.mrb[212].mxu0 %v5460_v6 }
 0x7ee   :  { %7575 = vmatprep.mubr.f32.mxu0 %v5461_v63 }
 0x7f1   :  { %7576 = vmatmul.mubr.f32.gmra.mrb[214].mxu0 %v5462_v4  ;;  %v5631_v4 = vld [vmem:[%s12670_s0 + $0x80] sm:$0xff] }
 0x7f2   :  { %7578 = vmatprep.mubr.f32.mxu0 %v5463_v59 }
 0x7f5   :  { %7579 = vmatmul.mubr.f32.gmra.mrb[216].mxu0 %v5464_v24  ;;  %v5630_v24 = vld [vmem:[%s12670_s0 + $0x78] sm:$0xff] }
 0x7f6   :  { %7581 = vmatprep.mubr.f32.mxu0 %v5465_v20 }
 0x7f9   :  { %7582 = vmatmul.mubr.f32.gmra.mrb[218].mxu0 %v5466_v34 }
 0x7fa   :  { %7584 = vmatprep.mubr.f32.mxu0 %v5467_v22 }
 0x7fd   :  { %7585 = vmatmul.mubr.f32.gmra.mrb[220].mxu0 %v5468_v33 }
 0x7fe   :  { %7587 = vmatprep.mubr.f32.mxu0 %v5469_v60 }
 0x801   :  { %7588 = vmatmul.mubr.f32.gmra.mrb[222].mxu0 %v5470_v19 }
 0x8b8   :  { %v7568_v5 = vpop.f32.mrb[208].mxu0 }
 0x8b9   :  { %v5633_v23 = vadd.f32 %v7568_v5, %v5617_v17  ;;  %v5537_v26 = vpop.f32.mrb[209].mxu0 }
 0x8ba   :  { %v5632_v28 = vadd.f32 %v5616_v38, %v5537_v26 }
 0x8bb   :  { %v5649_v58 = vmax.f32 %v5633_v23, 0.0 }
 0x8bc   :  { %v5648_v57 = vmax.f32 %v5632_v28, 0.0  ;;  %v7571_v54 = vpop.f32.mrb[210].mxu0 }
 0x8bd   :  { %5665 = vst [vmem:[#allocation8 + $0x8] sm:$0xff] %v5649_v58  ;;  %v5635_v37 = vadd.f32 %v7571_v54, %v5619_v0  ;;  %v5547_v42 = vpop.f32.mrb[211].mxu0 }
 0x8be   :  { %5664 = vst [vmem:[#allocation8] sm:$0xff] %v5648_v57  ;;  %v5634_v15 = vadd.f32 %v5618_v1, %v5547_v42 }
 0x8bf   :  { %v5651_v35 = vmax.f32 %v5635_v37, 0.0 }
 0x8c0   :  { %v5650_v11 = vmax.f32 %v5634_v15, 0.0  ;;  %v7574_v21 = vpop.f32.mrb[212].mxu0 }
 0x8c1   :  { %5667 = vst [vmem:[#allocation8 + $0x18] sm:$0xff] %v5651_v35  ;;  %v5637_v46 = vadd.f32 %v7574_v21, %v5621_v13  ;;  %v5557_v7 = vpop.f32.mrb[213].mxu0 }
 0x8c2   :  { %5666 = vst [vmem:[#allocation8 + $0x10] sm:$0xff] %v5650_v11  ;;  %v5636_v3 = vadd.f32 %v5620_v25, %v5557_v7 }
 0x8c3   :  { %v5653_v39 = vmax.f32 %v5637_v46, 0.0 }
 0x8c4   :  { %v5652_v47 = vmax.f32 %v5636_v3, 0.0  ;;  %v7577_v9 = vpop.f32.mrb[214].mxu0 }
 0x8c5   :  { %5669 = vst [vmem:[#allocation8 + $0x28] sm:$0xff] %v5653_v39  ;;  %v5639_v27 = vadd.f32 %v7577_v9, %v5623_v56  ;;  %v5567_v36 = vpop.f32.mrb[215].mxu0 }
 0x8c6   :  { %5668 = vst [vmem:[#allocation8 + $0x20] sm:$0xff] %v5652_v47  ;;  %v5638_v32 = vadd.f32 %v5622_v2, %v5567_v36 }
 0x8c7   :  { %v5655_v44 = vmax.f32 %v5639_v27, 0.0 }
 0x8c8   :  { %v5654_v52 = vmax.f32 %v5638_v32, 0.0  ;;  %v7580_v62 = vpop.f32.mrb[216].mxu0 }
 0x8c9   :  { %5671 = vst [vmem:[#allocation8 + $0x38] sm:$0xff] %v5655_v44  ;;  %v5641_v45 = vadd.f32 %v7580_v62, %v5625_v14  ;;  %v5577_v29 = vpop.f32.mrb[217].mxu0 }
 0x8ca   :  { %5670 = vst [vmem:[#allocation8 + $0x30] sm:$0xff] %v5654_v52  ;;  %v5640_v48 = vadd.f32 %v5624_v31, %v5577_v29 }
 0x8cb   :  { %v5657_v12 = vmax.f32 %v5641_v45, 0.0 }
 0x8cc   :  { %v5656_v51 = vmax.f32 %v5640_v48, 0.0  ;;  %v7583_v40 = vpop.f32.mrb[218].mxu0 }
 0x8cd   :  { %5673 = vst [vmem:[#allocation8 + $0x48] sm:$0xff] %v5657_v12  ;;  %v5643_v8 = vadd.f32 %v7583_v40, %v5627_v61  ;;  %v5587_v16 = vpop.f32.mrb[219].mxu0 }
 0x8ce   :  { %5672 = vst [vmem:[#allocation8 + $0x40] sm:$0xff] %v5656_v51  ;;  %v5642_v30 = vadd.f32 %v5626_v55, %v5587_v16 }
 0x8cf   :  { %v5659_v18 = vmax.f32 %v5643_v8, 0.0 }
 0x8d0   :  { %v5658_v49 = vmax.f32 %v5642_v30, 0.0  ;;  %v7586_v10 = vpop.f32.mrb[220].mxu0 }
 0x8d1   :  { %5675 = vst [vmem:[#allocation8 + $0x58] sm:$0xff] %v5659_v18  ;;  %v5645_v43 = vadd.f32 %v7586_v10, %v5629_v50  ;;  %v5597_v6 = vpop.f32.mrb[221].mxu0 }
 0x8d2   :  { %5674 = vst [vmem:[#allocation8 + $0x50] sm:$0xff] %v5658_v49  ;;  %v5644_v63 = vadd.f32 %v5628_v53, %v5597_v6 }
 0x8d3   :  { %v5661_v59 = vmax.f32 %v5645_v43, 0.0 }
 0x8d4   :  { %v5660_v20 = vmax.f32 %v5644_v63, 0.0  ;;  %v7589_v34 = vpop.f32.mrb[222].mxu0 }
 0x8d5   :  { %5677 = vst [vmem:[#allocation8 + $0x68] sm:$0xff] %v5661_v59  ;;  %v5647_v22 = vadd.f32 %v7589_v34, %v5631_v4  ;;  %v5607_v33 = vpop.f32.mrb[223].mxu0 }
 0x8d6   :  { %5676 = vst [vmem:[#allocation8 + $0x60] sm:$0xff] %v5660_v20  ;;  %v5646_v60 = vadd.f32 %v5630_v24, %v5607_v33 }
 0x8d7   :  { %v5663_v41 = vmax.f32 %v5647_v22, 0.0 }
 0x8d8   :  { %v5662_v19 = vmax.f32 %v5646_v60, 0.0 }
 0x8d9   :  { %5679 = vst [vmem:[#allocation8 + $0x78] sm:$0xff] %v5663_v41 }
 0x8da   :  { %5678 = vst [vmem:[#allocation8 + $0x70] sm:$0xff] %v5662_v19 }
 0x8db   :  { %8846 = shalt.err (!%p8843_p6)
}
 0x8dc   :  { %s8847_s22 = scalar_lea.hbm %s12676_s6, 2048 }
 0x8dd   :  { %p8848_p7 = scmp.ne.s32.totalorder %s12676_s6, %s8847_s22  ;;  %p8851_p8 = scmp.lt.u32.totalorder %s8847_s22, %s12676_s6 }
 0x8df   :  { %p8853_p9 = pnand %p8851_p8, %p8848_p7 }
 0x8e1   :  { %8856 = shalt.err (!%p8853_p9)
}
 0x8e2   :  { %5691 = dma.vmem_to_hbm [thread:$0]  %s5686_s18, 2048, %s12676_s6, [#allocation5], %s8867_s1, %s8867_s1, %s8868_s21  }
 0x8e3   :  { %8861 = dma.done.wait [#allocation5], 2048  }
 0x8e4   :  { %8862 = vsyncadd [#allocation5], 4294965248 }
 0x8e5   :  { %5695 = vsyncpa [#allocation4], 1 }
 0x8e6   :  { %5696 = vsyncpa [#allocation7], 1 }
 0x8e7   :  { %5697 = vsyncpa [#allocation5], 1 }

</bundles_post_ra>
